<compile_context>
chip_gen: v6e
topology: v6e:2x2x1
jax: 0.10.0
libtpu: 0.0.40
codegen_flags: <defaults>
</compile_context>

<pallas_src>
import functools

import jax
import jax.numpy as jnp
import numpy as np
from jax.experimental import pallas as pl
from jax.experimental.pallas import tpu as pltpu

EPS = 1e-5
S = 16            # padded spatial grid side (14x14 image + conv pad -> 16)
R = S * S         # rows per image in the flat grid (256)
C1_IN = 8         # conv1 input-channel lane pad (real: 1)
C_PAD = 16        # conv1/conv2 output-channel pad (real: 10)
N_PAD = 8         # linear output pad (real: 5)
XG_PAD = 48       # tail rows so shifted flat reads (offset <= 2*16+2 = 34) stay in bounds
Y1_PAD = 24       # tail rows for the pool's shifted reads (offset <= 17)
P2_PAD = 48       # tail rows for conv2's shifted reads


def _tree_sum(xs):
    """Balanced-tree accumulation (short dependence chain on the VPU)."""
    xs = list(xs)
    while len(xs) > 1:
        nxt = [xs[i] + xs[i + 1] for i in range(0, len(xs) - 1, 2)]
        if len(xs) % 2:
            nxt.append(xs[-1])
        xs = nxt
    return xs[0]


# ---------------- fused per-image Pallas kernel ----------------

def _net_kernel(x_ref, w1_ref, t1_ref, w2_ref, t2_ref, wl_ref, bl_ref, o_ref,
                xg, y1s, ms, p2s, y2s):
    # ---- stage 0: build the zero-padded 16x16 input grid in VMEM ----
    # x_ref block is (1, 196, 1): rows = y*14 + x of this image, pixel in lane 0.
    xg[...] = jnp.zeros_like(xg)
    for y in range(14):
        row = x_ref[0, pl.ds(y * 14, 14), :]                       # (14, 1)
        xg[pl.ds((y + 1) * S + 1, 14), :] = jnp.broadcast_to(row, (14, C1_IN))

    # ---- stage 1: conv1 (3x3, pad 1) + folded BN1 + ReLU ----
    # 9 shifted (256,8)@(8,16) matmuls; only weight row 0 is non-zero.
    parts = []
    for t in range(9):
        dy, dx = divmod(t, 3)
        xs = xg[pl.ds(dy * S + dx, R), :]                          # (256, 8)
        parts.append(jnp.dot(xs, w1_ref[t], preferred_element_type=jnp.float32))
    y1s[pl.ds(0, R), :] = jnp.maximum(_tree_sum(parts) + t1_ref[...], 0.0)

    # ---- stage 2: 2x2 stride-2 max-pool ----
    # Full-width candidate maxima with 3 sublane-shifted reads, then 7 strided
    # row copies scatter the pooled 7x7 map into the zero-padded conv2 grid.
    m01 = jnp.maximum(y1s[pl.ds(0, R), :], y1s[pl.ds(1, R), :])
    m23 = jnp.maximum(y1s[pl.ds(S, R), :], y1s[pl.ds(S + 1, R), :])
    ms[...] = jnp.maximum(m01, m23)                                # (256, 16)
    p2s[...] = jnp.zeros_like(p2s)
    for ho in range(7):
        p2s[pl.ds((ho + 1) * S + 1, 7), :] = ms[pl.ds(2 * ho * S, 7, 2), :]

    # ---- stage 3: conv2 (3x3, pad 1) + folded BN2 + ReLU ----
    parts = []
    for t in range(9):
        dy, dx = divmod(t, 3)
        ps = p2s[pl.ds(dy * S + dx, R), :]                         # (256, 16)
        parts.append(jnp.dot(ps, w2_ref[t], preferred_element_type=jnp.float32))
    y2s[...] = jnp.maximum(_tree_sum(parts) + t2_ref[...], 0.0)    # (256, 16)

    # ---- stage 4: linear(490 -> 5): per-spatial-position (1,16)@(16,8) dots ----
    parts = [bl_ref[...]]
    for h in range(7):
        for w in range(7):
            row = y2s[pl.ds(h * S + w, 1), :]                      # (1, 16)
            parts.append(jnp.dot(row, wl_ref[h * 7 + w],
                                 preferred_element_type=jnp.float32))
    o_ref[0] = _tree_sum(parts)                                    # (1, 8)


# ---------------- one-time parameter folding (NumPy, outside the jit path) ----------------

def prepare_params(params):
    p = {k: np.asarray(v, np.float32) for k, v in params.items()}

    s1 = p["g1"] / np.sqrt(p["v1"] + EPS)
    t1 = (p["b1"] - p["m1"]) * s1 + p["be1"]
    s2 = p["g2"] / np.sqrt(p["v2"] + EPS)
    t2 = (p["b2"] - p["m2"]) * s2 + p["be2"]

    w1r = np.transpose(p["w1"] * s1[:, None, None, None],
                       (2, 3, 1, 0)).reshape(9, 1, 10)             # [tap, ci, co]
    w1t = np.zeros((9, C1_IN, C_PAD), np.float32)
    w1t[:, :1, :10] = w1r
    w2r = np.transpose(p["w2"] * s2[:, None, None, None],
                       (2, 3, 1, 0)).reshape(9, 10, 10)
    w2t = np.zeros((9, C_PAD, C_PAD), np.float32)
    w2t[:, :10, :10] = w2r
    t1p = np.zeros((1, C_PAD), np.float32)
    t1p[0, :10] = t1
    t2p = np.zeros((1, C_PAD), np.float32)
    t2p[0, :10] = t2

    # Linear weight permuted to per-spatial-position blocks [h*7+w, c, n]
    # (matches PyTorch's NCHW flatten index c*49 + h*7 + w).
    wlr = np.transpose(p["wl"].reshape(5, 10, 7, 7),
                       (2, 3, 1, 0)).reshape(49, 10, 5)
    wlt = np.zeros((49, C_PAD, N_PAD), np.float32)
    wlt[:, :10, :5] = wlr
    blp = np.zeros((1, N_PAD), np.float32)
    blp[0, :5] = p["bl"]

    return {k: jnp.asarray(v) for k, v in
            dict(w1=w1t, t1=t1p, w2=w2t, t2=t2p, wl=wlt, bl=blp).items()}


# ---------------- jitted forward: one pallas_call, nothing else ----------------

def _forward_impl(xr, w1t, t1p, w2t, t2p, wlt, blp):
    B = xr.shape[0]
    return pl.pallas_call(
        _net_kernel,
        out_shape=jax.ShapeDtypeStruct((B, 1, N_PAD), jnp.float32),
        grid_spec=pltpu.PrefetchScalarGridSpec(
            num_scalar_prefetch=0,
            grid=(B,),
            in_specs=[
                pl.BlockSpec((1, 196, 1), lambda b: (b, 0, 0)),          # image b
                pl.BlockSpec((9, C1_IN, C_PAD), lambda b: (0, 0, 0)),    # conv1 w (folded)
                pl.BlockSpec((1, C_PAD), lambda b: (0, 0)),              # conv1 shift
                pl.BlockSpec((9, C_PAD, C_PAD), lambda b: (0, 0, 0)),    # conv2 w (folded)
                pl.BlockSpec((1, C_PAD), lambda b: (0, 0)),              # conv2 shift
                pl.BlockSpec((49, C_PAD, N_PAD), lambda b: (0, 0, 0)),   # linear w
                pl.BlockSpec((1, N_PAD), lambda b: (0, 0)),              # linear bias
            ],
            out_specs=pl.BlockSpec((1, 1, N_PAD), lambda b: (b, 0, 0)),
            scratch_shapes=[
                pltpu.VMEM((R + XG_PAD, C1_IN), jnp.float32),   # padded input grid
                pltpu.VMEM((R + Y1_PAD, C_PAD), jnp.float32),   # conv1 output
                pltpu.VMEM((R, C_PAD), jnp.float32),            # 2x2 candidate maxima
                pltpu.VMEM((R + P2_PAD, C_PAD), jnp.float32),   # padded conv2 input
                pltpu.VMEM((R, C_PAD), jnp.float32),            # conv2 output
            ],
        ),
        compiler_params=pltpu.CompilerParams(
            dimension_semantics=("parallel",)),
    )(xr, w1t, t1p, w2t, t2p, wlt, blp)


@jax.jit
def net_forward(x_nchw, folded):
    B = x_nchw.shape[0]
    xr = x_nchw.reshape(B, 14 * 14, 1)      # pure reshape, no data rearrangement
    out = _forward_impl(xr, folded["w1"], folded["t1"], folded["w2"],
                        folded["t2"], folded["wl"], folded["bl"])
    return out[:, 0, :5]


# ---------------- pure-JAX reference (for self-check) ----------------

def reference_forward(x_nchw, params):
    def conv(x, w, b):
        y = jax.lax.conv_general_dilated(
            x, w, (1, 1), ((1, 1), (1, 1)),
            dimension_numbers=("NCHW", "OIHW", "NCHW"),
            precision=jax.lax.Precision.HIGHEST)
        return y + b[None, :, None, None]

    def bn(x, g, be, m, v):
        return (x - m[None, :, None, None]) / jnp.sqrt(v[None, :, None, None] + EPS) \
            * g[None, :, None, None] + be[None, :, None, None]

    y = jax.nn.relu(bn(conv(x_nchw, params["w1"], params["b1"]),
                       params["g1"], params["be1"], params["m1"], params["v1"]))
    y = jax.lax.reduce_window(y, -jnp.inf, jax.lax.max,
                              (1, 1, 2, 2), (1, 1, 2, 2), "VALID")
    y = jax.nn.relu(bn(conv(y, params["w2"], params["b2"]),
                       params["g2"], params["be2"], params["m2"], params["v2"]))
    f = y.reshape(y.shape[0], -1)
    return f @ params["wl"].T + params["bl"]


# ---------------- main ----------------

if __name__ == "__main__":
    key = jax.random.PRNGKey(0)
    ks = jax.random.split(key, 16)

    params = {
        "w1": 0.2 * jax.random.normal(ks[0], (10, 1, 3, 3), jnp.float32),
        "b1": 0.1 * jax.random.normal(ks[1], (10,), jnp.float32),
        "g1": 1.0 + 0.1 * jax.random.normal(ks[2], (10,), jnp.float32),
        "be1": 0.1 * jax.random.normal(ks[3], (10,), jnp.float32),
        "m1": 0.1 * jax.random.normal(ks[4], (10,), jnp.float32),
        "v1": jax.random.uniform(ks[5], (10,), jnp.float32, 0.5, 1.5),
        "w2": 0.1 * jax.random.normal(ks[6], (10, 10, 3, 3), jnp.float32),
        "b2": 0.1 * jax.random.normal(ks[7], (10,), jnp.float32),
        "g2": 1.0 + 0.1 * jax.random.normal(ks[8], (10,), jnp.float32),
        "be2": 0.1 * jax.random.normal(ks[9], (10,), jnp.float32),
        "m2": 0.1 * jax.random.normal(ks[10], (10,), jnp.float32),
        "v2": jax.random.uniform(ks[11], (10,), jnp.float32, 0.5, 1.5),
        "wl": 0.05 * jax.random.normal(ks[12], (5, 10 * 7 * 7), jnp.float32),
        "bl": 0.05 * jax.random.normal(ks[13], (5,), jnp.float32),
    }

    # One-time parameter folding (hoisted out of the per-call path).
    folded = prepare_params(params)

    # Input: batch=2, channels=1, spatial=14x14 (so flatten gives 10*7*7 = 490).
    x = jax.random.normal(ks[14], (2, 1, 14, 14), jnp.float32)

    out = net_forward(x, folded)
    out = jax.block_until_ready(out)
    assert out.shape == (2, 5) and out.dtype == jnp.float32

    ref = jax.block_until_ready(reference_forward(x, params))
    np.testing.assert_allclose(np.asarray(out), np.asarray(ref),
                               rtol=1e-2, atol=1e-2)

    print("KERNEL_OK")
</pallas_src>

<mosaic_0001>
module attributes {stable_mosaic.version = 11 : i64} {
  func.func @_net_kernel(%arg0: i32, %arg1: memref<1x196x1xf32, #tpu.memory_space<vmem>>, %arg2: memref<9x8x16xf32, #tpu.memory_space<vmem>>, %arg3: memref<1x16xf32, #tpu.memory_space<vmem>>, %arg4: memref<9x16x16xf32, #tpu.memory_space<vmem>>, %arg5: memref<1x16xf32, #tpu.memory_space<vmem>>, %arg6: memref<49x16x8xf32, #tpu.memory_space<vmem>>, %arg7: memref<1x8xf32, #tpu.memory_space<vmem>>, %arg8: memref<1x1x8xf32, #tpu.memory_space<vmem>>, %arg9: memref<304x8xf32, #tpu.memory_space<vmem>>, %arg10: memref<280x16xf32, #tpu.memory_space<vmem>>, %arg11: memref<256x16xf32, #tpu.memory_space<vmem>>, %arg12: memref<304x16xf32, #tpu.memory_space<vmem>>, %arg13: memref<256x16xf32, #tpu.memory_space<vmem>>) attributes {dimension_semantics = [#tpu.dimension_semantics<parallel>], iteration_bounds = array<i64: 2>, scalar_prefetch = 0 : i64, scratch_operands = 5 : i64, tpu.core_type = #tpu.core_type<tc>, window_params = [{transform_indices = @transform_0, window_bounds = array<i64: 1, 196, 1>}, {pipeline_mode = #tpu.pipeline_mode<synchronous>, transform_indices = @transform_1, window_bounds = array<i64: 9, 8, 16>}, {pipeline_mode = #tpu.pipeline_mode<synchronous>, transform_indices = @transform_2, window_bounds = array<i64: 1, 16>}, {pipeline_mode = #tpu.pipeline_mode<synchronous>, transform_indices = @transform_3, window_bounds = array<i64: 9, 16, 16>}, {pipeline_mode = #tpu.pipeline_mode<synchronous>, transform_indices = @transform_4, window_bounds = array<i64: 1, 16>}, {pipeline_mode = #tpu.pipeline_mode<synchronous>, transform_indices = @transform_5, window_bounds = array<i64: 49, 16, 8>}, {pipeline_mode = #tpu.pipeline_mode<synchronous>, transform_indices = @transform_6, window_bounds = array<i64: 1, 8>}, {transform_indices = @transform_7, window_bounds = array<i64: 1, 1, 8>}]} {
    %cst = arith.constant 0.000000e+00 : f32
    %0 = vector.broadcast %cst : f32 to vector<304x8xf32>
    %c0 = arith.constant 0 : index
    %c0_0 = arith.constant 0 : index
    %1 = vector.load %arg9[%c0, %c0_0] : memref<304x8xf32, #tpu.memory_space<vmem>>, vector<304x8xf32>
    tpu.vector_store %arg9[%c0, %c0_0], %0 {strides = array<i32>} : memref<304x8xf32, #tpu.memory_space<vmem>>, vector<304x8xf32>,
    %c0_1 = arith.constant 0 : index
    %c0_2 = arith.constant 0 : index
    %c0_3 = arith.constant 0 : index
    %2 = vector.load %arg1[%c0_1, %c0_2, %c0_3] : memref<1x196x1xf32, #tpu.memory_space<vmem>>, vector<1x14x1xf32>
    %3 = vector.shape_cast %2 : vector<1x14x1xf32> to vector<14x1xf32>
    %4 = vector.shape_cast %3 : vector<14x1xf32> to vector<14x1xf32>
    %5 = vector.broadcast %4 : vector<14x1xf32> to vector<14x8xf32>
    %c17 = arith.constant 17 : index
    %c0_4 = arith.constant 0 : index
    %6 = vector.load %arg9[%c17, %c0_4] : memref<304x8xf32, #tpu.memory_space<vmem>>, vector<14x8xf32>
    tpu.vector_store %arg9[%c17, %c0_4], %5 {strides = array<i32>} : memref<304x8xf32, #tpu.memory_space<vmem>>, vector<14x8xf32>,
    %c0_5 = arith.constant 0 : index
    %c14 = arith.constant 14 : index
    %c0_6 = arith.constant 0 : index
    %7 = vector.load %arg1[%c0_5, %c14, %c0_6] : memref<1x196x1xf32, #tpu.memory_space<vmem>>, vector<1x14x1xf32>
    %8 = vector.shape_cast %7 : vector<1x14x1xf32> to vector<14x1xf32>
    %9 = vector.shape_cast %8 : vector<14x1xf32> to vector<14x1xf32>
    %10 = vector.broadcast %9 : vector<14x1xf32> to vector<14x8xf32>
    %c33 = arith.constant 33 : index
    %c0_7 = arith.constant 0 : index
    %11 = vector.load %arg9[%c33, %c0_7] : memref<304x8xf32, #tpu.memory_space<vmem>>, vector<14x8xf32>
    tpu.vector_store %arg9[%c33, %c0_7], %10 {strides = array<i32>} : memref<304x8xf32, #tpu.memory_space<vmem>>, vector<14x8xf32>,
    %c0_8 = arith.constant 0 : index
    %c28 = arith.constant 28 : index
    %c0_9 = arith.constant 0 : index
    %12 = vector.load %arg1[%c0_8, %c28, %c0_9] : memref<1x196x1xf32, #tpu.memory_space<vmem>>, vector<1x14x1xf32>
    %13 = vector.shape_cast %12 : vector<1x14x1xf32> to vector<14x1xf32>
    %14 = vector.shape_cast %13 : vector<14x1xf32> to vector<14x1xf32>
    %15 = vector.broadcast %14 : vector<14x1xf32> to vector<14x8xf32>
    %c49 = arith.constant 49 : index
    %c0_10 = arith.constant 0 : index
    %16 = vector.load %arg9[%c49, %c0_10] : memref<304x8xf32, #tpu.memory_space<vmem>>, vector<14x8xf32>
    tpu.vector_store %arg9[%c49, %c0_10], %15 {strides = array<i32>} : memref<304x8xf32, #tpu.memory_space<vmem>>, vector<14x8xf32>,
    %c0_11 = arith.constant 0 : index
    %c42 = arith.constant 42 : index
    %c0_12 = arith.constant 0 : index
    %17 = vector.load %arg1[%c0_11, %c42, %c0_12] : memref<1x196x1xf32, #tpu.memory_space<vmem>>, vector<1x14x1xf32>
    %18 = vector.shape_cast %17 : vector<1x14x1xf32> to vector<14x1xf32>
    %19 = vector.shape_cast %18 : vector<14x1xf32> to vector<14x1xf32>
    %20 = vector.broadcast %19 : vector<14x1xf32> to vector<14x8xf32>
    %c65 = arith.constant 65 : index
    %c0_13 = arith.constant 0 : index
    %21 = vector.load %arg9[%c65, %c0_13] : memref<304x8xf32, #tpu.memory_space<vmem>>, vector<14x8xf32>
    tpu.vector_store %arg9[%c65, %c0_13], %20 {strides = array<i32>} : memref<304x8xf32, #tpu.memory_space<vmem>>, vector<14x8xf32>,
    %c0_14 = arith.constant 0 : index
    %c56 = arith.constant 56 : index
    %c0_15 = arith.constant 0 : index
    %22 = vector.load %arg1[%c0_14, %c56, %c0_15] : memref<1x196x1xf32, #tpu.memory_space<vmem>>, vector<1x14x1xf32>
    %23 = vector.shape_cast %22 : vector<1x14x1xf32> to vector<14x1xf32>
    %24 = vector.shape_cast %23 : vector<14x1xf32> to vector<14x1xf32>
    %25 = vector.broadcast %24 : vector<14x1xf32> to vector<14x8xf32>
    %c81 = arith.constant 81 : index
    %c0_16 = arith.constant 0 : index
    %26 = vector.load %arg9[%c81, %c0_16] : memref<304x8xf32, #tpu.memory_space<vmem>>, vector<14x8xf32>
    tpu.vector_store %arg9[%c81, %c0_16], %25 {strides = array<i32>} : memref<304x8xf32, #tpu.memory_space<vmem>>, vector<14x8xf32>,
    %c0_17 = arith.constant 0 : index
    %c70 = arith.constant 70 : index
    %c0_18 = arith.constant 0 : index
    %27 = vector.load %arg1[%c0_17, %c70, %c0_18] : memref<1x196x1xf32, #tpu.memory_space<vmem>>, vector<1x14x1xf32>
    %28 = vector.shape_cast %27 : vector<1x14x1xf32> to vector<14x1xf32>
    %29 = vector.shape_cast %28 : vector<14x1xf32> to vector<14x1xf32>
    %30 = vector.broadcast %29 : vector<14x1xf32> to vector<14x8xf32>
    %c97 = arith.constant 97 : index
    %c0_19 = arith.constant 0 : index
    %31 = vector.load %arg9[%c97, %c0_19] : memref<304x8xf32, #tpu.memory_space<vmem>>, vector<14x8xf32>
    tpu.vector_store %arg9[%c97, %c0_19], %30 {strides = array<i32>} : memref<304x8xf32, #tpu.memory_space<vmem>>, vector<14x8xf32>,
    %c0_20 = arith.constant 0 : index
    %c84 = arith.constant 84 : index
    %c0_21 = arith.constant 0 : index
    %32 = vector.load %arg1[%c0_20, %c84, %c0_21] : memref<1x196x1xf32, #tpu.memory_space<vmem>>, vector<1x14x1xf32>
    %33 = vector.shape_cast %32 : vector<1x14x1xf32> to vector<14x1xf32>
    %34 = vector.shape_cast %33 : vector<14x1xf32> to vector<14x1xf32>
    %35 = vector.broadcast %34 : vector<14x1xf32> to vector<14x8xf32>
    %c113 = arith.constant 113 : index
    %c0_22 = arith.constant 0 : index
    %36 = vector.load %arg9[%c113, %c0_22] : memref<304x8xf32, #tpu.memory_space<vmem>>, vector<14x8xf32>
    tpu.vector_store %arg9[%c113, %c0_22], %35 {strides = array<i32>} : memref<304x8xf32, #tpu.memory_space<vmem>>, vector<14x8xf32>,
    %c0_23 = arith.constant 0 : index
    %c98 = arith.constant 98 : index
    %c0_24 = arith.constant 0 : index
    %37 = vector.load %arg1[%c0_23, %c98, %c0_24] : memref<1x196x1xf32, #tpu.memory_space<vmem>>, vector<1x14x1xf32>
    %38 = vector.shape_cast %37 : vector<1x14x1xf32> to vector<14x1xf32>
    %39 = vector.shape_cast %38 : vector<14x1xf32> to vector<14x1xf32>
    %40 = vector.broadcast %39 : vector<14x1xf32> to vector<14x8xf32>
    %c129 = arith.constant 129 : index
    %c0_25 = arith.constant 0 : index
    %41 = vector.load %arg9[%c129, %c0_25] : memref<304x8xf32, #tpu.memory_space<vmem>>, vector<14x8xf32>
    tpu.vector_store %arg9[%c129, %c0_25], %40 {strides = array<i32>} : memref<304x8xf32, #tpu.memory_space<vmem>>, vector<14x8xf32>,
    %c0_26 = arith.constant 0 : index
    %c112 = arith.constant 112 : index
    %c0_27 = arith.constant 0 : index
    %42 = vector.load %arg1[%c0_26, %c112, %c0_27] : memref<1x196x1xf32, #tpu.memory_space<vmem>>, vector<1x14x1xf32>
    %43 = vector.shape_cast %42 : vector<1x14x1xf32> to vector<14x1xf32>
    %44 = vector.shape_cast %43 : vector<14x1xf32> to vector<14x1xf32>
    %45 = vector.broadcast %44 : vector<14x1xf32> to vector<14x8xf32>
    %c145 = arith.constant 145 : index
    %c0_28 = arith.constant 0 : index
    %46 = vector.load %arg9[%c145, %c0_28] : memref<304x8xf32, #tpu.memory_space<vmem>>, vector<14x8xf32>
    tpu.vector_store %arg9[%c145, %c0_28], %45 {strides = array<i32>} : memref<304x8xf32, #tpu.memory_space<vmem>>, vector<14x8xf32>,
    %c0_29 = arith.constant 0 : index
    %c126 = arith.constant 126 : index
    %c0_30 = arith.constant 0 : index
    %47 = vector.load %arg1[%c0_29, %c126, %c0_30] : memref<1x196x1xf32, #tpu.memory_space<vmem>>, vector<1x14x1xf32>
    %48 = vector.shape_cast %47 : vector<1x14x1xf32> to vector<14x1xf32>
    %49 = vector.shape_cast %48 : vector<14x1xf32> to vector<14x1xf32>
    %50 = vector.broadcast %49 : vector<14x1xf32> to vector<14x8xf32>
    %c161 = arith.constant 161 : index
    %c0_31 = arith.constant 0 : index
    %51 = vector.load %arg9[%c161, %c0_31] : memref<304x8xf32, #tpu.memory_space<vmem>>, vector<14x8xf32>
    tpu.vector_store %arg9[%c161, %c0_31], %50 {strides = array<i32>} : memref<304x8xf32, #tpu.memory_space<vmem>>, vector<14x8xf32>,
    %c0_32 = arith.constant 0 : index
    %c140 = arith.constant 140 : index
    %c0_33 = arith.constant 0 : index
    %52 = vector.load %arg1[%c0_32, %c140, %c0_33] : memref<1x196x1xf32, #tpu.memory_space<vmem>>, vector<1x14x1xf32>
    %53 = vector.shape_cast %52 : vector<1x14x1xf32> to vector<14x1xf32>
    %54 = vector.shape_cast %53 : vector<14x1xf32> to vector<14x1xf32>
    %55 = vector.broadcast %54 : vector<14x1xf32> to vector<14x8xf32>
    %c177 = arith.constant 177 : index
    %c0_34 = arith.constant 0 : index
    %56 = vector.load %arg9[%c177, %c0_34] : memref<304x8xf32, #tpu.memory_space<vmem>>, vector<14x8xf32>
    tpu.vector_store %arg9[%c177, %c0_34], %55 {strides = array<i32>} : memref<304x8xf32, #tpu.memory_space<vmem>>, vector<14x8xf32>,
    %c0_35 = arith.constant 0 : index
    %c154 = arith.constant 154 : index
    %c0_36 = arith.constant 0 : index
    %57 = vector.load %arg1[%c0_35, %c154, %c0_36] : memref<1x196x1xf32, #tpu.memory_space<vmem>>, vector<1x14x1xf32>
    %58 = vector.shape_cast %57 : vector<1x14x1xf32> to vector<14x1xf32>
    %59 = vector.shape_cast %58 : vector<14x1xf32> to vector<14x1xf32>
    %60 = vector.broadcast %59 : vector<14x1xf32> to vector<14x8xf32>
    %c193 = arith.constant 193 : index
    %c0_37 = arith.constant 0 : index
    %61 = vector.load %arg9[%c193, %c0_37] : memref<304x8xf32, #tpu.memory_space<vmem>>, vector<14x8xf32>
    tpu.vector_store %arg9[%c193, %c0_37], %60 {strides = array<i32>} : memref<304x8xf32, #tpu.memory_space<vmem>>, vector<14x8xf32>,
    %c0_38 = arith.constant 0 : index
    %c168 = arith.constant 168 : index
    %c0_39 = arith.constant 0 : index
    %62 = vector.load %arg1[%c0_38, %c168, %c0_39] : memref<1x196x1xf32, #tpu.memory_space<vmem>>, vector<1x14x1xf32>
    %63 = vector.shape_cast %62 : vector<1x14x1xf32> to vector<14x1xf32>
    %64 = vector.shape_cast %63 : vector<14x1xf32> to vector<14x1xf32>
    %65 = vector.broadcast %64 : vector<14x1xf32> to vector<14x8xf32>
    %c209 = arith.constant 209 : index
    %c0_40 = arith.constant 0 : index
    %66 = vector.load %arg9[%c209, %c0_40] : memref<304x8xf32, #tpu.memory_space<vmem>>, vector<14x8xf32>
    tpu.vector_store %arg9[%c209, %c0_40], %65 {strides = array<i32>} : memref<304x8xf32, #tpu.memory_space<vmem>>, vector<14x8xf32>,
    %c0_41 = arith.constant 0 : index
    %c182 = arith.constant 182 : index
    %c0_42 = arith.constant 0 : index
    %67 = vector.load %arg1[%c0_41, %c182, %c0_42] : memref<1x196x1xf32, #tpu.memory_space<vmem>>, vector<1x14x1xf32>
    %68 = vector.shape_cast %67 : vector<1x14x1xf32> to vector<14x1xf32>
    %69 = vector.shape_cast %68 : vector<14x1xf32> to vector<14x1xf32>
    %70 = vector.broadcast %69 : vector<14x1xf32> to vector<14x8xf32>
    %c225 = arith.constant 225 : index
    %c0_43 = arith.constant 0 : index
    %71 = vector.load %arg9[%c225, %c0_43] : memref<304x8xf32, #tpu.memory_space<vmem>>, vector<14x8xf32>
    tpu.vector_store %arg9[%c225, %c0_43], %70 {strides = array<i32>} : memref<304x8xf32, #tpu.memory_space<vmem>>, vector<14x8xf32>,
    %c0_44 = arith.constant 0 : index
    %c0_45 = arith.constant 0 : index
    %72 = vector.load %arg9[%c0_44, %c0_45] : memref<304x8xf32, #tpu.memory_space<vmem>>, vector<256x8xf32>
    %c0_46 = arith.constant 0 : index
    %c0_47 = arith.constant 0 : index
    %c0_48 = arith.constant 0 : index
    %73 = vector.load %arg2[%c0_46, %c0_47, %c0_48] : memref<9x8x16xf32, #tpu.memory_space<vmem>>, vector<1x8x16xf32>
    %74 = vector.shape_cast %73 : vector<1x8x16xf32> to vector<8x16xf32>
    %cst_49 = arith.constant dense<0.000000e+00> : vector<256x16xf32>
    %75 = tpu.matmul %72, %74, %cst_49 {dimension_numbers = #tpu.dot_dimension_numbers<[1], [0], [0], [1], [0, 0, 1, 1], [], []>} : vector<256x8xf32>, vector<8x16xf32>, vector<256x16xf32> -> vector<256x16xf32>
    %c1 = arith.constant 1 : index
    %c0_50 = arith.constant 0 : index
    %76 = vector.load %arg9[%c1, %c0_50] : memref<304x8xf32, #tpu.memory_space<vmem>>, vector<256x8xf32>
    %c1_51 = arith.constant 1 : index
    %c0_52 = arith.constant 0 : index
    %c0_53 = arith.constant 0 : index
    %77 = vector.load %arg2[%c1_51, %c0_52, %c0_53] : memref<9x8x16xf32, #tpu.memory_space<vmem>>, vector<1x8x16xf32>
    %78 = vector.shape_cast %77 : vector<1x8x16xf32> to vector<8x16xf32>
    %cst_54 = arith.constant dense<0.000000e+00> : vector<256x16xf32>
    %79 = tpu.matmul %76, %78, %cst_54 {dimension_numbers = #tpu.dot_dimension_numbers<[1], [0], [0], [1], [0, 0, 1, 1], [], []>} : vector<256x8xf32>, vector<8x16xf32>, vector<256x16xf32> -> vector<256x16xf32>
    %c2 = arith.constant 2 : index
    %c0_55 = arith.constant 0 : index
    %80 = vector.load %arg9[%c2, %c0_55] : memref<304x8xf32, #tpu.memory_space<vmem>>, vector<256x8xf32>
    %c2_56 = arith.constant 2 : index
    %c0_57 = arith.constant 0 : index
    %c0_58 = arith.constant 0 : index
    %81 = vector.load %arg2[%c2_56, %c0_57, %c0_58] : memref<9x8x16xf32, #tpu.memory_space<vmem>>, vector<1x8x16xf32>
    %82 = vector.shape_cast %81 : vector<1x8x16xf32> to vector<8x16xf32>
    %cst_59 = arith.constant dense<0.000000e+00> : vector<256x16xf32>
    %83 = tpu.matmul %80, %82, %cst_59 {dimension_numbers = #tpu.dot_dimension_numbers<[1], [0], [0], [1], [0, 0, 1, 1], [], []>} : vector<256x8xf32>, vector<8x16xf32>, vector<256x16xf32> -> vector<256x16xf32>
    %c16 = arith.constant 16 : index
    %c0_60 = arith.constant 0 : index
    %84 = vector.load %arg9[%c16, %c0_60] : memref<304x8xf32, #tpu.memory_space<vmem>>, vector<256x8xf32>
    %c3 = arith.constant 3 : index
    %c0_61 = arith.constant 0 : index
    %c0_62 = arith.constant 0 : index
    %85 = vector.load %arg2[%c3, %c0_61, %c0_62] : memref<9x8x16xf32, #tpu.memory_space<vmem>>, vector<1x8x16xf32>
    %86 = vector.shape_cast %85 : vector<1x8x16xf32> to vector<8x16xf32>
    %cst_63 = arith.constant dense<0.000000e+00> : vector<256x16xf32>
    %87 = tpu.matmul %84, %86, %cst_63 {dimension_numbers = #tpu.dot_dimension_numbers<[1], [0], [0], [1], [0, 0, 1, 1], [], []>} : vector<256x8xf32>, vector<8x16xf32>, vector<256x16xf32> -> vector<256x16xf32>
    %c17_64 = arith.constant 17 : index
    %c0_65 = arith.constant 0 : index
    %88 = vector.load %arg9[%c17_64, %c0_65] : memref<304x8xf32, #tpu.memory_space<vmem>>, vector<256x8xf32>
    %c4 = arith.constant 4 : index
    %c0_66 = arith.constant 0 : index
    %c0_67 = arith.constant 0 : index
    %89 = vector.load %arg2[%c4, %c0_66, %c0_67] : memref<9x8x16xf32, #tpu.memory_space<vmem>>, vector<1x8x16xf32>
    %90 = vector.shape_cast %89 : vector<1x8x16xf32> to vector<8x16xf32>
    %cst_68 = arith.constant dense<0.000000e+00> : vector<256x16xf32>
    %91 = tpu.matmul %88, %90, %cst_68 {dimension_numbers = #tpu.dot_dimension_numbers<[1], [0], [0], [1], [0, 0, 1, 1], [], []>} : vector<256x8xf32>, vector<8x16xf32>, vector<256x16xf32> -> vector<256x16xf32>
    %c18 = arith.constant 18 : index
    %c0_69 = arith.constant 0 : index
    %92 = vector.load %arg9[%c18, %c0_69] : memref<304x8xf32, #tpu.memory_space<vmem>>, vector<256x8xf32>
    %c5 = arith.constant 5 : index
    %c0_70 = arith.constant 0 : index
    %c0_71 = arith.constant 0 : index
    %93 = vector.load %arg2[%c5, %c0_70, %c0_71] : memref<9x8x16xf32, #tpu.memory_space<vmem>>, vector<1x8x16xf32>
    %94 = vector.shape_cast %93 : vector<1x8x16xf32> to vector<8x16xf32>
    %cst_72 = arith.constant dense<0.000000e+00> : vector<256x16xf32>
    %95 = tpu.matmul %92, %94, %cst_72 {dimension_numbers = #tpu.dot_dimension_numbers<[1], [0], [0], [1], [0, 0, 1, 1], [], []>} : vector<256x8xf32>, vector<8x16xf32>, vector<256x16xf32> -> vector<256x16xf32>
    %c32 = arith.constant 32 : index
    %c0_73 = arith.constant 0 : index
    %96 = vector.load %arg9[%c32, %c0_73] : memref<304x8xf32, #tpu.memory_space<vmem>>, vector<256x8xf32>
    %c6 = arith.constant 6 : index
    %c0_74 = arith.constant 0 : index
    %c0_75 = arith.constant 0 : index
    %97 = vector.load %arg2[%c6, %c0_74, %c0_75] : memref<9x8x16xf32, #tpu.memory_space<vmem>>, vector<1x8x16xf32>
    %98 = vector.shape_cast %97 : vector<1x8x16xf32> to vector<8x16xf32>
    %cst_76 = arith.constant dense<0.000000e+00> : vector<256x16xf32>
    %99 = tpu.matmul %96, %98, %cst_76 {dimension_numbers = #tpu.dot_dimension_numbers<[1], [0], [0], [1], [0, 0, 1, 1], [], []>} : vector<256x8xf32>, vector<8x16xf32>, vector<256x16xf32> -> vector<256x16xf32>
    %c33_77 = arith.constant 33 : index
    %c0_78 = arith.constant 0 : index
    %100 = vector.load %arg9[%c33_77, %c0_78] : memref<304x8xf32, #tpu.memory_space<vmem>>, vector<256x8xf32>
    %c7 = arith.constant 7 : index
    %c0_79 = arith.constant 0 : index
    %c0_80 = arith.constant 0 : index
    %101 = vector.load %arg2[%c7, %c0_79, %c0_80] : memref<9x8x16xf32, #tpu.memory_space<vmem>>, vector<1x8x16xf32>
    %102 = vector.shape_cast %101 : vector<1x8x16xf32> to vector<8x16xf32>
    %cst_81 = arith.constant dense<0.000000e+00> : vector<256x16xf32>
    %103 = tpu.matmul %100, %102, %cst_81 {dimension_numbers = #tpu.dot_dimension_numbers<[1], [0], [0], [1], [0, 0, 1, 1], [], []>} : vector<256x8xf32>, vector<8x16xf32>, vector<256x16xf32> -> vector<256x16xf32>
    %c34 = arith.constant 34 : index
    %c0_82 = arith.constant 0 : index
    %104 = vector.load %arg9[%c34, %c0_82] : memref<304x8xf32, #tpu.memory_space<vmem>>, vector<256x8xf32>
    %c8 = arith.constant 8 : index
    %c0_83 = arith.constant 0 : index
    %c0_84 = arith.constant 0 : index
    %105 = vector.load %arg2[%c8, %c0_83, %c0_84] : memref<9x8x16xf32, #tpu.memory_space<vmem>>, vector<1x8x16xf32>
    %106 = vector.shape_cast %105 : vector<1x8x16xf32> to vector<8x16xf32>
    %cst_85 = arith.constant dense<0.000000e+00> : vector<256x16xf32>
    %107 = tpu.matmul %104, %106, %cst_85 {dimension_numbers = #tpu.dot_dimension_numbers<[1], [0], [0], [1], [0, 0, 1, 1], [], []>} : vector<256x8xf32>, vector<8x16xf32>, vector<256x16xf32> -> vector<256x16xf32>
    %108 = arith.addf %75, %79 : vector<256x16xf32>
    %109 = arith.addf %83, %87 : vector<256x16xf32>
    %110 = arith.addf %91, %95 : vector<256x16xf32>
    %111 = arith.addf %99, %103 : vector<256x16xf32>
    %112 = arith.addf %108, %109 : vector<256x16xf32>
    %113 = arith.addf %110, %111 : vector<256x16xf32>
    %114 = arith.addf %112, %113 : vector<256x16xf32>
    %115 = arith.addf %114, %107 : vector<256x16xf32>
    %c0_86 = arith.constant 0 : index
    %c0_87 = arith.constant 0 : index
    %116 = vector.load %arg3[%c0_86, %c0_87] : memref<1x16xf32, #tpu.memory_space<vmem>>, vector<1x16xf32>
    %117 = vector.broadcast %116 : vector<1x16xf32> to vector<256x16xf32>
    %118 = arith.addf %115, %117 : vector<256x16xf32>
    %cst_88 = arith.constant 0.000000e+00 : f32
    %119 = vector.broadcast %cst_88 : f32 to vector<256x16xf32>
    %120 = arith.maximumf %118, %119 : vector<256x16xf32>
    %c0_89 = arith.constant 0 : index
    %c0_90 = arith.constant 0 : index
    %121 = vector.load %arg10[%c0_89, %c0_90] : memref<280x16xf32, #tpu.memory_space<vmem>>, vector<256x16xf32>
    tpu.vector_store %arg10[%c0_89, %c0_90], %120 {strides = array<i32>} : memref<280x16xf32, #tpu.memory_space<vmem>>, vector<256x16xf32>,
    %c0_91 = arith.constant 0 : index
    %c0_92 = arith.constant 0 : index
    %122 = vector.load %arg10[%c0_91, %c0_92] : memref<280x16xf32, #tpu.memory_space<vmem>>, vector<256x16xf32>
    %c1_93 = arith.constant 1 : index
    %c0_94 = arith.constant 0 : index
    %123 = vector.load %arg10[%c1_93, %c0_94] : memref<280x16xf32, #tpu.memory_space<vmem>>, vector<256x16xf32>
    %124 = arith.maximumf %122, %123 : vector<256x16xf32>
    %c16_95 = arith.constant 16 : index
    %c0_96 = arith.constant 0 : index
    %125 = vector.load %arg10[%c16_95, %c0_96] : memref<280x16xf32, #tpu.memory_space<vmem>>, vector<256x16xf32>
    %c17_97 = arith.constant 17 : index
    %c0_98 = arith.constant 0 : index
    %126 = vector.load %arg10[%c17_97, %c0_98] : memref<280x16xf32, #tpu.memory_space<vmem>>, vector<256x16xf32>
    %127 = arith.maximumf %125, %126 : vector<256x16xf32>
    %128 = arith.maximumf %124, %127 : vector<256x16xf32>
    %c0_99 = arith.constant 0 : index
    %c0_100 = arith.constant 0 : index
    %129 = vector.load %arg11[%c0_99, %c0_100] : memref<256x16xf32, #tpu.memory_space<vmem>>, vector<256x16xf32>
    tpu.vector_store %arg11[%c0_99, %c0_100], %128 {strides = array<i32>} : memref<256x16xf32, #tpu.memory_space<vmem>>, vector<256x16xf32>,
    %cst_101 = arith.constant 0.000000e+00 : f32
    %130 = vector.broadcast %cst_101 : f32 to vector<304x16xf32>
    %c0_102 = arith.constant 0 : index
    %c0_103 = arith.constant 0 : index
    %131 = vector.load %arg12[%c0_102, %c0_103] : memref<304x16xf32, #tpu.memory_space<vmem>>, vector<304x16xf32>
    tpu.vector_store %arg12[%c0_102, %c0_103], %130 {strides = array<i32>} : memref<304x16xf32, #tpu.memory_space<vmem>>, vector<304x16xf32>,
    %c0_104 = arith.constant 0 : index
    %c0_105 = arith.constant 0 : index
    %132 = tpu.strided_load %arg11[%c0_104, %c0_105] {strides = array<i32: 2, 1>} : memref<256x16xf32, #tpu.memory_space<vmem>>, vector<7x16xf32>
    %c17_106 = arith.constant 17 : index
    %c0_107 = arith.constant 0 : index
    %133 = vector.load %arg12[%c17_106, %c0_107] : memref<304x16xf32, #tpu.memory_space<vmem>>, vector<7x16xf32>
    tpu.vector_store %arg12[%c17_106, %c0_107], %132 {strides = array<i32>} : memref<304x16xf32, #tpu.memory_space<vmem>>, vector<7x16xf32>,
    %c32_108 = arith.constant 32 : index
    %c0_109 = arith.constant 0 : index
    %134 = tpu.strided_load %arg11[%c32_108, %c0_109] {strides = array<i32: 2, 1>} : memref<256x16xf32, #tpu.memory_space<vmem>>, vector<7x16xf32>
    %c33_110 = arith.constant 33 : index
    %c0_111 = arith.constant 0 : index
    %135 = vector.load %arg12[%c33_110, %c0_111] : memref<304x16xf32, #tpu.memory_space<vmem>>, vector<7x16xf32>
    tpu.vector_store %arg12[%c33_110, %c0_111], %134 {strides = array<i32>} : memref<304x16xf32, #tpu.memory_space<vmem>>, vector<7x16xf32>,
    %c64 = arith.constant 64 : index
    %c0_112 = arith.constant 0 : index
    %136 = tpu.strided_load %arg11[%c64, %c0_112] {strides = array<i32: 2, 1>} : memref<256x16xf32, #tpu.memory_space<vmem>>, vector<7x16xf32>
    %c49_113 = arith.constant 49 : index
    %c0_114 = arith.constant 0 : index
    %137 = vector.load %arg12[%c49_113, %c0_114] : memref<304x16xf32, #tpu.memory_space<vmem>>, vector<7x16xf32>
    tpu.vector_store %arg12[%c49_113, %c0_114], %136 {strides = array<i32>} : memref<304x16xf32, #tpu.memory_space<vmem>>, vector<7x16xf32>,
    %c96 = arith.constant 96 : index
    %c0_115 = arith.constant 0 : index
    %138 = tpu.strided_load %arg11[%c96, %c0_115] {strides = array<i32: 2, 1>} : memref<256x16xf32, #tpu.memory_space<vmem>>, vector<7x16xf32>
    %c65_116 = arith.constant 65 : index
    %c0_117 = arith.constant 0 : index
    %139 = vector.load %arg12[%c65_116, %c0_117] : memref<304x16xf32, #tpu.memory_space<vmem>>, vector<7x16xf32>
    tpu.vector_store %arg12[%c65_116, %c0_117], %138 {strides = array<i32>} : memref<304x16xf32, #tpu.memory_space<vmem>>, vector<7x16xf32>,
    %c128 = arith.constant 128 : index
    %c0_118 = arith.constant 0 : index
    %140 = tpu.strided_load %arg11[%c128, %c0_118] {strides = array<i32: 2, 1>} : memref<256x16xf32, #tpu.memory_space<vmem>>, vector<7x16xf32>
    %c81_119 = arith.constant 81 : index
    %c0_120 = arith.constant 0 : index
    %141 = vector.load %arg12[%c81_119, %c0_120] : memref<304x16xf32, #tpu.memory_space<vmem>>, vector<7x16xf32>
    tpu.vector_store %arg12[%c81_119, %c0_120], %140 {strides = array<i32>} : memref<304x16xf32, #tpu.memory_space<vmem>>, vector<7x16xf32>,
    %c160 = arith.constant 160 : index
    %c0_121 = arith.constant 0 : index
    %142 = tpu.strided_load %arg11[%c160, %c0_121] {strides = array<i32: 2, 1>} : memref<256x16xf32, #tpu.memory_space<vmem>>, vector<7x16xf32>
    %c97_122 = arith.constant 97 : index
    %c0_123 = arith.constant 0 : index
    %143 = vector.load %arg12[%c97_122, %c0_123] : memref<304x16xf32, #tpu.memory_space<vmem>>, vector<7x16xf32>
    tpu.vector_store %arg12[%c97_122, %c0_123], %142 {strides = array<i32>} : memref<304x16xf32, #tpu.memory_space<vmem>>, vector<7x16xf32>,
    %c192 = arith.constant 192 : index
    %c0_124 = arith.constant 0 : index
    %144 = tpu.strided_load %arg11[%c192, %c0_124] {strides = array<i32: 2, 1>} : memref<256x16xf32, #tpu.memory_space<vmem>>, vector<7x16xf32>
    %c113_125 = arith.constant 113 : index
    %c0_126 = arith.constant 0 : index
    %145 = vector.load %arg12[%c113_125, %c0_126] : memref<304x16xf32, #tpu.memory_space<vmem>>, vector<7x16xf32>
    tpu.vector_store %arg12[%c113_125, %c0_126], %144 {strides = array<i32>} : memref<304x16xf32, #tpu.memory_space<vmem>>, vector<7x16xf32>,
    %c0_127 = arith.constant 0 : index
    %c0_128 = arith.constant 0 : index
    %146 = vector.load %arg12[%c0_127, %c0_128] : memref<304x16xf32, #tpu.memory_space<vmem>>, vector<256x16xf32>
    %c0_129 = arith.constant 0 : index
    %c0_130 = arith.constant 0 : index
    %c0_131 = arith.constant 0 : index
    %147 = vector.load %arg4[%c0_129, %c0_130, %c0_131] : memref<9x16x16xf32, #tpu.memory_space<vmem>>, vector<1x16x16xf32>
    %148 = vector.shape_cast %147 : vector<1x16x16xf32> to vector<16x16xf32>
    %cst_132 = arith.constant dense<0.000000e+00> : vector<256x16xf32>
    %149 = tpu.matmul %146, %148, %cst_132 {dimension_numbers = #tpu.dot_dimension_numbers<[1], [0], [0], [1], [0, 0, 1, 1], [], []>} : vector<256x16xf32>, vector<16x16xf32>, vector<256x16xf32> -> vector<256x16xf32>
    %c1_133 = arith.constant 1 : index
    %c0_134 = arith.constant 0 : index
    %150 = vector.load %arg12[%c1_133, %c0_134] : memref<304x16xf32, #tpu.memory_space<vmem>>, vector<256x16xf32>
    %c1_135 = arith.constant 1 : index
    %c0_136 = arith.constant 0 : index
    %c0_137 = arith.constant 0 : index
    %151 = vector.load %arg4[%c1_135, %c0_136, %c0_137] : memref<9x16x16xf32, #tpu.memory_space<vmem>>, vector<1x16x16xf32>
    %152 = vector.shape_cast %151 : vector<1x16x16xf32> to vector<16x16xf32>
    %cst_138 = arith.constant dense<0.000000e+00> : vector<256x16xf32>
    %153 = tpu.matmul %150, %152, %cst_138 {dimension_numbers = #tpu.dot_dimension_numbers<[1], [0], [0], [1], [0, 0, 1, 1], [], []>} : vector<256x16xf32>, vector<16x16xf32>, vector<256x16xf32> -> vector<256x16xf32>
    %c2_139 = arith.constant 2 : index
    %c0_140 = arith.constant 0 : index
    %154 = vector.load %arg12[%c2_139, %c0_140] : memref<304x16xf32, #tpu.memory_space<vmem>>, vector<256x16xf32>
    %c2_141 = arith.constant 2 : index
    %c0_142 = arith.constant 0 : index
    %c0_143 = arith.constant 0 : index
    %155 = vector.load %arg4[%c2_141, %c0_142, %c0_143] : memref<9x16x16xf32, #tpu.memory_space<vmem>>, vector<1x16x16xf32>
    %156 = vector.shape_cast %155 : vector<1x16x16xf32> to vector<16x16xf32>
    %cst_144 = arith.constant dense<0.000000e+00> : vector<256x16xf32>
    %157 = tpu.matmul %154, %156, %cst_144 {dimension_numbers = #tpu.dot_dimension_numbers<[1], [0], [0], [1], [0, 0, 1, 1], [], []>} : vector<256x16xf32>, vector<16x16xf32>, vector<256x16xf32> -> vector<256x16xf32>
    %c16_145 = arith.constant 16 : index
    %c0_146 = arith.constant 0 : index
    %158 = vector.load %arg12[%c16_145, %c0_146] : memref<304x16xf32, #tpu.memory_space<vmem>>, vector<256x16xf32>
    %c3_147 = arith.constant 3 : index
    %c0_148 = arith.constant 0 : index
    %c0_149 = arith.constant 0 : index
    %159 = vector.load %arg4[%c3_147, %c0_148, %c0_149] : memref<9x16x16xf32, #tpu.memory_space<vmem>>, vector<1x16x16xf32>
    %160 = vector.shape_cast %159 : vector<1x16x16xf32> to vector<16x16xf32>
    %cst_150 = arith.constant dense<0.000000e+00> : vector<256x16xf32>
    %161 = tpu.matmul %158, %160, %cst_150 {dimension_numbers = #tpu.dot_dimension_numbers<[1], [0], [0], [1], [0, 0, 1, 1], [], []>} : vector<256x16xf32>, vector<16x16xf32>, vector<256x16xf32> -> vector<256x16xf32>
    %c17_151 = arith.constant 17 : index
    %c0_152 = arith.constant 0 : index
    %162 = vector.load %arg12[%c17_151, %c0_152] : memref<304x16xf32, #tpu.memory_space<vmem>>, vector<256x16xf32>
    %c4_153 = arith.constant 4 : index
    %c0_154 = arith.constant 0 : index
    %c0_155 = arith.constant 0 : index
    %163 = vector.load %arg4[%c4_153, %c0_154, %c0_155] : memref<9x16x16xf32, #tpu.memory_space<vmem>>, vector<1x16x16xf32>
    %164 = vector.shape_cast %163 : vector<1x16x16xf32> to vector<16x16xf32>
    %cst_156 = arith.constant dense<0.000000e+00> : vector<256x16xf32>
    %165 = tpu.matmul %162, %164, %cst_156 {dimension_numbers = #tpu.dot_dimension_numbers<[1], [0], [0], [1], [0, 0, 1, 1], [], []>} : vector<256x16xf32>, vector<16x16xf32>, vector<256x16xf32> -> vector<256x16xf32>
    %c18_157 = arith.constant 18 : index
    %c0_158 = arith.constant 0 : index
    %166 = vector.load %arg12[%c18_157, %c0_158] : memref<304x16xf32, #tpu.memory_space<vmem>>, vector<256x16xf32>
    %c5_159 = arith.constant 5 : index
    %c0_160 = arith.constant 0 : index
    %c0_161 = arith.constant 0 : index
    %167 = vector.load %arg4[%c5_159, %c0_160, %c0_161] : memref<9x16x16xf32, #tpu.memory_space<vmem>>, vector<1x16x16xf32>
    %168 = vector.shape_cast %167 : vector<1x16x16xf32> to vector<16x16xf32>
    %cst_162 = arith.constant dense<0.000000e+00> : vector<256x16xf32>
    %169 = tpu.matmul %166, %168, %cst_162 {dimension_numbers = #tpu.dot_dimension_numbers<[1], [0], [0], [1], [0, 0, 1, 1], [], []>} : vector<256x16xf32>, vector<16x16xf32>, vector<256x16xf32> -> vector<256x16xf32>
    %c32_163 = arith.constant 32 : index
    %c0_164 = arith.constant 0 : index
    %170 = vector.load %arg12[%c32_163, %c0_164] : memref<304x16xf32, #tpu.memory_space<vmem>>, vector<256x16xf32>
    %c6_165 = arith.constant 6 : index
    %c0_166 = arith.constant 0 : index
    %c0_167 = arith.constant 0 : index
    %171 = vector.load %arg4[%c6_165, %c0_166, %c0_167] : memref<9x16x16xf32, #tpu.memory_space<vmem>>, vector<1x16x16xf32>
    %172 = vector.shape_cast %171 : vector<1x16x16xf32> to vector<16x16xf32>
    %cst_168 = arith.constant dense<0.000000e+00> : vector<256x16xf32>
    %173 = tpu.matmul %170, %172, %cst_168 {dimension_numbers = #tpu.dot_dimension_numbers<[1], [0], [0], [1], [0, 0, 1, 1], [], []>} : vector<256x16xf32>, vector<16x16xf32>, vector<256x16xf32> -> vector<256x16xf32>
    %c33_169 = arith.constant 33 : index
    %c0_170 = arith.constant 0 : index
    %174 = vector.load %arg12[%c33_169, %c0_170] : memref<304x16xf32, #tpu.memory_space<vmem>>, vector<256x16xf32>
    %c7_171 = arith.constant 7 : index
    %c0_172 = arith.constant 0 : index
    %c0_173 = arith.constant 0 : index
    %175 = vector.load %arg4[%c7_171, %c0_172, %c0_173] : memref<9x16x16xf32, #tpu.memory_space<vmem>>, vector<1x16x16xf32>
    %176 = vector.shape_cast %175 : vector<1x16x16xf32> to vector<16x16xf32>
    %cst_174 = arith.constant dense<0.000000e+00> : vector<256x16xf32>
    %177 = tpu.matmul %174, %176, %cst_174 {dimension_numbers = #tpu.dot_dimension_numbers<[1], [0], [0], [1], [0, 0, 1, 1], [], []>} : vector<256x16xf32>, vector<16x16xf32>, vector<256x16xf32> -> vector<256x16xf32>
    %c34_175 = arith.constant 34 : index
    %c0_176 = arith.constant 0 : index
    %178 = vector.load %arg12[%c34_175, %c0_176] : memref<304x16xf32, #tpu.memory_space<vmem>>, vector<256x16xf32>
    %c8_177 = arith.constant 8 : index
    %c0_178 = arith.constant 0 : index
    %c0_179 = arith.constant 0 : index
    %179 = vector.load %arg4[%c8_177, %c0_178, %c0_179] : memref<9x16x16xf32, #tpu.memory_space<vmem>>, vector<1x16x16xf32>
    %180 = vector.shape_cast %179 : vector<1x16x16xf32> to vector<16x16xf32>
    %cst_180 = arith.constant dense<0.000000e+00> : vector<256x16xf32>
    %181 = tpu.matmul %178, %180, %cst_180 {dimension_numbers = #tpu.dot_dimension_numbers<[1], [0], [0], [1], [0, 0, 1, 1], [], []>} : vector<256x16xf32>, vector<16x16xf32>, vector<256x16xf32> -> vector<256x16xf32>
    %182 = arith.addf %149, %153 : vector<256x16xf32>
    %183 = arith.addf %157, %161 : vector<256x16xf32>
    %184 = arith.addf %165, %169 : vector<256x16xf32>
    %185 = arith.addf %173, %177 : vector<256x16xf32>
    %186 = arith.addf %182, %183 : vector<256x16xf32>
    %187 = arith.addf %184, %185 : vector<256x16xf32>
    %188 = arith.addf %186, %187 : vector<256x16xf32>
    %189 = arith.addf %188, %181 : vector<256x16xf32>
    %c0_181 = arith.constant 0 : index
    %c0_182 = arith.constant 0 : index
    %190 = vector.load %arg5[%c0_181, %c0_182] : memref<1x16xf32, #tpu.memory_space<vmem>>, vector<1x16xf32>
    %191 = vector.broadcast %190 : vector<1x16xf32> to vector<256x16xf32>
    %192 = arith.addf %189, %191 : vector<256x16xf32>
    %cst_183 = arith.constant 0.000000e+00 : f32
    %193 = vector.broadcast %cst_183 : f32 to vector<256x16xf32>
    %194 = arith.maximumf %192, %193 : vector<256x16xf32>
    %c0_184 = arith.constant 0 : index
    %c0_185 = arith.constant 0 : index
    %195 = vector.load %arg13[%c0_184, %c0_185] : memref<256x16xf32, #tpu.memory_space<vmem>>, vector<256x16xf32>
    tpu.vector_store %arg13[%c0_184, %c0_185], %194 {strides = array<i32>} : memref<256x16xf32, #tpu.memory_space<vmem>>, vector<256x16xf32>,
    %c0_186 = arith.constant 0 : index
    %c0_187 = arith.constant 0 : index
    %196 = vector.load %arg7[%c0_186, %c0_187] : memref<1x8xf32, #tpu.memory_space<vmem>>, vector<1x8xf32>
    %c0_188 = arith.constant 0 : index
    %c0_189 = arith.constant 0 : index
    %197 = vector.load %arg13[%c0_188, %c0_189] : memref<256x16xf32, #tpu.memory_space<vmem>>, vector<1x16xf32>
    %c0_190 = arith.constant 0 : index
    %c0_191 = arith.constant 0 : index
    %c0_192 = arith.constant 0 : index
    %198 = vector.load %arg6[%c0_190, %c0_191, %c0_192] : memref<49x16x8xf32, #tpu.memory_space<vmem>>, vector<1x16x8xf32>
    %199 = vector.shape_cast %198 : vector<1x16x8xf32> to vector<16x8xf32>
    %cst_193 = arith.constant dense<0.000000e+00> : vector<1x8xf32>
    %200 = tpu.matmul %197, %199, %cst_193 {dimension_numbers = #tpu.dot_dimension_numbers<[1], [0], [0], [1], [0, 0, 1, 1], [], []>} : vector<1x16xf32>, vector<16x8xf32>, vector<1x8xf32> -> vector<1x8xf32>
    %c1_194 = arith.constant 1 : index
    %c0_195 = arith.constant 0 : index
    %201 = vector.load %arg13[%c1_194, %c0_195] : memref<256x16xf32, #tpu.memory_space<vmem>>, vector<1x16xf32>
    %c1_196 = arith.constant 1 : index
    %c0_197 = arith.constant 0 : index
    %c0_198 = arith.constant 0 : index
    %202 = vector.load %arg6[%c1_196, %c0_197, %c0_198] : memref<49x16x8xf32, #tpu.memory_space<vmem>>, vector<1x16x8xf32>
    %203 = vector.shape_cast %202 : vector<1x16x8xf32> to vector<16x8xf32>
    %cst_199 = arith.constant dense<0.000000e+00> : vector<1x8xf32>
    %204 = tpu.matmul %201, %203, %cst_199 {dimension_numbers = #tpu.dot_dimension_numbers<[1], [0], [0], [1], [0, 0, 1, 1], [], []>} : vector<1x16xf32>, vector<16x8xf32>, vector<1x8xf32> -> vector<1x8xf32>
    %c2_200 = arith.constant 2 : index
    %c0_201 = arith.constant 0 : index
    %205 = vector.load %arg13[%c2_200, %c0_201] : memref<256x16xf32, #tpu.memory_space<vmem>>, vector<1x16xf32>
    %c2_202 = arith.constant 2 : index
    %c0_203 = arith.constant 0 : index
    %c0_204 = arith.constant 0 : index
    %206 = vector.load %arg6[%c2_202, %c0_203, %c0_204] : memref<49x16x8xf32, #tpu.memory_space<vmem>>, vector<1x16x8xf32>
    %207 = vector.shape_cast %206 : vector<1x16x8xf32> to vector<16x8xf32>
    %cst_205 = arith.constant dense<0.000000e+00> : vector<1x8xf32>
    %208 = tpu.matmul %205, %207, %cst_205 {dimension_numbers = #tpu.dot_dimension_numbers<[1], [0], [0], [1], [0, 0, 1, 1], [], []>} : vector<1x16xf32>, vector<16x8xf32>, vector<1x8xf32> -> vector<1x8xf32>
    %c3_206 = arith.constant 3 : index
    %c0_207 = arith.constant 0 : index
    %209 = vector.load %arg13[%c3_206, %c0_207] : memref<256x16xf32, #tpu.memory_space<vmem>>, vector<1x16xf32>
    %c3_208 = arith.constant 3 : index
    %c0_209 = arith.constant 0 : index
    %c0_210 = arith.constant 0 : index
    %210 = vector.load %arg6[%c3_208, %c0_209, %c0_210] : memref<49x16x8xf32, #tpu.memory_space<vmem>>, vector<1x16x8xf32>
    %211 = vector.shape_cast %210 : vector<1x16x8xf32> to vector<16x8xf32>
    %cst_211 = arith.constant dense<0.000000e+00> : vector<1x8xf32>
    %212 = tpu.matmul %209, %211, %cst_211 {dimension_numbers = #tpu.dot_dimension_numbers<[1], [0], [0], [1], [0, 0, 1, 1], [], []>} : vector<1x16xf32>, vector<16x8xf32>, vector<1x8xf32> -> vector<1x8xf32>
    %c4_212 = arith.constant 4 : index
    %c0_213 = arith.constant 0 : index
    %213 = vector.load %arg13[%c4_212, %c0_213] : memref<256x16xf32, #tpu.memory_space<vmem>>, vector<1x16xf32>
    %c4_214 = arith.constant 4 : index
    %c0_215 = arith.constant 0 : index
    %c0_216 = arith.constant 0 : index
    %214 = vector.load %arg6[%c4_214, %c0_215, %c0_216] : memref<49x16x8xf32, #tpu.memory_space<vmem>>, vector<1x16x8xf32>
    %215 = vector.shape_cast %214 : vector<1x16x8xf32> to vector<16x8xf32>
    %cst_217 = arith.constant dense<0.000000e+00> : vector<1x8xf32>
    %216 = tpu.matmul %213, %215, %cst_217 {dimension_numbers = #tpu.dot_dimension_numbers<[1], [0], [0], [1], [0, 0, 1, 1], [], []>} : vector<1x16xf32>, vector<16x8xf32>, vector<1x8xf32> -> vector<1x8xf32>
    %c5_218 = arith.constant 5 : index
    %c0_219 = arith.constant 0 : index
    %217 = vector.load %arg13[%c5_218, %c0_219] : memref<256x16xf32, #tpu.memory_space<vmem>>, vector<1x16xf32>
    %c5_220 = arith.constant 5 : index
    %c0_221 = arith.constant 0 : index
    %c0_222 = arith.constant 0 : index
    %218 = vector.load %arg6[%c5_220, %c0_221, %c0_222] : memref<49x16x8xf32, #tpu.memory_space<vmem>>, vector<1x16x8xf32>
    %219 = vector.shape_cast %218 : vector<1x16x8xf32> to vector<16x8xf32>
    %cst_223 = arith.constant dense<0.000000e+00> : vector<1x8xf32>
    %220 = tpu.matmul %217, %219, %cst_223 {dimension_numbers = #tpu.dot_dimension_numbers<[1], [0], [0], [1], [0, 0, 1, 1], [], []>} : vector<1x16xf32>, vector<16x8xf32>, vector<1x8xf32> -> vector<1x8xf32>
    %c6_224 = arith.constant 6 : index
    %c0_225 = arith.constant 0 : index
    %221 = vector.load %arg13[%c6_224, %c0_225] : memref<256x16xf32, #tpu.memory_space<vmem>>, vector<1x16xf32>
    %c6_226 = arith.constant 6 : index
    %c0_227 = arith.constant 0 : index
    %c0_228 = arith.constant 0 : index
    %222 = vector.load %arg6[%c6_226, %c0_227, %c0_228] : memref<49x16x8xf32, #tpu.memory_space<vmem>>, vector<1x16x8xf32>
    %223 = vector.shape_cast %222 : vector<1x16x8xf32> to vector<16x8xf32>
    %cst_229 = arith.constant dense<0.000000e+00> : vector<1x8xf32>
    %224 = tpu.matmul %221, %223, %cst_229 {dimension_numbers = #tpu.dot_dimension_numbers<[1], [0], [0], [1], [0, 0, 1, 1], [], []>} : vector<1x16xf32>, vector<16x8xf32>, vector<1x8xf32> -> vector<1x8xf32>
    %c16_230 = arith.constant 16 : index
    %c0_231 = arith.constant 0 : index
    %225 = vector.load %arg13[%c16_230, %c0_231] : memref<256x16xf32, #tpu.memory_space<vmem>>, vector<1x16xf32>
    %c7_232 = arith.constant 7 : index
    %c0_233 = arith.constant 0 : index
    %c0_234 = arith.constant 0 : index
    %226 = vector.load %arg6[%c7_232, %c0_233, %c0_234] : memref<49x16x8xf32, #tpu.memory_space<vmem>>, vector<1x16x8xf32>
    %227 = vector.shape_cast %226 : vector<1x16x8xf32> to vector<16x8xf32>
    %cst_235 = arith.constant dense<0.000000e+00> : vector<1x8xf32>
    %228 = tpu.matmul %225, %227, %cst_235 {dimension_numbers = #tpu.dot_dimension_numbers<[1], [0], [0], [1], [0, 0, 1, 1], [], []>} : vector<1x16xf32>, vector<16x8xf32>, vector<1x8xf32> -> vector<1x8xf32>
    %c17_236 = arith.constant 17 : index
    %c0_237 = arith.constant 0 : index
    %229 = vector.load %arg13[%c17_236, %c0_237] : memref<256x16xf32, #tpu.memory_space<vmem>>, vector<1x16xf32>
    %c8_238 = arith.constant 8 : index
    %c0_239 = arith.constant 0 : index
    %c0_240 = arith.constant 0 : index
    %230 = vector.load %arg6[%c8_238, %c0_239, %c0_240] : memref<49x16x8xf32, #tpu.memory_space<vmem>>, vector<1x16x8xf32>
    %231 = vector.shape_cast %230 : vector<1x16x8xf32> to vector<16x8xf32>
    %cst_241 = arith.constant dense<0.000000e+00> : vector<1x8xf32>
    %232 = tpu.matmul %229, %231, %cst_241 {dimension_numbers = #tpu.dot_dimension_numbers<[1], [0], [0], [1], [0, 0, 1, 1], [], []>} : vector<1x16xf32>, vector<16x8xf32>, vector<1x8xf32> -> vector<1x8xf32>
    %c18_242 = arith.constant 18 : index
    %c0_243 = arith.constant 0 : index
    %233 = vector.load %arg13[%c18_242, %c0_243] : memref<256x16xf32, #tpu.memory_space<vmem>>, vector<1x16xf32>
    %c9 = arith.constant 9 : index
    %c0_244 = arith.constant 0 : index
    %c0_245 = arith.constant 0 : index
    %234 = vector.load %arg6[%c9, %c0_244, %c0_245] : memref<49x16x8xf32, #tpu.memory_space<vmem>>, vector<1x16x8xf32>
    %235 = vector.shape_cast %234 : vector<1x16x8xf32> to vector<16x8xf32>
    %cst_246 = arith.constant dense<0.000000e+00> : vector<1x8xf32>
    %236 = tpu.matmul %233, %235, %cst_246 {dimension_numbers = #tpu.dot_dimension_numbers<[1], [0], [0], [1], [0, 0, 1, 1], [], []>} : vector<1x16xf32>, vector<16x8xf32>, vector<1x8xf32> -> vector<1x8xf32>
    %c19 = arith.constant 19 : index
    %c0_247 = arith.constant 0 : index
    %237 = vector.load %arg13[%c19, %c0_247] : memref<256x16xf32, #tpu.memory_space<vmem>>, vector<1x16xf32>
    %c10 = arith.constant 10 : index
    %c0_248 = arith.constant 0 : index
    %c0_249 = arith.constant 0 : index
    %238 = vector.load %arg6[%c10, %c0_248, %c0_249] : memref<49x16x8xf32, #tpu.memory_space<vmem>>, vector<1x16x8xf32>
    %239 = vector.shape_cast %238 : vector<1x16x8xf32> to vector<16x8xf32>
    %cst_250 = arith.constant dense<0.000000e+00> : vector<1x8xf32>
    %240 = tpu.matmul %237, %239, %cst_250 {dimension_numbers = #tpu.dot_dimension_numbers<[1], [0], [0], [1], [0, 0, 1, 1], [], []>} : vector<1x16xf32>, vector<16x8xf32>, vector<1x8xf32> -> vector<1x8xf32>
    %c20 = arith.constant 20 : index
    %c0_251 = arith.constant 0 : index
    %241 = vector.load %arg13[%c20, %c0_251] : memref<256x16xf32, #tpu.memory_space<vmem>>, vector<1x16xf32>
    %c11 = arith.constant 11 : index
    %c0_252 = arith.constant 0 : index
    %c0_253 = arith.constant 0 : index
    %242 = vector.load %arg6[%c11, %c0_252, %c0_253] : memref<49x16x8xf32, #tpu.memory_space<vmem>>, vector<1x16x8xf32>
    %243 = vector.shape_cast %242 : vector<1x16x8xf32> to vector<16x8xf32>
    %cst_254 = arith.constant dense<0.000000e+00> : vector<1x8xf32>
    %244 = tpu.matmul %241, %243, %cst_254 {dimension_numbers = #tpu.dot_dimension_numbers<[1], [0], [0], [1], [0, 0, 1, 1], [], []>} : vector<1x16xf32>, vector<16x8xf32>, vector<1x8xf32> -> vector<1x8xf32>
    %c21 = arith.constant 21 : index
    %c0_255 = arith.constant 0 : index
    %245 = vector.load %arg13[%c21, %c0_255] : memref<256x16xf32, #tpu.memory_space<vmem>>, vector<1x16xf32>
    %c12 = arith.constant 12 : index
    %c0_256 = arith.constant 0 : index
    %c0_257 = arith.constant 0 : index
    %246 = vector.load %arg6[%c12, %c0_256, %c0_257] : memref<49x16x8xf32, #tpu.memory_space<vmem>>, vector<1x16x8xf32>
    %247 = vector.shape_cast %246 : vector<1x16x8xf32> to vector<16x8xf32>
    %cst_258 = arith.constant dense<0.000000e+00> : vector<1x8xf32>
    %248 = tpu.matmul %245, %247, %cst_258 {dimension_numbers = #tpu.dot_dimension_numbers<[1], [0], [0], [1], [0, 0, 1, 1], [], []>} : vector<1x16xf32>, vector<16x8xf32>, vector<1x8xf32> -> vector<1x8xf32>
    %c22 = arith.constant 22 : index
    %c0_259 = arith.constant 0 : index
    %249 = vector.load %arg13[%c22, %c0_259] : memref<256x16xf32, #tpu.memory_space<vmem>>, vector<1x16xf32>
    %c13 = arith.constant 13 : index
    %c0_260 = arith.constant 0 : index
    %c0_261 = arith.constant 0 : index
    %250 = vector.load %arg6[%c13, %c0_260, %c0_261] : memref<49x16x8xf32, #tpu.memory_space<vmem>>, vector<1x16x8xf32>
    %251 = vector.shape_cast %250 : vector<1x16x8xf32> to vector<16x8xf32>
    %cst_262 = arith.constant dense<0.000000e+00> : vector<1x8xf32>
    %252 = tpu.matmul %249, %251, %cst_262 {dimension_numbers = #tpu.dot_dimension_numbers<[1], [0], [0], [1], [0, 0, 1, 1], [], []>} : vector<1x16xf32>, vector<16x8xf32>, vector<1x8xf32> -> vector<1x8xf32>
    %c32_263 = arith.constant 32 : index
    %c0_264 = arith.constant 0 : index
    %253 = vector.load %arg13[%c32_263, %c0_264] : memref<256x16xf32, #tpu.memory_space<vmem>>, vector<1x16xf32>
    %c14_265 = arith.constant 14 : index
    %c0_266 = arith.constant 0 : index
    %c0_267 = arith.constant 0 : index
    %254 = vector.load %arg6[%c14_265, %c0_266, %c0_267] : memref<49x16x8xf32, #tpu.memory_space<vmem>>, vector<1x16x8xf32>
    %255 = vector.shape_cast %254 : vector<1x16x8xf32> to vector<16x8xf32>
    %cst_268 = arith.constant dense<0.000000e+00> : vector<1x8xf32>
    %256 = tpu.matmul %253, %255, %cst_268 {dimension_numbers = #tpu.dot_dimension_numbers<[1], [0], [0], [1], [0, 0, 1, 1], [], []>} : vector<1x16xf32>, vector<16x8xf32>, vector<1x8xf32> -> vector<1x8xf32>
    %c33_269 = arith.constant 33 : index
    %c0_270 = arith.constant 0 : index
    %257 = vector.load %arg13[%c33_269, %c0_270] : memref<256x16xf32, #tpu.memory_space<vmem>>, vector<1x16xf32>
    %c15 = arith.constant 15 : index
    %c0_271 = arith.constant 0 : index
    %c0_272 = arith.constant 0 : index
    %258 = vector.load %arg6[%c15, %c0_271, %c0_272] : memref<49x16x8xf32, #tpu.memory_space<vmem>>, vector<1x16x8xf32>
    %259 = vector.shape_cast %258 : vector<1x16x8xf32> to vector<16x8xf32>
    %cst_273 = arith.constant dense<0.000000e+00> : vector<1x8xf32>
    %260 = tpu.matmul %257, %259, %cst_273 {dimension_numbers = #tpu.dot_dimension_numbers<[1], [0], [0], [1], [0, 0, 1, 1], [], []>} : vector<1x16xf32>, vector<16x8xf32>, vector<1x8xf32> -> vector<1x8xf32>
    %c34_274 = arith.constant 34 : index
    %c0_275 = arith.constant 0 : index
    %261 = vector.load %arg13[%c34_274, %c0_275] : memref<256x16xf32, #tpu.memory_space<vmem>>, vector<1x16xf32>
    %c16_276 = arith.constant 16 : index
    %c0_277 = arith.constant 0 : index
    %c0_278 = arith.constant 0 : index
    %262 = vector.load %arg6[%c16_276, %c0_277, %c0_278] : memref<49x16x8xf32, #tpu.memory_space<vmem>>, vector<1x16x8xf32>
    %263 = vector.shape_cast %262 : vector<1x16x8xf32> to vector<16x8xf32>
    %cst_279 = arith.constant dense<0.000000e+00> : vector<1x8xf32>
    %264 = tpu.matmul %261, %263, %cst_279 {dimension_numbers = #tpu.dot_dimension_numbers<[1], [0], [0], [1], [0, 0, 1, 1], [], []>} : vector<1x16xf32>, vector<16x8xf32>, vector<1x8xf32> -> vector<1x8xf32>
    %c35 = arith.constant 35 : index
    %c0_280 = arith.constant 0 : index
    %265 = vector.load %arg13[%c35, %c0_280] : memref<256x16xf32, #tpu.memory_space<vmem>>, vector<1x16xf32>
    %c17_281 = arith.constant 17 : index
    %c0_282 = arith.constant 0 : index
    %c0_283 = arith.constant 0 : index
    %266 = vector.load %arg6[%c17_281, %c0_282, %c0_283] : memref<49x16x8xf32, #tpu.memory_space<vmem>>, vector<1x16x8xf32>
    %267 = vector.shape_cast %266 : vector<1x16x8xf32> to vector<16x8xf32>
    %cst_284 = arith.constant dense<0.000000e+00> : vector<1x8xf32>
    %268 = tpu.matmul %265, %267, %cst_284 {dimension_numbers = #tpu.dot_dimension_numbers<[1], [0], [0], [1], [0, 0, 1, 1], [], []>} : vector<1x16xf32>, vector<16x8xf32>, vector<1x8xf32> -> vector<1x8xf32>
    %c36 = arith.constant 36 : index
    %c0_285 = arith.constant 0 : index
    %269 = vector.load %arg13[%c36, %c0_285] : memref<256x16xf32, #tpu.memory_space<vmem>>, vector<1x16xf32>
    %c18_286 = arith.constant 18 : index
    %c0_287 = arith.constant 0 : index
    %c0_288 = arith.constant 0 : index
    %270 = vector.load %arg6[%c18_286, %c0_287, %c0_288] : memref<49x16x8xf32, #tpu.memory_space<vmem>>, vector<1x16x8xf32>
    %271 = vector.shape_cast %270 : vector<1x16x8xf32> to vector<16x8xf32>
    %cst_289 = arith.constant dense<0.000000e+00> : vector<1x8xf32>
    %272 = tpu.matmul %269, %271, %cst_289 {dimension_numbers = #tpu.dot_dimension_numbers<[1], [0], [0], [1], [0, 0, 1, 1], [], []>} : vector<1x16xf32>, vector<16x8xf32>, vector<1x8xf32> -> vector<1x8xf32>
    %c37 = arith.constant 37 : index
    %c0_290 = arith.constant 0 : index
    %273 = vector.load %arg13[%c37, %c0_290] : memref<256x16xf32, #tpu.memory_space<vmem>>, vector<1x16xf32>
    %c19_291 = arith.constant 19 : index
    %c0_292 = arith.constant 0 : index
    %c0_293 = arith.constant 0 : index
    %274 = vector.load %arg6[%c19_291, %c0_292, %c0_293] : memref<49x16x8xf32, #tpu.memory_space<vmem>>, vector<1x16x8xf32>
    %275 = vector.shape_cast %274 : vector<1x16x8xf32> to vector<16x8xf32>
    %cst_294 = arith.constant dense<0.000000e+00> : vector<1x8xf32>
    %276 = tpu.matmul %273, %275, %cst_294 {dimension_numbers = #tpu.dot_dimension_numbers<[1], [0], [0], [1], [0, 0, 1, 1], [], []>} : vector<1x16xf32>, vector<16x8xf32>, vector<1x8xf32> -> vector<1x8xf32>
    %c38 = arith.constant 38 : index
    %c0_295 = arith.constant 0 : index
    %277 = vector.load %arg13[%c38, %c0_295] : memref<256x16xf32, #tpu.memory_space<vmem>>, vector<1x16xf32>
    %c20_296 = arith.constant 20 : index
    %c0_297 = arith.constant 0 : index
    %c0_298 = arith.constant 0 : index
    %278 = vector.load %arg6[%c20_296, %c0_297, %c0_298] : memref<49x16x8xf32, #tpu.memory_space<vmem>>, vector<1x16x8xf32>
    %279 = vector.shape_cast %278 : vector<1x16x8xf32> to vector<16x8xf32>
    %cst_299 = arith.constant dense<0.000000e+00> : vector<1x8xf32>
    %280 = tpu.matmul %277, %279, %cst_299 {dimension_numbers = #tpu.dot_dimension_numbers<[1], [0], [0], [1], [0, 0, 1, 1], [], []>} : vector<1x16xf32>, vector<16x8xf32>, vector<1x8xf32> -> vector<1x8xf32>
    %c48 = arith.constant 48 : index
    %c0_300 = arith.constant 0 : index
    %281 = vector.load %arg13[%c48, %c0_300] : memref<256x16xf32, #tpu.memory_space<vmem>>, vector<1x16xf32>
    %c21_301 = arith.constant 21 : index
    %c0_302 = arith.constant 0 : index
    %c0_303 = arith.constant 0 : index
    %282 = vector.load %arg6[%c21_301, %c0_302, %c0_303] : memref<49x16x8xf32, #tpu.memory_space<vmem>>, vector<1x16x8xf32>
    %283 = vector.shape_cast %282 : vector<1x16x8xf32> to vector<16x8xf32>
    %cst_304 = arith.constant dense<0.000000e+00> : vector<1x8xf32>
    %284 = tpu.matmul %281, %283, %cst_304 {dimension_numbers = #tpu.dot_dimension_numbers<[1], [0], [0], [1], [0, 0, 1, 1], [], []>} : vector<1x16xf32>, vector<16x8xf32>, vector<1x8xf32> -> vector<1x8xf32>
    %c49_305 = arith.constant 49 : index
    %c0_306 = arith.constant 0 : index
    %285 = vector.load %arg13[%c49_305, %c0_306] : memref<256x16xf32, #tpu.memory_space<vmem>>, vector<1x16xf32>
    %c22_307 = arith.constant 22 : index
    %c0_308 = arith.constant 0 : index
    %c0_309 = arith.constant 0 : index
    %286 = vector.load %arg6[%c22_307, %c0_308, %c0_309] : memref<49x16x8xf32, #tpu.memory_space<vmem>>, vector<1x16x8xf32>
    %287 = vector.shape_cast %286 : vector<1x16x8xf32> to vector<16x8xf32>
    %cst_310 = arith.constant dense<0.000000e+00> : vector<1x8xf32>
    %288 = tpu.matmul %285, %287, %cst_310 {dimension_numbers = #tpu.dot_dimension_numbers<[1], [0], [0], [1], [0, 0, 1, 1], [], []>} : vector<1x16xf32>, vector<16x8xf32>, vector<1x8xf32> -> vector<1x8xf32>
    %c50 = arith.constant 50 : index
    %c0_311 = arith.constant 0 : index
    %289 = vector.load %arg13[%c50, %c0_311] : memref<256x16xf32, #tpu.memory_space<vmem>>, vector<1x16xf32>
    %c23 = arith.constant 23 : index
    %c0_312 = arith.constant 0 : index
    %c0_313 = arith.constant 0 : index
    %290 = vector.load %arg6[%c23, %c0_312, %c0_313] : memref<49x16x8xf32, #tpu.memory_space<vmem>>, vector<1x16x8xf32>
    %291 = vector.shape_cast %290 : vector<1x16x8xf32> to vector<16x8xf32>
    %cst_314 = arith.constant dense<0.000000e+00> : vector<1x8xf32>
    %292 = tpu.matmul %289, %291, %cst_314 {dimension_numbers = #tpu.dot_dimension_numbers<[1], [0], [0], [1], [0, 0, 1, 1], [], []>} : vector<1x16xf32>, vector<16x8xf32>, vector<1x8xf32> -> vector<1x8xf32>
    %c51 = arith.constant 51 : index
    %c0_315 = arith.constant 0 : index
    %293 = vector.load %arg13[%c51, %c0_315] : memref<256x16xf32, #tpu.memory_space<vmem>>, vector<1x16xf32>
    %c24 = arith.constant 24 : index
    %c0_316 = arith.constant 0 : index
    %c0_317 = arith.constant 0 : index
    %294 = vector.load %arg6[%c24, %c0_316, %c0_317] : memref<49x16x8xf32, #tpu.memory_space<vmem>>, vector<1x16x8xf32>
    %295 = vector.shape_cast %294 : vector<1x16x8xf32> to vector<16x8xf32>
    %cst_318 = arith.constant dense<0.000000e+00> : vector<1x8xf32>
    %296 = tpu.matmul %293, %295, %cst_318 {dimension_numbers = #tpu.dot_dimension_numbers<[1], [0], [0], [1], [0, 0, 1, 1], [], []>} : vector<1x16xf32>, vector<16x8xf32>, vector<1x8xf32> -> vector<1x8xf32>
    %c52 = arith.constant 52 : index
    %c0_319 = arith.constant 0 : index
    %297 = vector.load %arg13[%c52, %c0_319] : memref<256x16xf32, #tpu.memory_space<vmem>>, vector<1x16xf32>
    %c25 = arith.constant 25 : index
    %c0_320 = arith.constant 0 : index
    %c0_321 = arith.constant 0 : index
    %298 = vector.load %arg6[%c25, %c0_320, %c0_321] : memref<49x16x8xf32, #tpu.memory_space<vmem>>, vector<1x16x8xf32>
    %299 = vector.shape_cast %298 : vector<1x16x8xf32> to vector<16x8xf32>
    %cst_322 = arith.constant dense<0.000000e+00> : vector<1x8xf32>
    %300 = tpu.matmul %297, %299, %cst_322 {dimension_numbers = #tpu.dot_dimension_numbers<[1], [0], [0], [1], [0, 0, 1, 1], [], []>} : vector<1x16xf32>, vector<16x8xf32>, vector<1x8xf32> -> vector<1x8xf32>
    %c53 = arith.constant 53 : index
    %c0_323 = arith.constant 0 : index
    %301 = vector.load %arg13[%c53, %c0_323] : memref<256x16xf32, #tpu.memory_space<vmem>>, vector<1x16xf32>
    %c26 = arith.constant 26 : index
    %c0_324 = arith.constant 0 : index
    %c0_325 = arith.constant 0 : index
    %302 = vector.load %arg6[%c26, %c0_324, %c0_325] : memref<49x16x8xf32, #tpu.memory_space<vmem>>, vector<1x16x8xf32>
    %303 = vector.shape_cast %302 : vector<1x16x8xf32> to vector<16x8xf32>
    %cst_326 = arith.constant dense<0.000000e+00> : vector<1x8xf32>
    %304 = tpu.matmul %301, %303, %cst_326 {dimension_numbers = #tpu.dot_dimension_numbers<[1], [0], [0], [1], [0, 0, 1, 1], [], []>} : vector<1x16xf32>, vector<16x8xf32>, vector<1x8xf32> -> vector<1x8xf32>
    %c54 = arith.constant 54 : index
    %c0_327 = arith.constant 0 : index
    %305 = vector.load %arg13[%c54, %c0_327] : memref<256x16xf32, #tpu.memory_space<vmem>>, vector<1x16xf32>
    %c27 = arith.constant 27 : index
    %c0_328 = arith.constant 0 : index
    %c0_329 = arith.constant 0 : index
    %306 = vector.load %arg6[%c27, %c0_328, %c0_329] : memref<49x16x8xf32, #tpu.memory_space<vmem>>, vector<1x16x8xf32>
    %307 = vector.shape_cast %306 : vector<1x16x8xf32> to vector<16x8xf32>
    %cst_330 = arith.constant dense<0.000000e+00> : vector<1x8xf32>
    %308 = tpu.matmul %305, %307, %cst_330 {dimension_numbers = #tpu.dot_dimension_numbers<[1], [0], [0], [1], [0, 0, 1, 1], [], []>} : vector<1x16xf32>, vector<16x8xf32>, vector<1x8xf32> -> vector<1x8xf32>
    %c64_331 = arith.constant 64 : index
    %c0_332 = arith.constant 0 : index
    %309 = vector.load %arg13[%c64_331, %c0_332] : memref<256x16xf32, #tpu.memory_space<vmem>>, vector<1x16xf32>
    %c28_333 = arith.constant 28 : index
    %c0_334 = arith.constant 0 : index
    %c0_335 = arith.constant 0 : index
    %310 = vector.load %arg6[%c28_333, %c0_334, %c0_335] : memref<49x16x8xf32, #tpu.memory_space<vmem>>, vector<1x16x8xf32>
    %311 = vector.shape_cast %310 : vector<1x16x8xf32> to vector<16x8xf32>
    %cst_336 = arith.constant dense<0.000000e+00> : vector<1x8xf32>
    %312 = tpu.matmul %309, %311, %cst_336 {dimension_numbers = #tpu.dot_dimension_numbers<[1], [0], [0], [1], [0, 0, 1, 1], [], []>} : vector<1x16xf32>, vector<16x8xf32>, vector<1x8xf32> -> vector<1x8xf32>
    %c65_337 = arith.constant 65 : index
    %c0_338 = arith.constant 0 : index
    %313 = vector.load %arg13[%c65_337, %c0_338] : memref<256x16xf32, #tpu.memory_space<vmem>>, vector<1x16xf32>
    %c29 = arith.constant 29 : index
    %c0_339 = arith.constant 0 : index
    %c0_340 = arith.constant 0 : index
    %314 = vector.load %arg6[%c29, %c0_339, %c0_340] : memref<49x16x8xf32, #tpu.memory_space<vmem>>, vector<1x16x8xf32>
    %315 = vector.shape_cast %314 : vector<1x16x8xf32> to vector<16x8xf32>
    %cst_341 = arith.constant dense<0.000000e+00> : vector<1x8xf32>
    %316 = tpu.matmul %313, %315, %cst_341 {dimension_numbers = #tpu.dot_dimension_numbers<[1], [0], [0], [1], [0, 0, 1, 1], [], []>} : vector<1x16xf32>, vector<16x8xf32>, vector<1x8xf32> -> vector<1x8xf32>
    %c66 = arith.constant 66 : index
    %c0_342 = arith.constant 0 : index
    %317 = vector.load %arg13[%c66, %c0_342] : memref<256x16xf32, #tpu.memory_space<vmem>>, vector<1x16xf32>
    %c30 = arith.constant 30 : index
    %c0_343 = arith.constant 0 : index
    %c0_344 = arith.constant 0 : index
    %318 = vector.load %arg6[%c30, %c0_343, %c0_344] : memref<49x16x8xf32, #tpu.memory_space<vmem>>, vector<1x16x8xf32>
    %319 = vector.shape_cast %318 : vector<1x16x8xf32> to vector<16x8xf32>
    %cst_345 = arith.constant dense<0.000000e+00> : vector<1x8xf32>
    %320 = tpu.matmul %317, %319, %cst_345 {dimension_numbers = #tpu.dot_dimension_numbers<[1], [0], [0], [1], [0, 0, 1, 1], [], []>} : vector<1x16xf32>, vector<16x8xf32>, vector<1x8xf32> -> vector<1x8xf32>
    %c67 = arith.constant 67 : index
    %c0_346 = arith.constant 0 : index
    %321 = vector.load %arg13[%c67, %c0_346] : memref<256x16xf32, #tpu.memory_space<vmem>>, vector<1x16xf32>
    %c31 = arith.constant 31 : index
    %c0_347 = arith.constant 0 : index
    %c0_348 = arith.constant 0 : index
    %322 = vector.load %arg6[%c31, %c0_347, %c0_348] : memref<49x16x8xf32, #tpu.memory_space<vmem>>, vector<1x16x8xf32>
    %323 = vector.shape_cast %322 : vector<1x16x8xf32> to vector<16x8xf32>
    %cst_349 = arith.constant dense<0.000000e+00> : vector<1x8xf32>
    %324 = tpu.matmul %321, %323, %cst_349 {dimension_numbers = #tpu.dot_dimension_numbers<[1], [0], [0], [1], [0, 0, 1, 1], [], []>} : vector<1x16xf32>, vector<16x8xf32>, vector<1x8xf32> -> vector<1x8xf32>
    %c68 = arith.constant 68 : index
    %c0_350 = arith.constant 0 : index
    %325 = vector.load %arg13[%c68, %c0_350] : memref<256x16xf32, #tpu.memory_space<vmem>>, vector<1x16xf32>
    %c32_351 = arith.constant 32 : index
    %c0_352 = arith.constant 0 : index
    %c0_353 = arith.constant 0 : index
    %326 = vector.load %arg6[%c32_351, %c0_352, %c0_353] : memref<49x16x8xf32, #tpu.memory_space<vmem>>, vector<1x16x8xf32>
    %327 = vector.shape_cast %326 : vector<1x16x8xf32> to vector<16x8xf32>
    %cst_354 = arith.constant dense<0.000000e+00> : vector<1x8xf32>
    %328 = tpu.matmul %325, %327, %cst_354 {dimension_numbers = #tpu.dot_dimension_numbers<[1], [0], [0], [1], [0, 0, 1, 1], [], []>} : vector<1x16xf32>, vector<16x8xf32>, vector<1x8xf32> -> vector<1x8xf32>
    %c69 = arith.constant 69 : index
    %c0_355 = arith.constant 0 : index
    %329 = vector.load %arg13[%c69, %c0_355] : memref<256x16xf32, #tpu.memory_space<vmem>>, vector<1x16xf32>
    %c33_356 = arith.constant 33 : index
    %c0_357 = arith.constant 0 : index
    %c0_358 = arith.constant 0 : index
    %330 = vector.load %arg6[%c33_356, %c0_357, %c0_358] : memref<49x16x8xf32, #tpu.memory_space<vmem>>, vector<1x16x8xf32>
    %331 = vector.shape_cast %330 : vector<1x16x8xf32> to vector<16x8xf32>
    %cst_359 = arith.constant dense<0.000000e+00> : vector<1x8xf32>
    %332 = tpu.matmul %329, %331, %cst_359 {dimension_numbers = #tpu.dot_dimension_numbers<[1], [0], [0], [1], [0, 0, 1, 1], [], []>} : vector<1x16xf32>, vector<16x8xf32>, vector<1x8xf32> -> vector<1x8xf32>
    %c70_360 = arith.constant 70 : index
    %c0_361 = arith.constant 0 : index
    %333 = vector.load %arg13[%c70_360, %c0_361] : memref<256x16xf32, #tpu.memory_space<vmem>>, vector<1x16xf32>
    %c34_362 = arith.constant 34 : index
    %c0_363 = arith.constant 0 : index
    %c0_364 = arith.constant 0 : index
    %334 = vector.load %arg6[%c34_362, %c0_363, %c0_364] : memref<49x16x8xf32, #tpu.memory_space<vmem>>, vector<1x16x8xf32>
    %335 = vector.shape_cast %334 : vector<1x16x8xf32> to vector<16x8xf32>
    %cst_365 = arith.constant dense<0.000000e+00> : vector<1x8xf32>
    %336 = tpu.matmul %333, %335, %cst_365 {dimension_numbers = #tpu.dot_dimension_numbers<[1], [0], [0], [1], [0, 0, 1, 1], [], []>} : vector<1x16xf32>, vector<16x8xf32>, vector<1x8xf32> -> vector<1x8xf32>
    %c80 = arith.constant 80 : index
    %c0_366 = arith.constant 0 : index
    %337 = vector.load %arg13[%c80, %c0_366] : memref<256x16xf32, #tpu.memory_space<vmem>>, vector<1x16xf32>
    %c35_367 = arith.constant 35 : index
    %c0_368 = arith.constant 0 : index
    %c0_369 = arith.constant 0 : index
    %338 = vector.load %arg6[%c35_367, %c0_368, %c0_369] : memref<49x16x8xf32, #tpu.memory_space<vmem>>, vector<1x16x8xf32>
    %339 = vector.shape_cast %338 : vector<1x16x8xf32> to vector<16x8xf32>
    %cst_370 = arith.constant dense<0.000000e+00> : vector<1x8xf32>
    %340 = tpu.matmul %337, %339, %cst_370 {dimension_numbers = #tpu.dot_dimension_numbers<[1], [0], [0], [1], [0, 0, 1, 1], [], []>} : vector<1x16xf32>, vector<16x8xf32>, vector<1x8xf32> -> vector<1x8xf32>
    %c81_371 = arith.constant 81 : index
    %c0_372 = arith.constant 0 : index
    %341 = vector.load %arg13[%c81_371, %c0_372] : memref<256x16xf32, #tpu.memory_space<vmem>>, vector<1x16xf32>
    %c36_373 = arith.constant 36 : index
    %c0_374 = arith.constant 0 : index
    %c0_375 = arith.constant 0 : index
    %342 = vector.load %arg6[%c36_373, %c0_374, %c0_375] : memref<49x16x8xf32, #tpu.memory_space<vmem>>, vector<1x16x8xf32>
    %343 = vector.shape_cast %342 : vector<1x16x8xf32> to vector<16x8xf32>
    %cst_376 = arith.constant dense<0.000000e+00> : vector<1x8xf32>
    %344 = tpu.matmul %341, %343, %cst_376 {dimension_numbers = #tpu.dot_dimension_numbers<[1], [0], [0], [1], [0, 0, 1, 1], [], []>} : vector<1x16xf32>, vector<16x8xf32>, vector<1x8xf32> -> vector<1x8xf32>
    %c82 = arith.constant 82 : index
    %c0_377 = arith.constant 0 : index
    %345 = vector.load %arg13[%c82, %c0_377] : memref<256x16xf32, #tpu.memory_space<vmem>>, vector<1x16xf32>
    %c37_378 = arith.constant 37 : index
    %c0_379 = arith.constant 0 : index
    %c0_380 = arith.constant 0 : index
    %346 = vector.load %arg6[%c37_378, %c0_379, %c0_380] : memref<49x16x8xf32, #tpu.memory_space<vmem>>, vector<1x16x8xf32>
    %347 = vector.shape_cast %346 : vector<1x16x8xf32> to vector<16x8xf32>
    %cst_381 = arith.constant dense<0.000000e+00> : vector<1x8xf32>
    %348 = tpu.matmul %345, %347, %cst_381 {dimension_numbers = #tpu.dot_dimension_numbers<[1], [0], [0], [1], [0, 0, 1, 1], [], []>} : vector<1x16xf32>, vector<16x8xf32>, vector<1x8xf32> -> vector<1x8xf32>
    %c83 = arith.constant 83 : index
    %c0_382 = arith.constant 0 : index
    %349 = vector.load %arg13[%c83, %c0_382] : memref<256x16xf32, #tpu.memory_space<vmem>>, vector<1x16xf32>
    %c38_383 = arith.constant 38 : index
    %c0_384 = arith.constant 0 : index
    %c0_385 = arith.constant 0 : index
    %350 = vector.load %arg6[%c38_383, %c0_384, %c0_385] : memref<49x16x8xf32, #tpu.memory_space<vmem>>, vector<1x16x8xf32>
    %351 = vector.shape_cast %350 : vector<1x16x8xf32> to vector<16x8xf32>
    %cst_386 = arith.constant dense<0.000000e+00> : vector<1x8xf32>
    %352 = tpu.matmul %349, %351, %cst_386 {dimension_numbers = #tpu.dot_dimension_numbers<[1], [0], [0], [1], [0, 0, 1, 1], [], []>} : vector<1x16xf32>, vector<16x8xf32>, vector<1x8xf32> -> vector<1x8xf32>
    %c84_387 = arith.constant 84 : index
    %c0_388 = arith.constant 0 : index
    %353 = vector.load %arg13[%c84_387, %c0_388] : memref<256x16xf32, #tpu.memory_space<vmem>>, vector<1x16xf32>
    %c39 = arith.constant 39 : index
    %c0_389 = arith.constant 0 : index
    %c0_390 = arith.constant 0 : index
    %354 = vector.load %arg6[%c39, %c0_389, %c0_390] : memref<49x16x8xf32, #tpu.memory_space<vmem>>, vector<1x16x8xf32>
    %355 = vector.shape_cast %354 : vector<1x16x8xf32> to vector<16x8xf32>
    %cst_391 = arith.constant dense<0.000000e+00> : vector<1x8xf32>
    %356 = tpu.matmul %353, %355, %cst_391 {dimension_numbers = #tpu.dot_dimension_numbers<[1], [0], [0], [1], [0, 0, 1, 1], [], []>} : vector<1x16xf32>, vector<16x8xf32>, vector<1x8xf32> -> vector<1x8xf32>
    %c85 = arith.constant 85 : index
    %c0_392 = arith.constant 0 : index
    %357 = vector.load %arg13[%c85, %c0_392] : memref<256x16xf32, #tpu.memory_space<vmem>>, vector<1x16xf32>
    %c40 = arith.constant 40 : index
    %c0_393 = arith.constant 0 : index
    %c0_394 = arith.constant 0 : index
    %358 = vector.load %arg6[%c40, %c0_393, %c0_394] : memref<49x16x8xf32, #tpu.memory_space<vmem>>, vector<1x16x8xf32>
    %359 = vector.shape_cast %358 : vector<1x16x8xf32> to vector<16x8xf32>
    %cst_395 = arith.constant dense<0.000000e+00> : vector<1x8xf32>
    %360 = tpu.matmul %357, %359, %cst_395 {dimension_numbers = #tpu.dot_dimension_numbers<[1], [0], [0], [1], [0, 0, 1, 1], [], []>} : vector<1x16xf32>, vector<16x8xf32>, vector<1x8xf32> -> vector<1x8xf32>
    %c86 = arith.constant 86 : index
    %c0_396 = arith.constant 0 : index
    %361 = vector.load %arg13[%c86, %c0_396] : memref<256x16xf32, #tpu.memory_space<vmem>>, vector<1x16xf32>
    %c41 = arith.constant 41 : index
    %c0_397 = arith.constant 0 : index
    %c0_398 = arith.constant 0 : index
    %362 = vector.load %arg6[%c41, %c0_397, %c0_398] : memref<49x16x8xf32, #tpu.memory_space<vmem>>, vector<1x16x8xf32>
    %363 = vector.shape_cast %362 : vector<1x16x8xf32> to vector<16x8xf32>
    %cst_399 = arith.constant dense<0.000000e+00> : vector<1x8xf32>
    %364 = tpu.matmul %361, %363, %cst_399 {dimension_numbers = #tpu.dot_dimension_numbers<[1], [0], [0], [1], [0, 0, 1, 1], [], []>} : vector<1x16xf32>, vector<16x8xf32>, vector<1x8xf32> -> vector<1x8xf32>
    %c96_400 = arith.constant 96 : index
    %c0_401 = arith.constant 0 : index
    %365 = vector.load %arg13[%c96_400, %c0_401] : memref<256x16xf32, #tpu.memory_space<vmem>>, vector<1x16xf32>
    %c42_402 = arith.constant 42 : index
    %c0_403 = arith.constant 0 : index
    %c0_404 = arith.constant 0 : index
    %366 = vector.load %arg6[%c42_402, %c0_403, %c0_404] : memref<49x16x8xf32, #tpu.memory_space<vmem>>, vector<1x16x8xf32>
    %367 = vector.shape_cast %366 : vector<1x16x8xf32> to vector<16x8xf32>
    %cst_405 = arith.constant dense<0.000000e+00> : vector<1x8xf32>
    %368 = tpu.matmul %365, %367, %cst_405 {dimension_numbers = #tpu.dot_dimension_numbers<[1], [0], [0], [1], [0, 0, 1, 1], [], []>} : vector<1x16xf32>, vector<16x8xf32>, vector<1x8xf32> -> vector<1x8xf32>
    %c97_406 = arith.constant 97 : index
    %c0_407 = arith.constant 0 : index
    %369 = vector.load %arg13[%c97_406, %c0_407] : memref<256x16xf32, #tpu.memory_space<vmem>>, vector<1x16xf32>
    %c43 = arith.constant 43 : index
    %c0_408 = arith.constant 0 : index
    %c0_409 = arith.constant 0 : index
    %370 = vector.load %arg6[%c43, %c0_408, %c0_409] : memref<49x16x8xf32, #tpu.memory_space<vmem>>, vector<1x16x8xf32>
    %371 = vector.shape_cast %370 : vector<1x16x8xf32> to vector<16x8xf32>
    %cst_410 = arith.constant dense<0.000000e+00> : vector<1x8xf32>
    %372 = tpu.matmul %369, %371, %cst_410 {dimension_numbers = #tpu.dot_dimension_numbers<[1], [0], [0], [1], [0, 0, 1, 1], [], []>} : vector<1x16xf32>, vector<16x8xf32>, vector<1x8xf32> -> vector<1x8xf32>
    %c98_411 = arith.constant 98 : index
    %c0_412 = arith.constant 0 : index
    %373 = vector.load %arg13[%c98_411, %c0_412] : memref<256x16xf32, #tpu.memory_space<vmem>>, vector<1x16xf32>
    %c44 = arith.constant 44 : index
    %c0_413 = arith.constant 0 : index
    %c0_414 = arith.constant 0 : index
    %374 = vector.load %arg6[%c44, %c0_413, %c0_414] : memref<49x16x8xf32, #tpu.memory_space<vmem>>, vector<1x16x8xf32>
    %375 = vector.shape_cast %374 : vector<1x16x8xf32> to vector<16x8xf32>
    %cst_415 = arith.constant dense<0.000000e+00> : vector<1x8xf32>
    %376 = tpu.matmul %373, %375, %cst_415 {dimension_numbers = #tpu.dot_dimension_numbers<[1], [0], [0], [1], [0, 0, 1, 1], [], []>} : vector<1x16xf32>, vector<16x8xf32>, vector<1x8xf32> -> vector<1x8xf32>
    %c99 = arith.constant 99 : index
    %c0_416 = arith.constant 0 : index
    %377 = vector.load %arg13[%c99, %c0_416] : memref<256x16xf32, #tpu.memory_space<vmem>>, vector<1x16xf32>
    %c45 = arith.constant 45 : index
    %c0_417 = arith.constant 0 : index
    %c0_418 = arith.constant 0 : index
    %378 = vector.load %arg6[%c45, %c0_417, %c0_418] : memref<49x16x8xf32, #tpu.memory_space<vmem>>, vector<1x16x8xf32>
    %379 = vector.shape_cast %378 : vector<1x16x8xf32> to vector<16x8xf32>
    %cst_419 = arith.constant dense<0.000000e+00> : vector<1x8xf32>
    %380 = tpu.matmul %377, %379, %cst_419 {dimension_numbers = #tpu.dot_dimension_numbers<[1], [0], [0], [1], [0, 0, 1, 1], [], []>} : vector<1x16xf32>, vector<16x8xf32>, vector<1x8xf32> -> vector<1x8xf32>
    %c100 = arith.constant 100 : index
    %c0_420 = arith.constant 0 : index
    %381 = vector.load %arg13[%c100, %c0_420] : memref<256x16xf32, #tpu.memory_space<vmem>>, vector<1x16xf32>
    %c46 = arith.constant 46 : index
    %c0_421 = arith.constant 0 : index
    %c0_422 = arith.constant 0 : index
    %382 = vector.load %arg6[%c46, %c0_421, %c0_422] : memref<49x16x8xf32, #tpu.memory_space<vmem>>, vector<1x16x8xf32>
    %383 = vector.shape_cast %382 : vector<1x16x8xf32> to vector<16x8xf32>
    %cst_423 = arith.constant dense<0.000000e+00> : vector<1x8xf32>
    %384 = tpu.matmul %381, %383, %cst_423 {dimension_numbers = #tpu.dot_dimension_numbers<[1], [0], [0], [1], [0, 0, 1, 1], [], []>} : vector<1x16xf32>, vector<16x8xf32>, vector<1x8xf32> -> vector<1x8xf32>
    %c101 = arith.constant 101 : index
    %c0_424 = arith.constant 0 : index
    %385 = vector.load %arg13[%c101, %c0_424] : memref<256x16xf32, #tpu.memory_space<vmem>>, vector<1x16xf32>
    %c47 = arith.constant 47 : index
    %c0_425 = arith.constant 0 : index
    %c0_426 = arith.constant 0 : index
    %386 = vector.load %arg6[%c47, %c0_425, %c0_426] : memref<49x16x8xf32, #tpu.memory_space<vmem>>, vector<1x16x8xf32>
    %387 = vector.shape_cast %386 : vector<1x16x8xf32> to vector<16x8xf32>
    %cst_427 = arith.constant dense<0.000000e+00> : vector<1x8xf32>
    %388 = tpu.matmul %385, %387, %cst_427 {dimension_numbers = #tpu.dot_dimension_numbers<[1], [0], [0], [1], [0, 0, 1, 1], [], []>} : vector<1x16xf32>, vector<16x8xf32>, vector<1x8xf32> -> vector<1x8xf32>
    %c102 = arith.constant 102 : index
    %c0_428 = arith.constant 0 : index
    %389 = vector.load %arg13[%c102, %c0_428] : memref<256x16xf32, #tpu.memory_space<vmem>>, vector<1x16xf32>
    %c48_429 = arith.constant 48 : index
    %c0_430 = arith.constant 0 : index
    %c0_431 = arith.constant 0 : index
    %390 = vector.load %arg6[%c48_429, %c0_430, %c0_431] : memref<49x16x8xf32, #tpu.memory_space<vmem>>, vector<1x16x8xf32>
    %391 = vector.shape_cast %390 : vector<1x16x8xf32> to vector<16x8xf32>
    %cst_432 = arith.constant dense<0.000000e+00> : vector<1x8xf32>
    %392 = tpu.matmul %389, %391, %cst_432 {dimension_numbers = #tpu.dot_dimension_numbers<[1], [0], [0], [1], [0, 0, 1, 1], [], []>} : vector<1x16xf32>, vector<16x8xf32>, vector<1x8xf32> -> vector<1x8xf32>
    %393 = arith.addf %196, %200 : vector<1x8xf32>
    %394 = arith.addf %204, %208 : vector<1x8xf32>
    %395 = arith.addf %212, %216 : vector<1x8xf32>
    %396 = arith.addf %220, %224 : vector<1x8xf32>
    %397 = arith.addf %228, %232 : vector<1x8xf32>
    %398 = arith.addf %236, %240 : vector<1x8xf32>
    %399 = arith.addf %244, %248 : vector<1x8xf32>
    %400 = arith.addf %252, %256 : vector<1x8xf32>
    %401 = arith.addf %260, %264 : vector<1x8xf32>
    %402 = arith.addf %268, %272 : vector<1x8xf32>
    %403 = arith.addf %276, %280 : vector<1x8xf32>
    %404 = arith.addf %284, %288 : vector<1x8xf32>
    %405 = arith.addf %292, %296 : vector<1x8xf32>
    %406 = arith.addf %300, %304 : vector<1x8xf32>
    %407 = arith.addf %308, %312 : vector<1x8xf32>
    %408 = arith.addf %316, %320 : vector<1x8xf32>
    %409 = arith.addf %324, %328 : vector<1x8xf32>
    %410 = arith.addf %332, %336 : vector<1x8xf32>
    %411 = arith.addf %340, %344 : vector<1x8xf32>
    %412 = arith.addf %348, %352 : vector<1x8xf32>
    %413 = arith.addf %356, %360 : vector<1x8xf32>
    %414 = arith.addf %364, %368 : vector<1x8xf32>
    %415 = arith.addf %372, %376 : vector<1x8xf32>
    %416 = arith.addf %380, %384 : vector<1x8xf32>
    %417 = arith.addf %388, %392 : vector<1x8xf32>
    %418 = arith.addf %393, %394 : vector<1x8xf32>
    %419 = arith.addf %395, %396 : vector<1x8xf32>
    %420 = arith.addf %397, %398 : vector<1x8xf32>
    %421 = arith.addf %399, %400 : vector<1x8xf32>
    %422 = arith.addf %401, %402 : vector<1x8xf32>
    %423 = arith.addf %403, %404 : vector<1x8xf32>
    %424 = arith.addf %405, %406 : vector<1x8xf32>
    %425 = arith.addf %407, %408 : vector<1x8xf32>
    %426 = arith.addf %409, %410 : vector<1x8xf32>
    %427 = arith.addf %411, %412 : vector<1x8xf32>
    %428 = arith.addf %413, %414 : vector<1x8xf32>
    %429 = arith.addf %415, %416 : vector<1x8xf32>
    %430 = arith.addf %418, %419 : vector<1x8xf32>
    %431 = arith.addf %420, %421 : vector<1x8xf32>
    %432 = arith.addf %422, %423 : vector<1x8xf32>
    %433 = arith.addf %424, %425 : vector<1x8xf32>
    %434 = arith.addf %426, %427 : vector<1x8xf32>
    %435 = arith.addf %428, %429 : vector<1x8xf32>
    %436 = arith.addf %430, %431 : vector<1x8xf32>
    %437 = arith.addf %432, %433 : vector<1x8xf32>
    %438 = arith.addf %434, %435 : vector<1x8xf32>
    %439 = arith.addf %436, %437 : vector<1x8xf32>
    %440 = arith.addf %438, %417 : vector<1x8xf32>
    %441 = arith.addf %439, %440 : vector<1x8xf32>
    %c0_433 = arith.constant 0 : index
    %c0_434 = arith.constant 0 : index
    %c0_435 = arith.constant 0 : index
    %442 = vector.load %arg8[%c0_433, %c0_434, %c0_435] : memref<1x1x8xf32, #tpu.memory_space<vmem>>, vector<1x1x8xf32>
    %443 = vector.shape_cast %442 : vector<1x1x8xf32> to vector<1x8xf32>
    %444 = vector.shape_cast %441 : vector<1x8xf32> to vector<1x1x8xf32>
    tpu.vector_store %arg8[%c0_433, %c0_434, %c0_435], %444 {strides = array<i32>} : memref<1x1x8xf32, #tpu.memory_space<vmem>>, vector<1x1x8xf32>,
    return
  }
  func.func @transform_0(%arg0: i32) -> (i32, i32, i32) {
    %c0_i32 = arith.constant 0 : i32
    %c0_i32_0 = arith.constant 0 : i32
    %c0_i32_1 = arith.constant 0 : i32
    return %arg0, %c0_i32, %c0_i32_0 : i32, i32, i32
  }
  func.func @transform_1(%arg0: i32) -> (i32, i32, i32) {
    %c0_i32 = arith.constant 0 : i32
    %c0_i32_0 = arith.constant 0 : i32
    %c0_i32_1 = arith.constant 0 : i32
    %c0_i32_2 = arith.constant 0 : i32
    return %c0_i32, %c0_i32_0, %c0_i32_1 : i32, i32, i32
  }
  func.func @transform_2(%arg0: i32) -> (i32, i32) {
    %c0_i32 = arith.constant 0 : i32
    %c0_i32_0 = arith.constant 0 : i32
    %c0_i32_1 = arith.constant 0 : i32
    return %c0_i32, %c0_i32_0 : i32, i32
  }
  func.func @transform_3(%arg0: i32) -> (i32, i32, i32) {
    %c0_i32 = arith.constant 0 : i32
    %c0_i32_0 = arith.constant 0 : i32
    %c0_i32_1 = arith.constant 0 : i32
    %c0_i32_2 = arith.constant 0 : i32
    return %c0_i32, %c0_i32_0, %c0_i32_1 : i32, i32, i32
  }
  func.func @transform_4(%arg0: i32) -> (i32, i32) {
    %c0_i32 = arith.constant 0 : i32
    %c0_i32_0 = arith.constant 0 : i32
    %c0_i32_1 = arith.constant 0 : i32
    return %c0_i32, %c0_i32_0 : i32, i32
  }
  func.func @transform_5(%arg0: i32) -> (i32, i32, i32) {
    %c0_i32 = arith.constant 0 : i32
    %c0_i32_0 = arith.constant 0 : i32
    %c0_i32_1 = arith.constant 0 : i32
    %c0_i32_2 = arith.constant 0 : i32
    return %c0_i32, %c0_i32_0, %c0_i32_1 : i32, i32, i32
  }
  func.func @transform_6(%arg0: i32) -> (i32, i32) {
    %c0_i32 = arith.constant 0 : i32
    %c0_i32_0 = arith.constant 0 : i32
    %c0_i32_1 = arith.constant 0 : i32
    return %c0_i32, %c0_i32_0 : i32, i32
  }
  func.func @transform_7(%arg0: i32) -> (i32, i32, i32) {
    %c0_i32 = arith.constant 0 : i32
    %c0_i32_0 = arith.constant 0 : i32
    %c0_i32_1 = arith.constant 0 : i32
    return %arg0, %c0_i32, %c0_i32_0 : i32, i32, i32
  }
}

</mosaic_0001>

<bundles_post_ra>
// kernel: net_forward.1
= control target key start
LH: loop header
LB: loop body
LE: loop exit
PB: predicated region body
PF: predicated region fallthrough
CT: control target
= control target key end

     0   :  { %12 = vsyncpa [#allocation8], 0  ;;  %s18020_s0 = inlined_call_operand.vmem [shape: f32[2,196,1], index: 0, kind: input, shape index: {}]   ;;  %s18021_s1 = inlined_call_operand.vmem [shape: f32[9,8,16], index: 1, kind: input, shape index: {}]   ;;  %s18022_s2 = inlined_call_operand.vmem [shape: f32[1,16], index: 2, kind: input, shape index: {}]   ;;  %s18023_s3 = inlined_call_operand.vmem [shape: f32[9,16,16], index: 3, kind: input, shape index: {}]   ;;  %s18024_s4 = inlined_call_operand.vmem [shape: f32[1,16], index: 4, kind: input, shape index: {}]   ;;  %s18025_s5 = inlined_call_operand.vmem [shape: f32[49,16,8], index: 5, kind: input, shape index: {}]   ;;  %s18026_s6 = inlined_call_operand.vmem [shape: f32[1,8], index: 6, kind: input, shape index: {}]   ;;  %s18027_s7 = inlined_call_operand.hbm [shape: f32[2,1,8], index: 7, kind: output, shape index: {}]  }
   0x1   :  { %14 = vsyncpa [#allocation8 + $0x1], 0  ;;  %s14384_s24 = smov 0   ;;  %s14386_s25 = smov 0  }
   0x2   :  { %s14388_s26 = smov 0   ;;  %s14390_s27 = smov 0  }
   0x3 LB: > { %s14405_s28 = sadd.s32 4294967295, %s14338_s27   ;;  %s11465_s29 = sadd.s32 4294967294, %s14338_s27   ;;  %s14338_s27 = sphi %s14390_s27, %s18574_s27   ;;  %s14334_s26 = sphi %s14388_s26, %s18573_s26   ;;  %s14330_s25 = sphi %s14386_s25, %s18572_s25   ;;  %s14326_s24 = sphi %s14384_s24, %s18571_s24  }
   0x4   : > { %s14409_s30 = sadd.s32 1, %s14338_s27   ;;  %s179_s8 = sadd.s32 1, %s14334_s26 }
   0x5   : > { %s176_s9 = ssub.s32 %s14338_s27, %s14409_s30  ;;  %p189_p0 = scmp.ne.s32.totalorder %s14334_s26, %s14330_s25 }
   0x6   : > { %p177_p1 = scmp.eq.s32.totalorder %s176_s9, 0  ;;  %p190_p2 = scmp.eq.s32.totalorder %s14405_s28, 1 }
   0x7   : > { %p195_p3 = scmp.ne.s32.totalorder %s14330_s25, %s14326_s24  ;;  %p196_p4 = scmp.eq.s32.totalorder %s11465_s29, 1 }
   0x8   : > { %s14420_s10 = scalar_select %p177_p1, %s14334_s26, %s179_s8  }
   0x9   : > { %p14422_p5 = por %p190_p2, %p189_p0  ;;  %p14426_p6 = por %p196_p4, %p195_p3 }
   0xa   : > { %p11468_p7 = scmp.ge.s32.totalorder %s14338_s27, 1  ;;  %p240_p8 = scmp.lt.s32.totalorder %s14338_s27, 3 }
   0xc   : > { %p241_p9 = pnand %p11468_p7, %p240_p8 }
   0xe   : > { %244 = sbr.rel (%p241_p9) target bundleno = 1514 (0x5ea), region = 48 }
  0x13   : > { %p271_p10 = scmp.lt.s32.totalorder %s14405_s28, 1  ;;  %vm276_vm0 = vcmask 64512   ;;  %v14340_v0 = vmov 0   ;;  %v18028_v1 = vmov 0.0   ;;  %v11470_v10 = vld [vmem:[%s18021_s1 + $0x8] sm:$0xff]  ;;  %v11504_v14 = vld [vmem:[%s18021_s1 + $0x18] sm:$0xff] }
  0x14   : > { %14275 = vset.pattern.permute.xlu1 %v14340_v0  ;;  %14274 = vset.pattern.permute.xlu0 %v14340_v0  ;;  %281 = vst.msk [vmem:[#allocation2 + $0x20] sm:$0xff] %vm276_vm0, %v18028_v1  ;;  %282 = vst.msk [vmem:[#allocation2 + $0x28] sm:$0xff] %vm276_vm0, %v18028_v1  ;;  %v11538_v13 = vld [vmem:[%s18021_s1 + $0x28] sm:$0xff]  ;;  %v11572_v35 = vld [vmem:[%s18021_s1 + $0x38] sm:$0xff]  ;;  %vm328_vm1 = vcmask 62464   ;;  %vm3905_vm2 = vcmask 130048  }
  0x15   : > { %277 = vst.msk [vmem:[#allocation2] sm:$0xff] %vm276_vm0, %v18028_v1  ;;  %278 = vst.msk [vmem:[#allocation2 + $0x8] sm:$0xff] %vm276_vm0, %v18028_v1  ;;  %s272_s13 = scalar_select %p271_p10, %s14405_s28, 1  ;;  %12970 = vmatprep.subr.mxu0 %v11470_v10  ;;  %13020 = vmatprep.subr.mxu1 %v11504_v14  ;;  %v14560_v36 = vld [vmem:[%s18021_s1 + $0x40] sm:$0xff]  ;;  %vm4143_vm3 = vcmask 129024   ;;  %vm14342_vm4 = vmmov 0  }
  0x16   : > { %279 = vst.msk [vmem:[#allocation2 + $0x10] sm:$0xff] %vm276_vm0, %v18028_v1  ;;  %280 = vst.msk [vmem:[#allocation2 + $0x18] sm:$0xff] %vm276_vm0, %v18028_v1  ;;  %12971 = vmatpush3.msra.mxu0 %v11470_v10  ;;  %13021 = vmatpush3.msra.mxu1 %v11504_v14  ;;  %v14594_v51 = vld [vmem:[%s18021_s1] sm:$0xff]  ;;  %s269_s29 = sand.u32 1, %s14330_s25   ;;  %s12217_s8 = sshll.u32 %s14405_s28, 4  ;;  %vm11395_vm5 = vcmask 57344  }
  0x17   : > { %283 = vst.msk [vmem:[#allocation2 + $0x30] sm:$0xff] %vm276_vm0, %v18028_v1  ;;  %284 = vst.msk [vmem:[#allocation2 + $0x38] sm:$0xff] %vm276_vm0, %v18028_v1  ;;  %s14231_s14 = smul.u32 200, %s272_s13  ;;  %13070 = vmatprep.subr.mxu0 %v11538_v13  ;;  %13120 = vmatprep.subr.mxu1 %v11572_v35  ;;  %s270_s9 = scalar_lea.vmem [#allocation7], %s269_s29 }
  0x18   : > { %285 = vst.msk [vmem:[#allocation2 + $0x40] sm:$0xff] %vm276_vm0, %v18028_v1  ;;  %286 = vst.msk [vmem:[#allocation2 + $0x48] sm:$0xff] %vm276_vm0, %v18028_v1  ;;  %s11410_s13 = sshll.u32 %s270_s9, 4  ;;  %s11408_s16 = scalar_lea.hbm %s18027_s7, %s12217_s8  ;;  %s11411_s13 = int_to_ptr.vmem [resolvable:$true] %s11410_s13 }
  0x19   : > { %287 = vst.msk [vmem:[#allocation2 + $0x50] sm:$0xff] %vm276_vm0, %v18028_v1  ;;  %288 = vst.msk [vmem:[#allocation2 + $0x58] sm:$0xff] %vm276_vm0, %v18028_v1  ;;  %s14513_s17 = scalar_lea.vmem %s18020_s0, %s14231_s14  ;;  %s14278_s18 = scalar_lea.vmem %s11411_s13, 16 }
  0x1a   : > { %289 = vst.msk [vmem:[#allocation2 + $0x60] sm:$0xff] %vm276_vm0, %v18028_v1  ;;  %290 = vst.msk [vmem:[#allocation2 + $0x68] sm:$0xff] %vm276_vm0, %v18028_v1  ;;  %v330_v2 = vld [vmem:[%s14513_s17 + $0xe] sm:$0xff]  ;;  %v315_v3 = vld [vmem:[%s14513_s17] sm:$0xff]  ;;  %p14279_p11 = scmp.ne.s32.totalorder %s11411_s13, %s14278_s18  ;;  %s14343_s19 = smov [#allocation7]  }
  0x1b   : > { %291 = vst.msk [vmem:[#allocation2 + $0x70] sm:$0xff] %vm276_vm0, %v18028_v1  ;;  %292 = vst.msk [vmem:[#allocation2 + $0x78] sm:$0xff] %vm276_vm0, %v18028_v1  ;;  %334 = vperm.xlu1 %14275, %v330_v2   ;;  %319 = vperm.xlu0 %14274, %v315_v3   ;;  %v331_v4 = vld [vmem:[%s14513_s17 + $0x16] sm:$0x3f]  ;;  %v316_v5 = vld [vmem:[%s14513_s17 + $0x8] sm:$0x3f] }
  0x1c   : > { %293 = vst.msk [vmem:[#allocation2 + $0x80] sm:$0xff] %vm276_vm0, %v18028_v1  ;;  %294 = vst.msk [vmem:[#allocation2 + $0x88] sm:$0xff] %vm276_vm0, %v18028_v1  ;;  %v345_v6 = vld [vmem:[%s14513_s17 + $0x24] sm:$0x3f]  ;;  %v344_v7 = vld [vmem:[%s14513_s17 + $0x1c] sm:$0xff]  ;;  %p14280_p12 = pnand %p14279_p11, %p14422_p5  ;;  %s14282_s28 = sshll.u32 %s14343_s19, 4  ;;  %s14283_s28 = int_to_ptr.vmem [resolvable:$false] %s14282_s28 }
  0x1d   : > { %295 = vst.msk [vmem:[#allocation2 + $0x90] sm:$0xff] %vm276_vm0, %v18028_v1  ;;  %296 = vst.msk [vmem:[#allocation2 + $0x98] sm:$0xff] %vm276_vm0, %v18028_v1  ;;  %v359_v8 = vld [vmem:[%s14513_s17 + $0x32] sm:$0x3f]  ;;  %v358_v9 = vld [vmem:[%s14513_s17 + $0x2a] sm:$0xff]  ;;  %s14284_s20 = scalar_lea.vmem %s14283_s28, 32  ;;  %p14285_p0 = scmp.lt.s32.totalorder %s11411_s13, %s14283_s28 }
  0x1e   : > { %297 = vst.msk [vmem:[#allocation2 + $0xa0] sm:$0xff] %vm276_vm0, %v18028_v1  ;;  %298 = vst.msk [vmem:[#allocation2 + $0xa8] sm:$0xff] %vm276_vm0, %v18028_v1  ;;  %v545_v11 = vld [vmem:[#allocation2 + $0x1] sm:$0xff]  ;;  %v546_v12 = vld [vmem:[#allocation2 + $0x9] sm:$0xff]  ;;  %p14281_p13 = pneg %p14280_p12  ;;  %p14286_p1 = scmp.lt.s32.totalorder %s14284_s20, %s14278_s18 }
  0x1f   : > { %299 = vst.msk [vmem:[#allocation2 + $0xb0] sm:$0xff] %vm276_vm0, %v18028_v1  ;;  %300 = vst.msk [vmem:[#allocation2 + $0xb8] sm:$0xff] %vm276_vm0, %v18028_v1  ;;  %339 = vperm.xlu1 %14275, %v331_v4   ;;  %324 = vperm.xlu0 %14274, %v316_v5   ;;  %v373_v15 = vld [vmem:[%s14513_s17 + $0x40] sm:$0x3f]  ;;  %v372_v16 = vld [vmem:[%s14513_s17 + $0x38] sm:$0xff] }
  0x20   : > { %301 = vst.msk [vmem:[#allocation2 + $0xc0] sm:$0xff] %vm276_vm0, %v18028_v1  ;;  %302 = vst.msk [vmem:[#allocation2 + $0xc8] sm:$0xff] %vm276_vm0, %v18028_v1  ;;  %12972 = vmatprep.mubr.msk.f32.mxu0 %vm276_vm0, %v545_v11  ;;  %v387_v17 = vld [vmem:[%s14513_s17 + $0x4e] sm:$0x3f]  ;;  %v386_v18 = vld [vmem:[%s14513_s17 + $0x46] sm:$0xff]  ;;  %p14287_p2 = por %p14286_p1, %p14285_p0 }
  0x21   : > { %303 = vst.msk [vmem:[#allocation2 + $0xd0] sm:$0xff] %vm276_vm0, %v18028_v1  ;;  %304 = vst.msk [vmem:[#allocation2 + $0xd8] sm:$0xff] %vm276_vm0, %v18028_v1  ;;  %12973 = vmatmul.mubr.msk.f32.vlgmr.msra.gmra.mxu0 %vm276_vm0, %v546_v12  ;;  %v401_v19 = vld [vmem:[%s14513_s17 + $0x5c] sm:$0x3f]  ;;  %v400_v20 = vld [vmem:[%s14513_s17 + $0x54] sm:$0xff] }
  0x22   : > { %305 = vst.msk [vmem:[#allocation2 + $0xe0] sm:$0xff] %vm276_vm0, %v18028_v1  ;;  %306 = vst.msk [vmem:[#allocation2 + $0xe8] sm:$0xff] %vm276_vm0, %v18028_v1  ;;  %13071 = vmatpush3.msra.mxu0 %v11538_v13  ;;  %v415_v21 = vld [vmem:[%s14513_s17 + $0x6a] sm:$0x3f]  ;;  %v414_v22 = vld [vmem:[%s14513_s17 + $0x62] sm:$0xff]  ;;  %p14288_p3 = pnand %p14287_p2, %p14281_p13 }
  0x23   : > { %307 = vst.msk [vmem:[#allocation2 + $0xf0] sm:$0xff] %vm276_vm0, %v18028_v1  ;;  %308 = vst.msk [vmem:[#allocation2 + $0xf8] sm:$0xff] %vm276_vm0, %v18028_v1  ;;  %353 = vperm.xlu1 %14275, %v345_v6   ;;  %348 = vperm.xlu0 %14274, %v344_v7   ;;  %v429_v23 = vld [vmem:[%s14513_s17 + $0x78] sm:$0x3f]  ;;  %v428_v24 = vld [vmem:[%s14513_s17 + $0x70] sm:$0xff] }
  0x24   : > { %309 = vst.msk [vmem:[#allocation2 + $0x100] sm:$0xff] %vm276_vm0, %v18028_v1  ;;  %310 = vst.msk [vmem:[#allocation2 + $0x108] sm:$0xff] %vm276_vm0, %v18028_v1  ;;  %v443_v25 = vld [vmem:[%s14513_s17 + $0x86] sm:$0x3f]  ;;  %v442_v26 = vld [vmem:[%s14513_s17 + $0x7e] sm:$0xff]  ;;  %13170 = vmatprep.subr.mxu0 %v14560_v36 }
  0x25   : > { %311 = vst.msk [vmem:[#allocation2 + $0x110] sm:$0xff] %vm276_vm0, %v18028_v1  ;;  %312 = vst.msk [vmem:[#allocation2 + $0x118] sm:$0xff] %vm276_vm0, %v18028_v1  ;;  %v457_v27 = vld [vmem:[%s14513_s17 + $0x94] sm:$0x3f]  ;;  %v456_v28 = vld [vmem:[%s14513_s17 + $0x8c] sm:$0xff] }
  0x26   : > { %313 = vst.msk [vmem:[#allocation2 + $0x120] sm:$0xff] %vm276_vm0, %v18028_v1  ;;  %v471_v29 = vld [vmem:[%s14513_s17 + $0xa2] sm:$0x3f]  ;;  %v470_v30 = vld [vmem:[%s14513_s17 + $0x9a] sm:$0xff]  ;;  %v485_v31 = vld [vmem:[%s14513_s17 + $0xb0] sm:$0x3f] }
  0x27   : > { %367 = vperm.xlu1 %14275, %v359_v8   ;;  %362 = vperm.xlu0 %14274, %v358_v9   ;;  %v484_v32 = vld [vmem:[%s14513_s17 + $0xa8] sm:$0xff]  ;;  %v499_v33 = vld [vmem:[%s14513_s17 + $0xbe] sm:$0x3f]  ;;  %v498_v34 = vld [vmem:[%s14513_s17 + $0xb6] sm:$0xff]  ;;  %s11398_s17 = scalar_lea.sflag [#allocation8], %s269_s29 }
  0x2b   : > { %381 = vperm.xlu1 %14275, %v373_v15   ;;  %376 = vperm.xlu0 %14274, %v372_v16  }
  0x2f   : > { %395 = vperm.xlu1 %14275, %v387_v17   ;;  %390 = vperm.xlu0 %14274, %v386_v18  }
  0x33   : > { %409 = vperm.xlu1 %14275, %v401_v19   ;;  %404 = vperm.xlu0 %14274, %v400_v20  }
  0x37   : > { %423 = vperm.xlu1 %14275, %v415_v21   ;;  %418 = vperm.xlu0 %14274, %v414_v22  }
  0x3b   : > { %437 = vperm.xlu1 %14275, %v429_v23   ;;  %432 = vperm.xlu0 %14274, %v428_v24  }
  0x3f   : > { %451 = vperm.xlu1 %14275, %v443_v25   ;;  %446 = vperm.xlu0 %14274, %v442_v26  }
  0x43   : > { %465 = vperm.xlu1 %14275, %v457_v27   ;;  %460 = vperm.xlu0 %14274, %v456_v28  }
  0x47   : > { %479 = vperm.xlu1 %14275, %v471_v29   ;;  %474 = vperm.xlu0 %14274, %v470_v30  }
  0x4b   : > { %493 = vperm.xlu1 %14275, %v485_v31   ;;  %488 = vperm.xlu0 %14274, %v484_v32  }
  0x4f   : > { %507 = vperm.xlu1 %14275, %v499_v33   ;;  %502 = vperm.xlu0 %14274, %v498_v34  }
  0x96   : > { %v335_v37 = vpop.permute.xlu1 %334  ;;  %v320_v38 = vpop.permute.xlu0 %319 }
  0x97   : > { %342 = vst.msk [vmem:[#allocation2 + $0x21] sm:$0xff] %vm276_vm0, %v335_v37  ;;  %327 = vst.msk [vmem:[#allocation2 + $0x11] sm:$0xff] %vm276_vm0, %v320_v38 }
  0x9a   : > { %v340_v39 = vpop.permute.xlu1 %339  ;;  %v325_v40 = vpop.permute.xlu0 %324 }
  0x9b   : > { %343 = vst.msk [vmem:[#allocation2 + $0x29] sm:$0x3f] %vm328_vm1, %v340_v39  ;;  %329 = vst.msk [vmem:[#allocation2 + $0x19] sm:$0x3f] %vm328_vm1, %v325_v40 }
  0x9e   : > { %v354_v41 = vpop.permute.xlu1 %353  ;;  %v349_v42 = vpop.permute.xlu0 %348  ;;  %v14567_v43 = vld [vmem:[#allocation2 + $0x11] sm:$0xff]  ;;  %v14577_v45 = vld [vmem:[#allocation2 + $0x21] sm:$0xff] }
  0x9f   : > { %18105 = vst [vmem:[#allocation10_spill] sm:$0xff] %v14567_v43  ;;  %v14569_v44 = vld [vmem:[#allocation2 + $0x10] sm:$0xff]  ;;  %357 = vst.msk [vmem:[#allocation2 + $0x39] sm:$0x3f] %vm328_vm1, %v354_v41  ;;  %12975 = vmatprep.mubr.msk.f32.mxu0 %vm276_vm0, %v14567_v43  ;;  %v14579_v46 = vld [vmem:[#allocation2 + $0x20] sm:$0xff] }
  0xa0   : > { %356 = vst.msk [vmem:[#allocation2 + $0x31] sm:$0xff] %vm276_vm0, %v349_v42  ;;  %13022 = vmatprep.mubr.msk.f32.mxu1 %vm276_vm0, %v14569_v44  ;;  %18106 = vst [vmem:[#allocation11_spill] sm:$0xff] %v14577_v45 }
  0xa2   : > { %v368_v47 = vpop.permute.xlu1 %367  ;;  %v363_v48 = vpop.permute.xlu0 %362  ;;  %v14581_v49 = vld [vmem:[#allocation2 + $0x19] sm:$0xff]  ;;  %v14600_v52 = vld [vmem:[#allocation2 + $0x29] sm:$0xff] }
  0xa3   : > { %18107 = vst [vmem:[#allocation12_spill] sm:$0xff] %v14581_v49  ;;  %v14583_v50 = vld [vmem:[#allocation2 + $0x18] sm:$0xff]  ;;  %371 = vst.msk [vmem:[#allocation2 + $0x49] sm:$0x3f] %vm328_vm1, %v368_v47  ;;  %12976 = vmatmul.mubr.msk.f32.gmra.mxu0 %vm276_vm0, %v14581_v49  ;;  %v14602_v55 = vld [vmem:[#allocation2 + $0x28] sm:$0xff] }
  0xa4   : > { %370 = vst.msk [vmem:[#allocation2 + $0x41] sm:$0xff] %vm276_vm0, %v363_v48  ;;  %13023 = vmatmul.mubr.msk.f32.vlgmr.msra.gmra.mxu1 %vm276_vm0, %v14583_v50  ;;  %12978 = vmatprep.mubr.msk.f32.mxu0 %vm276_vm0, %v14577_v45  ;;  %18108 = vst [vmem:[#allocation13_spill] sm:$0xff] %v14600_v52  ;;  %v14837_v1 = vld [vmem:[#allocation2 + $0x12] sm:$0xff]  ;;  %v965_v49 = vld [vmem:[#allocation2 + $0x108] sm:$0xff] }
  0xa5   : > { %13025 = vmatprep.mubr.msk.f32.mxu1 %vm276_vm0, %v14579_v46  ;;  %13121 = vmatpush3.msra.mxu1 %v11572_v35  ;;  %18138 = vst [vmem:[#allocation43_spill] sm:$0xff] %v14837_v1  ;;  %v14842_v43 = vld [vmem:[#allocation2 + $0x1a] sm:$0xff] }
  0xa6   : > { %v382_v53 = vpop.permute.xlu1 %381  ;;  %v377_v54 = vpop.permute.xlu0 %376  ;;  %13220 = vmatprep.subr.mxu1 %v14594_v51  ;;  %v14619_v58 = vld [vmem:[#allocation2 + $0x39] sm:$0xff]  ;;  %18139 = vst [vmem:[#allocation44_spill] sm:$0xff] %v14842_v43 }
  0xa7   : > { %v14604_v56 = vld [vmem:[#allocation2 + $0x31] sm:$0xff]  ;;  %385 = vst.msk [vmem:[#allocation2 + $0x59] sm:$0x3f] %vm328_vm1, %v382_v53  ;;  %12979 = vmatmul.mubr.msk.f32.gmra.mxu0 %vm276_vm0, %v14600_v52  ;;  %18110 = vst [vmem:[#allocation15_spill] sm:$0xff] %v14619_v58 }
  0xa8   : > { %18109 = vst [vmem:[#allocation14_spill] sm:$0xff] %v14604_v56  ;;  %v14606_v57 = vld [vmem:[#allocation2 + $0x30] sm:$0xff]  ;;  %384 = vst.msk [vmem:[#allocation2 + $0x51] sm:$0xff] %vm276_vm0, %v377_v54  ;;  %13026 = vmatmul.mubr.msk.f32.gmra.mxu1 %vm276_vm0, %v14602_v55  ;;  %12981 = vmatprep.mubr.msk.f32.mxu0 %vm276_vm0, %v14604_v56  ;;  %v14621_v61 = vld [vmem:[#allocation2 + $0x38] sm:$0xff] }
  0xa9   : > { %13028 = vmatprep.mubr.msk.f32.mxu1 %vm276_vm0, %v14606_v57 }
  0xaa   : > { %v396_v59 = vpop.permute.xlu1 %395  ;;  %v391_v60 = vpop.permute.xlu0 %390  ;;  %v14637_v0 = vld [vmem:[#allocation2 + $0x49] sm:$0xff] }
  0xab   : > { %v14623_v62 = vld [vmem:[#allocation2 + $0x41] sm:$0xff]  ;;  %399 = vst.msk [vmem:[#allocation2 + $0x69] sm:$0x3f] %vm328_vm1, %v396_v59  ;;  %12982 = vmatmul.mubr.msk.f32.gmra.mxu0 %vm276_vm0, %v14619_v58  ;;  %18112 = vst [vmem:[#allocation17_spill] sm:$0xff] %v14637_v0 }
  0xac   : > { %18111 = vst [vmem:[#allocation16_spill] sm:$0xff] %v14623_v62  ;;  %v14625_v63 = vld [vmem:[#allocation2 + $0x40] sm:$0xff]  ;;  %398 = vst.msk [vmem:[#allocation2 + $0x61] sm:$0xff] %vm276_vm0, %v391_v60  ;;  %13029 = vmatmul.mubr.msk.f32.gmra.mxu1 %vm276_vm0, %v14621_v61  ;;  %12984 = vmatprep.mubr.msk.f32.mxu0 %vm276_vm0, %v14623_v62  ;;  %v14639_v4 = vld [vmem:[#allocation2 + $0x48] sm:$0xff] }
  0xad   : > { %13031 = vmatprep.mubr.msk.f32.mxu1 %vm276_vm0, %v14625_v63 }
  0xae   : > { %v410_v2 = vpop.permute.xlu1 %409  ;;  %v405_v3 = vpop.permute.xlu0 %404  ;;  %v14655_v7 = vld [vmem:[#allocation2 + $0x59] sm:$0xff] }
  0xaf   : > { %v14641_v5 = vld [vmem:[#allocation2 + $0x51] sm:$0xff]  ;;  %413 = vst.msk [vmem:[#allocation2 + $0x79] sm:$0x3f] %vm328_vm1, %v410_v2  ;;  %12985 = vmatmul.mubr.msk.f32.gmra.mxu0 %vm276_vm0, %v14637_v0  ;;  %18114 = vst [vmem:[#allocation19_spill] sm:$0xff] %v14655_v7 }
  0xb0   : > { %18113 = vst [vmem:[#allocation18_spill] sm:$0xff] %v14641_v5  ;;  %v14643_v6 = vld [vmem:[#allocation2 + $0x50] sm:$0xff]  ;;  %412 = vst.msk [vmem:[#allocation2 + $0x71] sm:$0xff] %vm276_vm0, %v405_v3  ;;  %13032 = vmatmul.mubr.msk.f32.gmra.mxu1 %vm276_vm0, %v14639_v4  ;;  %12987 = vmatprep.mubr.msk.f32.mxu0 %vm276_vm0, %v14641_v5  ;;  %v14657_v10 = vld [vmem:[#allocation2 + $0x58] sm:$0xff] }
  0xb1   : > { %13034 = vmatprep.mubr.msk.f32.mxu1 %vm276_vm0, %v14643_v6 }
  0xb2   : > { %v424_v8 = vpop.permute.xlu1 %423  ;;  %v419_v9 = vpop.permute.xlu0 %418  ;;  %v14673_v13 = vld [vmem:[#allocation2 + $0x69] sm:$0xff] }
  0xb3   : > { %v14659_v11 = vld [vmem:[#allocation2 + $0x61] sm:$0xff]  ;;  %427 = vst.msk [vmem:[#allocation2 + $0x89] sm:$0x3f] %vm328_vm1, %v424_v8  ;;  %12988 = vmatmul.mubr.msk.f32.gmra.mxu0 %vm276_vm0, %v14655_v7  ;;  %18116 = vst [vmem:[#allocation21_spill] sm:$0xff] %v14673_v13 }
  0xb4   : > { %18115 = vst [vmem:[#allocation20_spill] sm:$0xff] %v14659_v11  ;;  %v14661_v12 = vld [vmem:[#allocation2 + $0x60] sm:$0xff]  ;;  %426 = vst.msk [vmem:[#allocation2 + $0x81] sm:$0xff] %vm276_vm0, %v419_v9  ;;  %13035 = vmatmul.mubr.msk.f32.gmra.mxu1 %vm276_vm0, %v14657_v10  ;;  %12990 = vmatprep.mubr.msk.f32.mxu0 %vm276_vm0, %v14659_v11  ;;  %v14675_v16 = vld [vmem:[#allocation2 + $0x68] sm:$0xff] }
  0xb5   : > { %13037 = vmatprep.mubr.msk.f32.mxu1 %vm276_vm0, %v14661_v12 }
  0xb6   : > { %v438_v14 = vpop.permute.xlu1 %437  ;;  %v433_v15 = vpop.permute.xlu0 %432  ;;  %v14691_v19 = vld [vmem:[#allocation2 + $0x79] sm:$0xff] }
  0xb7   : > { %v14677_v17 = vld [vmem:[#allocation2 + $0x71] sm:$0xff]  ;;  %441 = vst.msk [vmem:[#allocation2 + $0x99] sm:$0x3f] %vm328_vm1, %v438_v14  ;;  %12991 = vmatmul.mubr.msk.f32.gmra.mxu0 %vm276_vm0, %v14673_v13  ;;  %18118 = vst [vmem:[#allocation23_spill] sm:$0xff] %v14691_v19 }
  0xb8   : > { %18117 = vst [vmem:[#allocation22_spill] sm:$0xff] %v14677_v17  ;;  %v14679_v18 = vld [vmem:[#allocation2 + $0x70] sm:$0xff]  ;;  %440 = vst.msk [vmem:[#allocation2 + $0x91] sm:$0xff] %vm276_vm0, %v433_v15  ;;  %13038 = vmatmul.mubr.msk.f32.gmra.mxu1 %vm276_vm0, %v14675_v16  ;;  %12993 = vmatprep.mubr.msk.f32.mxu0 %vm276_vm0, %v14677_v17  ;;  %v14693_v22 = vld [vmem:[#allocation2 + $0x78] sm:$0xff] }
  0xb9   : > { %13040 = vmatprep.mubr.msk.f32.mxu1 %vm276_vm0, %v14679_v18 }
  0xba   : > { %v452_v20 = vpop.permute.xlu1 %451  ;;  %v447_v21 = vpop.permute.xlu0 %446  ;;  %v14709_v25 = vld [vmem:[#allocation2 + $0x89] sm:$0xff] }
  0xbb   : > { %v14695_v23 = vld [vmem:[#allocation2 + $0x81] sm:$0xff]  ;;  %455 = vst.msk [vmem:[#allocation2 + $0xa9] sm:$0x3f] %vm328_vm1, %v452_v20  ;;  %12994 = vmatmul.mubr.msk.f32.gmra.mxu0 %vm276_vm0, %v14691_v19  ;;  %18120 = vst [vmem:[#allocation25_spill] sm:$0xff] %v14709_v25 }
  0xbc   : > { %18119 = vst [vmem:[#allocation24_spill] sm:$0xff] %v14695_v23  ;;  %v14697_v24 = vld [vmem:[#allocation2 + $0x80] sm:$0xff]  ;;  %454 = vst.msk [vmem:[#allocation2 + $0xa1] sm:$0xff] %vm276_vm0, %v447_v21  ;;  %13041 = vmatmul.mubr.msk.f32.gmra.mxu1 %vm276_vm0, %v14693_v22  ;;  %12996 = vmatprep.mubr.msk.f32.mxu0 %vm276_vm0, %v14695_v23  ;;  %v14711_v28 = vld [vmem:[#allocation2 + $0x88] sm:$0xff] }
  0xbd   : > { %13043 = vmatprep.mubr.msk.f32.mxu1 %vm276_vm0, %v14697_v24 }
  0xbe   : > { %v466_v26 = vpop.permute.xlu1 %465  ;;  %v461_v27 = vpop.permute.xlu0 %460  ;;  %v14727_v31 = vld [vmem:[#allocation2 + $0x99] sm:$0xff] }
  0xbf   : > { %v14713_v29 = vld [vmem:[#allocation2 + $0x91] sm:$0xff]  ;;  %469 = vst.msk [vmem:[#allocation2 + $0xb9] sm:$0x3f] %vm328_vm1, %v466_v26  ;;  %12997 = vmatmul.mubr.msk.f32.gmra.mxu0 %vm276_vm0, %v14709_v25  ;;  %18122 = vst [vmem:[#allocation27_spill] sm:$0xff] %v14727_v31 }
  0xc0   : > { %18121 = vst [vmem:[#allocation26_spill] sm:$0xff] %v14713_v29  ;;  %v14715_v30 = vld [vmem:[#allocation2 + $0x90] sm:$0xff]  ;;  %468 = vst.msk [vmem:[#allocation2 + $0xb1] sm:$0xff] %vm276_vm0, %v461_v27  ;;  %13044 = vmatmul.mubr.msk.f32.gmra.mxu1 %vm276_vm0, %v14711_v28  ;;  %12999 = vmatprep.mubr.msk.f32.mxu0 %vm276_vm0, %v14713_v29  ;;  %v14729_v34 = vld [vmem:[#allocation2 + $0x98] sm:$0xff] }
  0xc1   : > { %13046 = vmatprep.mubr.msk.f32.mxu1 %vm276_vm0, %v14715_v30  ;;  %v14813_v27 = vld [vmem:[#allocation2 + $0xf1] sm:$0xff] }
  0xc2   : > { %v480_v32 = vpop.permute.xlu1 %479  ;;  %v475_v33 = vpop.permute.xlu0 %474  ;;  %v14745_v38 = vld [vmem:[#allocation2 + $0xa9] sm:$0xff]  ;;  %18132 = vst [vmem:[#allocation37_spill] sm:$0xff] %v14813_v27 }
  0xc3   : > { %v14731_v35 = vld [vmem:[#allocation2 + $0xa1] sm:$0xff]  ;;  %483 = vst.msk [vmem:[#allocation2 + $0xc9] sm:$0x3f] %vm328_vm1, %v480_v32  ;;  %13000 = vmatmul.mubr.msk.f32.gmra.mxu0 %vm276_vm0, %v14727_v31  ;;  %18124 = vst [vmem:[#allocation29_spill] sm:$0xff] %v14745_v38  ;;  %v14815_v32 = vld [vmem:[#allocation2 + $0xf0] sm:$0xff] }
  0xc4   : > { %18123 = vst [vmem:[#allocation28_spill] sm:$0xff] %v14731_v35  ;;  %v14733_v37 = vld [vmem:[#allocation2 + $0xa0] sm:$0xff]  ;;  %482 = vst.msk [vmem:[#allocation2 + $0xc1] sm:$0xff] %vm276_vm0, %v475_v33  ;;  %13047 = vmatmul.mubr.msk.f32.gmra.mxu1 %vm276_vm0, %v14729_v34  ;;  %13002 = vmatprep.mubr.msk.f32.mxu0 %vm276_vm0, %v14731_v35  ;;  %v14747_v41 = vld [vmem:[#allocation2 + $0xa8] sm:$0xff] }
  0xc5   : > { %13049 = vmatprep.mubr.msk.f32.mxu1 %vm276_vm0, %v14733_v37  ;;  %18133 = vst [vmem:[#allocation38_spill] sm:$0xff] %v14815_v32 }
  0xc6   : > { %v494_v39 = vpop.permute.xlu1 %493  ;;  %v489_v40 = vpop.permute.xlu0 %488  ;;  %v14763_v48 = vld [vmem:[#allocation2 + $0xb9] sm:$0xff] }
  0xc7   : > { %v14749_v42 = vld [vmem:[#allocation2 + $0xb1] sm:$0xff]  ;;  %497 = vst.msk [vmem:[#allocation2 + $0xd9] sm:$0x3f] %vm328_vm1, %v494_v39  ;;  %13003 = vmatmul.mubr.msk.f32.gmra.mxu0 %vm276_vm0, %v14745_v38  ;;  %18126 = vst [vmem:[#allocation31_spill] sm:$0xff] %v14763_v48 }
  0xc8   : > { %18125 = vst [vmem:[#allocation30_spill] sm:$0xff] %v14749_v42  ;;  %v14751_v47 = vld [vmem:[#allocation2 + $0xb0] sm:$0xff]  ;;  %496 = vst.msk [vmem:[#allocation2 + $0xd1] sm:$0xff] %vm276_vm0, %v489_v40  ;;  %13050 = vmatmul.mubr.msk.f32.gmra.mxu1 %vm276_vm0, %v14747_v41  ;;  %13005 = vmatprep.mubr.msk.f32.mxu0 %vm276_vm0, %v14749_v42  ;;  %v14765_v59 = vld [vmem:[#allocation2 + $0xb8] sm:$0xff] }
  0xc9   : > { %13052 = vmatprep.mubr.msk.f32.mxu1 %vm276_vm0, %v14751_v47  ;;  %v14829_v40 = vld [vmem:[#allocation2 + $0xf9] sm:$0xff] }
  0xca   : > { %v508_v53 = vpop.permute.xlu1 %507  ;;  %v503_v54 = vpop.permute.xlu0 %502  ;;  %v14781_v3 = vld [vmem:[#allocation2 + $0xc9] sm:$0xff]  ;;  %18136 = vst [vmem:[#allocation41_spill] sm:$0xff] %v14829_v40 }
  0xcb   : > { %v14767_v60 = vld [vmem:[#allocation2 + $0xc1] sm:$0xff]  ;;  %511 = vst.msk [vmem:[#allocation2 + $0xe9] sm:$0x3f] %vm328_vm1, %v508_v53  ;;  %13006 = vmatmul.mubr.msk.f32.gmra.mxu0 %vm276_vm0, %v14763_v48  ;;  %18128 = vst [vmem:[#allocation33_spill] sm:$0xff] %v14781_v3  ;;  %v14831_v53 = vld [vmem:[#allocation2 + $0xf8] sm:$0xff] }
  0xcc   : > { %18127 = vst [vmem:[#allocation32_spill] sm:$0xff] %v14767_v60  ;;  %v14769_v2 = vld [vmem:[#allocation2 + $0xc0] sm:$0xff]  ;;  %510 = vst.msk [vmem:[#allocation2 + $0xe1] sm:$0xff] %vm276_vm0, %v503_v54  ;;  %13053 = vmatmul.mubr.msk.f32.gmra.mxu1 %vm276_vm0, %v14765_v59  ;;  %13008 = vmatprep.mubr.msk.f32.mxu0 %vm276_vm0, %v14767_v60  ;;  %v14783_v8 = vld [vmem:[#allocation2 + $0xc8] sm:$0xff] }
  0xcd   : > { %13055 = vmatprep.mubr.msk.f32.mxu1 %vm276_vm0, %v14769_v2  ;;  %18137 = vst [vmem:[#allocation42_spill] sm:$0xff] %v14831_v53  ;;  %v964_v54 = vld [vmem:[#allocation2 + $0x100] sm:$0xff] }
  0xce   : > { %v14797_v15 = vld [vmem:[#allocation2 + $0xd9] sm:$0xff] }
  0xcf   : > { %v14785_v9 = vld [vmem:[#allocation2 + $0xd1] sm:$0xff]  ;;  %13009 = vmatmul.mubr.msk.f32.gmra.mxu0 %vm276_vm0, %v14781_v3  ;;  %18130 = vst [vmem:[#allocation35_spill] sm:$0xff] %v14797_v15 }
  0xd0   : > { %18129 = vst [vmem:[#allocation34_spill] sm:$0xff] %v14785_v9  ;;  %v14787_v14 = vld [vmem:[#allocation2 + $0xd0] sm:$0xff]  ;;  %13056 = vmatmul.mubr.msk.f32.gmra.mxu1 %vm276_vm0, %v14783_v8  ;;  %13011 = vmatprep.mubr.msk.f32.mxu0 %vm276_vm0, %v14785_v9  ;;  %v14799_v20 = vld [vmem:[#allocation2 + $0xd8] sm:$0xff] }
  0xd1   : > { %13058 = vmatprep.mubr.msk.f32.mxu1 %vm276_vm0, %v14787_v14 }
  0xd2   : > { %v14817_v33 = vld [vmem:[#allocation2 + $0xe9] sm:$0xff] }
  0xd3   : > { %v14801_v21 = vld [vmem:[#allocation2 + $0xe1] sm:$0xff]  ;;  %13012 = vmatmul.mubr.msk.f32.gmra.mxu0 %vm276_vm0, %v14797_v15  ;;  %18134 = vst [vmem:[#allocation39_spill] sm:$0xff] %v14817_v33 }
  0xd4   : > { %18131 = vst [vmem:[#allocation36_spill] sm:$0xff] %v14801_v21  ;;  %v14803_v26 = vld [vmem:[#allocation2 + $0xe0] sm:$0xff]  ;;  %13059 = vmatmul.mubr.msk.f32.gmra.mxu1 %vm276_vm0, %v14799_v20  ;;  %13014 = vmatprep.mubr.msk.f32.mxu0 %vm276_vm0, %v14801_v21  ;;  %v14819_v39 = vld [vmem:[#allocation2 + $0xe8] sm:$0xff] }
  0xd5   : > { %13061 = vmatprep.mubr.msk.f32.mxu1 %vm276_vm0, %v14803_v26  ;;  %18135 = vst [vmem:[#allocation40_spill] sm:$0xff] %v14819_v39 }
  0xd7   : > { %13015 = vmatmul.mubr.msk.f32.gmra.mxu0 %vm276_vm0, %v14817_v33 }
  0xd8   : > { %13062 = vmatmul.mubr.msk.f32.gmra.mxu1 %vm276_vm0, %v14819_v39  ;;  %13017 = vmatprep.mubr.msk.f32.mxu0 %vm276_vm0, %v14813_v27  ;;  %v512_v39 = vld [vmem:[#allocation2] sm:$0xff] }
  0xd9   : > { %13064 = vmatprep.mubr.msk.f32.mxu1 %vm276_vm0, %v14815_v32  ;;  %v14847_v32 = vld [vmem:[%s18021_s1 + $0x10] sm:$0xff] }
  0xdb   : > { %13018 = vmatmul.mubr.msk.f32.gmra.mxu0 %vm276_vm0, %v14829_v40 }
  0xdc   : > { %13065 = vmatmul.mubr.msk.f32.gmra.mxu1 %vm276_vm0, %v14831_v53  ;;  %13072 = vmatprep.mubr.msk.f32.mxu0 %vm276_vm0, %v14837_v1  ;;  %v14852_v53 = vld [vmem:[#allocation2 + $0x22] sm:$0xff]  ;;  %v1742_v1 = vld [vmem:[#allocation2 + $0x111] sm:$0xff] }
  0xdd   : > { %13067 = vmatprep.mubr.msk.f32.mxu1 %vm276_vm0, %v964_v54  ;;  %v14860_v54 = vld [vmem:[#allocation2 + $0x2a] sm:$0xff] }
  0xdf   : > { %13073 = vmatmul.mubr.msk.f32.vlgmr.msra.gmra.mxu0 %vm276_vm0, %v14842_v43  ;;  %v15013_v43 = vld [vmem:[#allocation2 + $0xea] sm:$0xff] }
  0xe0   : > { %13068 = vmatmul.mubr.msk.f32.gmra.mxu1 %vm276_vm0, %v965_v49  ;;  %13171 = vmatpush3.msra.mxu0 %v14560_v36  ;;  %v14866_v49 = vld [vmem:[#allocation2 + $0x32] sm:$0xff]  ;;  %v14871_v36 = vld [vmem:[%s18021_s1 + $0x20] sm:$0xff] }
  0xe1   : > { %13075 = vmatprep.mubr.msk.f32.mxu0 %vm276_vm0, %v14852_v53  ;;  %13122 = vmatprep.mubr.msk.f32.mxu1 %vm276_vm0, %v14577_v45  ;;  %v14878_v45 = vld [vmem:[#allocation2 + $0x3a] sm:$0xff] }
  0xe2   : > { %13270 = vmatprep.subr.mxu0 %v14847_v32 }
  0xe3   : > { %13076 = vmatmul.mubr.msk.f32.gmra.mxu0 %vm276_vm0, %v14860_v54 }
  0xe4   : > { %13123 = vmatmul.mubr.msk.f32.vlgmr.msra.gmra.mxu1 %vm276_vm0, %v14600_v52  ;;  %13078 = vmatprep.mubr.msk.f32.mxu0 %vm276_vm0, %v14866_v49  ;;  %v14885_v52 = vld [vmem:[#allocation2 + $0x42] sm:$0xff] }
  0xe5   : > { %13125 = vmatprep.mubr.msk.f32.mxu1 %vm276_vm0, %v14604_v56  ;;  %13221 = vmatpush3.msra.mxu1 %v14594_v51  ;;  %v14891_v56 = vld [vmem:[#allocation2 + $0x4a] sm:$0xff]  ;;  %v14897_v51 = vld [vmem:[#allocation2 + $0x52] sm:$0xff] }
  0xe6   : > { %13320 = vmatprep.subr.mxu1 %v14871_v36 }
  0xe7   : > { %13079 = vmatmul.mubr.msk.f32.gmra.mxu0 %vm276_vm0, %v14878_v45 }
  0xe8   : > { %13126 = vmatmul.mubr.msk.f32.gmra.mxu1 %vm276_vm0, %v14619_v58  ;;  %13081 = vmatprep.mubr.msk.f32.mxu0 %vm276_vm0, %v14885_v52  ;;  %v14903_v58 = vld [vmem:[#allocation2 + $0x5a] sm:$0xff] }
  0xe9   : > { %13128 = vmatprep.mubr.msk.f32.mxu1 %vm276_vm0, %v14623_v62  ;;  %v14909_v62 = vld [vmem:[#allocation2 + $0x62] sm:$0xff] }
  0xeb   : > { %13082 = vmatmul.mubr.msk.f32.gmra.mxu0 %vm276_vm0, %v14891_v56 }
  0xec   : > { %13129 = vmatmul.mubr.msk.f32.gmra.mxu1 %vm276_vm0, %v14637_v0  ;;  %13084 = vmatprep.mubr.msk.f32.mxu0 %vm276_vm0, %v14897_v51  ;;  %v14915_v0 = vld [vmem:[#allocation2 + $0x6a] sm:$0xff] }
  0xed   : > { %13131 = vmatprep.mubr.msk.f32.mxu1 %vm276_vm0, %v14641_v5  ;;  %v14921_v5 = vld [vmem:[#allocation2 + $0x72] sm:$0xff] }
  0xef   : > { %13085 = vmatmul.mubr.msk.f32.gmra.mxu0 %vm276_vm0, %v14903_v58 }
  0xf0   : > { %13132 = vmatmul.mubr.msk.f32.gmra.mxu1 %vm276_vm0, %v14655_v7  ;;  %13087 = vmatprep.mubr.msk.f32.mxu0 %vm276_vm0, %v14909_v62  ;;  %v14927_v7 = vld [vmem:[#allocation2 + $0x7a] sm:$0xff] }
  0xf1   : > { %13134 = vmatprep.mubr.msk.f32.mxu1 %vm276_vm0, %v14659_v11  ;;  %v14933_v11 = vld [vmem:[#allocation2 + $0x82] sm:$0xff] }
  0xf3   : > { %13088 = vmatmul.mubr.msk.f32.gmra.mxu0 %vm276_vm0, %v14915_v0 }
  0xf4   : > { %13135 = vmatmul.mubr.msk.f32.gmra.mxu1 %vm276_vm0, %v14673_v13  ;;  %13090 = vmatprep.mubr.msk.f32.mxu0 %vm276_vm0, %v14921_v5  ;;  %v14939_v13 = vld [vmem:[#allocation2 + $0x8a] sm:$0xff] }
  0xf5   : > { %13137 = vmatprep.mubr.msk.f32.mxu1 %vm276_vm0, %v14677_v17  ;;  %v14945_v17 = vld [vmem:[#allocation2 + $0x92] sm:$0xff] }
  0xf7   : > { %13091 = vmatmul.mubr.msk.f32.gmra.mxu0 %vm276_vm0, %v14927_v7 }
  0xf8   : > { %13138 = vmatmul.mubr.msk.f32.gmra.mxu1 %vm276_vm0, %v14691_v19  ;;  %13093 = vmatprep.mubr.msk.f32.mxu0 %vm276_vm0, %v14933_v11  ;;  %v14951_v19 = vld [vmem:[#allocation2 + $0x9a] sm:$0xff] }
  0xf9   : > { %13140 = vmatprep.mubr.msk.f32.mxu1 %vm276_vm0, %v14695_v23  ;;  %v14957_v23 = vld [vmem:[#allocation2 + $0xa2] sm:$0xff] }
  0xfb   : > { %13094 = vmatmul.mubr.msk.f32.gmra.mxu0 %vm276_vm0, %v14939_v13 }
  0xfc   : > { %13141 = vmatmul.mubr.msk.f32.gmra.mxu1 %vm276_vm0, %v14709_v25  ;;  %13096 = vmatprep.mubr.msk.f32.mxu0 %vm276_vm0, %v14945_v17  ;;  %v14963_v25 = vld [vmem:[#allocation2 + $0xaa] sm:$0xff] }
  0xfd   : > { %13143 = vmatprep.mubr.msk.f32.mxu1 %vm276_vm0, %v14713_v29  ;;  %v14969_v29 = vld [vmem:[#allocation2 + $0xb2] sm:$0xff] }
  0xff   : > { %13097 = vmatmul.mubr.msk.f32.gmra.mxu0 %vm276_vm0, %v14951_v19 }
 0x100   : > { %13144 = vmatmul.mubr.msk.f32.gmra.mxu1 %vm276_vm0, %v14727_v31  ;;  %13099 = vmatprep.mubr.msk.f32.mxu0 %vm276_vm0, %v14957_v23  ;;  %v14975_v31 = vld [vmem:[#allocation2 + $0xba] sm:$0xff] }
 0x101   : > { %13146 = vmatprep.mubr.msk.f32.mxu1 %vm276_vm0, %v14731_v35  ;;  %v14981_v35 = vld [vmem:[#allocation2 + $0xc2] sm:$0xff] }
 0x103   : > { %13100 = vmatmul.mubr.msk.f32.gmra.mxu0 %vm276_vm0, %v14963_v25 }
 0x104   : > { %13147 = vmatmul.mubr.msk.f32.gmra.mxu1 %vm276_vm0, %v14745_v38  ;;  %13102 = vmatprep.mubr.msk.f32.mxu0 %vm276_vm0, %v14969_v29  ;;  %v14987_v38 = vld [vmem:[#allocation2 + $0xca] sm:$0xff] }
 0x105   : > { %13149 = vmatprep.mubr.msk.f32.mxu1 %vm276_vm0, %v14749_v42  ;;  %v14993_v42 = vld [vmem:[#allocation2 + $0xd2] sm:$0xff] }
 0x107   : > { %13103 = vmatmul.mubr.msk.f32.gmra.mxu0 %vm276_vm0, %v14975_v31 }
 0x108   : > { %13150 = vmatmul.mubr.msk.f32.gmra.mxu1 %vm276_vm0, %v14763_v48  ;;  %13105 = vmatprep.mubr.msk.f32.mxu0 %vm276_vm0, %v14981_v35  ;;  %v14999_v48 = vld [vmem:[#allocation2 + $0xda] sm:$0xff] }
 0x109   : > { %13152 = vmatprep.mubr.msk.f32.mxu1 %vm276_vm0, %v14767_v60  ;;  %v15005_v60 = vld [vmem:[#allocation2 + $0xe2] sm:$0xff] }
 0x10b   : > { %13106 = vmatmul.mubr.msk.f32.gmra.mxu0 %vm276_vm0, %v14987_v38 }
 0x10c   : > { %13153 = vmatmul.mubr.msk.f32.gmra.mxu1 %vm276_vm0, %v14781_v3  ;;  %13108 = vmatprep.mubr.msk.f32.mxu0 %vm276_vm0, %v14993_v42  ;;  %v15011_v3 = vld [vmem:[#allocation2 + $0xf2] sm:$0xff] }
 0x10d   : > { %13155 = vmatprep.mubr.msk.f32.mxu1 %vm276_vm0, %v14785_v9  ;;  %v15025_v9 = vld [vmem:[#allocation2 + $0x102] sm:$0xff] }
 0x10f   : > { %13109 = vmatmul.mubr.msk.f32.gmra.mxu0 %vm276_vm0, %v14999_v48 }
 0x110   : > { %13156 = vmatmul.mubr.msk.f32.gmra.mxu1 %vm276_vm0, %v14797_v15  ;;  %13111 = vmatprep.mubr.msk.f32.mxu0 %vm276_vm0, %v15005_v60  ;;  %v15023_v15 = vld [vmem:[#allocation2 + $0xfa] sm:$0xff] }
 0x111   : > { %13158 = vmatprep.mubr.msk.f32.mxu1 %vm276_vm0, %v14801_v21  ;;  %v15027_v21 = vld [vmem:[#allocation2 + $0x101] sm:$0xff] }
 0x112   : > { %18140 = vst [vmem:[#allocation45_spill] sm:$0xff] %v15027_v21 }
 0x113   : > { %13112 = vmatmul.mubr.msk.f32.gmra.mxu0 %vm276_vm0, %v15013_v43 }
 0x114   : > { %13159 = vmatmul.mubr.msk.f32.gmra.mxu1 %vm276_vm0, %v14817_v33  ;;  %13114 = vmatprep.mubr.msk.f32.mxu0 %vm276_vm0, %v15011_v3  ;;  %v15037_v33 = vld [vmem:[#allocation2 + $0x10a] sm:$0xff] }
 0x115   : > { %13161 = vmatprep.mubr.msk.f32.mxu1 %vm276_vm0, %v14813_v27  ;;  %v15039_v27 = vld [vmem:[#allocation2 + $0x109] sm:$0xff] }
 0x116   : > { %18141 = vst [vmem:[#allocation46_spill] sm:$0xff] %v15039_v27 }
 0x117   : > { %13115 = vmatmul.mubr.msk.f32.gmra.mxu0 %vm276_vm0, %v15023_v15 }
 0x118   : > { %13162 = vmatmul.mubr.msk.f32.gmra.mxu1 %vm276_vm0, %v14829_v40  ;;  %13117 = vmatprep.mubr.msk.f32.mxu0 %vm276_vm0, %v15025_v9  ;;  %v1743_v40 = vld [vmem:[#allocation2 + $0x119] sm:$0xff] }
 0x119   : > { %13164 = vmatprep.mubr.msk.f32.mxu1 %vm276_vm0, %v15027_v21  ;;  %v15051_v21 = vld [vmem:[%s18021_s1 + $0x30] sm:$0xff] }
 0x11b   : > { %13118 = vmatmul.mubr.msk.f32.gmra.mxu0 %vm276_vm0, %v15037_v33 }
 0x11c   : > { %13165 = vmatmul.mubr.msk.f32.gmra.mxu1 %vm276_vm0, %v15039_v27  ;;  %13172 = vmatprep.mubr.msk.f32.mxu0 %vm276_vm0, %v14852_v53  ;;  %v513_v27 = vld [vmem:[#allocation2 + $0x8] sm:$0xff] }
 0x11d   : > { %13167 = vmatprep.mubr.msk.f32.mxu1 %vm276_vm0, %v1742_v1  ;;  %v2097_v1 = vld [vmem:[#allocation2 + $0x112] sm:$0xff] }
 0x11f   : > { %13173 = vmatmul.mubr.msk.f32.vlgmr.msra.gmra.mxu0 %vm276_vm0, %v14860_v54 }
 0x120   : > { %13168 = vmatmul.mubr.msk.f32.gmra.mxu1 %vm276_vm0, %v1743_v40  ;;  %13271 = vmatpush3.msra.mxu0 %v14847_v32 }
 0x121   : > { %13175 = vmatprep.mubr.msk.f32.mxu0 %vm276_vm0, %v14866_v49  ;;  %13222 = vmatprep.mubr.msk.f32.mxu1 %vm276_vm0, %v512_v39 }
 0x122   : > { %13370 = vmatprep.subr.mxu0 %v15051_v21 }
 0x123   : > { %13176 = vmatmul.mubr.msk.f32.gmra.mxu0 %vm276_vm0, %v14878_v45 }
 0x124   : > { %13223 = vmatmul.mubr.msk.f32.vlgmr.msra.gmra.mxu1 %vm276_vm0, %v513_v27  ;;  %13178 = vmatprep.mubr.msk.f32.mxu0 %vm276_vm0, %v14885_v52 }
 0x125   : > { %13225 = vmatprep.mubr.msk.f32.mxu1 %vm276_vm0, %v14569_v44  ;;  %13321 = vmatpush3.msra.mxu1 %v14871_v36  ;;  %v2098_v44 = vld [vmem:[#allocation2 + $0x11a] sm:$0xff] }
 0x127   : > { %13179 = vmatmul.mubr.msk.f32.gmra.mxu0 %vm276_vm0, %v14891_v56 }
 0x128   : > { %13226 = vmatmul.mubr.msk.f32.gmra.mxu1 %vm276_vm0, %v14583_v50  ;;  %13181 = vmatprep.mubr.msk.f32.mxu0 %vm276_vm0, %v14897_v51  ;;  %v18142_v50 = vld [vmem:[#allocation40_spill] sm:$0xff] }
 0x129   : > { %13228 = vmatprep.mubr.msk.f32.mxu1 %vm276_vm0, %v14579_v46  ;;  %v900_v46 = vld [vmem:[#allocation2 + $0x2] sm:$0xff] }
 0x12b   : > { %13182 = vmatmul.mubr.msk.f32.gmra.mxu0 %vm276_vm0, %v14903_v58 }
 0x12c   : > { %13229 = vmatmul.mubr.msk.f32.gmra.mxu1 %vm276_vm0, %v14602_v55  ;;  %13184 = vmatprep.mubr.msk.f32.mxu0 %vm276_vm0, %v14909_v62  ;;  %v18143_v55 = vld [vmem:[#allocation38_spill] sm:$0xff] }
 0x12d   : > { %13231 = vmatprep.mubr.msk.f32.mxu1 %vm276_vm0, %v14606_v57  ;;  %v15178_v57 = vpop.f32.mrf.mxu0 }
 0x12f   : > { %13185 = vmatmul.mubr.msk.f32.gmra.mxu0 %vm276_vm0, %v14915_v0 }
 0x130   : > { %13232 = vmatmul.mubr.msk.f32.gmra.mxu1 %vm276_vm0, %v14621_v61  ;;  %13187 = vmatprep.mubr.msk.f32.mxu0 %vm276_vm0, %v14921_v5  ;;  %v901_v61 = vld [vmem:[#allocation2 + $0xa] sm:$0xff] }
 0x131   : > { %13234 = vmatprep.mubr.msk.f32.mxu1 %vm276_vm0, %v14625_v63  ;;  %v18144_v63 = vld [vmem:[#allocation42_spill] sm:$0xff] }
 0x133   : > { %13188 = vmatmul.mubr.msk.f32.gmra.mxu0 %vm276_vm0, %v14927_v7 }
 0x134   : > { %13235 = vmatmul.mubr.msk.f32.gmra.mxu1 %vm276_vm0, %v14639_v4  ;;  %13190 = vmatprep.mubr.msk.f32.mxu0 %vm276_vm0, %v14933_v11  ;;  %v18145_v4 = vld [vmem:[#allocation43_spill] sm:$0xff] }
 0x135   : > { %13237 = vmatprep.mubr.msk.f32.mxu1 %vm276_vm0, %v14643_v6  ;;  %v15186_v6 = vpop.f32.mrf.mxu0 }
 0x137   : > { %13191 = vmatmul.mubr.msk.f32.gmra.mxu0 %vm276_vm0, %v14939_v13 }
 0x138   : > { %13238 = vmatmul.mubr.msk.f32.gmra.mxu1 %vm276_vm0, %v14657_v10  ;;  %13193 = vmatprep.mubr.msk.f32.mxu0 %vm276_vm0, %v14945_v17  ;;  %v18146_v10 = vld [vmem:[#allocation10_spill] sm:$0xff] }
 0x139   : > { %13240 = vmatprep.mubr.msk.f32.mxu1 %vm276_vm0, %v14661_v12 }
 0x13b   : > { %13194 = vmatmul.mubr.msk.f32.gmra.mxu0 %vm276_vm0, %v14951_v19 }
 0x13c   : > { %13241 = vmatmul.mubr.msk.f32.gmra.mxu1 %vm276_vm0, %v14675_v16  ;;  %13196 = vmatprep.mubr.msk.f32.mxu0 %vm276_vm0, %v14957_v23 }
 0x13d   : > { %13243 = vmatprep.mubr.msk.f32.mxu1 %vm276_vm0, %v14679_v18  ;;  %v18147_v18 = vld [vmem:[#allocation44_spill] sm:$0xff] }
 0x13f   : > { %13197 = vmatmul.mubr.msk.f32.gmra.mxu0 %vm276_vm0, %v14963_v25 }
 0x140   : > { %13244 = vmatmul.mubr.msk.f32.gmra.mxu1 %vm276_vm0, %v14693_v22  ;;  %13199 = vmatprep.mubr.msk.f32.mxu0 %vm276_vm0, %v14969_v29  ;;  %v18148_v22 = vld [vmem:[#allocation12_spill] sm:$0xff] }
 0x141   : > { %13246 = vmatprep.mubr.msk.f32.mxu1 %vm276_vm0, %v14697_v24  ;;  %v18149_v24 = vld [vmem:[#allocation11_spill] sm:$0xff] }
 0x143   : > { %13200 = vmatmul.mubr.msk.f32.gmra.mxu0 %vm276_vm0, %v14975_v31 }
 0x144   : > { %13247 = vmatmul.mubr.msk.f32.gmra.mxu1 %vm276_vm0, %v14711_v28  ;;  %13202 = vmatprep.mubr.msk.f32.mxu0 %vm276_vm0, %v14981_v35 }
 0x145   : > { %13249 = vmatprep.mubr.msk.f32.mxu1 %vm276_vm0, %v14715_v30 }
 0x147   : > { %13203 = vmatmul.mubr.msk.f32.gmra.mxu0 %vm276_vm0, %v14987_v38 }
 0x148   : > { %13250 = vmatmul.mubr.msk.f32.gmra.mxu1 %vm276_vm0, %v14729_v34  ;;  %13205 = vmatprep.mubr.msk.f32.mxu0 %vm276_vm0, %v14993_v42 }
 0x149   : > { %13252 = vmatprep.mubr.msk.f32.mxu1 %vm276_vm0, %v14733_v37 }
 0x14b   : > { %13206 = vmatmul.mubr.msk.f32.gmra.mxu0 %vm276_vm0, %v14999_v48 }
 0x14c   : > { %13253 = vmatmul.mubr.msk.f32.gmra.mxu1 %vm276_vm0, %v14747_v41  ;;  %13208 = vmatprep.mubr.msk.f32.mxu0 %vm276_vm0, %v15005_v60  ;;  %v18151_v41 = vld [vmem:[#allocation13_spill] sm:$0xff] }
 0x14d   : > { %13255 = vmatprep.mubr.msk.f32.mxu1 %vm276_vm0, %v14751_v47  ;;  %v18152_v47 = vld [vmem:[#allocation14_spill] sm:$0xff] }
 0x14f   : > { %13209 = vmatmul.mubr.msk.f32.gmra.mxu0 %vm276_vm0, %v15013_v43 }
 0x150   : > { %13256 = vmatmul.mubr.msk.f32.gmra.mxu1 %vm276_vm0, %v14765_v59  ;;  %13211 = vmatprep.mubr.msk.f32.mxu0 %vm276_vm0, %v15011_v3 }
 0x151   : > { %13258 = vmatprep.mubr.msk.f32.mxu1 %vm276_vm0, %v14769_v2 }
 0x153   : > { %13212 = vmatmul.mubr.msk.f32.gmra.mxu0 %vm276_vm0, %v15023_v15 }
 0x154   : > { %13259 = vmatmul.mubr.msk.f32.gmra.mxu1 %vm276_vm0, %v14783_v8  ;;  %13214 = vmatprep.mubr.msk.f32.mxu0 %vm276_vm0, %v15025_v9 }
 0x155   : > { %13261 = vmatprep.mubr.msk.f32.mxu1 %vm276_vm0, %v14787_v14  ;;  %v18154_v14 = vld [vmem:[#allocation15_spill] sm:$0xff] }
 0x157   : > { %13215 = vmatmul.mubr.msk.f32.gmra.mxu0 %vm276_vm0, %v15037_v33 }
 0x158   : > { %13262 = vmatmul.mubr.msk.f32.gmra.mxu1 %vm276_vm0, %v14799_v20  ;;  %13217 = vmatprep.mubr.msk.f32.mxu0 %vm276_vm0, %v2097_v1  ;;  %v18155_v20 = vld [vmem:[#allocation16_spill] sm:$0xff] }
 0x159   : > { %13264 = vmatprep.mubr.msk.f32.mxu1 %vm276_vm0, %v14803_v26 }
 0x15b   : > { %13218 = vmatmul.mubr.msk.f32.gmra.mxu0 %vm276_vm0, %v2098_v44 }
 0x15c   : > { %13265 = vmatmul.mubr.msk.f32.gmra.mxu1 %vm276_vm0, %v18142_v50  ;;  %13272 = vmatprep.mubr.msk.f32.mxu0 %vm276_vm0, %v900_v46 }
 0x15d   : > { %13267 = vmatprep.mubr.msk.f32.mxu1 %vm276_vm0, %v18143_v55 }
 0x15f   : > { %13273 = vmatmul.mubr.msk.f32.vlgmr.msra.gmra.mxu0 %vm276_vm0, %v901_v61 }
 0x160   : > { %13268 = vmatmul.mubr.msk.f32.gmra.mxu1 %vm276_vm0, %v18144_v63  ;;  %13371 = vmatpush3.msra.mxu0 %v15051_v21 }
 0x161   : > { %13275 = vmatprep.mubr.msk.f32.mxu0 %vm276_vm0, %v18145_v4  ;;  %13322 = vmatprep.mubr.msk.f32.mxu1 %vm276_vm0, %v18146_v10 }
 0x163   : > { %v15190_v12 = vpop.f32.mrf.mxu0  ;;  %13276 = vmatmul.mubr.msk.f32.gmra.mxu0 %vm276_vm0, %v18147_v18 }
 0x164   : > { %v15192_v16 = vpop.f32.mrf.mxu1  ;;  %13323 = vmatmul.mubr.msk.f32.vlgmr.msra.gmra.mxu1 %vm276_vm0, %v18148_v22  ;;  %13278 = vmatprep.mubr.msk.f32.mxu0 %vm276_vm0, %v14852_v53 }
 0x165   : > { %13325 = vmatprep.mubr.msk.f32.mxu1 %vm276_vm0, %v18149_v24  ;;  %v15202_v28 = vpop.f32.mrf.mxu0 }
 0x166   : > { %v15204_v30 = vpop.f32.mrf.mxu1 }
 0x167   : > { %18150 = vst [vmem:[#allocation40_spill] sm:$0xff] %v15204_v30  ;;  %v15206_v34 = vpop.f32.mrf.mxu0  ;;  %13279 = vmatmul.mubr.msk.f32.gmra.mxu0 %vm276_vm0, %v14860_v54  ;;  %v18161_v54 = vld [vmem:[#allocation20_spill] sm:$0xff] }
 0x168   : > { %v15208_v37 = vpop.f32.mrf.mxu1  ;;  %13326 = vmatmul.mubr.msk.f32.gmra.mxu1 %vm276_vm0, %v18151_v41  ;;  %13281 = vmatprep.mubr.msk.f32.mxu0 %vm276_vm0, %v14866_v49 }
 0x169   : > { %13328 = vmatprep.mubr.msk.f32.mxu1 %vm276_vm0, %v18152_v47  ;;  %v15218_v59 = vpop.f32.mrf.mxu0 }
 0x16a   : > { %v15220_v2 = vpop.f32.mrf.mxu1 }
 0x16b   : > { %18153 = vst [vmem:[#allocation38_spill] sm:$0xff] %v15220_v2  ;;  %v15222_v8 = vpop.f32.mrf.mxu0  ;;  %13282 = vmatmul.mubr.msk.f32.gmra.mxu0 %vm276_vm0, %v14878_v45  ;;  %v18157_v45 = vld [vmem:[#allocation17_spill] sm:$0xff] }
 0x16c   : > { %v15224_v9 = vpop.f32.mrf.mxu1  ;;  %13329 = vmatmul.mubr.msk.f32.gmra.mxu1 %vm276_vm0, %v18154_v14  ;;  %13284 = vmatprep.mubr.msk.f32.mxu0 %vm276_vm0, %v14885_v52  ;;  %v18158_v52 = vld [vmem:[#allocation18_spill] sm:$0xff] }
 0x16d   : > { %13331 = vmatprep.mubr.msk.f32.mxu1 %vm276_vm0, %v18155_v20  ;;  %v15234_v21 = vpop.f32.mrf.mxu0 }
 0x16e   : > { %v15236_v26 = vpop.f32.mrf.mxu1 }
 0x16f   : > { %18156 = vst [vmem:[#allocation42_spill] sm:$0xff] %v15236_v26  ;;  %v15238_v27 = vpop.f32.mrf.mxu0  ;;  %13285 = vmatmul.mubr.msk.f32.gmra.mxu0 %vm276_vm0, %v14891_v56  ;;  %v18160_v56 = vld [vmem:[#allocation19_spill] sm:$0xff] }
 0x170   : > { %v15240_v32 = vpop.f32.mrf.mxu1  ;;  %13332 = vmatmul.mubr.msk.f32.gmra.mxu1 %vm276_vm0, %v18157_v45  ;;  %13287 = vmatprep.mubr.msk.f32.mxu0 %vm276_vm0, %v14897_v51 }
 0x171   : > { %13334 = vmatprep.mubr.msk.f32.mxu1 %vm276_vm0, %v18158_v52  ;;  %v15250_v33 = vpop.f32.mrf.mxu0 }
 0x172   : > { %v15252_v39 = vpop.f32.mrf.mxu1 }
 0x173   : > { %18159 = vst [vmem:[#allocation43_spill] sm:$0xff] %v15252_v39  ;;  %v15254_v40 = vpop.f32.mrf.mxu0  ;;  %13288 = vmatmul.mubr.msk.f32.gmra.mxu0 %vm276_vm0, %v14903_v58  ;;  %v18164_v58 = vld [vmem:[#allocation21_spill] sm:$0xff] }
 0x174   : > { %v15256_v53 = vpop.f32.mrf.mxu1  ;;  %13335 = vmatmul.mubr.msk.f32.gmra.mxu1 %vm276_vm0, %v18160_v56  ;;  %13290 = vmatprep.mubr.msk.f32.mxu0 %vm276_vm0, %v14909_v62  ;;  %v18165_v62 = vld [vmem:[#allocation22_spill] sm:$0xff] }
 0x175   : > { %13337 = vmatprep.mubr.msk.f32.mxu1 %vm276_vm0, %v18161_v54  ;;  %v15266_v49 = vpop.f32.mrf.mxu0 }
 0x176   : > { %18162 = vst [vmem:[#allocation10_spill] sm:$0xff] %v15266_v49  ;;  %v15268_v36 = vpop.f32.mrf.mxu1 }
 0x177   : > { %18163 = vst [vmem:[#allocation44_spill] sm:$0xff] %v15268_v36  ;;  %v15270_v51 = vpop.f32.mrf.mxu0  ;;  %13291 = vmatmul.mubr.msk.f32.gmra.mxu0 %vm276_vm0, %v14915_v0  ;;  %v18168_v0 = vld [vmem:[#allocation23_spill] sm:$0xff] }
 0x178   : > { %v15272_v1 = vpop.f32.mrf.mxu1  ;;  %13338 = vmatmul.mubr.msk.f32.gmra.mxu1 %vm276_vm0, %v18164_v58  ;;  %13293 = vmatprep.mubr.msk.f32.mxu0 %vm276_vm0, %v14921_v5  ;;  %v18169_v5 = vld [vmem:[#allocation24_spill] sm:$0xff] }
 0x179   : > { %13340 = vmatprep.mubr.msk.f32.mxu1 %vm276_vm0, %v18165_v62  ;;  %v15282_v44 = vpop.f32.mrf.mxu0 }
 0x17a   : > { %18166 = vst [vmem:[#allocation12_spill] sm:$0xff] %v15282_v44  ;;  %v15284_v46 = vpop.f32.mrf.mxu1 }
 0x17b   : > { %18167 = vst [vmem:[#allocation11_spill] sm:$0xff] %v15284_v46  ;;  %v15286_v50 = vpop.f32.mrf.mxu0  ;;  %13294 = vmatmul.mubr.msk.f32.gmra.mxu0 %vm276_vm0, %v14927_v7  ;;  %v18172_v7 = vld [vmem:[#allocation25_spill] sm:$0xff]  ;;  %v1683_v46 = vld [vmem:[#allocation2 + $0x48] sm:$0xff] }
 0x17c   : > { %v15288_v55 = vpop.f32.mrf.mxu1  ;;  %13341 = vmatmul.mubr.msk.f32.gmra.mxu1 %vm276_vm0, %v18168_v0  ;;  %13296 = vmatprep.mubr.msk.f32.mxu0 %vm276_vm0, %v14933_v11  ;;  %v18173_v11 = vld [vmem:[#allocation26_spill] sm:$0xff] }
 0x17d   : > { %13343 = vmatprep.mubr.msk.f32.mxu1 %vm276_vm0, %v18169_v5  ;;  %v15298_v61 = vpop.f32.mrf.mxu0 }
 0x17e   : > { %18170 = vst [vmem:[#allocation13_spill] sm:$0xff] %v15298_v61  ;;  %v15300_v63 = vpop.f32.mrf.mxu1 }
 0x17f   : > { %18171 = vst [vmem:[#allocation14_spill] sm:$0xff] %v15300_v63  ;;  %v15302_v4 = vpop.f32.mrf.mxu0  ;;  %13297 = vmatmul.mubr.msk.f32.gmra.mxu0 %vm276_vm0, %v14939_v13  ;;  %v18176_v13 = vld [vmem:[#allocation27_spill] sm:$0xff] }
 0x180   : > { %v15304_v10 = vpop.f32.mrf.mxu1  ;;  %13344 = vmatmul.mubr.msk.f32.gmra.mxu1 %vm276_vm0, %v18172_v7  ;;  %13299 = vmatprep.mubr.msk.f32.mxu0 %vm276_vm0, %v14945_v17  ;;  %v18177_v17 = vld [vmem:[#allocation28_spill] sm:$0xff]  ;;  %v1682_v63 = vld [vmem:[#allocation2 + $0x40] sm:$0xff] }
 0x181   : > { %13346 = vmatprep.mubr.msk.f32.mxu1 %vm276_vm0, %v18173_v11  ;;  %v15314_v18 = vpop.f32.mrf.mxu0 }
 0x182   : > { %18174 = vst [vmem:[#allocation15_spill] sm:$0xff] %v15314_v18  ;;  %v15316_v22 = vpop.f32.mrf.mxu1 }
 0x183   : > { %18175 = vst [vmem:[#allocation16_spill] sm:$0xff] %v15316_v22  ;;  %v15318_v24 = vpop.f32.mrf.mxu0  ;;  %13300 = vmatmul.mubr.msk.f32.gmra.mxu0 %vm276_vm0, %v14951_v19  ;;  %v18180_v19 = vld [vmem:[#allocation29_spill] sm:$0xff] }
 0x184   : > { %v15320_v41 = vpop.f32.mrf.mxu1  ;;  %13347 = vmatmul.mubr.msk.f32.gmra.mxu1 %vm276_vm0, %v18176_v13  ;;  %13302 = vmatprep.mubr.msk.f32.mxu0 %vm276_vm0, %v14957_v23  ;;  %v18181_v23 = vld [vmem:[#allocation30_spill] sm:$0xff] }
 0x185   : > { %13349 = vmatprep.mubr.msk.f32.mxu1 %vm276_vm0, %v18177_v17  ;;  %v15330_v47 = vpop.f32.mrf.mxu0 }
 0x186   : > { %18178 = vst [vmem:[#allocation17_spill] sm:$0xff] %v15330_v47  ;;  %v15332_v14 = vpop.f32.mrf.mxu1 }
 0x187   : > { %18179 = vst [vmem:[#allocation18_spill] sm:$0xff] %v15332_v14  ;;  %v15334_v20 = vpop.f32.mrf.mxu0  ;;  %13303 = vmatmul.mubr.msk.f32.gmra.mxu0 %vm276_vm0, %v14963_v25  ;;  %v18184_v25 = vld [vmem:[#allocation31_spill] sm:$0xff]  ;;  %v18209_v14 = vld [vmem:[#allocation46_spill] sm:$0xff] }
 0x188   : > { %v15336_v45 = vpop.f32.mrf.mxu1  ;;  %13350 = vmatmul.mubr.msk.f32.gmra.mxu1 %vm276_vm0, %v18180_v19  ;;  %13305 = vmatprep.mubr.msk.f32.mxu0 %vm276_vm0, %v14969_v29  ;;  %v18185_v29 = vld [vmem:[#allocation32_spill] sm:$0xff] }
 0x189   : > { %13352 = vmatprep.mubr.msk.f32.mxu1 %vm276_vm0, %v18181_v23  ;;  %v15346_v52 = vpop.f32.mrf.mxu0 }
 0x18a   : > { %18182 = vst [vmem:[#allocation19_spill] sm:$0xff] %v15346_v52  ;;  %v15348_v56 = vpop.f32.mrf.mxu1 }
 0x18b   : > { %18183 = vst [vmem:[#allocation20_spill] sm:$0xff] %v15348_v56  ;;  %v15350_v54 = vpop.f32.mrf.mxu0  ;;  %13306 = vmatmul.mubr.msk.f32.gmra.mxu0 %vm276_vm0, %v14975_v31  ;;  %v18188_v31 = vld [vmem:[#allocation33_spill] sm:$0xff] }
 0x18c   : > { %v15352_v58 = vpop.f32.mrf.mxu1  ;;  %13353 = vmatmul.mubr.msk.f32.gmra.mxu1 %vm276_vm0, %v18184_v25  ;;  %13308 = vmatprep.mubr.msk.f32.mxu0 %vm276_vm0, %v14981_v35  ;;  %v18189_v35 = vld [vmem:[#allocation34_spill] sm:$0xff] }
 0x18d   : > { %13355 = vmatprep.mubr.msk.f32.mxu1 %vm276_vm0, %v18185_v29  ;;  %v15362_v62 = vpop.f32.mrf.mxu0 }
 0x18e   : > { %18186 = vst [vmem:[#allocation21_spill] sm:$0xff] %v15362_v62  ;;  %v15364_v0 = vpop.f32.mrf.mxu1 }
 0x18f   : > { %18187 = vst [vmem:[#allocation22_spill] sm:$0xff] %v15364_v0  ;;  %v15366_v5 = vpop.f32.mrf.mxu0  ;;  %13309 = vmatmul.mubr.msk.f32.gmra.mxu0 %vm276_vm0, %v14987_v38  ;;  %v18192_v38 = vld [vmem:[#allocation35_spill] sm:$0xff] }
 0x190   : > { %v15368_v7 = vpop.f32.mrf.mxu1  ;;  %13356 = vmatmul.mubr.msk.f32.gmra.mxu1 %vm276_vm0, %v18188_v31  ;;  %13311 = vmatprep.mubr.msk.f32.mxu0 %vm276_vm0, %v14993_v42  ;;  %v18193_v42 = vld [vmem:[#allocation36_spill] sm:$0xff] }
 0x191   : > { %13358 = vmatprep.mubr.msk.f32.mxu1 %vm276_vm0, %v18189_v35  ;;  %v15378_v11 = vpop.f32.mrf.mxu0 }
 0x192   : > { %18190 = vst [vmem:[#allocation23_spill] sm:$0xff] %v15378_v11  ;;  %v15380_v13 = vpop.f32.mrf.mxu1 }
 0x193   : > { %18191 = vst [vmem:[#allocation24_spill] sm:$0xff] %v15380_v13  ;;  %v15382_v17 = vpop.f32.mrf.mxu0  ;;  %13312 = vmatmul.mubr.msk.f32.gmra.mxu0 %vm276_vm0, %v14999_v48  ;;  %v18197_v48 = vld [vmem:[#allocation39_spill] sm:$0xff] }
 0x194   : > { %v15384_v19 = vpop.f32.mrf.mxu1  ;;  %13359 = vmatmul.mubr.msk.f32.gmra.mxu1 %vm276_vm0, %v18192_v38  ;;  %13314 = vmatprep.mubr.msk.f32.mxu0 %vm276_vm0, %v15005_v60  ;;  %v18198_v60 = vld [vmem:[#allocation37_spill] sm:$0xff] }
 0x195   : > { %13361 = vmatprep.mubr.msk.f32.mxu1 %vm276_vm0, %v18193_v42  ;;  %v15394_v23 = vpop.f32.mrf.mxu0 }
 0x196   : > { %18194 = vst [vmem:[#allocation25_spill] sm:$0xff] %v15394_v23  ;;  %v15396_v25 = vpop.f32.mrf.mxu1 }
 0x197   : > { %18195 = vst [vmem:[#allocation26_spill] sm:$0xff] %v15396_v25  ;;  %v15398_v29 = vpop.f32.mrf.mxu0  ;;  %13315 = vmatmul.mubr.msk.f32.gmra.mxu0 %vm276_vm0, %v15013_v43  ;;  %v18203_v43 = vld [vmem:[#allocation41_spill] sm:$0xff] }
 0x198   : > { %18196 = vst [vmem:[#allocation27_spill] sm:$0xff] %v15398_v29  ;;  %v15400_v31 = vpop.f32.mrf.mxu1  ;;  %13362 = vmatmul.mubr.msk.f32.gmra.mxu1 %vm276_vm0, %v18197_v48  ;;  %13317 = vmatprep.mubr.msk.f32.mxu0 %vm276_vm0, %v15011_v3  ;;  %v1678_v48 = vld [vmem:[#allocation2 + $0x20] sm:$0xff]  ;;  %v18204_v3 = vld [vmem:[#allocation45_spill] sm:$0xff] }
 0x199   : > { %13364 = vmatprep.mubr.msk.f32.mxu1 %vm276_vm0, %v18198_v60  ;;  %v15410_v35 = vpop.f32.mrf.mxu0 }
 0x19a   : > { %18199 = vst [vmem:[#allocation28_spill] sm:$0xff] %v15410_v35  ;;  %v15412_v38 = vpop.f32.mrf.mxu1 }
 0x19b   : > { %18200 = vst [vmem:[#allocation29_spill] sm:$0xff] %v15412_v38  ;;  %v15414_v42 = vpop.f32.mrf.mxu0  ;;  %13318 = vmatmul.mubr.msk.f32.gmra.mxu0 %vm276_vm0, %v15023_v15  ;;  %v1679_v38 = vld [vmem:[#allocation2 + $0x28] sm:$0xff]  ;;  %v1680_v15 = vld [vmem:[#allocation2 + $0x30] sm:$0xff] }
 0x19c   : > { %18201 = vst [vmem:[#allocation30_spill] sm:$0xff] %v15414_v42  ;;  %v15416_v25 = vpop.f32.mrf.mxu1  ;;  %13365 = vmatmul.mubr.msk.f32.gmra.mxu1 %vm276_vm0, %v18203_v43  ;;  %13372 = vmatprep.mubr.msk.f32.mxu0 %vm276_vm0, %v1678_v48 }
 0x19d   : > { %18202 = vst [vmem:[#allocation31_spill] sm:$0xff] %v15416_v25  ;;  %13367 = vmatprep.mubr.msk.f32.mxu1 %vm276_vm0, %v18204_v3  ;;  %v15425_v60 = vpop.f32.mrf.mxu0  ;;  %v1681_v3 = vld [vmem:[#allocation2 + $0x38] sm:$0xff] }
 0x19e   : > { %18205 = vst [vmem:[#allocation32_spill] sm:$0xff] %v15425_v60  ;;  %v15427_v13 = vpop.f32.mrf.mxu1 }
 0x19f   : > { %18206 = vst [vmem:[#allocation33_spill] sm:$0xff] %v15427_v13  ;;  %v15431_v56 = vpop.f32.mrf.mxu0  ;;  %13373 = vmatmul.mubr.msk.f32.vlgmr.msra.gmra.mxu0 %vm276_vm0, %v1679_v38 }
 0x1a0   : > { %v15429_v0 = vpop.f32.mrf.mxu1  ;;  %18208 = vst [vmem:[#allocation35_spill] sm:$0xff] %v15431_v56  ;;  %13368 = vmatmul.mubr.msk.f32.gmra.mxu1 %vm276_vm0, %v18209_v14  ;;  %13375 = vmatprep.mubr.msk.f32.mxu0 %vm276_vm0, %v1680_v15 }
 0x1a1   : > { %18207 = vst [vmem:[#allocation34_spill] sm:$0xff] %v15429_v0  ;;  %v15439_v48 = vpop.f32.mrf.mxu0 }
 0x1a2   : > { %v15437_v43 = vpop.f32.mrf.mxu1  ;;  %18211 = vst [vmem:[#allocation39_spill] sm:$0xff] %v15439_v48  ;;  %v1684_v48 = vld [vmem:[#allocation2 + $0x50] sm:$0xff] }
 0x1a3   : > { %18210 = vst [vmem:[#allocation36_spill] sm:$0xff] %v15437_v43  ;;  %v15441_v22 = vpop.f32.mrf.mxu0  ;;  %13376 = vmatmul.mubr.msk.f32.gmra.mxu0 %vm276_vm0, %v1681_v3 }
 0x1a4   : > { %18212 = vst [vmem:[#allocation37_spill] sm:$0xff] %v15441_v22  ;;  %v15443_v13 = vpop.f32.mrf.mxu1  ;;  %13378 = vmatprep.mubr.msk.f32.mxu0 %vm276_vm0, %v1682_v63  ;;  %v1685_v22 = vld [vmem:[#allocation2 + $0x58] sm:$0xff] }
 0x1a5   : > { %18213 = vst [vmem:[#allocation41_spill] sm:$0xff] %v15443_v13  ;;  %v15447_v14 = vpop.f32.mrf.mxu0 }
 0x1a6   : > { %18214 = vst [vmem:[#allocation45_spill] sm:$0xff] %v15447_v14  ;;  %v15449_v38 = vpop.f32.mrf.mxu1 }
 0x1a7   : > { %18215 = vst [vmem:[#allocation46_spill] sm:$0xff] %v15449_v38  ;;  %v15451_v15 = vpop.f32.mrf.mxu0  ;;  %13379 = vmatmul.mubr.msk.f32.gmra.mxu0 %vm276_vm0, %v1683_v46  ;;  %v1686_v38 = vld [vmem:[#allocation2 + $0x60] sm:$0xff] }
 0x1a8   : > { %18216 = vst [vmem:[#allocation47_spill] sm:$0xff] %v15451_v15  ;;  %v15453_v43 = vpop.f32.mrf.mxu1  ;;  %13381 = vmatprep.mubr.msk.f32.mxu0 %vm276_vm0, %v1684_v48  ;;  %v1687_v15 = vld [vmem:[#allocation2 + $0x68] sm:$0xff] }
 0x1a9   : > { %18217 = vst [vmem:[#allocation48_spill] sm:$0xff] %v15453_v43  ;;  %v15457_v13 = vpop.f32.mrf.mxu0 }
 0x1aa   : > { %18218 = vst [vmem:[#allocation49_spill] sm:$0xff] %v15457_v13  ;;  %v15459_v3 = vpop.f32.mrf.mxu1 }
 0x1ab   : > { %18219 = vst [vmem:[#allocation50_spill] sm:$0xff] %v15459_v3  ;;  %v15461_v63 = vpop.f32.mrf.mxu0  ;;  %13382 = vmatmul.mubr.msk.f32.gmra.mxu0 %vm276_vm0, %v1685_v22  ;;  %v1688_v3 = vld [vmem:[#allocation2 + $0x70] sm:$0xff] }
 0x1ac   : > { %18220 = vst [vmem:[#allocation51_spill] sm:$0xff] %v15461_v63  ;;  %v15463_v14 = vpop.f32.mrf.mxu1  ;;  %13384 = vmatprep.mubr.msk.f32.mxu0 %vm276_vm0, %v1686_v38  ;;  %v1689_v63 = vld [vmem:[#allocation2 + $0x78] sm:$0xff] }
 0x1ad   : > { %18221 = vst [vmem:[#allocation52_spill] sm:$0xff] %v15463_v14  ;;  %v15467_v43 = vpop.f32.mrf.mxu0 }
 0x1ae   : > { %18222 = vst [vmem:[#allocation53_spill] sm:$0xff] %v15467_v43  ;;  %v15469_v46 = vpop.f32.mrf.mxu1 }
 0x1af   : > { %18223 = vst [vmem:[#allocation54_spill] sm:$0xff] %v15469_v46  ;;  %v15471_v48 = vpop.f32.mrf.mxu0  ;;  %13385 = vmatmul.mubr.msk.f32.gmra.mxu0 %vm276_vm0, %v1687_v15  ;;  %v1690_v46 = vld [vmem:[#allocation2 + $0x80] sm:$0xff] }
 0x1b0   : > { %18224 = vst [vmem:[#allocation55_spill] sm:$0xff] %v15471_v48  ;;  %v15473_v13 = vpop.f32.mrf.mxu1  ;;  %13387 = vmatprep.mubr.msk.f32.mxu0 %vm276_vm0, %v1688_v3  ;;  %v1691_v48 = vld [vmem:[#allocation2 + $0x88] sm:$0xff] }
 0x1b1   : > { %18225 = vst [vmem:[#allocation56_spill] sm:$0xff] %v15473_v13  ;;  %v15477_v14 = vpop.f32.mrf.mxu0 }
 0x1b2   : > { %18226 = vst [vmem:[#allocation57_spill] sm:$0xff] %v15477_v14  ;;  %v15479_v22 = vpop.f32.mrf.mxu1 }
 0x1b3   : > { %18227 = vst [vmem:[#allocation58_spill] sm:$0xff] %v15479_v22  ;;  %v15481_v38 = vpop.f32.mrf.mxu0  ;;  %13388 = vmatmul.mubr.msk.f32.gmra.mxu0 %vm276_vm0, %v1689_v63  ;;  %v1692_v22 = vld [vmem:[#allocation2 + $0x90] sm:$0xff] }
 0x1b4   : > { %18228 = vst [vmem:[#allocation59_spill] sm:$0xff] %v15481_v38  ;;  %v15483_v43 = vpop.f32.mrf.mxu1  ;;  %13390 = vmatprep.mubr.msk.f32.mxu0 %vm276_vm0, %v1690_v46  ;;  %v1693_v38 = vld [vmem:[#allocation2 + $0x98] sm:$0xff] }
 0x1b5   : > { %18229 = vst [vmem:[#allocation60_spill] sm:$0xff] %v15483_v43  ;;  %v15487_v13 = vpop.f32.mrf.mxu0 }
 0x1b6   : > { %18230 = vst [vmem:[#allocation61_spill] sm:$0xff] %v15487_v13  ;;  %v15489_v15 = vpop.f32.mrf.mxu1 }
 0x1b7   : > { %18231 = vst [vmem:[#allocation62_spill] sm:$0xff] %v15489_v15  ;;  %v15491_v3 = vpop.f32.mrf.mxu0  ;;  %13391 = vmatmul.mubr.msk.f32.gmra.mxu0 %vm276_vm0, %v1691_v48  ;;  %v1694_v15 = vld [vmem:[#allocation2 + $0xa0] sm:$0xff] }
 0x1b8   : > { %18232 = vst [vmem:[#allocation63_spill] sm:$0xff] %v15491_v3  ;;  %v15493_v14 = vpop.f32.mrf.mxu1  ;;  %13393 = vmatprep.mubr.msk.f32.mxu0 %vm276_vm0, %v1692_v22  ;;  %v1695_v3 = vld [vmem:[#allocation2 + $0xa8] sm:$0xff] }
 0x1b9   : > { %18233 = vst [vmem:[#allocation64_spill] sm:$0xff] %v15493_v14  ;;  %v15497_v43 = vpop.f32.mrf.mxu0 }
 0x1ba   : > { %18234 = vst [vmem:[#allocation65_spill] sm:$0xff] %v15497_v43  ;;  %v15499_v63 = vpop.f32.mrf.mxu1 }
 0x1bb   : > { %18235 = vst [vmem:[#allocation66_spill] sm:$0xff] %v15499_v63  ;;  %v15501_v46 = vpop.f32.mrf.mxu0  ;;  %13394 = vmatmul.mubr.msk.f32.gmra.mxu0 %vm276_vm0, %v1693_v38  ;;  %v1696_v63 = vld [vmem:[#allocation2 + $0xb0] sm:$0xff] }
 0x1bc   : > { %18236 = vst [vmem:[#allocation67_spill] sm:$0xff] %v15501_v46  ;;  %v15503_v13 = vpop.f32.mrf.mxu1  ;;  %13396 = vmatprep.mubr.msk.f32.mxu0 %vm276_vm0, %v1694_v15  ;;  %v1697_v46 = vld [vmem:[#allocation2 + $0xb8] sm:$0xff] }
 0x1bd   : > { %18237 = vst [vmem:[#allocation68_spill] sm:$0xff] %v15503_v13  ;;  %v15507_v14 = vpop.f32.mrf.mxu0 }
 0x1be   : > { %18238 = vst [vmem:[#allocation69_spill] sm:$0xff] %v15507_v14  ;;  %v15509_v48 = vpop.f32.mrf.mxu1 }
 0x1bf   : > { %18239 = vst [vmem:[#allocation70_spill] sm:$0xff] %v15509_v48  ;;  %v15511_v22 = vpop.f32.mrf.mxu0  ;;  %13397 = vmatmul.mubr.msk.f32.gmra.mxu0 %vm276_vm0, %v1695_v3  ;;  %v1698_v48 = vld [vmem:[#allocation2 + $0xc0] sm:$0xff] }
 0x1c0   : > { %18240 = vst [vmem:[#allocation71_spill] sm:$0xff] %v15511_v22  ;;  %v15513_v43 = vpop.f32.mrf.mxu1  ;;  %13399 = vmatprep.mubr.msk.f32.mxu0 %vm276_vm0, %v1696_v63  ;;  %v1699_v22 = vld [vmem:[#allocation2 + $0xc8] sm:$0xff] }
 0x1c1   : > { %18241 = vst [vmem:[#allocation72_spill] sm:$0xff] %v15513_v43  ;;  %v15517_v13 = vpop.f32.mrf.mxu0 }
 0x1c2   : > { %18242 = vst [vmem:[#allocation73_spill] sm:$0xff] %v15517_v13  ;;  %v15519_v38 = vpop.f32.mrf.mxu1 }
 0x1c3   : > { %18243 = vst [vmem:[#allocation74_spill] sm:$0xff] %v15519_v38  ;;  %v15521_v15 = vpop.f32.mrf.mxu0  ;;  %13400 = vmatmul.mubr.msk.f32.gmra.mxu0 %vm276_vm0, %v1697_v46  ;;  %v1700_v38 = vld [vmem:[#allocation2 + $0xd0] sm:$0xff] }
 0x1c4   : > { %18244 = vst [vmem:[#allocation75_spill] sm:$0xff] %v15521_v15  ;;  %v15523_v14 = vpop.f32.mrf.mxu1  ;;  %13402 = vmatprep.mubr.msk.f32.mxu0 %vm276_vm0, %v1698_v48  ;;  %v1701_v15 = vld [vmem:[#allocation2 + $0xd8] sm:$0xff] }
 0x1c5   : > { %18245 = vst [vmem:[#allocation76_spill] sm:$0xff] %v15523_v14  ;;  %v15527_v43 = vpop.f32.mrf.mxu0 }
 0x1c6   : > { %18246 = vst [vmem:[#allocation77_spill] sm:$0xff] %v15527_v43  ;;  %v15529_v3 = vpop.f32.mrf.mxu1 }
 0x1c7   : > { %18247 = vst [vmem:[#allocation78_spill] sm:$0xff] %v15529_v3  ;;  %v15531_v63 = vpop.f32.mrf.mxu0  ;;  %13403 = vmatmul.mubr.msk.f32.gmra.mxu0 %vm276_vm0, %v1699_v22  ;;  %v1702_v3 = vld [vmem:[#allocation2 + $0xe0] sm:$0xff] }
 0x1c8   : > { %18248 = vst [vmem:[#allocation79_spill] sm:$0xff] %v15531_v63  ;;  %v15533_v13 = vpop.f32.mrf.mxu1  ;;  %13405 = vmatprep.mubr.msk.f32.mxu0 %vm276_vm0, %v1700_v38  ;;  %v1704_v63 = vld [vmem:[#allocation2 + $0xf0] sm:$0xff]  ;;  %v1703_v38 = vld [vmem:[#allocation2 + $0xe8] sm:$0xff] }
 0x1c9   : > { %18249 = vst [vmem:[#allocation80_spill] sm:$0xff] %v15533_v13  ;;  %v15537_v14 = vpop.f32.mrf.mxu0 }
 0x1ca   : > { %18250 = vst [vmem:[#allocation81_spill] sm:$0xff] %v15537_v14  ;;  %v15539_v46 = vpop.f32.mrf.mxu1 }
 0x1cb   : > { %18251 = vst [vmem:[#allocation82_spill] sm:$0xff] %v15539_v46  ;;  %v15541_v48 = vpop.f32.mrf.mxu0  ;;  %13406 = vmatmul.mubr.msk.f32.gmra.mxu0 %vm276_vm0, %v1701_v15 }
 0x1cc   : > { %18252 = vst [vmem:[#allocation83_spill] sm:$0xff] %v15541_v48  ;;  %v15543_v43 = vpop.f32.mrf.mxu1  ;;  %13408 = vmatprep.mubr.msk.f32.mxu0 %vm276_vm0, %v1702_v3  ;;  %v1706_v3 = vld [vmem:[#allocation2 + $0x100] sm:$0xff] }
 0x1cd   : > { %18253 = vst [vmem:[#allocation84_spill] sm:$0xff] %v15543_v43  ;;  %v15547_v13 = vpop.f32.mrf.mxu0  ;;  %v1705_v43 = vld [vmem:[#allocation2 + $0xf8] sm:$0xff] }
 0x1ce   : > { %18254 = vst [vmem:[#allocation85_spill] sm:$0xff] %v15547_v13  ;;  %v15549_v22 = vpop.f32.mrf.mxu1 }
 0x1cf   : > { %18255 = vst [vmem:[#allocation86_spill] sm:$0xff] %v15549_v22  ;;  %v15551_v0 = vpop.f32.mrf.mxu0  ;;  %13409 = vmatmul.mubr.msk.f32.gmra.mxu0 %vm276_vm0, %v1703_v38  ;;  %v1707_v22 = vld [vmem:[#allocation2 + $0x108] sm:$0xff] }
 0x1d0   : > { %18256 = vst [vmem:[#allocation87_spill] sm:$0xff] %v15551_v0  ;;  %v15553_v14 = vpop.f32.mrf.mxu1  ;;  %13411 = vmatprep.mubr.msk.f32.mxu0 %vm276_vm0, %v1704_v63  ;;  %v1708_v63 = vld [vmem:[#allocation2 + $0x110] sm:$0xff] }
 0x1d1   : > { %18257 = vst [vmem:[#allocation88_spill] sm:$0xff] %v15553_v14  ;;  %v15557_v46 = vpop.f32.mrf.mxu0 }
 0x1d2   : > { %18258 = vst [vmem:[#allocation89_spill] sm:$0xff] %v15557_v46  ;;  %v15559_v15 = vpop.f32.mrf.mxu1 }
 0x1d3   : > { %18259 = vst [vmem:[#allocation90_spill] sm:$0xff] %v15559_v15  ;;  %v15561_v48 = vpop.f32.mrf.mxu0  ;;  %13412 = vmatmul.mubr.msk.f32.gmra.mxu0 %vm276_vm0, %v1705_v43  ;;  %v1709_v15 = vld [vmem:[#allocation2 + $0x118] sm:$0xff] }
 0x1d4   : > { %18260 = vst [vmem:[#allocation91_spill] sm:$0xff] %v15561_v48  ;;  %v15563_v13 = vpop.f32.mrf.mxu1  ;;  %13414 = vmatprep.mubr.msk.f32.mxu0 %vm276_vm0, %v1706_v3 }
 0x1d5   : > { %18261 = vst [vmem:[#allocation92_spill] sm:$0xff] %v15563_v13  ;;  %v15567_v14 = vpop.f32.mrf.mxu0 }
 0x1d6   : > { %18262 = vst [vmem:[#allocation93_spill] sm:$0xff] %v15567_v14  ;;  %v15569_v38 = vpop.f32.mrf.mxu1 }
 0x1d7   : > { %18263 = vst [vmem:[#allocation94_spill] sm:$0xff] %v15569_v38  ;;  %v15571_v0 = vpop.f32.mrf.mxu0  ;;  %13415 = vmatmul.mubr.msk.f32.gmra.mxu0 %vm276_vm0, %v1707_v22 }
 0x1d8   : > { %18264 = vst [vmem:[#allocation95_spill] sm:$0xff] %v15571_v0  ;;  %v15573_v46 = vpop.f32.mrf.mxu1  ;;  %13417 = vmatprep.mubr.msk.f32.mxu0 %vm276_vm0, %v1708_v63 }
 0x1d9   : > { %18265 = vst [vmem:[#allocation96_spill] sm:$0xff] %v15573_v46  ;;  %v15577_v13 = vpop.f32.mrf.mxu0 }
 0x1da   : > { %18266 = vst [vmem:[#allocation97_spill] sm:$0xff] %v15577_v13  ;;  %v15579_v43 = vpop.f32.mrf.mxu1 }
 0x1db   : > { %18267 = vst [vmem:[#allocation98_spill] sm:$0xff] %v15579_v43  ;;  %v15581_v3 = vpop.f32.mrf.mxu0  ;;  %13418 = vmatmul.mubr.msk.f32.gmra.mxu0 %vm276_vm0, %v1709_v15 }
 0x1dc   : > { %18268 = vst [vmem:[#allocation99_spill] sm:$0xff] %v15581_v3  ;;  %v15583_v48 = vpop.f32.mrf.mxu1 }
 0x1dd   : > { %18269 = vst [vmem:[#allocation100_spill] sm:$0xff] %v15583_v48  ;;  %v15586_v38 = vpop.f32.mrf.mxu0 }
 0x1de   : > { %18270 = vst [vmem:[#allocation101_spill] sm:$0xff] %v15586_v38  ;;  %v15588_v0 = vpop.f32.mrf.mxu1 }
 0x1df   : > { %18271 = vst [vmem:[#allocation102_spill] sm:$0xff] %v15588_v0  ;;  %v15592_v22 = vpop.f32.mrf.mxu0 }
 0x1e0   : > { %v15590_v46 = vpop.f32.mrf.mxu1  ;;  %18273 = vst [vmem:[#allocation104_spill] sm:$0xff] %v15592_v22 }
 0x1e1   : > { %18272 = vst [vmem:[#allocation103_spill] sm:$0xff] %v15590_v46  ;;  %v15596_v14 = vpop.f32.mrf.mxu0 }
 0x1e2   : > { %v15594_v63 = vpop.f32.mrf.mxu1  ;;  %18275 = vst [vmem:[#allocation106_spill] sm:$0xff] %v15596_v14 }
 0x1e3   : > { %18274 = vst [vmem:[#allocation105_spill] sm:$0xff] %v15594_v63  ;;  %v15598_v13 = vpop.f32.mrf.mxu0 }
 0x1e4   : > { %18276 = vst [vmem:[#allocation107_spill] sm:$0xff] %v15598_v13  ;;  %v15600_v43 = vpop.f32.mrf.mxu1  ;;  %v18281_v13 = vmov 0.0  }
 0x1e5   : > { %v15602_v3 = vpop.f32.mrf.mxu0  ;;  %4104 = vst.msk [vmem:[#allocation5] sm:$0xff] %vm3905_vm2, %v18281_v13  ;;  %4105 = vst.msk [vmem:[#allocation5 + $0x8] sm:$0xff] %vm3905_vm2, %v18281_v13 }
 0x1e6   : > { %18277 = vst [vmem:[#allocation108_spill] sm:$0xff] %v15602_v3  ;;  %v15604_v48 = vpop.f32.mrf.mxu1  ;;  %4106 = vst.msk [vmem:[#allocation5 + $0x10] sm:$0xff] %vm3905_vm2, %v18281_v13 }
 0x1e7   : > { %v15606_v15 = vpop.f32.mrf.mxu0  ;;  %4107 = vst.msk [vmem:[#allocation5 + $0x18] sm:$0xff] %vm3905_vm2, %v18281_v13  ;;  %4108 = vst.msk [vmem:[#allocation5 + $0x20] sm:$0xff] %vm3905_vm2, %v18281_v13 }
 0x1e8   : > { %18278 = vst [vmem:[#allocation109_spill] sm:$0xff] %v15606_v15  ;;  %v15608_v38 = vpop.f32.mrf.mxu1  ;;  %4109 = vst.msk [vmem:[#allocation5 + $0x28] sm:$0xff] %vm3905_vm2, %v18281_v13 }
 0x1e9   : > { %v15610_v0 = vpop.f32.mrf.mxu0  ;;  %4110 = vst.msk [vmem:[#allocation5 + $0x30] sm:$0xff] %vm3905_vm2, %v18281_v13  ;;  %4111 = vst.msk [vmem:[#allocation5 + $0x38] sm:$0xff] %vm3905_vm2, %v18281_v13 }
 0x1ea   : > { %18279 = vst [vmem:[#allocation110_spill] sm:$0xff] %v15610_v0  ;;  %v15612_v46 = vpop.f32.mrf.mxu1  ;;  %4112 = vst.msk [vmem:[#allocation5 + $0x40] sm:$0xff] %vm3905_vm2, %v18281_v13 }
 0x1eb   : > { %v15614_v63 = vpop.f32.mrf.mxu0  ;;  %4113 = vst.msk [vmem:[#allocation5 + $0x48] sm:$0xff] %vm3905_vm2, %v18281_v13  ;;  %4114 = vst.msk [vmem:[#allocation5 + $0x50] sm:$0xff] %vm3905_vm2, %v18281_v13 }
 0x1ec   : > { %18280 = vst [vmem:[#allocation111_spill] sm:$0xff] %v15614_v63  ;;  %v15616_v14 = vpop.f32.mrf.mxu1  ;;  %4115 = vst.msk [vmem:[#allocation5 + $0x58] sm:$0xff] %vm3905_vm2, %v18281_v13 }
 0x1ed   : > { %4116 = vst.msk [vmem:[#allocation5 + $0x60] sm:$0xff] %vm3905_vm2, %v18281_v13  ;;  %4117 = vst.msk [vmem:[#allocation5 + $0x68] sm:$0xff] %vm3905_vm2, %v18281_v13  ;;  %v15692_v63 = vpop.f32.mrf.mxu0 }
 0x1ee   : > { %4118 = vst.msk [vmem:[#allocation5 + $0x70] sm:$0xff] %vm3905_vm2, %v18281_v13  ;;  %4119 = vst.msk [vmem:[#allocation5 + $0x78] sm:$0xff] %vm3905_vm2, %v18281_v13  ;;  %v15694_v0 = vpop.f32.mrf.mxu1 }
 0x1ef   : > { %4120 = vst.msk [vmem:[#allocation5 + $0x80] sm:$0xff] %vm3905_vm2, %v18281_v13  ;;  %4121 = vst.msk [vmem:[#allocation5 + $0x88] sm:$0xff] %vm3905_vm2, %v18281_v13  ;;  %v15696_v15 = vpop.f32.mrf.mxu0 }
 0x1f0   : > { %4122 = vst.msk [vmem:[#allocation5 + $0x90] sm:$0xff] %vm3905_vm2, %v18281_v13  ;;  %4123 = vst.msk [vmem:[#allocation5 + $0x98] sm:$0xff] %vm3905_vm2, %v18281_v13  ;;  %v15698_v3 = vpop.f32.mrf.mxu1 }
 0x1f1   : > { %4124 = vst.msk [vmem:[#allocation5 + $0xa0] sm:$0xff] %vm3905_vm2, %v18281_v13  ;;  %4125 = vst.msk [vmem:[#allocation5 + $0xa8] sm:$0xff] %vm3905_vm2, %v18281_v13  ;;  %v15700_v22 = vpop.f32.mrf.mxu0 }
 0x1f2   : > { %4126 = vst.msk [vmem:[#allocation5 + $0xb0] sm:$0xff] %vm3905_vm2, %v18281_v13  ;;  %4127 = vst.msk [vmem:[#allocation5 + $0xb8] sm:$0xff] %vm3905_vm2, %v18281_v13  ;;  %v15702_v36 = vpop.f32.mrf.mxu1 }
 0x1f3   : > { %4128 = vst.msk [vmem:[#allocation5 + $0xc0] sm:$0xff] %vm3905_vm2, %v18281_v13  ;;  %4129 = vst.msk [vmem:[#allocation5 + $0xc8] sm:$0xff] %vm3905_vm2, %v18281_v13  ;;  %v15704_v56 = vpop.f32.mrf.mxu0 }
 0x1f4   : > { %4130 = vst.msk [vmem:[#allocation5 + $0xd0] sm:$0xff] %vm3905_vm2, %v18281_v13  ;;  %4131 = vst.msk [vmem:[#allocation5 + $0xd8] sm:$0xff] %vm3905_vm2, %v18281_v13  ;;  %v15706_v39 = vpop.f32.mrf.mxu1 }
 0x1f5   : > { %4132 = vst.msk [vmem:[#allocation5 + $0xe0] sm:$0xff] %vm3905_vm2, %v18281_v13  ;;  %4133 = vst.msk [vmem:[#allocation5 + $0xe8] sm:$0xff] %vm3905_vm2, %v18281_v13  ;;  %v15708_v60 = vpop.f32.mrf.mxu0 }
 0x1f6   : > { %4134 = vst.msk [vmem:[#allocation5 + $0xf0] sm:$0xff] %vm3905_vm2, %v18281_v13  ;;  %4135 = vst.msk [vmem:[#allocation5 + $0xf8] sm:$0xff] %vm3905_vm2, %v18281_v13  ;;  %v15710_v42 = vpop.f32.mrf.mxu1 }
 0x1f7   : > { %4136 = vst.msk [vmem:[#allocation5 + $0x100] sm:$0xff] %vm3905_vm2, %v18281_v13  ;;  %4137 = vst.msk [vmem:[#allocation5 + $0x108] sm:$0xff] %vm3905_vm2, %v18281_v13 }
 0x1f8   : > { %4138 = vst.msk [vmem:[#allocation5 + $0x110] sm:$0xff] %vm3905_vm2, %v18281_v13  ;;  %4139 = vst.msk [vmem:[#allocation5 + $0x118] sm:$0xff] %vm3905_vm2, %v18281_v13 }
 0x1f9   : > { %4140 = vst.msk [vmem:[#allocation5 + $0x120] sm:$0xff] %vm3905_vm2, %v18281_v13  ;;  %18282 = vst [vmem:[#allocation112_spill] sm:$0xff] %v15692_v63  ;;  %v15712_v13 = vpop.f32.mrf.mxu0  ;;  %v15714_v63 = vpop.f32.mrf.mxu1 }
 0x1fa   : > { %18283 = vst [vmem:[#allocation113_spill] sm:$0xff] %v15696_v15  ;;  %18284 = vst [vmem:[#allocation114_spill] sm:$0xff] %v15700_v22 }
 0x1fb   : > { %18285 = vst [vmem:[#allocation115_spill] sm:$0xff] %v15704_v56  ;;  %18286 = vst [vmem:[#allocation116_spill] sm:$0xff] %v15708_v60  ;;  %v15716_v35 = vpop.f32.mrf.mxu0  ;;  %v15718_v15 = vpop.f32.mrf.mxu1  ;;  %v11768_v60 = vld [vmem:[%s18023_s3 + $0x18] sm:$0xff] }
 0x1fc   : > { %18287 = vst [vmem:[#allocation117_spill] sm:$0xff] %v15712_v13  ;;  %18288 = vst [vmem:[#allocation118_spill] sm:$0xff] %v15716_v35  ;;  %13420 = vmatprep.subr.mxu1 %v11768_v60 }
 0x1fd   : > { %18289 = vst [vmem:[#allocation119_spill] sm:$0xff] %v15718_v15  ;;  %v15720_v26 = vpop.f32.mrf.mxu0  ;;  %v15722_v22 = vpop.f32.mrf.mxu1  ;;  %13421 = vmatpush3.msra.mxu1 %v11768_v60 }
 0x1fe   : > { %18290 = vst [vmem:[#allocation120_spill] sm:$0xff] %v15720_v26 }
 0x1ff   : > { %v15724_v23 = vpop.f32.mrf.mxu0  ;;  %v15726_v56 = vpop.f32.mrf.mxu1 }
 0x200   : > { %18291 = vst [vmem:[#allocation121_spill] sm:$0xff] %v15724_v23  ;;  %18292 = vst [vmem:[#allocation122_spill] sm:$0xff] %v15726_v56 }
 0x201   : > { %v15731_v11 = vpop.f32.mrf.mxu0  ;;  %v15733_v13 = vpop.f32.mrf.mxu1 }
 0x202   : > { %18293 = vst [vmem:[#allocation123_spill] sm:$0xff] %v15731_v11 }
 0x203   : > { %v15735_v35 = vpop.f32.mrf.mxu0  ;;  %v15737_v2 = vpop.f32.mrf.mxu1 }
 0x204   : > { %18294 = vst [vmem:[#allocation124_spill] sm:$0xff] %v15735_v35  ;;  %18295 = vst [vmem:[#allocation125_spill] sm:$0xff] %v15737_v2 }
 0x205   : > { %v15739_v26 = vpop.f32.mrf.mxu0  ;;  %v15741_v62 = vpop.f32.mrf.mxu1 }
 0x206   : > { %18296 = vst [vmem:[#allocation126_spill] sm:$0xff] %v15739_v26 }
 0x207   : > { %v15743_v23 = vpop.f32.mrf.mxu0  ;;  %v15745_v52 = vpop.f32.mrf.mxu1 }
 0x208   : > { %18297 = vst [vmem:[#allocation127_spill] sm:$0xff] %v15743_v23  ;;  %18298 = vst [vmem:[#allocation128_spill] sm:$0xff] %v15745_v52 }
 0x209   : > { %v15747_v47 = vpop.f32.mrf.mxu0  ;;  %v15749_v25 = vpop.f32.mrf.mxu1 }
 0x20a   : > { %18299 = vst [vmem:[#allocation129_spill] sm:$0xff] %v15747_v47  ;;  %v11767_v47 = vld [vmem:[%s18023_s3 + $0x10] sm:$0xff] }
 0x20b   : > { %v15751_v11 = vpop.f32.mrf.mxu0  ;;  %v15753_v30 = vpop.f32.mrf.mxu1  ;;  %13422 = vmatprep.subr.mxu1 %v11767_v47 }
 0x20c   : > { %18300 = vst [vmem:[#allocation130_spill] sm:$0xff] %v15751_v11  ;;  %18301 = vst [vmem:[#allocation131_spill] sm:$0xff] %v15753_v30  ;;  %13423 = vmatpush3.msra.mxu1 %v11767_v47  ;;  %v11804_v47 = vld [vmem:[%s18023_s3 + $0x38] sm:$0xff] }
 0x20d   : > { %v15755_v60 = vpop.f32.mrf.mxu0  ;;  %v15757_v35 = vpop.f32.mrf.mxu1  ;;  %13472 = vmatprep.subr.mxu0 %v11804_v47 }
 0x20e   : > { %18302 = vst [vmem:[#allocation132_spill] sm:$0xff] %v15755_v60  ;;  %v4197_v60 = vld [vmem:[#allocation5 + $0x1] sm:$0xff]  ;;  %13473 = vmatpush3.msra.mxu0 %v11804_v47  ;;  %v2590_v47 = vadd.f32 %v15600_v43, %v15178_v57 }
 0x20f   : > { %v15759_v29 = vpop.f32.mrf.mxu0  ;;  %v15761_v26 = vpop.f32.mrf.mxu1  ;;  %13424 = vmatprep.mubr.msk.f32.mxu1 %vm3905_vm2, %v4197_v60 }
 0x210   : > { %18303 = vst [vmem:[#allocation133_spill] sm:$0xff] %v15759_v29  ;;  %18304 = vst [vmem:[#allocation134_spill] sm:$0xff] %v15761_v26 }
 0x211   : > { %v15763_v18 = vpop.f32.mrf.mxu0  ;;  %v15765_v23 = vpop.f32.mrf.mxu1 }
 0x212   : > { %18305 = vst [vmem:[#allocation135_spill] sm:$0xff] %v15763_v18  ;;  %v4198_v18 = vld [vmem:[#allocation5 + $0x9] sm:$0xff] }
 0x213   : > { %v15770_v52 = vpop.f32.mrf.mxu0  ;;  %v15772_v11 = vpop.f32.mrf.mxu1  ;;  %13425 = vmatmul.mubr.msk.f32.vlgmr.msra.gmra.mxu1 %vm3905_vm2, %v4198_v18  ;;  %v11803_v18 = vld [vmem:[%s18023_s3 + $0x30] sm:$0xff] }
 0x214   : > { %18306 = vst [vmem:[#allocation136_spill] sm:$0xff] %v15770_v52  ;;  %18307 = vst [vmem:[#allocation137_spill] sm:$0xff] %v15772_v11  ;;  %13474 = vmatprep.subr.mxu0 %v11803_v18 }
 0x215   : > { %v15774_v30 = vpop.f32.mrf.mxu0  ;;  %v15776_v29 = vpop.f32.mrf.mxu1  ;;  %13475 = vmatpush3.msra.mxu0 %v11803_v18 }
 0x216   : > { %18308 = vst [vmem:[#allocation138_spill] sm:$0xff] %v15774_v30 }
 0x217   : > { %v15780_v26 = vpop.f32.mrf.mxu0  ;;  %v15782_v2 = vpop.f32.mrf.mxu1 }
 0x218   : > { %18309 = vst [vmem:[#allocation139_spill] sm:$0xff] %v15780_v26  ;;  %18310 = vst [vmem:[#allocation140_spill] sm:$0xff] %v15782_v2 }
 0x219   : > { %v15784_v61 = vpop.f32.mrf.mxu0  ;;  %v15786_v52 = vpop.f32.mrf.mxu1 }
 0x21a   : > { %18311 = vst [vmem:[#allocation141_spill] sm:$0xff] %v15784_v61 }
 0x21b   : > { %v15791_v30 = vpop.f32.mrf.mxu0  ;;  %v15793_v11 = vpop.f32.mrf.mxu1 }
 0x21c   : > { %18312 = vst [vmem:[#allocation142_spill] sm:$0xff] %v15791_v30  ;;  %18313 = vst [vmem:[#allocation143_spill] sm:$0xff] %v15793_v11 }
 0x21d   : > { %v15798_v60 = vpop.f32.mrf.mxu0  ;;  %v15800_v26 = vpop.f32.mrf.mxu1 }
 0x21e   : > { %18314 = vst [vmem:[#allocation144_spill] sm:$0xff] %v15798_v60  ;;  %18315 = vst [vmem:[#allocation145_spill] sm:$0xff] %v15800_v26 }
 0x21f   : > { %v15802_v61 = vpop.f32.mrf.mxu0  ;;  %v15804_v2 = vpop.f32.mrf.mxu1 }
 0x220   : > { %18316 = vst [vmem:[#allocation146_spill] sm:$0xff] %v15802_v61  ;;  %18317 = vst [vmem:[#allocation147_spill] sm:$0xff] %v15804_v2  ;;  %v2600_v61 = vadd.f32 %v15608_v38, %v15190_v12 }
 0x221   : > { %v15806_v56 = vpop.f32.mrf.mxu1  ;;  %v13274_v30 = vpop.f32.mrf.mxu0 }
 0x222   : > { %18318 = vst [vmem:[#allocation148_spill] sm:$0xff] %v15806_v56  ;;  %v2911_v11 = vadd.f32 %v13274_v30, %v15192_v16 }
 0x223   : > { %v15811_v44 = vpop.f32.mrf.mxu1  ;;  %v15813_v15 = vpop.f32.mrf.mxu0 }
 0x224   : > { %v15815_v60 = vadd.f32 %v2911_v11, %v2590_v47  ;;  %v2610_v11 = vadd.f32 %v15616_v14, %v15206_v34 }
 0x225   : > { %v13277_v26 = vpop.f32.mrf.mxu0  ;;  %v15817_v18 = vpop.f32.mrf.mxu1 }
 0x226   : > { %18319 = vst [vmem:[#allocation149_spill] sm:$0xff] %v15815_v60  ;;  %v2921_v56 = vadd.f32 %v13277_v26, %v15208_v37 }
 0x227   : > { %v15822_v2 = vpop.f32.mrf.mxu0  ;;  %v15824_v49 = vpop.f32.mrf.mxu1 }
 0x228   : > { %v15826_v57 = vadd.f32 %v2921_v56, %v2600_v61  ;;  %v2620_v61 = vadd.f32 %v15698_v3, %v15222_v8 }
 0x229   : > { %v13280_v16 = vpop.f32.mrf.mxu0  ;;  %v15828_v30 = vpop.f32.mrf.mxu1 }
 0x22a   : > { %18320 = vst [vmem:[#allocation150_spill] sm:$0xff] %v15826_v57  ;;  %v2931_v43 = vadd.f32 %v13280_v16, %v15224_v9  ;;  %v2630_v16 = vadd.f32 %v15706_v39, %v15238_v27 }
 0x22b   : > { %v15833_v47 = vpop.f32.mrf.mxu0  ;;  %v15835_v60 = vpop.f32.mrf.mxu1 }
 0x22c   : > { %v15837_v12 = vadd.f32 %v2931_v43, %v2610_v11 }
 0x22d   : > { %v13283_v37 = vpop.f32.mrf.mxu0  ;;  %v15839_v26 = vpop.f32.mrf.mxu1 }
 0x22e   : > { %18321 = vst [vmem:[#allocation151_spill] sm:$0xff] %v15837_v12  ;;  %v2941_v56 = vadd.f32 %v13283_v37, %v15240_v32  ;;  %v2640_v37 = vadd.f32 %v15714_v63, %v15254_v40 }
 0x22f   : > { %v15844_v38 = vpop.f32.mrf.mxu0  ;;  %v15846_v57 = vpop.f32.mrf.mxu1 }
 0x230   : > { %v15848_v34 = vadd.f32 %v2941_v56, %v2620_v61 }
 0x231   : > { %v13286_v9 = vpop.f32.mrf.mxu0  ;;  %v15850_v14 = vpop.f32.mrf.mxu1 }
 0x232   : > { %18322 = vst [vmem:[#allocation152_spill] sm:$0xff] %v15848_v34  ;;  %v2951_v11 = vadd.f32 %v13286_v9, %v15256_v53  ;;  %v11840_v9 = vld [vmem:[%s18023_s3 + $0x58] sm:$0xff] }
 0x233   : > { %v15855_v43 = vpop.f32.mrf.mxu0  ;;  %v15857_v12 = vpop.f32.mrf.mxu1  ;;  %13524 = vmatprep.subr.mxu1 %v11840_v9 }
 0x234   : > { %v15859_v8 = vadd.f32 %v2951_v11, %v2630_v16  ;;  %v2650_v16 = vadd.f32 %v15722_v22, %v15270_v51  ;;  %13525 = vmatpush3.msra.mxu1 %v11840_v9  ;;  %v2670_v9 = vadd.f32 %v15741_v62, %v15302_v4  ;;  %v2690_v62 = vadd.f32 %v15757_v35, %v15334_v20 }
 0x235   : > { %v13289_v32 = vpop.f32.mrf.mxu0  ;;  %v15861_v3 = vpop.f32.mrf.mxu1  ;;  %v2710_v35 = vadd.f32 %v15776_v29, %v15366_v5  ;;  %v2595_v5 = vadd.f32 %v15612_v46, %v15202_v28  ;;  %v2615_v29 = vadd.f32 %v15702_v36, %v15234_v21  ;;  %v18339_v28 = vld [vmem:[#allocation13_spill] sm:$0xff]  ;;  %v18343_v36 = vld [vmem:[#allocation27_spill] sm:$0xff] }
 0x236   : > { %18323 = vst [vmem:[#allocation153_spill] sm:$0xff] %v15859_v8  ;;  %v2961_v61 = vadd.f32 %v13289_v32, %v15272_v1  ;;  %v18340_v46 = vld [vmem:[#allocation125_spill] sm:$0xff] }
 0x237   : > { %v15866_v56 = vpop.f32.mrf.mxu0  ;;  %v15868_v34 = vpop.f32.mrf.mxu1 }
 0x238   : > { %v15870_v27 = vadd.f32 %v2961_v61, %v2640_v37  ;;  %v2660_v61 = vadd.f32 %v15733_v13, %v15286_v50  ;;  %v2680_v13 = vadd.f32 %v15749_v25, %v15318_v24 }
 0x239   : > { %v13292_v39 = vpop.f32.mrf.mxu0  ;;  %v15872_v53 = vpop.f32.mrf.mxu1 }
 0x23a   : > { %18324 = vst [vmem:[#allocation154_spill] sm:$0xff] %v15870_v27  ;;  %v2971_v40 = vadd.f32 %v13292_v39, %v15288_v55 }
 0x23b   : > { %v15880_v1 = vpop.f32.mrf.mxu0  ;;  %v15882_v63 = vpop.f32.mrf.mxu1 }
 0x23c   : > { %v15884_v11 = vadd.f32 %v2971_v40, %v2650_v16 }
 0x23d   : > { %v13295_v32 = vpop.f32.mrf.mxu0  ;;  %v15886_v37 = vpop.f32.mrf.mxu1 }
 0x23e   : > { %18325 = vst [vmem:[#allocation155_spill] sm:$0xff] %v15884_v11  ;;  %v2981_v27 = vadd.f32 %v13295_v32, %v15304_v10 }
 0x23f   : > { %v15891_v8 = vpop.f32.mrf.mxu0  ;;  %v15893_v51 = vpop.f32.mrf.mxu1 }
 0x240   : > { %v15895_v55 = vadd.f32 %v2981_v27, %v2660_v61 }
 0x241   : > { %v13298_v22 = vpop.f32.mrf.mxu0  ;;  %v15897_v39 = vpop.f32.mrf.mxu1 }
 0x242   : > { %18326 = vst [vmem:[#allocation156_spill] sm:$0xff] %v15895_v55  ;;  %v2991_v16 = vadd.f32 %v13298_v22, %v15320_v41  ;;  %v11839_v41 = vld [vmem:[%s18023_s3 + $0x50] sm:$0xff] }
 0x243   : > { %v15902_v40 = vpop.f32.mrf.mxu0  ;;  %v15906_v50 = vpop.f32.mrf.mxu1  ;;  %13526 = vmatprep.subr.mxu1 %v11839_v41 }
 0x244   : > { %v15904_v11 = vadd.f32 %v2991_v16, %v2670_v9  ;;  %13527 = vmatpush3.msra.mxu1 %v11839_v41  ;;  %v2700_v16 = vadd.f32 %v15765_v23, %v15350_v54 }
 0x245   : > { %v13301_v10 = vpop.f32.mrf.mxu0  ;;  %v15915_v55 = vpop.f32.mrf.mxu1 }
 0x246   : > { %18327 = vst [vmem:[#allocation157_spill] sm:$0xff] %v15904_v11  ;;  %v3001_v27 = vadd.f32 %v13301_v10, %v15336_v45 }
 0x247   : > { %v15911_v32 = vpop.f32.mrf.mxu0  ;;  %v15925_v45 = vpop.f32.mrf.mxu1 }
 0x248   : > { %v15913_v61 = vadd.f32 %v3001_v27, %v2680_v13 }
 0x249   : > { %v13304_v4 = vpop.f32.mrf.mxu0  ;;  %v15934_v27 = vpop.f32.mrf.mxu1 }
 0x24a   : > { %18328 = vst [vmem:[#allocation158_spill] sm:$0xff] %v15913_v61  ;;  %v3011_v22 = vadd.f32 %v13304_v4, %v15352_v58 }
 0x24b   : > { %v15923_v24 = vpop.f32.mrf.mxu0 }
 0x24c   : > { %v15927_v25 = vadd.f32 %v3011_v22, %v2690_v62  ;;  %v15943_v62 = vpop.f32.mrf.mxu1 }
 0x24d   : > { %v13307_v9 = vpop.f32.mrf.mxu0 }
 0x24e   : > { %18329 = vst [vmem:[#allocation159_spill] sm:$0xff] %v15927_v25  ;;  %v3021_v10 = vadd.f32 %v13307_v9, %v15368_v7  ;;  %v2720_v7 = vadd.f32 %v15786_v52, %v15382_v17  ;;  %v2585_v9 = vadd.f32 %v15604_v48, %v15186_v6  ;;  %v2625_v52 = vadd.f32 %v15710_v42, %v15250_v33  ;;  %v18335_v17 = vld [vmem:[#allocation10_spill] sm:$0xff]  ;;  %v18336_v6 = vld [vmem:[#allocation119_spill] sm:$0xff]  ;;  %v18337_v48 = vld [vmem:[#allocation12_spill] sm:$0xff] }
 0x24f   : > { %v15932_v13 = vpop.f32.mrf.mxu0  ;;  %v18346_v33 = vld [vmem:[#allocation31_spill] sm:$0xff]  ;;  %v18347_v25 = vld [vmem:[#allocation17_spill] sm:$0xff] }
 0x250   : > { %v15936_v20 = vadd.f32 %v3021_v10, %v2700_v16  ;;  %v15960_v10 = vpop.f32.mrf.mxu1 }
 0x251   : > { %v13310_v58 = vpop.f32.mrf.mxu0 }
 0x252   : > { %18330 = vst [vmem:[#allocation160_spill] sm:$0xff] %v15936_v20  ;;  %v3031_v4 = vadd.f32 %v13310_v58, %v15384_v19  ;;  %v2605_v19 = vadd.f32 %v15694_v0, %v15218_v59  ;;  %v18341_v0 = vld [vmem:[#allocation15_spill] sm:$0xff]  ;;  %v18344_v20 = vld [vmem:[#allocation145_spill] sm:$0xff] }
 0x253   : > { %v15941_v41 = vpop.f32.mrf.mxu0 }
 0x254   : > { %18331 = vst [vmem:[#allocation161_spill] sm:$0xff] %v15941_v41  ;;  %v15945_v22 = vadd.f32 %v3031_v4, %v2710_v35  ;;  %v18338_v35 = vld [vmem:[#allocation122_spill] sm:$0xff] }
 0x255   : > { %v13313_v54 = vpop.f32.mrf.mxu0  ;;  %v2645_v4 = vadd.f32 %v18338_v35, %v18337_v48  ;;  %v18349_v48 = vld [vmem:[#allocation19_spill] sm:$0xff]  ;;  %v18350_v35 = vld [vmem:[#allocation134_spill] sm:$0xff] }
 0x256   : > { %18332 = vst [vmem:[#allocation162_spill] sm:$0xff] %v15945_v22  ;;  %v3041_v23 = vadd.f32 %v13313_v54, %v15400_v31  ;;  %v2635_v31 = vadd.f32 %v18336_v6, %v18335_v17  ;;  %v2655_v54 = vadd.f32 %v18340_v46, %v18339_v28  ;;  %v18342_v22 = vld [vmem:[#allocation128_spill] sm:$0xff]  ;;  %v18348_v17 = vld [vmem:[#allocation131_spill] sm:$0xff]  ;;  %v15985_v61 = vadd.f32 %v18350_v35, %v18349_v48  ;;  %v18351_v28 = vld [vmem:[#allocation21_spill] sm:$0xff]  ;;  %v16005_v35 = vpop.f32.mrf.mxu1 }
 0x257   : > { %v15952_v16 = vpop.f32.mrf.mxu0  ;;  %v2665_v21 = vadd.f32 %v18342_v22, %v18341_v0  ;;  %v15981_v6 = vadd.f32 %v18348_v17, %v18347_v25  ;;  %v18352_v46 = vld [vmem:[#allocation137_spill] sm:$0xff]  ;;  %v18353_v22 = vld [vmem:[#allocation38_spill] sm:$0xff]  ;;  %v18358_v25 = vld [vmem:[#allocation143_spill] sm:$0xff] }
 0x258   : > { %18333 = vst [vmem:[#allocation163_spill] sm:$0xff] %v15952_v16  ;;  %v15962_v58 = vadd.f32 %v3041_v23, %v2720_v7  ;;  %v2730_v7 = vadd.f32 %v18344_v20, %v18343_v36  ;;  %v18345_v23 = vld [vmem:[#allocation40_spill] sm:$0xff]  ;;  %v15989_v11 = vadd.f32 %v18352_v46, %v18351_v28  ;;  %v2916_v20 = vadd.f32 %v15822_v2, %v18353_v22  ;;  %v18360_v17 = vld [vmem:[#allocation42_spill] sm:$0xff]  ;;  %v18363_v16 = vld [vmem:[#allocation147_spill] sm:$0xff] }
 0x259   : > { %v13316_v59 = vpop.f32.mrf.mxu0  ;;  %v18356_v36 = vld [vmem:[#allocation140_spill] sm:$0xff]  ;;  %v2926_v48 = vadd.f32 %v15833_v47, %v18360_v17  ;;  %v18365_v22 = vld [vmem:[#allocation30_spill] sm:$0xff]  ;;  %v18370_v17 = vld [vmem:[#allocation35_spill] sm:$0xff] }
 0x25a   : > { %18334 = vst [vmem:[#allocation164_spill] sm:$0xff] %v15962_v58  ;;  %v2906_v58 = vadd.f32 %v15813_v15, %v18345_v23  ;;  %v3051_v42 = vadd.f32 %v13316_v59, %v18346_v33  ;;  %v18355_v15 = vld [vmem:[#allocation23_spill] sm:$0xff]  ;;  %v18357_v23 = vld [vmem:[#allocation25_spill] sm:$0xff]  ;;  %v18362_v46 = vld [vmem:[#allocation28_spill] sm:$0xff] }
 0x25b   : > { %v15993_v0 = vpop.f32.mrf.mxu0  ;;  %v15997_v59 = vadd.f32 %v18356_v36, %v18355_v15  ;;  %v16001_v33 = vadd.f32 %v18358_v25, %v18357_v23  ;;  %v16011_v2 = vadd.f32 %v18363_v16, %v18362_v46  ;;  %v18367_v15 = vld [vmem:[#allocation32_spill] sm:$0xff]  ;;  %v18369_v23 = vld [vmem:[#allocation43_spill] sm:$0xff]  ;;  %v18372_v16 = vld [vmem:[#allocation34_spill] sm:$0xff] }
 0x25c   : > { %18354 = vst [vmem:[#allocation10_spill] sm:$0xff] %v15993_v0  ;;  %v16007_v28 = vadd.f32 %v3051_v42, %v2730_v7  ;;  %v18366_v0 = vld [vmem:[#allocation148_spill] sm:$0xff]  ;;  %v16017_v36 = vadd.f32 %v15811_v44, %v18367_v15  ;;  %v2936_v25 = vadd.f32 %v15844_v38, %v18369_v23  ;;  %v3706_v47 = vadd.f32 %v2906_v58, %v2585_v9  ;;  %v18374_v44 = vld [vmem:[#allocation37_spill] sm:$0xff]  ;;  %v18377_v23 = vld [vmem:[#allocation47_spill] sm:$0xff] }
 0x25d   : > { %18359 = vst [vmem:[#allocation119_spill] sm:$0xff] %v16001_v33  ;;  %18364 = vst [vmem:[#allocation122_spill] sm:$0xff] %v16011_v2  ;;  %v2740_v41 = vadd.f32 %v18366_v0, %v18365_v22  ;;  %v13319_v33 = vpop.f32.mrf.mxu0  ;;  %v3232_v7 = vadd.f32 %v15817_v18, %v18370_v17  ;;  %v18371_v42 = vld [vmem:[#allocation44_spill] sm:$0xff]  ;;  %v16026_v2 = vadd.f32 %v2916_v20, %v2595_v5  ;;  %v18373_v0 = vld [vmem:[#allocation39_spill] sm:$0xff]  ;;  %v16044_v20 = vpop.f32.mrf.mxu1 }
 0x25e   : > { %18361 = vst [vmem:[#allocation12_spill] sm:$0xff] %v16007_v28  ;;  %18368 = vst [vmem:[#allocation13_spill] sm:$0xff] %v16017_v36  ;;  %v2946_v28 = vadd.f32 %v15855_v43, %v18371_v42  ;;  %v3061_v46 = vadd.f32 %v13319_v33, %v18372_v16  ;;  %v3227_v22 = vadd.f32 %v15824_v49, %v18373_v0  ;;  %v18375_v36 = vld [vmem:[#allocation11_spill] sm:$0xff]  ;;  %v18376_v18 = vld [vmem:[#allocation45_spill] sm:$0xff] }
 0x25f   : > { %v3242_v15 = vadd.f32 %v15828_v30, %v18374_v44  ;;  %v2956_v38 = vadd.f32 %v15866_v56, %v18375_v36  ;;  %v16034_v9 = vpop.f32.mrf.mxu0  ;;  %v16036_v58 = vadd.f32 %v2926_v48, %v2605_v19  ;;  %v3237_v43 = vadd.f32 %v15835_v60, %v18376_v18  ;;  %v18378_v30 = vld [vmem:[#allocation49_spill] sm:$0xff]  ;;  %v18379_v36 = vld [vmem:[#allocation51_spill] sm:$0xff]  ;;  %v18380_v48 = vld [vmem:[#allocation14_spill] sm:$0xff] }
 0x260   : > { %v16042_v5 = vadd.f32 %v15839_v26, %v18377_v23  ;;  %v16046_v49 = vadd.f32 %v3061_v46, %v2740_v41  ;;  %v16048_v33 = vadd.f32 %v2936_v25, %v2615_v29  ;;  %v16052_v56 = vadd.f32 %v15846_v57, %v18378_v30  ;;  %v18381_v42 = vld [vmem:[#allocation53_spill] sm:$0xff]  ;;  %v18382_v29 = vld [vmem:[#allocation16_spill] sm:$0xff]  ;;  %v18384_v46 = vld [vmem:[#allocation55_spill] sm:$0xff] }
 0x261   : > { %v16056_v19 = vadd.f32 %v15850_v14, %v18379_v36  ;;  %v2966_v60 = vadd.f32 %v15880_v1, %v18380_v48  ;;  %v13374_v17 = vpop.f32.mrf.mxu0  ;;  %v16060_v26 = vadd.f32 %v2946_v28, %v2625_v52  ;;  %v16064_v41 = vadd.f32 %v15857_v12, %v18381_v42  ;;  %v18383_v16 = vld [vmem:[#allocation41_spill] sm:$0xff]  ;;  %v18386_v52 = vld [vmem:[#allocation18_spill] sm:$0xff]  ;;  %v18387_v18 = vld [vmem:[#allocation59_spill] sm:$0xff] }
 0x262   : > { %v2976_v25 = vadd.f32 %v15891_v8, %v18382_v29  ;;  %v3553_v57 = vadd.f32 %v13374_v17, %v18383_v16  ;;  %v16071_v0 = vadd.f32 %v15861_v3, %v18384_v46  ;;  %v16073_v14 = vadd.f32 %v2956_v38, %v2635_v31  ;;  %v18385_v44 = vld [vmem:[#allocation57_spill] sm:$0xff]  ;;  %v16089_v3 = vpop.f32.mrf.mxu1  ;;  %v18389_v38 = vld [vmem:[#allocation46_spill] sm:$0xff] }
 0x263   : > { %v16077_v1 = vadd.f32 %v15868_v34, %v18385_v44  ;;  %v2986_v28 = vadd.f32 %v15902_v40, %v18386_v52  ;;  %v3547_v12 = vpop.f32.mrf.mxu0  ;;  %v16083_v23 = vadd.f32 %v15872_v53, %v18387_v18  ;;  %v18388_v8 = vld [vmem:[#allocation61_spill] sm:$0xff]  ;;  %v16092_v48 = vadd.f32 %v2966_v60, %v2645_v4  ;;  %v18390_v34 = vld [vmem:[#allocation63_spill] sm:$0xff]  ;;  %v18392_v53 = vld [vmem:[#allocation20_spill] sm:$0xff] }
 0x264   : > { %v16087_v30 = vadd.f32 %v15882_v63, %v18388_v8  ;;  %v3739_v31 = vadd.f32 %v3553_v57, %v3232_v7  ;;  %v3548_v36 = vadd.f32 %v3547_v12, %v18389_v38  ;;  %v16096_v17 = vadd.f32 %v15886_v37, %v18390_v34  ;;  %v18391_v40 = vld [vmem:[#allocation65_spill] sm:$0xff]  ;;  %v18394_v44 = vld [vmem:[#allocation48_spill] sm:$0xff]  ;;  %v18395_v60 = vld [vmem:[#allocation67_spill] sm:$0xff] }
 0x265   : > { %v16100_v42 = vadd.f32 %v15893_v51, %v18391_v40  ;;  %v2996_v29 = vadd.f32 %v15911_v32, %v18392_v53  ;;  %v13377_v63 = vpop.f32.mrf.mxu0  ;;  %v16104_v16 = vadd.f32 %v2976_v25, %v2655_v54  ;;  %v18393_v46 = vld [vmem:[#allocation149_spill] sm:$0xff]  ;;  %v16110_v52 = vadd.f32 %v15897_v39, %v18395_v60  ;;  %v18397_v18 = vld [vmem:[#allocation22_spill] sm:$0xff]  ;;  %v16125_v25 = vpop.f32.mrf.mxu1  ;;  %v18398_v8 = vld [vmem:[#allocation104_spill] sm:$0xff] }
 0x266   : > { %v3771_v7 = vadd.f32 %v3739_v31, %v18393_v46  ;;  %v3738_v57 = vadd.f32 %v3548_v36, %v3227_v22  ;;  %v3563_v4 = vadd.f32 %v13377_v63, %v18394_v44  ;;  %v16112_v37 = vadd.f32 %v2986_v28, %v2665_v21  ;;  %v18396_v12 = vld [vmem:[#allocation69_spill] sm:$0xff]  ;;  %v16123_v54 = vld [vmem:[%s18022_s2] ss:$0 sm:$0xff]  ;;  %v18400_v36 = vld [vmem:[#allocation71_spill] sm:$0xff] }
 0x267   : > { %v16116_v51 = vadd.f32 %v15906_v50, %v18396_v12  ;;  %v3006_v32 = vadd.f32 %v15923_v24, %v18397_v18  ;;  %v3557_v22 = vpop.f32.mrf.mxu0  ;;  %v18399_v28 = vld [vmem:[#allocation50_spill] sm:$0xff]  ;;  %v16131_v50 = vadd.f32 %v15915_v55, %v18400_v36  ;;  %v16134_v24 = vadd.f32 %v2996_v29, %v15981_v6  ;;  %v18401_v34 = vld [vmem:[#allocation73_spill] sm:$0xff]  ;;  %v18402_v53 = vld [vmem:[#allocation75_spill] sm:$0xff] }
 0x268   : > { %v3803_v39 = vadd.f32 %v18398_v8, %v3771_v7  ;;  %v3770_v31 = vadd.f32 %v3738_v57, %v3706_v47  ;;  %v3741_v21 = vadd.f32 %v3563_v4, %v3242_v15  ;;  %v3558_v38 = vadd.f32 %v3557_v22, %v18399_v28  ;;  %v16147_v47 = vld [vmem:[%s18023_s3 + $0x78] sm:$0xff]  ;;  %v11910_v55 = vld [vmem:[%s18023_s3 + $0x88] sm:$0xff] }
 0x269   : > { %v16138_v40 = vadd.f32 %v15925_v45, %v18401_v34  ;;  %v16142_v63 = vadd.f32 %v15934_v27, %v18402_v53  ;;  %v13380_v46 = vpop.f32.mrf.mxu0  ;;  %v18403_v15 = vld [vmem:[#allocation106_spill] sm:$0xff]  ;;  %13576 = vmatprep.subr.mxu0 %v16147_v47  ;;  %v16157_v27 = vadd.f32 %v3006_v32, %v15985_v61  ;;  %v18405_v44 = vld [vmem:[#allocation77_spill] sm:$0xff]  ;;  %v18406_v60 = vld [vmem:[#allocation24_spill] sm:$0xff]  ;;  %13628 = vmatprep.subr.mxu1 %v11910_v55 }
 0x26a   : > { %v3842_v6 = vadd.f32 %v16123_v54, %v3803_v39  ;;  %v3802_v29 = vadd.f32 %v3770_v31, %v18403_v15  ;;  %v18404_v45 = vld [vmem:[#allocation150_spill] sm:$0xff]  ;;  %v3740_v57 = vadd.f32 %v3558_v38, %v3237_v43  ;;  %v16161_v4 = vadd.f32 %v15943_v62, %v18405_v44  ;;  %v18407_v18 = vld [vmem:[#allocation52_spill] sm:$0xff]  ;;  %v3346_v39 = vpop.f32.mrf.mxu1  ;;  %v18409_v32 = vld [vmem:[#allocation79_spill] sm:$0xff] }
 0x26b   : > { %v3773_v7 = vadd.f32 %v3741_v21, %v18404_v45  ;;  %v3016_v12 = vadd.f32 %v15932_v13, %v18406_v60  ;;  %v3573_v22 = vadd.f32 %v13380_v46, %v18407_v18  ;;  %v3567_v8 = vpop.f32.mrf.mxu0  ;;  %v18408_v21 = vld [vmem:[#allocation107_spill] sm:$0xff]  ;;  %v16171_v38 = vadd.f32 %v15960_v10, %v18409_v32  ;;  %v18410_v62 = vld [vmem:[#allocation81_spill] sm:$0xff]  ;;  %v18411_v34 = vld [vmem:[#allocation54_spill] sm:$0xff] }
 0x26c   : > { %v3874_v31 = vmax.f32 %v3842_v6, 0.0  ;;  %v3841_v43 = vadd.f32 %v16123_v54, %v3802_v29  ;;  %v3772_v61 = vadd.f32 %v3740_v57, %v16026_v2  ;;  %v16175_v36 = vadd.f32 %v16005_v35, %v18410_v62  ;;  %v18412_v15 = vld [vmem:[#allocation108_spill] sm:$0xff]  ;;  %v18415_v35 = vld [vmem:[#allocation161_spill] sm:$0xff]  ;;  %v18416_v44 = vld [vmem:[#allocation151_spill] sm:$0xff] }
 0x26d   : > { %v3805_v28 = vadd.f32 %v18408_v21, %v3773_v7  ;;  %v3743_v13 = vadd.f32 %v3573_v22, %v16042_v5  ;;  %v3568_v53 = vadd.f32 %v3567_v8, %v18411_v34  ;;  %v13383_v46 = vpop.f32.mrf.mxu0  ;;  %v18413_v29 = vld [vmem:[#allocation56_spill] sm:$0xff]  ;;  %v16184_v10 = vadd.f32 %v3016_v12, %v15989_v11  ;;  %v18414_v7 = vld [vmem:[#allocation26_spill] sm:$0xff]  ;;  %v13363_v22 = vpop.f32.mrf.mxu1  ;;  %v18418_v11 = vld [vmem:[#allocation83_spill] sm:$0xff] }
 0x26e   : > { %3907 = vst.msk [vmem:[#allocation3 + $0x8] sm:$0xff] %vm3905_vm2, %v3874_v31  ;;  %v3873_v55 = vmax.f32 %v3841_v43, 0.0  ;;  %v3804_v2 = vadd.f32 %v3772_v61, %v18412_v15  ;;  %v3583_v45 = vadd.f32 %v13383_v46, %v18413_v29  ;;  %v3026_v57 = vadd.f32 %v18415_v35, %v18414_v7  ;;  %v18417_v21 = vld [vmem:[#allocation58_spill] sm:$0xff]  ;;  %v18419_v61 = vld [vmem:[#allocation85_spill] sm:$0xff]  ;;  %v18421_v46 = vld [vmem:[#allocation152_spill] sm:$0xff] }
 0x26f   : > { %v3844_v6 = vadd.f32 %v16123_v54, %v3805_v28  ;;  %v3775_v5 = vadd.f32 %v3743_v13, %v18416_v44  ;;  %v3742_v60 = vadd.f32 %v3568_v53, %v16052_v56  ;;  %v3577_v18 = vpop.f32.mrf.mxu0  ;;  %v16196_v12 = vadd.f32 %v16044_v20, %v18418_v11  ;;  %v18420_v56 = vld [vmem:[#allocation109_spill] sm:$0xff]  ;;  %v18425_v7 = vld [vmem:[#allocation110_spill] sm:$0xff]  ;;  %v3356_v44 = vpop.f32.mrf.mxu1 }
 0x270   : > { %3906 = vst.msk [vmem:[#allocation3] sm:$0xff] %vm3905_vm2, %v3873_v55  ;;  %v3843_v31 = vadd.f32 %v16123_v54, %v3804_v2  ;;  %v3745_v43 = vadd.f32 %v3583_v45, %v16056_v19  ;;  %v3578_v28 = vadd.f32 %v3577_v18, %v18417_v21  ;;  %v16200_v32 = vadd.f32 %v16089_v3, %v18419_v61  ;;  %v18423_v2 = vld [vmem:[#allocation29_spill] sm:$0xff]  ;;  %v18424_v3 = vld [vmem:[#allocation163_spill] sm:$0xff]  ;;  %v18430_v21 = vld [vmem:[#allocation10_spill] sm:$0xff] }
 0x271   : > { %v3876_v8 = vmax.f32 %v3844_v6, 0.0  ;;  %v3807_v62 = vadd.f32 %v18420_v56, %v3775_v5  ;;  %v3774_v13 = vadd.f32 %v3742_v60, %v16036_v58  ;;  %v13386_v34 = vpop.f32.mrf.mxu0  ;;  %v18422_v6 = vld [vmem:[#allocation60_spill] sm:$0xff]  ;;  %v16209_v20 = vadd.f32 %v3026_v57, %v15997_v59  ;;  %v18426_v5 = vld [vmem:[#allocation111_spill] sm:$0xff] }
 0x272   : > { %v3875_v53 = vmax.f32 %v3843_v31, 0.0  ;;  %v3777_v19 = vadd.f32 %v3745_v43, %v18421_v46  ;;  %v3744_v55 = vadd.f32 %v3578_v28, %v16064_v41  ;;  %v3593_v15 = vadd.f32 %v13386_v34, %v18422_v6  ;;  %v18428_v57 = vld [vmem:[#allocation87_spill] sm:$0xff]  ;;  %v18429_v43 = vld [vmem:[#allocation33_spill] sm:$0xff] }
 0x273   : > { %3909 = vst.msk [vmem:[#allocation3 + $0x18] sm:$0xff] %vm3905_vm2, %v3876_v8  ;;  %v3036_v29 = vadd.f32 %v18424_v3, %v18423_v2  ;;  %v3846_v45 = vadd.f32 %v16123_v54, %v3807_v62  ;;  %v3806_v58 = vadd.f32 %v3774_v13, %v18425_v7  ;;  %v3587_v35 = vpop.f32.mrf.mxu0  ;;  %v18427_v8 = vld [vmem:[#allocation62_spill] sm:$0xff]  ;;  %v16222_v31 = vadd.f32 %v16125_v25, %v18428_v57  ;;  %v18431_v13 = vld [vmem:[#allocation112_spill] sm:$0xff]  ;;  %v18433_v46 = vld [vmem:[#allocation119_spill] sm:$0xff] }
 0x274   : > { %3908 = vst.msk [vmem:[#allocation3 + $0x10] sm:$0xff] %vm3905_vm2, %v3875_v53  ;;  %v3809_v60 = vadd.f32 %v18426_v5, %v3777_v19  ;;  %v3776_v41 = vadd.f32 %v3744_v55, %v16048_v33  ;;  %v3747_v18 = vadd.f32 %v3593_v15, %v16071_v0  ;;  %v3588_v59 = vadd.f32 %v3587_v35, %v18427_v8  ;;  %v18432_v33 = vld [vmem:[#allocation153_spill] sm:$0xff]  ;;  %v18435_v15 = vld [vmem:[#allocation64_spill] sm:$0xff]  ;;  %v18439_v57 = vld [vmem:[#allocation66_spill] sm:$0xff] }
 0x275   : > { %v3046_v28 = vadd.f32 %v18430_v21, %v18429_v43  ;;  %v3878_v11 = vmax.f32 %v3846_v45, 0.0  ;;  %v3845_v61 = vadd.f32 %v16123_v54, %v3806_v58  ;;  %v13389_v56 = vpop.f32.mrf.mxu0  ;;  %v16232_v19 = vadd.f32 %v3036_v29, %v18433_v46  ;;  %v18434_v25 = vld [vmem:[#allocation89_spill] sm:$0xff]  ;;  %v18436_v45 = vld [vmem:[#allocation91_spill] sm:$0xff]  ;;  %v13366_v58 = vpop.f32.mrf.mxu1  ;;  %v18440_v21 = vld [vmem:[#allocation122_spill] sm:$0xff] }
 0x276   : > { %v3848_v62 = vadd.f32 %v16123_v54, %v3809_v60  ;;  %v3808_v34 = vadd.f32 %v3776_v41, %v18431_v13  ;;  %v3779_v53 = vadd.f32 %v3747_v18, %v18432_v33  ;;  %v3746_v0 = vadd.f32 %v3588_v59, %v16077_v1  ;;  %v18437_v1 = vld [vmem:[#allocation113_spill] sm:$0xff]  ;;  %v18442_v13 = vld [vmem:[#allocation95_spill] sm:$0xff] }
 0x277   : > { %v16235_v55 = vadd.f32 %v3346_v39, %v18434_v25  ;;  %3911 = vst.msk [vmem:[#allocation3 + $0x28] sm:$0xff] %vm3905_vm2, %v3878_v11  ;;  %v3877_v6 = vmax.f32 %v3845_v61, 0.0  ;;  %v3603_v2 = vadd.f32 %v13389_v56, %v18435_v15  ;;  %v3597_v3 = vpop.f32.mrf.mxu0  ;;  %v16240_v7 = vadd.f32 %v13363_v22, %v18436_v45  ;;  %v18438_v29 = vld [vmem:[#allocation93_spill] sm:$0xff]  ;;  %v18441_v56 = vld [vmem:[#allocation68_spill] sm:$0xff] }
 0x278   : > { %v3880_v35 = vmax.f32 %v3848_v62, 0.0  ;;  %v3847_v5 = vadd.f32 %v16123_v54, %v3808_v34  ;;  %v3811_v60 = vadd.f32 %v18437_v1, %v3779_v53  ;;  %v16245_v41 = vadd.f32 %v3356_v44, %v18438_v29  ;;  %v3938_v39 = vld [vmem:[#allocation3] sm:$0xff]  ;;  %v18443_v53 = vld [vmem:[#allocation114_spill] sm:$0xff] }
 0x279   : > { %v3970_v18 = vld [vmem:[#allocation3 + $0x1] sm:$0xff]  ;;  %3910 = vst.msk [vmem:[#allocation3 + $0x20] sm:$0xff] %vm3905_vm2, %v3877_v6  ;;  %v3778_v8 = vadd.f32 %v3746_v0, %v16060_v26  ;;  %v3749_v59 = vadd.f32 %v3603_v2, %v16083_v23  ;;  %v3598_v22 = vadd.f32 %v3597_v3, %v18439_v57  ;;  %v13392_v43 = vpop.f32.mrf.mxu0  ;;  %v16252_v11 = vadd.f32 %v3046_v28, %v18440_v21  ;;  %v18444_v0 = vld [vmem:[#allocation154_spill] sm:$0xff] }
 0x27a   : > { %3913 = vst.msk [vmem:[#allocation3 + $0x38] sm:$0xff] %vm3905_vm2, %v3880_v35  ;;  %v3879_v61 = vmax.f32 %v3847_v5, 0.0  ;;  %v3850_v44 = vadd.f32 %v16123_v54, %v3811_v60  ;;  %v3613_v62 = vadd.f32 %v13392_v43, %v18441_v56  ;;  %v16258_v34 = vadd.f32 %v13366_v58, %v18442_v13  ;;  %v18445_v35 = vld [vmem:[#allocation115_spill] sm:$0xff]  ;;  %v18446_v60 = vld [vmem:[#allocation70_spill] sm:$0xff] }
 0x27b   : > { %v3940_v33 = vld [vmem:[#allocation3 + $0x10] sm:$0xff]  ;;  %v3810_v23 = vadd.f32 %v3778_v8, %v18443_v53  ;;  %v3781_v46 = vadd.f32 %v3749_v59, %v18444_v0  ;;  %v3748_v25 = vadd.f32 %v3598_v22, %v16087_v30  ;;  %v3607_v28 = vpop.f32.mrf.mxu0  ;;  %v4002_v6 = vmax.f32 %v3938_v39, %v3970_v18  ;;  %v18447_v59 = vld [vmem:[#allocation36_spill] sm:$0xff]  ;;  %v3939_v43 = vld [vmem:[#allocation3 + $0x8] sm:$0xff] }
 0x27c   : > { %v3972_v26 = vld [vmem:[#allocation3 + $0x11] sm:$0xff]  ;;  %3912 = vst.msk [vmem:[#allocation3 + $0x30] sm:$0xff] %vm3905_vm2, %v3879_v61  ;;  %v3882_v2 = vmax.f32 %v3850_v44, 0.0  ;;  %v3751_v3 = vadd.f32 %v3613_v62, %v16096_v17  ;;  %v3971_v45 = vld [vmem:[#allocation3 + $0x9] sm:$0xff]  ;;  %v3608_v29 = vadd.f32 %v3607_v28, %v18446_v60  ;;  %v16271_v30 = vadd.f32 %v16034_v9, %v18447_v59  ;;  %v18449_v17 = vld [vmem:[#allocation72_spill] sm:$0xff] }
 0x27d   : > { %v4004_v15 = vmax.f32 %v3940_v33, %v3972_v26  ;;  %v3849_v58 = vadd.f32 %v16123_v54, %v3810_v23  ;;  %v3813_v5 = vadd.f32 %v18445_v35, %v3781_v46  ;;  %v3780_v1 = vadd.f32 %v3748_v25, %v16073_v14  ;;  %v13395_v8 = vpop.f32.mrf.mxu0  ;;  %v18448_v18 = vld [vmem:[#allocation155_spill] sm:$0xff]  ;;  %v18450_v14 = vld [vmem:[#allocation116_spill] sm:$0xff]  ;;  %v18451_v23 = vld [vmem:[#allocation117_spill] sm:$0xff] }
 0x27e   : > { %3915 = vst.msk [vmem:[#allocation3 + $0x48] sm:$0xff] %vm3905_vm2, %v3882_v2  ;;  %v3783_v57 = vadd.f32 %v3751_v3, %v18448_v18  ;;  %v3623_v22 = vadd.f32 %v13395_v8, %v18449_v17  ;;  %v3941_v21 = vld [vmem:[#allocation3 + $0x18] sm:$0xff]  ;;  %v3750_v62 = vadd.f32 %v3608_v29, %v16100_v42  ;;  %v4003_v33 = vmax.f32 %v3939_v43, %v3971_v45  ;;  %v18452_v25 = vld [vmem:[#allocation74_spill] sm:$0xff] }
 0x27f   : > { %v4040_v39 = vmax.f32 %v4002_v6, %v4004_v15  ;;  %v3881_v61 = vmax.f32 %v3849_v58, 0.0  ;;  %v3852_v44 = vadd.f32 %v16123_v54, %v3813_v5  ;;  %v3812_v56 = vadd.f32 %v3780_v1, %v18450_v14  ;;  %v3617_v13 = vpop.f32.mrf.mxu0  ;;  %v3943_v45 = vld [vmem:[#allocation3 + $0x28] sm:$0xff]  ;;  %v18453_v5 = vld [vmem:[#allocation156_spill] sm:$0xff] }
 0x280   : > { %v3942_v9 = vld [vmem:[#allocation3 + $0x20] sm:$0xff]  ;;  %v3815_v0 = vadd.f32 %v18451_v23, %v3783_v57  ;;  %v3753_v46 = vadd.f32 %v3623_v22, %v16110_v52  ;;  %v3618_v28 = vadd.f32 %v3617_v13, %v18452_v25  ;;  %v3782_v35 = vadd.f32 %v3750_v62, %v16092_v48  ;;  %v18457_v13 = vld [vmem:[#allocation78_spill] sm:$0xff] }
 0x281   : > { %4072 = vst.msk [vmem:[#allocation4] sm:$0xff] %vm3905_vm2, %v4040_v39  ;;  %v3973_v26 = vld [vmem:[#allocation3 + $0x19] sm:$0xff]  ;;  %v3974_v53 = vld [vmem:[#allocation3 + $0x21] sm:$0xff]  ;;  %3914 = vst.msk [vmem:[#allocation3 + $0x40] sm:$0xff] %vm3905_vm2, %v3881_v61  ;;  %v3884_v2 = vmax.f32 %v3852_v44, 0.0  ;;  %v3851_v42 = vadd.f32 %v16123_v54, %v3812_v56  ;;  %v13398_v3 = vpop.f32.mrf.mxu0  ;;  %v3366_v44 = vpop.f32.mrf.mxu1 }
 0x282   : > { %v4005_v6 = vmax.f32 %v3941_v21, %v3973_v26  ;;  %v4006_v15 = vmax.f32 %v3942_v9, %v3974_v53  ;;  %v3854_v58 = vadd.f32 %v16123_v54, %v3815_v0  ;;  %v3785_v1 = vadd.f32 %v3753_v46, %v18453_v5  ;;  %v18454_v18 = vld [vmem:[#allocation76_spill] sm:$0xff]  ;;  %v18455_v61 = vld [vmem:[#allocation118_spill] sm:$0xff] }
 0x283   : > { %v3752_v60 = vadd.f32 %v3618_v28, %v16116_v51  ;;  %v3944_v29 = vld [vmem:[#allocation3 + $0x30] sm:$0xff]  ;;  %3917 = vst.msk [vmem:[#allocation3 + $0x58] sm:$0xff] %vm3905_vm2, %v3884_v2  ;;  %v3883_v39 = vmax.f32 %v3851_v42, 0.0  ;;  %v3633_v57 = vadd.f32 %v13398_v3, %v18454_v18  ;;  %v3627_v17 = vpop.f32.mrf.mxu0  ;;  %v3814_v48 = vadd.f32 %v3782_v35, %v18455_v61  ;;  %v18456_v51 = vld [vmem:[#allocation120_spill] sm:$0xff]  ;;  %v18459_v28 = vld [vmem:[#allocation121_spill] sm:$0xff] }
 0x284   : > { %v4041_v52 = vmax.f32 %v4003_v33, %v4005_v6  ;;  %v3975_v8 = vld [vmem:[#allocation3 + $0x29] sm:$0xff]  ;;  %v3976_v59 = vld [vmem:[#allocation3 + $0x31] sm:$0xff]  ;;  %v3886_v21 = vmax.f32 %v3854_v58, 0.0  ;;  %v3817_v14 = vadd.f32 %v18456_v51, %v3785_v1  ;;  %v3628_v33 = vadd.f32 %v3627_v17, %v18457_v13  ;;  %v18458_v23 = vld [vmem:[#allocation80_spill] sm:$0xff] }
 0x285   : > { %v4007_v22 = vmax.f32 %v3943_v45, %v3975_v8  ;;  %v4008_v43 = vmax.f32 %v3944_v29, %v3976_v59  ;;  %3916 = vst.msk [vmem:[#allocation3 + $0x50] sm:$0xff] %vm3905_vm2, %v3883_v39  ;;  %v3784_v56 = vadd.f32 %v3752_v60, %v16104_v16  ;;  %v3755_v62 = vadd.f32 %v3633_v57, %v16131_v50  ;;  %v13401_v9 = vpop.f32.mrf.mxu0  ;;  %v3945_v46 = vld [vmem:[#allocation3 + $0x38] sm:$0xff]  ;;  %v18460_v2 = vld [vmem:[#allocation157_spill] sm:$0xff]  ;;  %v18462_v60 = vld [vmem:[#allocation82_spill] sm:$0xff] }
 0x286   : > { %4073 = vst.msk [vmem:[#allocation4 + $0x8] sm:$0xff] %vm3905_vm2, %v4041_v52  ;;  %3919 = vst.msk [vmem:[#allocation3 + $0x68] sm:$0xff] %vm3905_vm2, %v3886_v21  ;;  %v3853_v53 = vadd.f32 %v16123_v54, %v3814_v48  ;;  %v3643_v0 = vadd.f32 %v13401_v9, %v18458_v23  ;;  %v3856_v25 = vadd.f32 %v16123_v54, %v3817_v14  ;;  %v18461_v3 = vld [vmem:[#allocation97_spill] sm:$0xff]  ;;  %v18463_v18 = vld [vmem:[#allocation123_spill] sm:$0xff] }
 0x287   : > { %v4044_v26 = vmax.f32 %v4006_v15, %v4008_v43  ;;  %v3816_v6 = vadd.f32 %v3784_v56, %v18459_v28  ;;  %v3787_v42 = vadd.f32 %v3755_v62, %v18460_v2  ;;  %v3754_v16 = vadd.f32 %v3628_v33, %v16138_v40  ;;  %v3637_v50 = vpop.f32.mrf.mxu0  ;;  %v18464_v43 = vld [vmem:[#allocation158_spill] sm:$0xff]  ;;  %v18465_v51 = vld [vmem:[#allocation84_spill] sm:$0xff] }
 0x288   : > { %v16306_v45 = vadd.f32 %v3366_v44, %v18461_v3  ;;  %v3946_v15 = vld [vmem:[#allocation3 + $0x40] sm:$0xff]  ;;  %v3885_v5 = vmax.f32 %v3853_v53, 0.0  ;;  %v3757_v1 = vadd.f32 %v3643_v0, %v16142_v63  ;;  %v3638_v52 = vadd.f32 %v3637_v50, %v18462_v60  ;;  %v3947_v48 = vld [vmem:[#allocation3 + $0x48] sm:$0xff]  ;;  %v18469_v3 = vld [vmem:[#allocation127_spill] sm:$0xff] }
 0x289   : > { %4076 = vst.msk [vmem:[#allocation4 + $0x20] sm:$0xff] %vm3905_vm2, %v4044_v26  ;;  %v3977_v58 = vld [vmem:[#allocation3 + $0x39] sm:$0xff]  ;;  %v3978_v35 = vld [vmem:[#allocation3 + $0x41] sm:$0xff]  ;;  %v3888_v59 = vmax.f32 %v3856_v25, 0.0  ;;  %v3855_v39 = vadd.f32 %v16123_v54, %v3816_v6  ;;  %v13404_v40 = vpop.f32.mrf.mxu0  ;;  %v3819_v57 = vadd.f32 %v18463_v18, %v3787_v42  ;;  %v3786_v17 = vadd.f32 %v3754_v16, %v16112_v37  ;;  %v18467_v37 = vld [vmem:[#allocation126_spill] sm:$0xff] }
 0x28a   : > { %v4009_v29 = vmax.f32 %v3945_v46, %v3977_v58  ;;  %v4010_v8 = vmax.f32 %v3946_v15, %v3978_v35  ;;  %3918 = vst.msk [vmem:[#allocation3 + $0x60] sm:$0xff] %vm3905_vm2, %v3885_v5  ;;  %v3789_v21 = vadd.f32 %v3757_v1, %v18464_v43  ;;  %v3756_v61 = vadd.f32 %v3638_v52, %v16161_v4  ;;  %v18466_v26 = vld [vmem:[#allocation124_spill] sm:$0xff]  ;;  %v18468_v25 = vld [vmem:[#allocation86_spill] sm:$0xff]  ;;  %v18470_v58 = vld [vmem:[#allocation159_spill] sm:$0xff] }
 0x28b   : > { %3921 = vst.msk [vmem:[#allocation3 + $0x78] sm:$0xff] %vm3905_vm2, %v3888_v59  ;;  %v3887_v44 = vmax.f32 %v3855_v39, 0.0  ;;  %v3653_v14 = vadd.f32 %v13404_v40, %v18465_v51  ;;  %v3647_v56 = vpop.f32.mrf.mxu0  ;;  %v3858_v9 = vadd.f32 %v16123_v54, %v3819_v57  ;;  %v3818_v53 = vadd.f32 %v3786_v17, %v18466_v26  ;;  %v18471_v59 = vld [vmem:[#allocation88_spill] sm:$0xff]  ;;  %v18472_v40 = vld [vmem:[#allocation13_spill] sm:$0xff] }
 0x28c   : > { %v4045_v63 = vmax.f32 %v4007_v22, %v4009_v29  ;;  %v3948_v62 = vld [vmem:[#allocation3 + $0x50] sm:$0xff]  ;;  %v3821_v23 = vadd.f32 %v18467_v37, %v3789_v21  ;;  %v3788_v0 = vadd.f32 %v3756_v61, %v16134_v24  ;;  %v3648_v28 = vadd.f32 %v3647_v56, %v18468_v25  ;;  %v18476_v26 = vld [vmem:[#allocation92_spill] sm:$0xff] }
 0x28d   : > { %v3979_v13 = vld [vmem:[#allocation3 + $0x49] sm:$0xff]  ;;  %v3980_v33 = vld [vmem:[#allocation3 + $0x51] sm:$0xff]  ;;  %3920 = vst.msk [vmem:[#allocation3 + $0x70] sm:$0xff] %vm3905_vm2, %v3887_v44  ;;  %v3759_v46 = vadd.f32 %v3653_v14, %v16171_v38  ;;  %v13407_v6 = vpop.f32.mrf.mxu0  ;;  %v3890_v42 = vmax.f32 %v3858_v9, 0.0  ;;  %v3857_v16 = vadd.f32 %v16123_v54, %v3818_v53  ;;  %v16338_v18 = vadd.f32 %v16271_v30, %v18472_v40  ;;  %v13369_v44 = vpop.f32.mrf.mxu1 }
 0x28e   : > { %4077 = vst.msk [vmem:[#allocation4 + $0x28] sm:$0xff] %vm3905_vm2, %v4045_v63  ;;  %v4011_v4 = vmax.f32 %v3947_v48, %v3979_v13  ;;  %v4012_v22 = vmax.f32 %v3948_v62, %v3980_v33  ;;  %v4142_v2 = vld [vmem:[#allocation4] ss:$2 sm:$0x7f]  ;;  %v3860_v50 = vadd.f32 %v16123_v54, %v3821_v23  ;;  %v3820_v15 = vadd.f32 %v3788_v0, %v18469_v3  ;;  %v18474_v61 = vld [vmem:[#allocation90_spill] sm:$0xff] }
 0x28f   : > { %4144 = vst.msk [vmem:[#allocation5 + $0x11] sm:$0x7f] %vm4143_vm3, %v4142_v2  ;;  %v3791_v35 = vadd.f32 %v3759_v46, %v18470_v58  ;;  %v3758_v5 = vadd.f32 %v3648_v28, %v16175_v36  ;;  %v3657_v1 = vpop.f32.mrf.mxu0  ;;  %v3949_v38 = vld [vmem:[#allocation3 + $0x58] sm:$0xff]  ;;  %v3889_v60 = vmax.f32 %v3857_v16, 0.0  ;;  %v3663_v39 = vadd.f32 %v13407_v6, %v18471_v59  ;;  %v18473_v36 = vld [vmem:[#allocation129_spill] sm:$0xff]  ;;  %v18475_v33 = vld [vmem:[#allocation130_spill] sm:$0xff] }
 0x290   : > { %v4048_v24 = vmax.f32 %v4010_v8, %v4012_v22  ;;  %3923 = vst.msk [vmem:[#allocation3 + $0x88] sm:$0xff] %vm3905_vm2, %v3890_v42  ;;  %v3892_v52 = vmax.f32 %v3860_v50, 0.0  ;;  %v3859_v29 = vadd.f32 %v16123_v54, %v3820_v15  ;;  %v3658_v48 = vadd.f32 %v3657_v1, %v18474_v61  ;;  %v16347_v62 = vld [vmem:[#allocation3 + $0x68] sm:$0xff]  ;;  %v4200_v23 = vld [vmem:[#allocation5 + $0x19] sm:$0xff] }
 0x291   : > { %v3950_v8 = vld [vmem:[#allocation3 + $0x60] sm:$0xff]  ;;  %v3823_v43 = vadd.f32 %v18473_v36, %v3791_v35  ;;  %v3790_v21 = vadd.f32 %v3758_v5, %v16157_v27  ;;  %v13410_v63 = vpop.f32.mrf.mxu0  ;;  %3922 = vst.msk [vmem:[#allocation3 + $0x80] sm:$0xff] %vm3905_vm2, %v3889_v60  ;;  %v3761_v56 = vadd.f32 %v3663_v39, %v16196_v12  ;;  %v16353_v0 = vld [vmem:[#allocation5 + $0x18] sm:$0xff]  ;;  %v3376_v35 = vpop.f32.mrf.mxu1 }
 0x292   : > { %4080 = vst.msk [vmem:[#allocation4 + $0x40] sm:$0xff] %vm3905_vm2, %v4048_v24  ;;  %v3981_v57 = vld [vmem:[#allocation3 + $0x59] sm:$0xff]  ;;  %v3982_v17 = vld [vmem:[#allocation3 + $0x61] sm:$0xff]  ;;  %3925 = vst.msk [vmem:[#allocation3 + $0x98] sm:$0xff] %vm3905_vm2, %v3892_v52  ;;  %v3891_v30 = vmax.f32 %v3859_v29, 0.0  ;;  %v3760_v27 = vadd.f32 %v3658_v48, %v16200_v32  ;;  %v3673_v53 = vadd.f32 %v13410_v63, %v18476_v26 }
 0x293   : > { %v4013_v51 = vmax.f32 %v3949_v38, %v3981_v57  ;;  %v4014_v14 = vmax.f32 %v3950_v8, %v3982_v17  ;;  %v3862_v13 = vadd.f32 %v16123_v54, %v3823_v43  ;;  %v3822_v9 = vadd.f32 %v3790_v21, %v18475_v33  ;;  %v3667_v37 = vpop.f32.mrf.mxu0  ;;  %v18477_v12 = vld [vmem:[#allocation160_spill] sm:$0xff]  ;;  %v18478_v2 = vld [vmem:[#allocation94_spill] sm:$0xff]  ;;  %v18481_v57 = vld [vmem:[#allocation133_spill] sm:$0xff] }
 0x294   : > { %v3952_v46 = vld [vmem:[#allocation3 + $0x70] sm:$0xff]  ;;  %3924 = vst.msk [vmem:[#allocation3 + $0x90] sm:$0xff] %vm3905_vm2, %v3891_v30  ;;  %v3793_v6 = vadd.f32 %v3761_v56, %v18477_v12  ;;  %v3668_v42 = vadd.f32 %v3667_v37, %v18478_v2  ;;  %v18479_v5 = vld [vmem:[#allocation132_spill] sm:$0xff]  ;;  %v3792_v38 = vadd.f32 %v3760_v27, %v16184_v10  ;;  %v3763_v60 = vadd.f32 %v3673_v53, %v16222_v31  ;;  %v18484_v63 = vld [vmem:[#allocation101_spill] sm:$0xff] }
 0x295   : > { %v4049_v22 = vmax.f32 %v4011_v4, %v4013_v51  ;;  %v3983_v25 = vld [vmem:[#allocation3 + $0x69] sm:$0xff]  ;;  %v3984_v28 = vld [vmem:[#allocation3 + $0x71] sm:$0xff]  ;;  %v3894_v32 = vmax.f32 %v3862_v13, 0.0  ;;  %v3861_v3 = vadd.f32 %v16123_v54, %v3822_v9  ;;  %v13413_v58 = vpop.f32.mrf.mxu0  ;;  %v18480_v39 = vld [vmem:[#allocation96_spill] sm:$0xff]  ;;  %v16387_v51 = vadd.f32 %v3376_v35, %v18484_v63 }
 0x296   : > { %v4015_v16 = vmax.f32 %v16347_v62, %v3983_v25  ;;  %v4016_v50 = vmax.f32 %v3952_v46, %v3984_v28  ;;  %v4199_v15 = vld [vmem:[#allocation5 + $0x11] sm:$0xff]  ;;  %v4146_v4 = vld [vmem:[#allocation4 + $0x20] ss:$2 sm:$0x7f]  ;;  %v3825_v1 = vadd.f32 %v18479_v5, %v3793_v6  ;;  %v3762_v52 = vadd.f32 %v3668_v42, %v16235_v55 }
 0x297   : > { %v16360_v24 = vld [vmem:[#allocation5 + $0x10] sm:$0xff]  ;;  %4081 = vst.msk [vmem:[#allocation4 + $0x48] sm:$0xff] %vm3905_vm2, %v4049_v22  ;;  %13427 = vmatprep.mubr.msk.f32.mxu1 %vm3905_vm2, %v4199_v15  ;;  %3927 = vst.msk [vmem:[#allocation3 + $0xa8] sm:$0xff] %vm3905_vm2, %v3894_v32  ;;  %v3893_v59 = vmax.f32 %v3861_v3, 0.0  ;;  %v3683_v40 = vadd.f32 %v13413_v58, %v18480_v39  ;;  %v3677_v8 = vpop.f32.mrf.mxu0  ;;  %v11875_v10 = vld [vmem:[%s18023_s3 + $0x70] sm:$0xff]  ;;  %v3824_v17 = vadd.f32 %v3792_v38, %v18481_v57 }
 0x298   : > { %4147 = vst.msk [vmem:[#allocation5 + $0x21] sm:$0x7f] %vm4143_vm3, %v4146_v4  ;;  %v4052_v29 = vmax.f32 %v4014_v14, %v4016_v50  ;;  %13476 = vmatprep.mubr.msk.f32.mxu0 %vm3905_vm2, %v16360_v24  ;;  %13428 = vmatmul.mubr.msk.f32.gmra.mxu1 %vm3905_vm2, %v4200_v23  ;;  %v3953_v31 = vld [vmem:[#allocation3 + $0x78] sm:$0xff]  ;;  %v3864_v55 = vadd.f32 %v16123_v54, %v3825_v1  ;;  %v18482_v36 = vld [vmem:[#allocation162_spill] sm:$0xff]  ;;  %v3954_v14 = vld [vmem:[#allocation3 + $0x80] sm:$0xff] }
 0x299   : > { %v3795_v43 = vadd.f32 %v3763_v60, %v18482_v36  ;;  %v3794_v21 = vadd.f32 %v3762_v52, %v16209_v20  ;;  %13477 = vmatmul.mubr.msk.f32.vlgmr.msra.gmra.mxu0 %vm3905_vm2, %v16353_v0  ;;  %v18483_v61 = vld [vmem:[#allocation99_spill] sm:$0xff]  ;;  %v3986_v56 = vld [vmem:[#allocation3 + $0x81] sm:$0xff]  ;;  %3926 = vst.msk [vmem:[#allocation3 + $0xa0] sm:$0xff] %vm3905_vm2, %v3893_v59  ;;  %v3765_v62 = vadd.f32 %v3683_v40, %v16240_v7  ;;  %v18485_v13 = vld [vmem:[#allocation98_spill] sm:$0xff]  ;;  %v13416_v33 = vpop.f32.mrf.mxu0 }
 0x29a   : > { %v16384_v48 = vadd.f32 %v13369_v44, %v18483_v61  ;;  %4084 = vst.msk [vmem:[#allocation4 + $0x60] sm:$0xff] %vm3905_vm2, %v4052_v29  ;;  %v3985_v30 = vld [vmem:[#allocation3 + $0x79] sm:$0xff]  ;;  %v3678_v20 = vadd.f32 %v3677_v8, %v18485_v13  ;;  %13577 = vmatpush3.msra.mxu0 %v16147_v47  ;;  %v16394_v9 = vld [vmem:[#allocation3 + $0x88] sm:$0xff]  ;;  %v4018_v27 = vmax.f32 %v3954_v14, %v3986_v56  ;;  %v3896_v26 = vmax.f32 %v3864_v55, 0.0 }
 0x29b   : > { %v4017_v44 = vmax.f32 %v3953_v31, %v3985_v30  ;;  %v3863_v53 = vadd.f32 %v16123_v54, %v3824_v17  ;;  %13578 = vmatprep.subr.mxu0 %v11875_v10  ;;  %v3956_v37 = vld [vmem:[#allocation3 + $0x90] sm:$0xff]  ;;  %v18487_v28 = vld [vmem:[#allocation136_spill] sm:$0xff]  ;;  %v3687_v47 = vpop.f32.mrf.mxu0  ;;  %v18496_v56 = vld [vmem:[#allocation105_spill] sm:$0xff] }
 0x29c   : > { %v3987_v23 = vld [vmem:[#allocation3 + $0x89] sm:$0xff]  ;;  %v3988_v22 = vld [vmem:[#allocation3 + $0x91] sm:$0xff]  ;;  %v3826_v7 = vadd.f32 %v3794_v21, %v18487_v28  ;;  %v18488_v12 = vld [vmem:[#allocation164_spill] sm:$0xff]  ;;  %v3764_v2 = vadd.f32 %v3678_v20, %v16245_v41  ;;  %13579 = vmatpush3.msra.mxu0 %v11875_v10  ;;  %3929 = vst.msk [vmem:[#allocation3 + $0xb8] sm:$0xff] %vm3905_vm2, %v3896_v26 }
 0x29d   : > { %v18486_v46 = vld [vmem:[#allocation135_spill] sm:$0xff]  ;;  %v3797_v6 = vadd.f32 %v3765_v62, %v18488_v12  ;;  %v4053_v42 = vmax.f32 %v4015_v16, %v4017_v44  ;;  %v4019_v50 = vmax.f32 %v16394_v9, %v3987_v23  ;;  %v4020_v32 = vmax.f32 %v3956_v37, %v3988_v22  ;;  %v16403_v3 = vld [vmem:[#allocation5 + $0x29] sm:$0xff]  ;;  %v18490_v5 = vld [vmem:[#allocation138_spill] sm:$0xff]  ;;  %v13419_v16 = vpop.f32.mrf.mxu0 }
 0x29e   : > { %v3827_v25 = vadd.f32 %v18486_v46, %v3795_v43  ;;  %18489 = vst [vmem:[#allocation125_spill] sm:$0xff] %v16403_v3  ;;  %v16405_v15 = vld [vmem:[#allocation5 + $0x28] sm:$0xff]  ;;  %v3895_v58 = vmax.f32 %v3863_v53, 0.0  ;;  %v3865_v35 = vadd.f32 %v16123_v54, %v3826_v7  ;;  %v3796_v29 = vadd.f32 %v3764_v2, %v16232_v19  ;;  %v3957_v40 = vld [vmem:[#allocation3 + $0x98] sm:$0xff]  ;;  %v18493_v55 = vld [vmem:[#allocation102_spill] sm:$0xff] }
 0x29f   : > { %v3829_v1 = vadd.f32 %v18490_v5, %v3797_v6  ;;  %v16410_v41 = vld [vmem:[#allocation5 + $0x21] sm:$0xff]  ;;  %4085 = vst.msk [vmem:[#allocation4 + $0x68] sm:$0xff] %vm3905_vm2, %v4053_v42  ;;  %v4056_v52 = vmax.f32 %v4018_v27, %v4020_v32  ;;  %v3688_v57 = vadd.f32 %v3687_v47, %v18493_v55  ;;  %v3697_v19 = vpop.f32.mrf.mxu0  ;;  %v3959_v22 = vld [vmem:[#allocation3 + $0xa8] sm:$0xff]  ;;  %v16446_v12 = vld [vmem:[#allocation5 + $0x39] sm:$0xff] }
 0x2a0   : > { %v3866_v4 = vadd.f32 %v16123_v54, %v3827_v25  ;;  %18491 = vst [vmem:[#allocation15_spill] sm:$0xff] %v16410_v41  ;;  %v16412_v38 = vld [vmem:[#allocation5 + $0x20] sm:$0xff]  ;;  %13430 = vmatprep.mubr.msk.f32.mxu1 %vm3905_vm2, %v16410_v41  ;;  %3928 = vst.msk [vmem:[#allocation3 + $0xb0] sm:$0xff] %vm3905_vm2, %v3895_v58  ;;  %v3897_v10 = vmax.f32 %v3865_v35, 0.0  ;;  %v3958_v17 = vld [vmem:[#allocation3 + $0xa0] sm:$0xff]  ;;  %v3698_v62 = vadd.f32 %v3697_v19, %v18496_v56 }
 0x2a1   : > { %v4149_v60 = vld [vmem:[#allocation4 + $0x40] ss:$2 sm:$0x7f]  ;;  %v3868_v31 = vadd.f32 %v16123_v54, %v3829_v1  ;;  %13479 = vmatprep.mubr.msk.f32.mxu0 %vm3905_vm2, %v16412_v38  ;;  %13431 = vmatmul.mubr.msk.f32.gmra.mxu1 %vm3905_vm2, %v16403_v3  ;;  %4088 = vst.msk [vmem:[#allocation4 + $0x80] sm:$0xff] %vm3905_vm2, %v4056_v52  ;;  %v3766_v9 = vadd.f32 %v3688_v57, %v16306_v45  ;;  %18499 = vst [vmem:[#allocation128_spill] sm:$0xff] %v16446_v12  ;;  %v16448_v6 = vld [vmem:[#allocation5 + $0x38] sm:$0xff] }
 0x2a2   : > { %v18492_v59 = vld [vmem:[#allocation100_spill] sm:$0xff]  ;;  %4150 = vst.msk [vmem:[#allocation5 + $0x31] sm:$0x7f] %vm4143_vm3, %v4149_v60  ;;  %v3898_v8 = vmax.f32 %v3866_v4, 0.0  ;;  %v18494_v21 = vld [vmem:[#allocation139_spill] sm:$0xff]  ;;  %13480 = vmatmul.mubr.msk.f32.gmra.mxu0 %vm3905_vm2, %v16405_v15  ;;  %v3768_v53 = vadd.f32 %v3698_v62, %v16387_v51  ;;  %v18498_v25 = vld [vmem:[#allocation141_spill] sm:$0xff] }
 0x2a3   : > { %v3693_v39 = vadd.f32 %v13416_v33, %v18492_v59  ;;  %v3989_v36 = vld [vmem:[#allocation3 + $0x99] sm:$0xff]  ;;  %v3990_v43 = vld [vmem:[#allocation3 + $0xa1] sm:$0xff]  ;;  %v3828_v61 = vadd.f32 %v3796_v29, %v18494_v21  ;;  %3930 = vst.msk [vmem:[#allocation3 + $0xc0] sm:$0xff] %vm3905_vm2, %v3897_v10  ;;  %v3900_v33 = vmax.f32 %v3868_v31, 0.0  ;;  %v3798_v23 = vadd.f32 %v3766_v9, %v16252_v11  ;;  %v18503_v4 = vld [vmem:[#allocation146_spill] sm:$0xff] }
 0x2a4   : > { %v18495_v14 = vld [vmem:[#allocation103_spill] sm:$0xff]  ;;  %v4021_v13 = vmax.f32 %v3957_v40, %v3989_v36  ;;  %v4022_v20 = vmax.f32 %v3958_v17, %v3990_v43  ;;  %3931 = vst.msk [vmem:[#allocation3 + $0xc8] sm:$0xff] %vm3905_vm2, %v3898_v8  ;;  %v18497_v27 = vld [vmem:[#allocation12_spill] sm:$0xff]  ;;  %v3800_v45 = vadd.f32 %v3768_v53, %v16338_v18 }
 0x2a5   : > { %v3767_v63 = vadd.f32 %v3693_v39, %v16258_v34  ;;  %v3703_v30 = vadd.f32 %v13419_v16, %v18495_v14  ;;  %v3867_v44 = vadd.f32 %v16123_v54, %v3828_v61  ;;  %3933 = vst.msk [vmem:[#allocation3 + $0xd8] sm:$0xff] %vm3905_vm2, %v3900_v33  ;;  %v18502_v18 = vld [vmem:[#allocation144_spill] sm:$0xff] }
 0x2a6   : > { %v4057_v37 = vmax.f32 %v4019_v50, %v4021_v13  ;;  %v4152_v11 = vld [vmem:[#allocation4 + $0x60] ss:$2 sm:$0x7f]  ;;  %v3832_v35 = vadd.f32 %v3800_v45, %v18503_v4  ;;  %v16565_v4 = vld [vmem:[#allocation5 + $0x91] sm:$0xff] }
 0x2a7   : > { %v3799_v34 = vadd.f32 %v3767_v63, %v18497_v27  ;;  %v3769_v26 = vadd.f32 %v3703_v30, %v16384_v48  ;;  %v3899_v46 = vmax.f32 %v3867_v44, 0.0  ;;  %v18500_v48 = vld [vmem:[#allocation142_spill] sm:$0xff]  ;;  %4153 = vst.msk [vmem:[#allocation5 + $0x41] sm:$0x7f] %vm4143_vm3, %v4152_v11  ;;  %v3961_v60 = vld [vmem:[#allocation3 + $0xb8] sm:$0xff]  ;;  %v16485_v61 = vld [vmem:[#allocation5 + $0x48] sm:$0xff] }
 0x2a8   : > { %4089 = vst.msk [vmem:[#allocation4 + $0x88] sm:$0xff] %vm3905_vm2, %v4057_v37  ;;  %v3830_v51 = vadd.f32 %v3798_v23, %v18500_v48  ;;  %v3960_v42 = vld [vmem:[#allocation3 + $0xb0] sm:$0xff]  ;;  %v3871_v40 = vadd.f32 %v16123_v54, %v3832_v35  ;;  %v16476_v36 = vld [vmem:[%s18023_s3 + $0x8] sm:$0xff]  ;;  %18514 = vst [vmem:[#allocation23_spill] sm:$0xff] %v16565_v4 }
 0x2a9   : > { %v3831_v28 = vadd.f32 %v18498_v25, %v3799_v34  ;;  %v3801_v7 = vadd.f32 %v3769_v26, %v16046_v49  ;;  %v16452_v2 = vld [vmem:[#allocation5 + $0x31] sm:$0xff]  ;;  %v3992_v32 = vld [vmem:[#allocation3 + $0xb1] sm:$0xff]  ;;  %3932 = vst.msk [vmem:[#allocation3 + $0xd0] sm:$0xff] %vm3905_vm2, %v3899_v46  ;;  %13680 = vmatprep.subr.mxu0 %v16476_v36  ;;  %v16520_v25 = vld [vmem:[#allocation5 + $0x69] sm:$0xff] }
 0x2aa   : > { %18501 = vst [vmem:[#allocation27_spill] sm:$0xff] %v16452_v2  ;;  %v16454_v47 = vld [vmem:[#allocation5 + $0x30] sm:$0xff]  ;;  %13433 = vmatprep.mubr.msk.f32.mxu1 %vm3905_vm2, %v16452_v2  ;;  %v4024_v1 = vmax.f32 %v3960_v42, %v3992_v32  ;;  %v3869_v16 = vadd.f32 %v16123_v54, %v3830_v51  ;;  %v3962_v52 = vld [vmem:[#allocation3 + $0xc0] sm:$0xff]  ;;  %v3903_v17 = vmax.f32 %v3871_v40, 0.0  ;;  %v16501_v27 = vld [vmem:[#allocation5 + $0x59] sm:$0xff] }
 0x2ab   : > { %v3991_v50 = vld [vmem:[#allocation3 + $0xa9] sm:$0xff]  ;;  %v3870_v49 = vadd.f32 %v16123_v54, %v3831_v28  ;;  %v3833_v58 = vadd.f32 %v18502_v18, %v3801_v7  ;;  %13482 = vmatprep.mubr.msk.f32.mxu0 %vm3905_vm2, %v16454_v47  ;;  %13434 = vmatmul.mubr.msk.f32.gmra.mxu1 %vm3905_vm2, %v16446_v12  ;;  %v3993_v29 = vld [vmem:[#allocation3 + $0xb9] sm:$0xff]  ;;  %v3994_v10 = vld [vmem:[#allocation3 + $0xc1] sm:$0xff]  ;;  %18506 = vst [vmem:[#allocation31_spill] sm:$0xff] %v16501_v27 }
 0x2ac   : > { %v4023_v5 = vmax.f32 %v3959_v22, %v3991_v50  ;;  %13483 = vmatmul.mubr.msk.f32.gmra.mxu0 %vm3905_vm2, %v16448_v6  ;;  %v4060_v8 = vmax.f32 %v4022_v20, %v4024_v1  ;;  %v4025_v31 = vmax.f32 %v3961_v60, %v3993_v29  ;;  %v3901_v55 = vmax.f32 %v3869_v16, 0.0  ;;  %v3963_v21 = vld [vmem:[#allocation3 + $0xc8] sm:$0xff]  ;;  %3936 = vst.msk [vmem:[#allocation3 + $0xf0] sm:$0xff] %vm3905_vm2, %v3903_v17  ;;  %v3965_v44 = vld [vmem:[#allocation3 + $0xd8] sm:$0xff]  ;;  %v16504_v26 = vld [vmem:[#allocation5 + $0x58] sm:$0xff] }
 0x2ad   : > { %v3902_v59 = vmax.f32 %v3870_v49, 0.0  ;;  %v3872_v39 = vadd.f32 %v16123_v54, %v3833_v58  ;;  %v4026_v57 = vmax.f32 %v3962_v52, %v3994_v10  ;;  %v16480_v54 = vld [vmem:[#allocation5 + $0x49] sm:$0xff]  ;;  %18508 = vst [vmem:[#allocation131_spill] sm:$0xff] %v16520_v25  ;;  %v16537_v51 = vld [vmem:[#allocation5 + $0x79] sm:$0xff]  ;;  %v16541_v42 = vld [vmem:[#allocation5 + $0x81] sm:$0xff] }
 0x2ae   : > { %4092 = vst.msk [vmem:[#allocation4 + $0xa0] sm:$0xff] %vm3905_vm2, %v4060_v8  ;;  %v4061_v43 = vmax.f32 %v4023_v5, %v4025_v31  ;;  %3934 = vst.msk [vmem:[#allocation3 + $0xe0] sm:$0xff] %vm3905_vm2, %v3901_v55  ;;  %v16489_v20 = vld [vmem:[#allocation5 + $0x41] sm:$0xff]  ;;  %v16539_v11 = vld [vmem:[#allocation5 + $0x78] sm:$0xff] }
 0x2af   : > { %3935 = vst.msk [vmem:[#allocation3 + $0xe8] sm:$0xff] %vm3905_vm2, %v3902_v59  ;;  %v3904_v19 = vmax.f32 %v3872_v39, 0.0  ;;  %18504 = vst [vmem:[#allocation145_spill] sm:$0xff] %v16480_v54  ;;  %v4155_v63 = vld [vmem:[#allocation4 + $0x80] ss:$2 sm:$0x7f]  ;;  %13436 = vmatprep.mubr.msk.f32.mxu1 %vm3905_vm2, %v16489_v20 }
 0x2b0   : > { %4093 = vst.msk [vmem:[#allocation4 + $0xa8] sm:$0xff] %vm3905_vm2, %v4061_v43  ;;  %v3964_v14 = vld [vmem:[#allocation3 + $0xd0] sm:$0xff]  ;;  %18505 = vst [vmem:[#allocation40_spill] sm:$0xff] %v16489_v20  ;;  %v16491_v33 = vld [vmem:[#allocation5 + $0x40] sm:$0xff]  ;;  %13437 = vmatmul.mubr.msk.f32.gmra.mxu1 %vm3905_vm2, %v16480_v54 }
 0x2b1   : > { %3937 = vst.msk [vmem:[#allocation3 + $0xf8] sm:$0xff] %vm3905_vm2, %v3904_v19  ;;  %v3995_v30 = vld [vmem:[#allocation3 + $0xc9] sm:$0xff]  ;;  %v3996_v56 = vld [vmem:[#allocation3 + $0xd1] sm:$0xff]  ;;  %13485 = vmatprep.mubr.msk.f32.mxu0 %vm3905_vm2, %v16491_v33  ;;  %v16522_v28 = vld [vmem:[#allocation5 + $0x68] sm:$0xff] }
 0x2b2   : > { %4156 = vst.msk [vmem:[#allocation5 + $0x51] sm:$0x7f] %vm4143_vm3, %v4155_v63  ;;  %v4027_v62 = vmax.f32 %v3963_v21, %v3995_v30  ;;  %v4028_v13 = vmax.f32 %v3964_v14, %v3996_v56  ;;  %13486 = vmatmul.mubr.msk.f32.gmra.mxu0 %vm3905_vm2, %v16485_v61  ;;  %18510 = vst [vmem:[#allocation134_spill] sm:$0xff] %v16537_v51  ;;  %v16547_v49 = vld [vmem:[#allocation5 + $0x80] sm:$0xff]  ;;  %v16561_v18 = vld [vmem:[#allocation5 + $0x89] sm:$0xff] }
 0x2b3   : > { %18511 = vst [vmem:[#allocation21_spill] sm:$0xff] %v16541_v42  ;;  %18513 = vst [vmem:[#allocation38_spill] sm:$0xff] %v16561_v18  ;;  %v16563_v58 = vld [vmem:[#allocation5 + $0x88] sm:$0xff]  ;;  %v16567_v35 = vld [vmem:[#allocation5 + $0x90] sm:$0xff] }
 0x2b4   : > { %v4064_v9 = vmax.f32 %v4026_v57, %v4028_v13  ;;  %v16577_v5 = vld [vmem:[#allocation5 + $0x99] sm:$0xff]  ;;  %v16581_v16 = vld [vmem:[#allocation5 + $0xa1] sm:$0xff]  ;;  %v16593_v52 = vld [vmem:[#allocation5 + $0xa9] sm:$0xff] }
 0x2b5   : > { %v3997_v34 = vld [vmem:[#allocation3 + $0xd9] sm:$0xff]  ;;  %18515 = vst [vmem:[#allocation140_spill] sm:$0xff] %v16577_v5  ;;  %v16579_v1 = vld [vmem:[#allocation5 + $0x98] sm:$0xff]  ;;  %18516 = vst [vmem:[#allocation25_spill] sm:$0xff] %v16581_v16 }
 0x2b6   : > { %4096 = vst.msk [vmem:[#allocation4 + $0xc0] sm:$0xff] %vm3905_vm2, %v4064_v9  ;;  %v4029_v53 = vmax.f32 %v3965_v44, %v3997_v34  ;;  %v16583_v60 = vld [vmem:[#allocation5 + $0xa0] sm:$0xff]  ;;  %18517 = vst [vmem:[#allocation143_spill] sm:$0xff] %v16593_v52  ;;  %v16595_v29 = vld [vmem:[#allocation5 + $0xa8] sm:$0xff] }
 0x2b7   : > { %v4158_v46 = vld [vmem:[#allocation4 + $0xa0] ss:$2 sm:$0x7f]  ;;  %v16597_v59 = vld [vmem:[#allocation5 + $0xb1] sm:$0xff] }
 0x2b8   : > { %v4065_v23 = vmax.f32 %v4027_v62, %v4029_v53  ;;  %4159 = vst.msk [vmem:[#allocation5 + $0x61] sm:$0x7f] %vm4143_vm3, %v4158_v46  ;;  %18518 = vst [vmem:[#allocation42_spill] sm:$0xff] %v16597_v59  ;;  %v16599_v39 = vld [vmem:[#allocation5 + $0xb0] sm:$0xff]  ;;  %v16609_v40 = vld [vmem:[#allocation5 + $0xb9] sm:$0xff] }
 0x2b9   : > { %v16506_v37 = vld [vmem:[#allocation5 + $0x51] sm:$0xff]  ;;  %18519 = vst [vmem:[#allocation28_spill] sm:$0xff] %v16609_v40  ;;  %v16613_v10 = vld [vmem:[#allocation5 + $0xc1] sm:$0xff]  ;;  %v16625_v55 = vld [vmem:[#allocation5 + $0xc9] sm:$0xff] }
 0x2ba   : > { %18507 = vst [vmem:[#allocation17_spill] sm:$0xff] %v16506_v37  ;;  %13439 = vmatprep.mubr.msk.f32.mxu1 %vm3905_vm2, %v16506_v37  ;;  %v16510_v22 = vld [vmem:[#allocation5 + $0x50] sm:$0xff]  ;;  %4097 = vst.msk [vmem:[#allocation4 + $0xc8] sm:$0xff] %vm3905_vm2, %v4065_v23  ;;  %v16611_v8 = vld [vmem:[#allocation5 + $0xb8] sm:$0xff] }
 0x2bb   : > { %13488 = vmatprep.mubr.msk.f32.mxu0 %vm3905_vm2, %v16510_v22  ;;  %13440 = vmatmul.mubr.msk.f32.gmra.mxu1 %vm3905_vm2, %v16501_v27  ;;  %18520 = vst [vmem:[#allocation147_spill] sm:$0xff] %v16613_v10  ;;  %v16615_v31 = vld [vmem:[#allocation5 + $0xc0] sm:$0xff]  ;;  %18521 = vst [vmem:[#allocation30_spill] sm:$0xff] %v16625_v55  ;;  %v16627_v57 = vld [vmem:[#allocation5 + $0xc8] sm:$0xff] }
 0x2bc   : > { %13489 = vmatmul.mubr.msk.f32.gmra.mxu0 %vm3905_vm2, %v16504_v26  ;;  %v16629_v19 = vld [vmem:[#allocation5 + $0xd1] sm:$0xff]  ;;  %v16641_v43 = vld [vmem:[#allocation5 + $0xd9] sm:$0xff]  ;;  %v16645_v63 = vld [vmem:[#allocation5 + $0xe1] sm:$0xff] }
 0x2bd   : > { %18522 = vst [vmem:[#allocation148_spill] sm:$0xff] %v16629_v19  ;;  %v16631_v17 = vld [vmem:[#allocation5 + $0xd0] sm:$0xff]  ;;  %18523 = vst [vmem:[#allocation32_spill] sm:$0xff] %v16641_v43  ;;  %v16643_v21 = vld [vmem:[#allocation5 + $0xd8] sm:$0xff] }
 0x2be   : > { %18524 = vst [vmem:[#allocation43_spill] sm:$0xff] %v16645_v63  ;;  %v16647_v14 = vld [vmem:[#allocation5 + $0xe0] sm:$0xff]  ;;  %v16657_v30 = vld [vmem:[#allocation5 + $0xe9] sm:$0xff]  ;;  %v16661_v62 = vld [vmem:[#allocation5 + $0xf1] sm:$0xff] }
 0x2bf   : > { %v16524_v7 = vld [vmem:[#allocation5 + $0x61] sm:$0xff]  ;;  %18525 = vst [vmem:[#allocation35_spill] sm:$0xff] %v16657_v30  ;;  %18527 = vst [vmem:[#allocation34_spill] sm:$0xff] %v16661_v62  ;;  %v16663_v13 = vld [vmem:[#allocation5 + $0xf0] sm:$0xff] }
 0x2c0   : > { %18509 = vst [vmem:[#allocation19_spill] sm:$0xff] %v16524_v7  ;;  %v16526_v45 = vld [vmem:[#allocation5 + $0x60] sm:$0xff]  ;;  %13442 = vmatprep.mubr.msk.f32.mxu1 %vm3905_vm2, %v16524_v7  ;;  %v16659_v56 = vld [vmem:[#allocation5 + $0xe8] sm:$0xff]  ;;  %18528 = vst [vmem:[#allocation39_spill] sm:$0xff] %v16663_v13 }
 0x2c1   : > { %13491 = vmatprep.mubr.msk.f32.mxu0 %vm3905_vm2, %v16526_v45  ;;  %v4161_v48 = vld [vmem:[#allocation4 + $0xc0] ss:$2 sm:$0x7f]  ;;  %13443 = vmatmul.mubr.msk.f32.gmra.mxu1 %vm3905_vm2, %v16520_v25  ;;  %18526 = vst [vmem:[#allocation44_spill] sm:$0xff] %v16659_v56  ;;  %v16675_v44 = vld [vmem:[#allocation5 + $0xf8] sm:$0xff] }
 0x2c2   : > { %13492 = vmatmul.mubr.msk.f32.gmra.mxu0 %vm3905_vm2, %v16522_v28  ;;  %4162 = vst.msk [vmem:[#allocation5 + $0x71] sm:$0x7f] %vm4143_vm3, %v4161_v48  ;;  %v16673_v9 = vld [vmem:[#allocation5 + $0xf9] sm:$0xff]  ;;  %18530 = vst [vmem:[#allocation11_spill] sm:$0xff] %v16675_v44  ;;  %v4619_v23 = vld [vmem:[#allocation5 + $0x108] sm:$0xff] }
 0x2c3   : > { %18529 = vst [vmem:[#allocation37_spill] sm:$0xff] %v16673_v9  ;;  %v4618_v34 = vld [vmem:[#allocation5 + $0x100] sm:$0xff]  ;;  %v16681_v53 = vld [vmem:[#allocation5 + $0x12] sm:$0xff] }
 0x2c4   : > { %18531 = vst [vmem:[#allocation45_spill] sm:$0xff] %v16681_v53  ;;  %v16686_v46 = vld [vmem:[#allocation5 + $0x1a] sm:$0xff] }
 0x2c5   : > { %18532 = vst [vmem:[#allocation47_spill] sm:$0xff] %v16686_v46  ;;  %v11909_v48 = vld [vmem:[%s18023_s3 + $0x80] sm:$0xff] }
 0x2c9   : > { %v16543_v50 = vld [vmem:[#allocation5 + $0x71] sm:$0xff] }
 0x2ca   : > { %18512 = vst [vmem:[#allocation137_spill] sm:$0xff] %v16543_v50  ;;  %v16545_v32 = vld [vmem:[#allocation5 + $0x70] sm:$0xff]  ;;  %13445 = vmatprep.mubr.msk.f32.mxu1 %vm3905_vm2, %v16543_v50 }
 0x2cb   : > { %13494 = vmatprep.mubr.msk.f32.mxu0 %vm3905_vm2, %v16545_v32  ;;  %13446 = vmatmul.mubr.msk.f32.gmra.mxu1 %vm3905_vm2, %v16537_v51 }
 0x2cc   : > { %13495 = vmatmul.mubr.msk.f32.gmra.mxu0 %vm3905_vm2, %v16539_v11  ;;  %13448 = vmatprep.mubr.msk.f32.mxu1 %vm3905_vm2, %v16541_v42 }
 0x2cd   : > { %13497 = vmatprep.mubr.msk.f32.mxu0 %vm3905_vm2, %v16547_v49 }
 0x2cf   : > { %13449 = vmatmul.mubr.msk.f32.gmra.mxu1 %vm3905_vm2, %v16561_v18 }
 0x2d0   : > { %13498 = vmatmul.mubr.msk.f32.gmra.mxu0 %vm3905_vm2, %v16563_v58  ;;  %13451 = vmatprep.mubr.msk.f32.mxu1 %vm3905_vm2, %v16565_v4 }
 0x2d1   : > { %13500 = vmatprep.mubr.msk.f32.mxu0 %vm3905_vm2, %v16567_v35 }
 0x2d3   : > { %13452 = vmatmul.mubr.msk.f32.gmra.mxu1 %vm3905_vm2, %v16577_v5 }
 0x2d4   : > { %13501 = vmatmul.mubr.msk.f32.gmra.mxu0 %vm3905_vm2, %v16579_v1  ;;  %13454 = vmatprep.mubr.msk.f32.mxu1 %vm3905_vm2, %v16581_v16 }
 0x2d5   : > { %13503 = vmatprep.mubr.msk.f32.mxu0 %vm3905_vm2, %v16583_v60 }
 0x2d7   : > { %13455 = vmatmul.mubr.msk.f32.gmra.mxu1 %vm3905_vm2, %v16593_v52 }
 0x2d8   : > { %13504 = vmatmul.mubr.msk.f32.gmra.mxu0 %vm3905_vm2, %v16595_v29  ;;  %13457 = vmatprep.mubr.msk.f32.mxu1 %vm3905_vm2, %v16597_v59 }
 0x2d9   : > { %13506 = vmatprep.mubr.msk.f32.mxu0 %vm3905_vm2, %v16599_v39 }
 0x2db   : > { %13458 = vmatmul.mubr.msk.f32.gmra.mxu1 %vm3905_vm2, %v16609_v40 }
 0x2dc   : > { %13507 = vmatmul.mubr.msk.f32.gmra.mxu0 %vm3905_vm2, %v16611_v8  ;;  %13460 = vmatprep.mubr.msk.f32.mxu1 %vm3905_vm2, %v16613_v10 }
 0x2dd   : > { %13509 = vmatprep.mubr.msk.f32.mxu0 %vm3905_vm2, %v16615_v31 }
 0x2df   : > { %13461 = vmatmul.mubr.msk.f32.gmra.mxu1 %vm3905_vm2, %v16625_v55 }
 0x2e0   : > { %13510 = vmatmul.mubr.msk.f32.gmra.mxu0 %vm3905_vm2, %v16627_v57  ;;  %13463 = vmatprep.mubr.msk.f32.mxu1 %vm3905_vm2, %v16629_v19 }
 0x2e1   : > { %13512 = vmatprep.mubr.msk.f32.mxu0 %vm3905_vm2, %v16631_v17 }
 0x2e3   : > { %13464 = vmatmul.mubr.msk.f32.gmra.mxu1 %vm3905_vm2, %v16641_v43 }
 0x2e4   : > { %13513 = vmatmul.mubr.msk.f32.gmra.mxu0 %vm3905_vm2, %v16643_v21  ;;  %13466 = vmatprep.mubr.msk.f32.mxu1 %vm3905_vm2, %v16645_v63 }
 0x2e5   : > { %13515 = vmatprep.mubr.msk.f32.mxu0 %vm3905_vm2, %v16647_v14 }
 0x2e7   : > { %13467 = vmatmul.mubr.msk.f32.gmra.mxu1 %vm3905_vm2, %v16657_v30 }
 0x2e8   : > { %13516 = vmatmul.mubr.msk.f32.gmra.mxu0 %vm3905_vm2, %v16659_v56  ;;  %13469 = vmatprep.mubr.msk.f32.mxu1 %vm3905_vm2, %v16661_v62  ;;  %v4163_v56 = vld [vmem:[#allocation5] sm:$0xff] }
 0x2e9   : > { %13518 = vmatprep.mubr.msk.f32.mxu0 %vm3905_vm2, %v16663_v13  ;;  %v5400_v13 = vld [vmem:[#allocation5 + $0x111] sm:$0xff] }
 0x2eb   : > { %13470 = vmatmul.mubr.msk.f32.gmra.mxu1 %vm3905_vm2, %v16673_v9 }
 0x2ec   : > { %13519 = vmatmul.mubr.msk.f32.gmra.mxu0 %vm3905_vm2, %v16675_v44  ;;  %13528 = vmatprep.mubr.msk.f32.mxu1 %vm3905_vm2, %v16681_v53  ;;  %v16694_v44 = vld [vmem:[#allocation5 + $0x22] sm:$0xff] }
 0x2ed   : > { %13521 = vmatprep.mubr.msk.f32.mxu0 %vm3905_vm2, %v4618_v34  ;;  %v14276_v53 = vld [vmem:[%s18023_s3 + $0x88] sm:$0xff]  ;;  %v16703_v34 = vld [vmem:[#allocation5 + $0x2a] sm:$0xff] }
 0x2ef   : > { %13529 = vmatmul.mubr.msk.f32.vlgmr.msra.gmra.mxu1 %vm3905_vm2, %v16686_v46  ;;  %v16736_v46 = vld [vmem:[%s18023_s3 + $0x48] sm:$0xff] }
 0x2f0   : > { %13522 = vmatmul.mubr.msk.f32.gmra.mxu0 %vm3905_vm2, %v4619_v23  ;;  %13629 = vmatpush3.msra.mxu1 %v14276_v53  ;;  %v16708_v23 = vld [vmem:[%s18023_s3 + $0x28] sm:$0xff]  ;;  %v16714_v53 = vld [vmem:[#allocation5 + $0x32] sm:$0xff] }
 0x2f1   : > { %13531 = vmatprep.mubr.msk.f32.mxu1 %vm3905_vm2, %v16694_v44  ;;  %13580 = vmatprep.mubr.msk.f32.mxu0 %vm3905_vm2, %v16410_v41  ;;  %v4195_v41 = vld [vmem:[%s18023_s3] sm:$0xff] }
 0x2f2   : > { %13630 = vmatprep.subr.mxu1 %v11909_v48 }
 0x2f3   : > { %13631 = vmatpush3.msra.mxu1 %v11909_v48  ;;  %v16725_v48 = vld [vmem:[#allocation5 + $0x3a] sm:$0xff] }
 0x2f4   : > { %13532 = vmatmul.mubr.msk.f32.gmra.mxu1 %vm3905_vm2, %v16703_v34  ;;  %13581 = vmatmul.mubr.msk.f32.vlgmr.msra.gmra.mxu0 %vm3905_vm2, %v16403_v3  ;;  %v16731_v3 = vld [vmem:[#allocation5 + $0x42] sm:$0xff] }
 0x2f5   : > { %13534 = vmatprep.mubr.msk.f32.mxu1 %vm3905_vm2, %v16714_v53  ;;  %13583 = vmatprep.mubr.msk.f32.mxu0 %vm3905_vm2, %v16452_v2  ;;  %v16781_v2 = vld [vmem:[#allocation5 + $0x82] sm:$0xff] }
 0x2f6   : > { %13732 = vmatprep.subr.mxu1 %v16708_v23  ;;  %13681 = vmatpush3.msra.mxu0 %v16476_v36  ;;  %v16742_v36 = vld [vmem:[#allocation5 + $0x4a] sm:$0xff] }
 0x2f7   : > { %13682 = vmatprep.subr.mxu0 %v4195_v41 }
 0x2f8   : > { %13535 = vmatmul.mubr.msk.f32.gmra.mxu1 %vm3905_vm2, %v16725_v48  ;;  %13584 = vmatmul.mubr.msk.f32.gmra.mxu0 %vm3905_vm2, %v16446_v12  ;;  %v16749_v12 = vld [vmem:[#allocation5 + $0x52] sm:$0xff] }
 0x2f9   : > { %13537 = vmatprep.mubr.msk.f32.mxu1 %vm3905_vm2, %v16731_v3  ;;  %13586 = vmatprep.mubr.msk.f32.mxu0 %vm3905_vm2, %v16489_v20  ;;  %v16755_v20 = vld [vmem:[#allocation5 + $0x5a] sm:$0xff] }
 0x2fa   : > { %13683 = vmatpush3.msra.mxu0 %v4195_v41  ;;  %v16761_v41 = vld [vmem:[#allocation5 + $0x62] sm:$0xff] }
 0x2fb   : > { %13784 = vmatprep.subr.mxu0 %v16736_v46 }
 0x2fc   : > { %13538 = vmatmul.mubr.msk.f32.gmra.mxu1 %vm3905_vm2, %v16742_v36  ;;  %13587 = vmatmul.mubr.msk.f32.gmra.mxu0 %vm3905_vm2, %v16480_v54  ;;  %v16767_v54 = vld [vmem:[#allocation5 + $0x6a] sm:$0xff] }
 0x2fd   : > { %13540 = vmatprep.mubr.msk.f32.mxu1 %vm3905_vm2, %v16749_v12  ;;  %13589 = vmatprep.mubr.msk.f32.mxu0 %vm3905_vm2, %v16506_v37  ;;  %v16773_v37 = vld [vmem:[#allocation5 + $0x72] sm:$0xff] }
 0x300   : > { %13541 = vmatmul.mubr.msk.f32.gmra.mxu1 %vm3905_vm2, %v16755_v20  ;;  %13590 = vmatmul.mubr.msk.f32.gmra.mxu0 %vm3905_vm2, %v16501_v27  ;;  %v16779_v27 = vld [vmem:[#allocation5 + $0x7a] sm:$0xff] }
 0x301   : > { %13543 = vmatprep.mubr.msk.f32.mxu1 %vm3905_vm2, %v16761_v41  ;;  %13592 = vmatprep.mubr.msk.f32.mxu0 %vm3905_vm2, %v16524_v7  ;;  %v16793_v7 = vld [vmem:[#allocation5 + $0x92] sm:$0xff] }
 0x304   : > { %13544 = vmatmul.mubr.msk.f32.gmra.mxu1 %vm3905_vm2, %v16767_v54  ;;  %13593 = vmatmul.mubr.msk.f32.gmra.mxu0 %vm3905_vm2, %v16520_v25  ;;  %v16791_v25 = vld [vmem:[#allocation5 + $0x8a] sm:$0xff] }
 0x305   : > { %13546 = vmatprep.mubr.msk.f32.mxu1 %vm3905_vm2, %v16773_v37  ;;  %13595 = vmatprep.mubr.msk.f32.mxu0 %vm3905_vm2, %v16543_v50  ;;  %v16805_v50 = vld [vmem:[#allocation5 + $0xa2] sm:$0xff] }
 0x308   : > { %13547 = vmatmul.mubr.msk.f32.gmra.mxu1 %vm3905_vm2, %v16779_v27  ;;  %13596 = vmatmul.mubr.msk.f32.gmra.mxu0 %vm3905_vm2, %v16537_v51  ;;  %v16803_v51 = vld [vmem:[#allocation5 + $0x9a] sm:$0xff] }
 0x309   : > { %13549 = vmatprep.mubr.msk.f32.mxu1 %vm3905_vm2, %v16781_v2  ;;  %13598 = vmatprep.mubr.msk.f32.mxu0 %vm3905_vm2, %v16541_v42  ;;  %v16817_v42 = vld [vmem:[#allocation5 + $0xb2] sm:$0xff] }
 0x30c   : > { %13550 = vmatmul.mubr.msk.f32.gmra.mxu1 %vm3905_vm2, %v16791_v25  ;;  %13599 = vmatmul.mubr.msk.f32.gmra.mxu0 %vm3905_vm2, %v16561_v18  ;;  %v16815_v18 = vld [vmem:[#allocation5 + $0xaa] sm:$0xff] }
 0x30d   : > { %13552 = vmatprep.mubr.msk.f32.mxu1 %vm3905_vm2, %v16793_v7  ;;  %13601 = vmatprep.mubr.msk.f32.mxu0 %vm3905_vm2, %v16565_v4  ;;  %v16829_v4 = vld [vmem:[#allocation5 + $0xc2] sm:$0xff] }
 0x310   : > { %13553 = vmatmul.mubr.msk.f32.gmra.mxu1 %vm3905_vm2, %v16803_v51  ;;  %13602 = vmatmul.mubr.msk.f32.gmra.mxu0 %vm3905_vm2, %v16577_v5  ;;  %v16827_v5 = vld [vmem:[#allocation5 + $0xba] sm:$0xff] }
 0x311   : > { %13555 = vmatprep.mubr.msk.f32.mxu1 %vm3905_vm2, %v16805_v50  ;;  %13604 = vmatprep.mubr.msk.f32.mxu0 %vm3905_vm2, %v16581_v16  ;;  %v16841_v16 = vld [vmem:[#allocation5 + $0xd2] sm:$0xff] }
 0x314   : > { %13556 = vmatmul.mubr.msk.f32.gmra.mxu1 %vm3905_vm2, %v16815_v18  ;;  %13605 = vmatmul.mubr.msk.f32.gmra.mxu0 %vm3905_vm2, %v16593_v52  ;;  %v16839_v52 = vld [vmem:[#allocation5 + $0xca] sm:$0xff] }
 0x315   : > { %13558 = vmatprep.mubr.msk.f32.mxu1 %vm3905_vm2, %v16817_v42  ;;  %13607 = vmatprep.mubr.msk.f32.mxu0 %vm3905_vm2, %v16597_v59  ;;  %v16853_v59 = vld [vmem:[#allocation5 + $0xe2] sm:$0xff] }
 0x318   : > { %13559 = vmatmul.mubr.msk.f32.gmra.mxu1 %vm3905_vm2, %v16827_v5  ;;  %13608 = vmatmul.mubr.msk.f32.gmra.mxu0 %vm3905_vm2, %v16609_v40  ;;  %v16851_v40 = vld [vmem:[#allocation5 + $0xda] sm:$0xff] }
 0x319   : > { %13561 = vmatprep.mubr.msk.f32.mxu1 %vm3905_vm2, %v16829_v4  ;;  %13610 = vmatprep.mubr.msk.f32.mxu0 %vm3905_vm2, %v16613_v10  ;;  %v16865_v10 = vld [vmem:[#allocation5 + $0xf2] sm:$0xff] }
 0x31c   : > { %13562 = vmatmul.mubr.msk.f32.gmra.mxu1 %vm3905_vm2, %v16839_v52  ;;  %13611 = vmatmul.mubr.msk.f32.gmra.mxu0 %vm3905_vm2, %v16625_v55  ;;  %v16863_v55 = vld [vmem:[#allocation5 + $0xea] sm:$0xff] }
 0x31d   : > { %13564 = vmatprep.mubr.msk.f32.mxu1 %vm3905_vm2, %v16841_v16  ;;  %13613 = vmatprep.mubr.msk.f32.mxu0 %vm3905_vm2, %v16629_v19  ;;  %v16877_v19 = vld [vmem:[#allocation5 + $0x102] sm:$0xff] }
 0x320   : > { %13565 = vmatmul.mubr.msk.f32.gmra.mxu1 %vm3905_vm2, %v16851_v40  ;;  %13614 = vmatmul.mubr.msk.f32.gmra.mxu0 %vm3905_vm2, %v16641_v43  ;;  %v16875_v43 = vld [vmem:[#allocation5 + $0xfa] sm:$0xff] }
 0x321   : > { %13567 = vmatprep.mubr.msk.f32.mxu1 %vm3905_vm2, %v16853_v59  ;;  %13616 = vmatprep.mubr.msk.f32.mxu0 %vm3905_vm2, %v16645_v63  ;;  %v16879_v63 = vld [vmem:[#allocation5 + $0x101] sm:$0xff] }
 0x322   : > { %18533 = vst [vmem:[#allocation49_spill] sm:$0xff] %v16879_v63 }
 0x324   : > { %13568 = vmatmul.mubr.msk.f32.gmra.mxu1 %vm3905_vm2, %v16863_v55  ;;  %13617 = vmatmul.mubr.msk.f32.gmra.mxu0 %vm3905_vm2, %v16657_v30  ;;  %v16889_v30 = vld [vmem:[#allocation5 + $0x10a] sm:$0xff] }
 0x325   : > { %13570 = vmatprep.mubr.msk.f32.mxu1 %vm3905_vm2, %v16865_v10  ;;  %13619 = vmatprep.mubr.msk.f32.mxu0 %vm3905_vm2, %v16661_v62  ;;  %v16891_v62 = vld [vmem:[#allocation5 + $0x109] sm:$0xff] }
 0x326   : > { %18534 = vst [vmem:[#allocation51_spill] sm:$0xff] %v16891_v62 }
 0x328   : > { %13571 = vmatmul.mubr.msk.f32.gmra.mxu1 %vm3905_vm2, %v16875_v43  ;;  %13620 = vmatmul.mubr.msk.f32.gmra.mxu0 %vm3905_vm2, %v16673_v9  ;;  %v5401_v9 = vld [vmem:[#allocation5 + $0x119] sm:$0xff] }
 0x329   : > { %13573 = vmatprep.mubr.msk.f32.mxu1 %vm3905_vm2, %v16877_v19  ;;  %13622 = vmatprep.mubr.msk.f32.mxu0 %vm3905_vm2, %v16879_v63  ;;  %v11801_v63 = vld [vmem:[%s18023_s3 + $0x20] sm:$0xff] }
 0x32c   : > { %13574 = vmatmul.mubr.msk.f32.gmra.mxu1 %vm3905_vm2, %v16889_v30  ;;  %13623 = vmatmul.mubr.msk.f32.gmra.mxu0 %vm3905_vm2, %v16891_v62  ;;  %v4164_v62 = vld [vmem:[#allocation5 + $0x8] sm:$0xff] }
 0x32d   : > { %13632 = vmatprep.mubr.msk.f32.mxu1 %vm3905_vm2, %v16694_v44  ;;  %13625 = vmatprep.mubr.msk.f32.mxu0 %vm3905_vm2, %v5400_v13  ;;  %v16913_v13 = vld [vmem:[%s18023_s3 + $0x68] sm:$0xff] }
 0x330   : > { %13626 = vmatmul.mubr.msk.f32.gmra.mxu0 %vm3905_vm2, %v5401_v9  ;;  %13633 = vmatmul.mubr.msk.f32.vlgmr.msra.gmra.mxu1 %vm3905_vm2, %v16703_v34  ;;  %v11837_v9 = vld [vmem:[%s18023_s3 + $0x40] sm:$0xff] }
 0x331   : > { %13733 = vmatpush3.msra.mxu1 %v16708_v23  ;;  %13635 = vmatprep.mubr.msk.f32.mxu1 %vm3905_vm2, %v16714_v53  ;;  %v18544_v23 = vld [vmem:[#allocation128_spill] sm:$0xff] }
 0x332   : > { %13684 = vmatprep.mubr.msk.f32.mxu0 %vm3905_vm2, %v4163_v56  ;;  %13734 = vmatprep.subr.mxu1 %v11801_v63  ;;  %v18542_v56 = vld [vmem:[#allocation125_spill] sm:$0xff] }
 0x333   : > { %13735 = vmatpush3.msra.mxu1 %v11801_v63  ;;  %v18535_v63 = vmov 0.0  }
 0x334   : > { %13636 = vmatmul.mubr.msk.f32.gmra.mxu1 %vm3905_vm2, %v16725_v48  ;;  %13685 = vmatmul.mubr.msk.f32.vlgmr.msra.gmra.mxu0 %vm3905_vm2, %v4164_v62 }
 0x335   : > { %13638 = vmatprep.mubr.msk.f32.mxu1 %vm3905_vm2, %v16731_v3  ;;  %13687 = vmatprep.mubr.msk.f32.mxu0 %vm3905_vm2, %v16360_v24 }
 0x336   : > { %13836 = vmatprep.subr.mxu1 %v16913_v13  ;;  %13785 = vmatpush3.msra.mxu0 %v16736_v46  ;;  %v18543_v46 = vld [vmem:[#allocation27_spill] sm:$0xff] }
 0x337   : > { %13786 = vmatprep.subr.mxu0 %v11837_v9 }
 0x338   : > { %13639 = vmatmul.mubr.msk.f32.gmra.mxu1 %vm3905_vm2, %v16742_v36  ;;  %13688 = vmatmul.mubr.msk.f32.gmra.mxu0 %vm3905_vm2, %v16353_v0  ;;  %v13426_v0 = vpop.f32.mrf.mxu1 }
 0x339   : > { %13641 = vmatprep.mubr.msk.f32.mxu1 %vm3905_vm2, %v16749_v12  ;;  %13690 = vmatprep.mubr.msk.f32.mxu0 %vm3905_vm2, %v16412_v38 }
 0x33a   : > { %13787 = vmatpush3.msra.mxu0 %v11837_v9  ;;  %v17000_v24 = vpop.f32.mrf.mxu1 }
 0x33b   : > { %13888 = vmatprep.subr.mxu0 %v18535_v63 }
 0x33c   : > { %13642 = vmatmul.mubr.msk.f32.gmra.mxu1 %vm3905_vm2, %v16755_v20  ;;  %13691 = vmatmul.mubr.msk.f32.gmra.mxu0 %vm3905_vm2, %v16405_v15 }
 0x33d   : > { %13644 = vmatprep.mubr.msk.f32.mxu1 %vm3905_vm2, %v16761_v41  ;;  %13693 = vmatprep.mubr.msk.f32.mxu0 %vm3905_vm2, %v16454_v47 }
 0x340   : > { %13645 = vmatmul.mubr.msk.f32.gmra.mxu1 %vm3905_vm2, %v16767_v54  ;;  %13694 = vmatmul.mubr.msk.f32.gmra.mxu0 %vm3905_vm2, %v16448_v6 }
 0x341   : > { %13647 = vmatprep.mubr.msk.f32.mxu1 %vm3905_vm2, %v16773_v37  ;;  %13696 = vmatprep.mubr.msk.f32.mxu0 %vm3905_vm2, %v16491_v33  ;;  %v5756_v33 = vld [vmem:[#allocation5 + $0x112] sm:$0xff] }
 0x344   : > { %13648 = vmatmul.mubr.msk.f32.gmra.mxu1 %vm3905_vm2, %v16779_v27  ;;  %13697 = vmatmul.mubr.msk.f32.gmra.mxu0 %vm3905_vm2, %v16485_v61 }
 0x345   : > { %13699 = vmatprep.mubr.msk.f32.mxu0 %vm3905_vm2, %v16510_v22  ;;  %13650 = vmatprep.mubr.msk.f32.mxu1 %vm3905_vm2, %v16781_v2 }
 0x348   : > { %13651 = vmatmul.mubr.msk.f32.gmra.mxu1 %vm3905_vm2, %v16791_v25  ;;  %13700 = vmatmul.mubr.msk.f32.gmra.mxu0 %vm3905_vm2, %v16504_v26 }
 0x349   : > { %13702 = vmatprep.mubr.msk.f32.mxu0 %vm3905_vm2, %v16526_v45  ;;  %13653 = vmatprep.mubr.msk.f32.mxu1 %vm3905_vm2, %v16793_v7  ;;  %v4553_v45 = vld [vmem:[#allocation5 + $0x2] sm:$0xff] }
 0x34c   : > { %13654 = vmatmul.mubr.msk.f32.gmra.mxu1 %vm3905_vm2, %v16803_v51  ;;  %13703 = vmatmul.mubr.msk.f32.gmra.mxu0 %vm3905_vm2, %v16522_v28  ;;  %v5757_v28 = vld [vmem:[#allocation5 + $0x11a] sm:$0xff] }
 0x34d   : > { %13705 = vmatprep.mubr.msk.f32.mxu0 %vm3905_vm2, %v16545_v32  ;;  %13656 = vmatprep.mubr.msk.f32.mxu1 %vm3905_vm2, %v16805_v50  ;;  %v18536_v32 = vld [vmem:[#allocation44_spill] sm:$0xff] }
 0x350   : > { %13657 = vmatmul.mubr.msk.f32.gmra.mxu1 %vm3905_vm2, %v16815_v18  ;;  %13706 = vmatmul.mubr.msk.f32.gmra.mxu0 %vm3905_vm2, %v16539_v11 }
 0x351   : > { %13659 = vmatprep.mubr.msk.f32.mxu1 %vm3905_vm2, %v16817_v42  ;;  %13708 = vmatprep.mubr.msk.f32.mxu0 %vm3905_vm2, %v16547_v49 }
 0x354   : > { %13660 = vmatmul.mubr.msk.f32.gmra.mxu1 %vm3905_vm2, %v16827_v5  ;;  %13709 = vmatmul.mubr.msk.f32.gmra.mxu0 %vm3905_vm2, %v16563_v58  ;;  %v18537_v58 = vld [vmem:[#allocation39_spill] sm:$0xff] }
 0x355   : > { %13662 = vmatprep.mubr.msk.f32.mxu1 %vm3905_vm2, %v16829_v4  ;;  %13711 = vmatprep.mubr.msk.f32.mxu0 %vm3905_vm2, %v16567_v35 }
 0x358   : > { %13663 = vmatmul.mubr.msk.f32.gmra.mxu1 %vm3905_vm2, %v16839_v52  ;;  %13712 = vmatmul.mubr.msk.f32.gmra.mxu0 %vm3905_vm2, %v16579_v1  ;;  %v13429_v38 = vpop.f32.mrf.mxu1  ;;  %v4554_v1 = vld [vmem:[#allocation5 + $0xa] sm:$0xff] }
 0x359   : > { %13665 = vmatprep.mubr.msk.f32.mxu1 %vm3905_vm2, %v16841_v16  ;;  %13714 = vmatprep.mubr.msk.f32.mxu0 %vm3905_vm2, %v16583_v60  ;;  %v13478_v15 = vpop.f32.mrf.mxu0  ;;  %v11873_v60 = vld [vmem:[%s18023_s3 + $0x60] sm:$0xff] }
 0x35a   : > { %v17020_v47 = vpop.f32.mrf.mxu1  ;;  %v18549_v38 = vld [vmem:[#allocation19_spill] sm:$0xff] }
 0x35b   : > { %v17014_v6 = vpop.f32.mrf.mxu0 }
 0x35c   : > { %13666 = vmatmul.mubr.msk.f32.gmra.mxu1 %vm3905_vm2, %v16851_v40  ;;  %13715 = vmatmul.mubr.msk.f32.gmra.mxu0 %vm3905_vm2, %v16595_v29  ;;  %v18538_v29 = vld [vmem:[#allocation11_spill] sm:$0xff] }
 0x35d   : > { %13668 = vmatprep.mubr.msk.f32.mxu1 %vm3905_vm2, %v16853_v59  ;;  %13717 = vmatprep.mubr.msk.f32.mxu0 %vm3905_vm2, %v16599_v39 }
 0x360   : > { %13669 = vmatmul.mubr.msk.f32.gmra.mxu1 %vm3905_vm2, %v16863_v55  ;;  %13718 = vmatmul.mubr.msk.f32.gmra.mxu0 %vm3905_vm2, %v16611_v8  ;;  %v18539_v8 = vld [vmem:[#allocation45_spill] sm:$0xff] }
 0x361   : > { %13671 = vmatprep.mubr.msk.f32.mxu1 %vm3905_vm2, %v16865_v10  ;;  %13720 = vmatprep.mubr.msk.f32.mxu0 %vm3905_vm2, %v16615_v31  ;;  %v13432_v26 = vpop.f32.mrf.mxu1  ;;  %v4944_v31 = vld [vmem:[#allocation5 + $0x11] sm:$0xff] }
 0x362   : > { %v13481_v61 = vpop.f32.mrf.mxu0 }
 0x363   : > { %v17039_v11 = vpop.f32.mrf.mxu1 }
 0x364   : > { %13672 = vmatmul.mubr.msk.f32.gmra.mxu1 %vm3905_vm2, %v16875_v43  ;;  %13721 = vmatmul.mubr.msk.f32.gmra.mxu0 %vm3905_vm2, %v16627_v57  ;;  %v17034_v22 = vpop.f32.mrf.mxu0 }
 0x365   : > { %13674 = vmatprep.mubr.msk.f32.mxu1 %vm3905_vm2, %v16877_v19  ;;  %13723 = vmatprep.mubr.msk.f32.mxu0 %vm3905_vm2, %v16631_v17  ;;  %v18540_v19 = vld [vmem:[#allocation47_spill] sm:$0xff] }
 0x366   : > { %v14277_v17 = vld [vmem:[#allocation5 + $0x19] sm:$0xff] }
 0x368   : > { %13675 = vmatmul.mubr.msk.f32.gmra.mxu1 %vm3905_vm2, %v16889_v30  ;;  %13724 = vmatmul.mubr.msk.f32.gmra.mxu0 %vm3905_vm2, %v16643_v21 }
 0x369   : > { %13677 = vmatprep.mubr.msk.f32.mxu1 %vm3905_vm2, %v5756_v33  ;;  %13726 = vmatprep.mubr.msk.f32.mxu0 %vm3905_vm2, %v16647_v14  ;;  %v18541_v14 = vld [vmem:[#allocation15_spill] sm:$0xff] }
 0x36b   : > { %v13435_v35 = vpop.f32.mrf.mxu1 }
 0x36c   : > { %13678 = vmatmul.mubr.msk.f32.gmra.mxu1 %vm3905_vm2, %v5757_v28  ;;  %13727 = vmatmul.mubr.msk.f32.gmra.mxu0 %vm3905_vm2, %v18536_v32  ;;  %v13484_v49 = vpop.f32.mrf.mxu0  ;;  %v18554_v35 = vld [vmem:[#allocation38_spill] sm:$0xff] }
 0x36d   : > { %13729 = vmatprep.mubr.msk.f32.mxu0 %vm3905_vm2, %v18537_v58  ;;  %13736 = vmatprep.mubr.msk.f32.mxu1 %vm3905_vm2, %v4553_v45  ;;  %v17059_v57 = vpop.f32.mrf.mxu1  ;;  %v18552_v45 = vld [vmem:[#allocation134_spill] sm:$0xff] }
 0x36e   : > { %v17053_v39 = vpop.f32.mrf.mxu0 }
 0x370   : > { %13730 = vmatmul.mubr.msk.f32.gmra.mxu0 %vm3905_vm2, %v18538_v29  ;;  %13737 = vmatmul.mubr.msk.f32.vlgmr.msra.gmra.mxu1 %vm3905_vm2, %v4554_v1  ;;  %v13438_v30 = vpop.f32.mrf.mxu1 }
 0x371   : > { %13837 = vmatpush3.msra.mxu1 %v16913_v13  ;;  %13739 = vmatprep.mubr.msk.f32.mxu1 %vm3905_vm2, %v18539_v8  ;;  %v18545_v13 = vld [vmem:[#allocation40_spill] sm:$0xff] }
 0x372   : > { %13788 = vmatprep.mubr.msk.f32.mxu0 %vm3905_vm2, %v4944_v31  ;;  %13838 = vmatprep.subr.mxu1 %v11873_v60  ;;  %v13487_v21 = vpop.f32.mrf.mxu0  ;;  %v18556_v8 = vld [vmem:[#allocation140_spill] sm:$0xff] }
 0x373   : > { %13839 = vmatpush3.msra.mxu1 %v11873_v60  ;;  %v18558_v21 = vld [vmem:[#allocation143_spill] sm:$0xff] }
 0x374   : > { %13740 = vmatmul.mubr.msk.f32.gmra.mxu1 %vm3905_vm2, %v18540_v19  ;;  %13789 = vmatmul.mubr.msk.f32.vlgmr.msra.gmra.mxu0 %vm3905_vm2, %v14277_v17  ;;  %v17073_v62 = vpop.f32.mrf.mxu0 }
 0x375   : > { %13742 = vmatprep.mubr.msk.f32.mxu1 %vm3905_vm2, %v16694_v44  ;;  %13791 = vmatprep.mubr.msk.f32.mxu0 %vm3905_vm2, %v18541_v14  ;;  %v17079_v44 = vpop.f32.mrf.mxu1 }
 0x376   : > { %13895 = vmatprep.subr.mxu1 %v18535_v63 }
 0x378   : > { %13743 = vmatmul.mubr.msk.f32.gmra.mxu1 %vm3905_vm2, %v16703_v34  ;;  %13792 = vmatmul.mubr.msk.f32.gmra.mxu0 %vm3905_vm2, %v18542_v56 }
 0x379   : > { %13745 = vmatprep.mubr.msk.f32.mxu1 %vm3905_vm2, %v16714_v53  ;;  %13794 = vmatprep.mubr.msk.f32.mxu0 %vm3905_vm2, %v18543_v46  ;;  %v18546_v53 = vld [vmem:[#allocation145_spill] sm:$0xff]  ;;  %v18560_v46 = vld [vmem:[#allocation28_spill] sm:$0xff] }
 0x37b   : > { %v13441_v9 = vpop.f32.mrf.mxu1 }
 0x37c   : > { %13746 = vmatmul.mubr.msk.f32.gmra.mxu1 %vm3905_vm2, %v16725_v48  ;;  %13795 = vmatmul.mubr.msk.f32.gmra.mxu0 %vm3905_vm2, %v18544_v23  ;;  %v13490_v34 = vpop.f32.mrf.mxu0  ;;  %v18547_v48 = vld [vmem:[#allocation17_spill] sm:$0xff]  ;;  %v18562_v9 = vld [vmem:[#allocation30_spill] sm:$0xff] }
 0x37d   : > { %13748 = vmatprep.mubr.msk.f32.mxu1 %vm3905_vm2, %v16731_v3  ;;  %13797 = vmatprep.mubr.msk.f32.mxu0 %vm3905_vm2, %v18545_v13  ;;  %v17099_v15 = vpop.f32.mrf.mxu1  ;;  %v18548_v3 = vld [vmem:[#allocation31_spill] sm:$0xff] }
 0x37e   : > { %v17093_v0 = vpop.f32.mrf.mxu0 }
 0x380   : > { %13749 = vmatmul.mubr.msk.f32.gmra.mxu1 %vm3905_vm2, %v16742_v36  ;;  %13798 = vmatmul.mubr.msk.f32.gmra.mxu0 %vm3905_vm2, %v18546_v53 }
 0x381   : > { %13751 = vmatprep.mubr.msk.f32.mxu1 %vm3905_vm2, %v16749_v12  ;;  %13800 = vmatprep.mubr.msk.f32.mxu0 %vm3905_vm2, %v18547_v48  ;;  %v13444_v61 = vpop.f32.mrf.mxu1  ;;  %v18550_v12 = vld [vmem:[#allocation131_spill] sm:$0xff] }
 0x382   : > { %v13493_v36 = vpop.f32.mrf.mxu0 }
 0x383   : > { %v17119_v26 = vpop.f32.mrf.mxu1  ;;  %v18564_v36 = vld [vmem:[#allocation32_spill] sm:$0xff] }
 0x384   : > { %13752 = vmatmul.mubr.msk.f32.gmra.mxu1 %vm3905_vm2, %v16755_v20  ;;  %13801 = vmatmul.mubr.msk.f32.gmra.mxu0 %vm3905_vm2, %v18548_v3  ;;  %v17113_v33 = vpop.f32.mrf.mxu0  ;;  %v18551_v20 = vld [vmem:[#allocation137_spill] sm:$0xff] }
 0x385   : > { %13754 = vmatprep.mubr.msk.f32.mxu1 %vm3905_vm2, %v16761_v41  ;;  %13803 = vmatprep.mubr.msk.f32.mxu0 %vm3905_vm2, %v18549_v38 }
 0x388   : > { %13755 = vmatmul.mubr.msk.f32.gmra.mxu1 %vm3905_vm2, %v16767_v54  ;;  %13804 = vmatmul.mubr.msk.f32.gmra.mxu0 %vm3905_vm2, %v18550_v12  ;;  %v18553_v54 = vld [vmem:[#allocation21_spill] sm:$0xff] }
 0x389   : > { %13757 = vmatprep.mubr.msk.f32.mxu1 %vm3905_vm2, %v16773_v37  ;;  %13806 = vmatprep.mubr.msk.f32.mxu0 %vm3905_vm2, %v18551_v20  ;;  %v18566_v20 = vld [vmem:[#allocation35_spill] sm:$0xff] }
 0x38b   : > { %v13447_v41 = vpop.f32.mrf.mxu1 }
 0x38c   : > { %v13496_v28 = vpop.f32.mrf.mxu0  ;;  %13758 = vmatmul.mubr.msk.f32.gmra.mxu1 %vm3905_vm2, %v16779_v27  ;;  %13807 = vmatmul.mubr.msk.f32.gmra.mxu0 %vm3905_vm2, %v18552_v45  ;;  %v18555_v27 = vld [vmem:[#allocation23_spill] sm:$0xff] }
 0x38d   : > { %13760 = vmatprep.mubr.msk.f32.mxu1 %vm3905_vm2, %v16781_v2  ;;  %13809 = vmatprep.mubr.msk.f32.mxu0 %vm3905_vm2, %v18553_v54  ;;  %v4464_v37 = vpop.f32.mrf.mxu1  ;;  %v18568_v54 = vld [vmem:[#allocation37_spill] sm:$0xff] }
 0x38e   : > { %v17129_v32 = vpop.f32.mrf.mxu0  ;;  %v18569_v37 = vld [vmem:[#allocation49_spill] sm:$0xff] }
 0x38f   : > { %v13450_v49 = vpop.f32.mrf.mxu1 }
 0x390   : > { %v13499_v58 = vpop.f32.mrf.mxu0  ;;  %13761 = vmatmul.mubr.msk.f32.gmra.mxu1 %vm3905_vm2, %v16791_v25  ;;  %13810 = vmatmul.mubr.msk.f32.gmra.mxu0 %vm3905_vm2, %v18554_v35  ;;  %v18557_v25 = vld [vmem:[#allocation25_spill] sm:$0xff] }
 0x391   : > { %13763 = vmatprep.mubr.msk.f32.mxu1 %vm3905_vm2, %v16793_v7  ;;  %13812 = vmatprep.mubr.msk.f32.mxu0 %vm3905_vm2, %v18555_v27  ;;  %v4474_v2 = vpop.f32.mrf.mxu1 }
 0x392   : > { %v4855_v1 = vpop.f32.mrf.mxu0  ;;  %v18570_v2 = vld [vmem:[#allocation51_spill] sm:$0xff] }
 0x393   : > { %v13453_v60 = vpop.f32.mrf.mxu1  ;;  %v5338_v1 = vld [vmem:[#allocation5 + $0x38] sm:$0xff] }
 0x394   : > { %v13502_v29 = vpop.f32.mrf.mxu0  ;;  %13764 = vmatmul.mubr.msk.f32.gmra.mxu1 %vm3905_vm2, %v16803_v51  ;;  %13813 = vmatmul.mubr.msk.f32.gmra.mxu0 %vm3905_vm2, %v18556_v8  ;;  %v18559_v51 = vld [vmem:[#allocation42_spill] sm:$0xff] }
 0x395   : > { %13766 = vmatprep.mubr.msk.f32.mxu1 %vm3905_vm2, %v16805_v50  ;;  %13815 = vmatprep.mubr.msk.f32.mxu0 %vm3905_vm2, %v18557_v25  ;;  %v4484_v7 = vpop.f32.mrf.mxu1 }
 0x396   : > { %v4865_v31 = vpop.f32.mrf.mxu0  ;;  %v5339_v7 = vld [vmem:[#allocation5 + $0x40] sm:$0xff] }
 0x397   : > { %v13456_v19 = vpop.f32.mrf.mxu1  ;;  %v5340_v31 = vld [vmem:[#allocation5 + $0x48] sm:$0xff] }
 0x398   : > { %v13505_v17 = vpop.f32.mrf.mxu0  ;;  %13767 = vmatmul.mubr.msk.f32.gmra.mxu1 %vm3905_vm2, %v16815_v18  ;;  %13816 = vmatmul.mubr.msk.f32.gmra.mxu0 %vm3905_vm2, %v18558_v21  ;;  %v18561_v18 = vld [vmem:[#allocation147_spill] sm:$0xff] }
 0x399   : > { %13769 = vmatprep.mubr.msk.f32.mxu1 %vm3905_vm2, %v16817_v42  ;;  %13818 = vmatprep.mubr.msk.f32.mxu0 %vm3905_vm2, %v18559_v51  ;;  %v4494_v50 = vpop.f32.mrf.mxu1 }
 0x39a   : > { %v4875_v14 = vpop.f32.mrf.mxu0  ;;  %v5341_v50 = vld [vmem:[#allocation5 + $0x50] sm:$0xff] }
 0x39b   : > { %v13459_v30 = vpop.f32.mrf.mxu1  ;;  %v5342_v14 = vld [vmem:[#allocation5 + $0x58] sm:$0xff] }
 0x39c   : > { %v13508_v56 = vpop.f32.mrf.mxu0  ;;  %13770 = vmatmul.mubr.msk.f32.gmra.mxu1 %vm3905_vm2, %v16827_v5  ;;  %13819 = vmatmul.mubr.msk.f32.gmra.mxu0 %vm3905_vm2, %v18560_v46  ;;  %v18563_v5 = vld [vmem:[#allocation148_spill] sm:$0xff] }
 0x39d   : > { %13772 = vmatprep.mubr.msk.f32.mxu1 %vm3905_vm2, %v16829_v4  ;;  %13821 = vmatprep.mubr.msk.f32.mxu0 %vm3905_vm2, %v18561_v18  ;;  %v4504_v42 = vpop.f32.mrf.mxu1 }
 0x39e   : > { %v4885_v23 = vpop.f32.mrf.mxu0  ;;  %v5343_v42 = vld [vmem:[#allocation5 + $0x60] sm:$0xff] }
 0x39f   : > { %v13462_v34 = vpop.f32.mrf.mxu1  ;;  %v5344_v23 = vld [vmem:[#allocation5 + $0x68] sm:$0xff] }
 0x3a0   : > { %v13511_v13 = vpop.f32.mrf.mxu0  ;;  %13773 = vmatmul.mubr.msk.f32.gmra.mxu1 %vm3905_vm2, %v16839_v52  ;;  %13822 = vmatmul.mubr.msk.f32.gmra.mxu0 %vm3905_vm2, %v18562_v9  ;;  %v18565_v52 = vld [vmem:[#allocation43_spill] sm:$0xff] }
 0x3a1   : > { %13775 = vmatprep.mubr.msk.f32.mxu1 %vm3905_vm2, %v16841_v16  ;;  %13824 = vmatprep.mubr.msk.f32.mxu0 %vm3905_vm2, %v18563_v5  ;;  %v4514_v4 = vpop.f32.mrf.mxu1 }
 0x3a2   : > { %v4895_v53 = vpop.f32.mrf.mxu0  ;;  %v5345_v4 = vld [vmem:[#allocation5 + $0x70] sm:$0xff] }
 0x3a3   : > { %v13465_v48 = vpop.f32.mrf.mxu1  ;;  %v5346_v53 = vld [vmem:[#allocation5 + $0x78] sm:$0xff] }
 0x3a4   : > { %v13514_v3 = vpop.f32.mrf.mxu0  ;;  %13776 = vmatmul.mubr.msk.f32.gmra.mxu1 %vm3905_vm2, %v16851_v40  ;;  %13825 = vmatmul.mubr.msk.f32.gmra.mxu0 %vm3905_vm2, %v18564_v36  ;;  %v18567_v40 = vld [vmem:[#allocation34_spill] sm:$0xff]  ;;  %v5347_v36 = vld [vmem:[#allocation5 + $0x80] sm:$0xff] }
 0x3a5   : > { %13778 = vmatprep.mubr.msk.f32.mxu1 %vm3905_vm2, %v16853_v59  ;;  %13827 = vmatprep.mubr.msk.f32.mxu0 %vm3905_vm2, %v18565_v52  ;;  %v4524_v16 = vpop.f32.mrf.mxu1 }
 0x3a6   : > { %v4905_v38 = vpop.f32.mrf.mxu0 }
 0x3a7   : > { %v13468_v61 = vpop.f32.mrf.mxu1  ;;  %v5348_v38 = vld [vmem:[#allocation5 + $0x88] sm:$0xff] }
 0x3a8   : > { %v13517_v12 = vpop.f32.mrf.mxu0  ;;  %13779 = vmatmul.mubr.msk.f32.gmra.mxu1 %vm3905_vm2, %v16863_v55  ;;  %13828 = vmatmul.mubr.msk.f32.gmra.mxu0 %vm3905_vm2, %v18566_v20  ;;  %v5335_v55 = vld [vmem:[#allocation5 + $0x20] sm:$0xff]  ;;  %v5349_v20 = vld [vmem:[#allocation5 + $0x90] sm:$0xff] }
 0x3a9   : > { %13781 = vmatprep.mubr.msk.f32.mxu1 %vm3905_vm2, %v16865_v10  ;;  %13830 = vmatprep.mubr.msk.f32.mxu0 %vm3905_vm2, %v18567_v40  ;;  %v4534_v59 = vpop.f32.mrf.mxu1  ;;  %v5336_v10 = vld [vmem:[#allocation5 + $0x28] sm:$0xff] }
 0x3aa   : > { %v4915_v41 = vpop.f32.mrf.mxu0 }
 0x3ab   : > { %v13471_v28 = vpop.f32.mrf.mxu1  ;;  %v5350_v41 = vld [vmem:[#allocation5 + $0x98] sm:$0xff] }
 0x3ac   : > { %v13520_v45 = vpop.f32.mrf.mxu0  ;;  %13782 = vmatmul.mubr.msk.f32.gmra.mxu1 %vm3905_vm2, %v16875_v43  ;;  %13831 = vmatmul.mubr.msk.f32.gmra.mxu0 %vm3905_vm2, %v18568_v54  ;;  %v5337_v43 = vld [vmem:[#allocation5 + $0x30] sm:$0xff]  ;;  %v7600_v28 = vld [vmem:[%s18025_s5 + $0x8] sm:$0xff] }
 0x3ad   : > { %13840 = vmatprep.mubr.msk.f32.mxu1 %vm3905_vm2, %v5335_v55  ;;  %13833 = vmatprep.mubr.msk.f32.mxu0 %vm3905_vm2, %v18569_v37  ;;  %v4544_v49 = vpop.f32.mrf.mxu1  ;;  %v12076_v45 = vld [vmem:[%s18025_s5 + $0x28] sm:$0xff] }
 0x3ae   : > { %v4925_v58 = vpop.f32.mrf.mxu0  ;;  %v5351_v37 = vld [vmem:[#allocation5 + $0xa0] sm:$0xff]  ;;  %13889 = vmatpush3.msra.mxu0 %v7600_v28 }
 0x3af   : > { %v13530_v27 = vpop.f32.mrf.mxu1  ;;  %13890 = vmatprep.subr.mxu0 %v18535_v63  ;;  %v5352_v58 = vld [vmem:[#allocation5 + $0xa8] sm:$0xff] }
 0x3b0   : > { %v13523_v35 = vpop.f32.mrf.mxu0  ;;  %13834 = vmatmul.mubr.msk.f32.gmra.mxu0 %vm3905_vm2, %v18570_v2  ;;  %13841 = vmatmul.mubr.msk.f32.vlgmr.msra.gmra.mxu1 %vm3905_vm2, %v5336_v10  ;;  %v5353_v2 = vld [vmem:[#allocation5 + $0xb0] sm:$0xff] }
 0x3b1   : > { %13843 = vmatprep.mubr.msk.f32.mxu1 %vm3905_vm2, %v5337_v43  ;;  %v17198_v29 = vpop.f32.mrf.mxu1  ;;  %13896 = vmatpush3.msra.mxu1 %v12076_v45 }
 0x3b2   : > { %v4935_v60 = vpop.f32.mrf.mxu0  ;;  %13897 = vmatprep.subr.mxu1 %v18535_v63  ;;  %13892 = vmatprep.mubr.msk.f32.mxu0 %vm14342_vm4, %v18535_v63 }
 0x3b3   : > { %v5354_v60 = vld [vmem:[#allocation5 + $0xb8] sm:$0xff] }
 0x3b4   : > { %v13533_v8 = vpop.f32.mrf.mxu1  ;;  %v13582_v25 = vpop.f32.mrf.mxu0  ;;  %13844 = vmatmul.mubr.msk.f32.gmra.mxu1 %vm3905_vm2, %v5338_v1 }
 0x3b5   : > { %13846 = vmatprep.mubr.msk.f32.mxu1 %vm3905_vm2, %v5339_v7  ;;  %v5355_v7 = vld [vmem:[#allocation5 + $0xc0] sm:$0xff] }
 0x3b6   : > { %v17202_v19 = vpop.f32.mrf.mxu1  ;;  %v17204_v17 = vpop.f32.mrf.mxu0 }
 0x3b8   : > { %v13536_v21 = vpop.f32.mrf.mxu1  ;;  %v13585_v51 = vpop.f32.mrf.mxu0  ;;  %13847 = vmatmul.mubr.msk.f32.gmra.mxu1 %vm3905_vm2, %v5340_v31 }
 0x3b9   : > { %13849 = vmatprep.mubr.msk.f32.mxu1 %vm3905_vm2, %v5341_v50  ;;  %v5356_v51 = vld [vmem:[#allocation5 + $0xc8] sm:$0xff] }
 0x3ba   : > { %v17208_v30 = vpop.f32.mrf.mxu1  ;;  %v17210_v56 = vpop.f32.mrf.mxu0 }
 0x3bc   : > { %v13539_v46 = vpop.f32.mrf.mxu1  ;;  %v13588_v18 = vpop.f32.mrf.mxu0  ;;  %13850 = vmatmul.mubr.msk.f32.gmra.mxu1 %vm3905_vm2, %v5342_v14 }
 0x3bd   : > { %13852 = vmatprep.mubr.msk.f32.mxu1 %vm3905_vm2, %v5343_v42  ;;  %v5357_v46 = vld [vmem:[#allocation5 + $0xd0] sm:$0xff] }
 0x3be   : > { %v17214_v34 = vpop.f32.mrf.mxu1  ;;  %v17216_v13 = vpop.f32.mrf.mxu0 }
 0x3c0   : > { %v13542_v9 = vpop.f32.mrf.mxu1  ;;  %v13591_v5 = vpop.f32.mrf.mxu0  ;;  %13853 = vmatmul.mubr.msk.f32.gmra.mxu1 %vm3905_vm2, %v5344_v23  ;;  %v5358_v23 = vld [vmem:[#allocation5 + $0xd8] sm:$0xff] }
 0x3c1   : > { %13855 = vmatprep.mubr.msk.f32.mxu1 %vm3905_vm2, %v5345_v4  ;;  %v5359_v4 = vld [vmem:[#allocation5 + $0xe0] sm:$0xff] }
 0x3c2   : > { %v17220_v48 = vpop.f32.mrf.mxu1  ;;  %v17222_v3 = vpop.f32.mrf.mxu0 }
 0x3c4   : > { %v13545_v52 = vpop.f32.mrf.mxu1  ;;  %v13594_v16 = vpop.f32.mrf.mxu0  ;;  %13856 = vmatmul.mubr.msk.f32.gmra.mxu1 %vm3905_vm2, %v5346_v53 }
 0x3c5   : > { %13858 = vmatprep.mubr.msk.f32.mxu1 %vm3905_vm2, %v5347_v36  ;;  %v5360_v52 = vld [vmem:[#allocation5 + $0xe8] sm:$0xff] }
 0x3c6   : > { %v17226_v61 = vpop.f32.mrf.mxu1  ;;  %v17228_v12 = vpop.f32.mrf.mxu0 }
 0x3c8   : > { %v13548_v40 = vpop.f32.mrf.mxu1  ;;  %v13597_v59 = vpop.f32.mrf.mxu0  ;;  %13859 = vmatmul.mubr.msk.f32.gmra.mxu1 %vm3905_vm2, %v5348_v38 }
 0x3c9   : > { %13861 = vmatprep.mubr.msk.f32.mxu1 %vm3905_vm2, %v5349_v20  ;;  %v5361_v20 = vld [vmem:[#allocation5 + $0xf0] sm:$0xff] }
 0x3ca   : > { %v17238_v54 = vpop.f32.mrf.mxu1  ;;  %v17240_v55 = vpop.f32.mrf.mxu0 }
 0x3cc   : > { %v13551_v10 = vpop.f32.mrf.mxu1  ;;  %v13600_v49 = vpop.f32.mrf.mxu0  ;;  %13862 = vmatmul.mubr.msk.f32.gmra.mxu1 %vm3905_vm2, %v5350_v41  ;;  %v5362_v41 = vld [vmem:[#allocation5 + $0xf8] sm:$0xff] }
 0x3cd   : > { %13864 = vmatprep.mubr.msk.f32.mxu1 %vm3905_vm2, %v5351_v37  ;;  %v5363_v37 = vld [vmem:[#allocation5 + $0x100] sm:$0xff] }
 0x3ce   : > { %v5246_v35 = vpop.f32.mrf.mxu1  ;;  %v17246_v27 = vpop.f32.mrf.mxu0 }
 0x3d0   : > { %v13554_v43 = vpop.f32.mrf.mxu1  ;;  %v13603_v1 = vpop.f32.mrf.mxu0  ;;  %13865 = vmatmul.mubr.msk.f32.gmra.mxu1 %vm3905_vm2, %v5352_v58  ;;  %v5364_v58 = vld [vmem:[#allocation5 + $0x108] sm:$0xff] }
 0x3d1   : > { %13867 = vmatprep.mubr.msk.f32.mxu1 %vm3905_vm2, %v5353_v2  ;;  %v5365_v43 = vld [vmem:[#allocation5 + $0x110] sm:$0xff] }
 0x3d2   : > { %v5256_v8 = vpop.f32.mrf.mxu1  ;;  %v5637_v25 = vpop.f32.mrf.mxu0 }
 0x3d3   : > { %v5366_v8 = vld [vmem:[#allocation5 + $0x118] sm:$0xff] }
 0x3d4   : > { %v13557_v31 = vpop.f32.mrf.mxu1  ;;  %v13606_v21 = vpop.f32.mrf.mxu0  ;;  %13868 = vmatmul.mubr.msk.f32.gmra.mxu1 %vm3905_vm2, %v5354_v60  ;;  %v7599_v25 = vld [vmem:[%s18025_s5] sm:$0xff] }
 0x3d5   : > { %13870 = vmatprep.mubr.msk.f32.mxu1 %vm3905_vm2, %v5355_v7  ;;  %v12075_v7 = vld [vmem:[%s18025_s5 + $0x20] sm:$0xff]  ;;  %13891 = vmatpush3.msra.mxu0 %v7599_v25 }
 0x3d6   : > { %v5266_v50 = vpop.f32.mrf.mxu1  ;;  %v5647_v14 = vpop.f32.mrf.mxu0  ;;  %13898 = vmatpush3.msra.mxu1 %v12075_v7  ;;  %13902 = vmatprep.subr.mxu0 %v18535_v63 }
 0x3d7   : > { %13909 = vmatprep.subr.mxu1 %v18535_v63 }
 0x3d8   : > { %v13560_v18 = vpop.f32.mrf.mxu1  ;;  %v13609_v42 = vpop.f32.mrf.mxu0  ;;  %13871 = vmatmul.mubr.msk.f32.gmra.mxu1 %vm3905_vm2, %v5356_v51 }
 0x3d9   : > { %13873 = vmatprep.mubr.msk.f32.mxu1 %vm3905_vm2, %v5357_v46 }
 0x3da   : > { %v5276_v9 = vpop.f32.mrf.mxu1  ;;  %v5657_v5 = vpop.f32.mrf.mxu0 }
 0x3dc   : > { %v13563_v53 = vpop.f32.mrf.mxu1  ;;  %v13612_v36 = vpop.f32.mrf.mxu0  ;;  %13874 = vmatmul.mubr.msk.f32.gmra.mxu1 %vm3905_vm2, %v5358_v23 }
 0x3dd   : > { %13876 = vmatprep.mubr.msk.f32.mxu1 %vm3905_vm2, %v5359_v4 }
 0x3de   : > { %v5286_v16 = vpop.f32.mrf.mxu1  ;;  %v5667_v38 = vpop.f32.mrf.mxu0 }
 0x3e0   : > { %v13566_v40 = vpop.f32.mrf.mxu1  ;;  %v13615_v59 = vpop.f32.mrf.mxu0  ;;  %13877 = vmatmul.mubr.msk.f32.gmra.mxu1 %vm3905_vm2, %v5360_v52 }
 0x3e1   : > { %13879 = vmatprep.mubr.msk.f32.mxu1 %vm3905_vm2, %v5361_v20 }
 0x3e2   : > { %v5296_v28 = vpop.f32.mrf.mxu1  ;;  %v5677_v45 = vpop.f32.mrf.mxu0 }
 0x3e4   : > { %v13569_v10 = vpop.f32.mrf.mxu1  ;;  %v13618_v49 = vpop.f32.mrf.mxu0  ;;  %13880 = vmatmul.mubr.msk.f32.gmra.mxu1 %vm3905_vm2, %v5362_v41 }
 0x3e5   : > { %13882 = vmatprep.mubr.msk.f32.mxu1 %vm3905_vm2, %v5363_v37 }
 0x3e6   : > { %v5306_v35 = vpop.f32.mrf.mxu1  ;;  %v5687_v2 = vpop.f32.mrf.mxu0 }
 0x3e8   : > { %v13572_v1 = vpop.f32.mrf.mxu1  ;;  %v13621_v60 = vpop.f32.mrf.mxu0  ;;  %13883 = vmatmul.mubr.msk.f32.gmra.mxu1 %vm3905_vm2, %v5364_v58 }
 0x3e9   : > { %13885 = vmatprep.mubr.msk.f32.mxu1 %vm3905_vm2, %v5365_v43 }
 0x3ea   : > { %v5316_v31 = vpop.f32.mrf.mxu1  ;;  %v5697_v21 = vpop.f32.mrf.mxu0 }
 0x3ec   : > { %v13575_v51 = vpop.f32.mrf.mxu1  ;;  %v13624_v50 = vpop.f32.mrf.mxu0  ;;  %13886 = vmatmul.mubr.msk.f32.gmra.mxu1 %vm3905_vm2, %v5366_v8 }
 0x3ed   : > { %13899 = vmatprep.mubr.msk.f32.mxu1 %vm14342_vm4, %v18535_v63 }
 0x3ee   : > { %v5326_v14 = vpop.f32.mrf.mxu1  ;;  %v5707_v46 = vpop.f32.mrf.mxu0 }
 0x3f0   : > { %v13627_v18 = vpop.f32.mrf.mxu0  ;;  %v13634_v42 = vpop.f32.mrf.mxu1 }
 0x3f2   : > { %v5717_v23 = vpop.f32.mrf.mxu0  ;;  %v17271_v9 = vpop.f32.mrf.mxu1 }
 0x3f4   : > { %v13637_v5 = vpop.f32.mrf.mxu1  ;;  %v13686_v4 = vpop.f32.mrf.mxu0 }
 0x3f6   : > { %v17273_v53 = vpop.f32.mrf.mxu1  ;;  %v17275_v36 = vpop.f32.mrf.mxu0 }
 0x3f8   : > { %v13640_v52 = vpop.f32.mrf.mxu1  ;;  %v13689_v16 = vpop.f32.mrf.mxu0 }
 0x3fa   : > { %v17277_v38 = vpop.f32.mrf.mxu1  ;;  %v17279_v20 = vpop.f32.mrf.mxu0 }
 0x3fc   : > { %v13643_v40 = vpop.f32.mrf.mxu1  ;;  %v13692_v59 = vpop.f32.mrf.mxu0 }
 0x3fe   : > { %v17281_v41 = vpop.f32.mrf.mxu1  ;;  %v17283_v28 = vpop.f32.mrf.mxu0 }
 0x400   : > { %v13646_v45 = vpop.f32.mrf.mxu1  ;;  %v13695_v37 = vpop.f32.mrf.mxu0 }
 0x402   : > { %v17285_v10 = vpop.f32.mrf.mxu1  ;;  %v17287_v49 = vpop.f32.mrf.mxu0 }
 0x404   : > { %v13649_v58 = vpop.f32.mrf.mxu1  ;;  %v13698_v35 = vpop.f32.mrf.mxu0 }
 0x406   : > { %v17289_v2 = vpop.f32.mrf.mxu1  ;;  %v17291_v43 = vpop.f32.mrf.mxu0 }
 0x408   : > { %v13652_v1 = vpop.f32.mrf.mxu1  ;;  %v13701_v60 = vpop.f32.mrf.mxu0 }
 0x40a   : > { %v17293_v8 = vpop.f32.mrf.mxu1  ;;  %v17295_v25 = vpop.f32.mrf.mxu0 }
 0x40c   : > { %v13655_v7 = vpop.f32.mrf.mxu1  ;;  %v13704_v31 = vpop.f32.mrf.mxu0 }
 0x40e   : > { %v5993_v21 = vpop.f32.mrf.mxu1  ;;  %v17301_v51 = vpop.f32.mrf.mxu0 }
 0x410   : > { %v13658_v50 = vpop.f32.mrf.mxu1  ;;  %v13707_v14 = vpop.f32.mrf.mxu0 }
 0x412   : > { %v6003_v46 = vpop.f32.mrf.mxu1  ;;  %v6314_v18 = vpop.f32.mrf.mxu0 }
 0x414   : > { %v13661_v42 = vpop.f32.mrf.mxu1  ;;  %v13710_v23 = vpop.f32.mrf.mxu0 }
 0x416   : > { %v6013_v5 = vpop.f32.mrf.mxu1  ;;  %v6324_v4 = vpop.f32.mrf.mxu0 }
 0x418   : > { %v13664_v52 = vpop.f32.mrf.mxu1  ;;  %v13713_v16 = vpop.f32.mrf.mxu0 }
 0x41a   : > { %v6023_v40 = vpop.f32.mrf.mxu1  ;;  %v6334_v59 = vpop.f32.mrf.mxu0 }
 0x41c   : > { %v13667_v45 = vpop.f32.mrf.mxu1  ;;  %v13716_v37 = vpop.f32.mrf.mxu0 }
 0x41e   : > { %v6033_v58 = vpop.f32.mrf.mxu1  ;;  %v6344_v35 = vpop.f32.mrf.mxu0 }
 0x420   : > { %v13670_v1 = vpop.f32.mrf.mxu1  ;;  %v13719_v60 = vpop.f32.mrf.mxu0 }
 0x422   : > { %v6043_v7 = vpop.f32.mrf.mxu1  ;;  %v6354_v31 = vpop.f32.mrf.mxu0 }
 0x423   : > { %v6255_v31 = vadd.f32 %v17279_v20, %v17020_v47  ;;  %v6275_v47 = vadd.f32 %v17287_v49, %v17059_v57  ;;  %v6295_v57 = vadd.f32 %v17295_v25, %v17099_v15 }
 0x424   : > { %v13673_v21 = vpop.f32.mrf.mxu1  ;;  %v13722_v50 = vpop.f32.mrf.mxu0 }
 0x426   : > { %v6053_v14 = vpop.f32.mrf.mxu1  ;;  %v6364_v46 = vpop.f32.mrf.mxu0 }
 0x428   : > { %v13676_v18 = vpop.f32.mrf.mxu1  ;;  %v13725_v42 = vpop.f32.mrf.mxu0 }
 0x429   : > { %v6265_v42 = vadd.f32 %v17283_v28, %v17039_v11  ;;  %v6285_v11 = vadd.f32 %v17291_v43, %v17079_v44  ;;  %v6305_v44 = vadd.f32 %v17301_v51, %v17119_v26 }
 0x42a   : > { %v6063_v23 = vpop.f32.mrf.mxu1  ;;  %v6374_v5 = vpop.f32.mrf.mxu0 }
 0x42c   : > { %v13679_v4 = vpop.f32.mrf.mxu1  ;;  %v13728_v52 = vpop.f32.mrf.mxu0 }
 0x42e   : > { %v6073_v16 = vpop.f32.mrf.mxu1  ;;  %v6384_v40 = vpop.f32.mrf.mxu0 }
 0x430   : > { %v13731_v59 = vpop.f32.mrf.mxu0  ;;  %v13738_v45 = vpop.f32.mrf.mxu1 }
 0x432   : > { %v6394_v37 = vpop.f32.mrf.mxu0  ;;  %v17303_v58 = vpop.f32.mrf.mxu1 }
 0x434   : > { %v13741_v35 = vpop.f32.mrf.mxu1  ;;  %v13790_v1 = vpop.f32.mrf.mxu0 }
 0x436   : > { %v6575_v60 = vpop.f32.mrf.mxu1  ;;  %v17305_v7 = vpop.f32.mrf.mxu0 }
 0x437   : > { %v6576_v21 = vadd.f32 %v6575_v60, %v17034_v22 }
 0x438   : > { %v13744_v50 = vpop.f32.mrf.mxu1  ;;  %v13793_v46 = vpop.f32.mrf.mxu0 }
 0x439   : > { %v17310_v14 = vadd.f32 %v6576_v21, %v6255_v31 }
 0x43a   : > { %v6585_v18 = vpop.f32.mrf.mxu1  ;;  %v6896_v52 = vpop.f32.mrf.mxu0 }
 0x43b   : > { %v6586_v23 = vadd.f32 %v6585_v18, %v17053_v39 }
 0x43c   : > { %v13747_v5 = vpop.f32.mrf.mxu1  ;;  %v13796_v40 = vpop.f32.mrf.mxu0 }
 0x43d   : > { %v17315_v4 = vadd.f32 %v6586_v23, %v6265_v42 }
 0x43e   : > { %v6595_v16 = vpop.f32.mrf.mxu1  ;;  %v6906_v37 = vpop.f32.mrf.mxu0 }
 0x43f   : > { %v6596_v22 = vadd.f32 %v6595_v16, %v17073_v62 }
 0x440   : > { %v13750_v20 = vpop.f32.mrf.mxu1  ;;  %v13799_v60 = vpop.f32.mrf.mxu0 }
 0x441   : > { %v17320_v59 = vadd.f32 %v6596_v22, %v6275_v47 }
 0x442   : > { %v6605_v45 = vpop.f32.mrf.mxu1  ;;  %v6916_v50 = vpop.f32.mrf.mxu0 }
 0x443   : > { %v6606_v39 = vadd.f32 %v6605_v45, %v17093_v0 }
 0x444   : > { %v13753_v28 = vpop.f32.mrf.mxu1  ;;  %v13802_v23 = vpop.f32.mrf.mxu0 }
 0x445   : > { %v17325_v35 = vadd.f32 %v6606_v39, %v6285_v11  ;;  %v6887_v23 = vadd.f32 %v17305_v7, %v17198_v29 }
 0x446   : > { %v6615_v1 = vpop.f32.mrf.mxu1 }
 0x447   : > { %v6616_v62 = vadd.f32 %v6615_v1, %v17113_v33  ;;  %v6926_v33 = vpop.f32.mrf.mxu0 }
 0x448   : > { %v13756_v49 = vpop.f32.mrf.mxu1 }
 0x449   : > { %v17330_v31 = vadd.f32 %v6616_v62, %v6295_v57  ;;  %v13805_v47 = vpop.f32.mrf.mxu0 }
 0x44a   : > { %v6625_v21 = vpop.f32.mrf.mxu1 }
 0x44b   : > { %v6626_v0 = vadd.f32 %v6625_v21, %v17129_v32  ;;  %v17337_v40 = vpop.f32.mrf.mxu0 }
 0x44c   : > { %v13759_v43 = vpop.f32.mrf.mxu1 }
 0x44d   : > { %v17335_v46 = vadd.f32 %v6626_v0, %v6305_v44  ;;  %v13808_v32 = vpop.f32.mrf.mxu0  ;;  %v6566_v44 = vadd.f32 %v17303_v58, %v17014_v6  ;;  %v17352_v6 = vld [vmem:[%s18024_s4] ss:$0 sm:$0xff] }
 0x44e   : > { %v6635_v18 = vpop.f32.mrf.mxu1 }
 0x44f   : > { %v17339_v39 = vpop.f32.mrf.mxu0  ;;  %v6245_v18 = vadd.f32 %v17275_v36, %v17000_v24 }
 0x450   : > { %v13762_v42 = vpop.f32.mrf.mxu1 }
 0x451   : > { %v13811_v57 = vpop.f32.mrf.mxu0 }
 0x452   : > { %v6645_v15 = vpop.f32.mrf.mxu1 }
 0x453   : > { %v6956_v60 = vpop.f32.mrf.mxu0 }
 0x454   : > { %v13765_v25 = vpop.f32.mrf.mxu1 }
 0x455   : > { %v13814_v43 = vpop.f32.mrf.mxu0  ;;  %v7366_v25 = vadd.f32 %v6566_v44, %v6245_v18 }
 0x456   : > { %v6655_v5 = vpop.f32.mrf.mxu1 }
 0x458   : > { %v13768_v16 = vpop.f32.mrf.mxu1 }
 0x459   : > { %v6966_v16 = vpop.f32.mrf.mxu0 }
 0x45a   : > { %v6665_v22 = vpop.f32.mrf.mxu1 }
 0x45b   : > { %v6897_v22 = vadd.f32 %v6896_v52, %v17202_v19  ;;  %v6907_v19 = vadd.f32 %v6906_v37, %v17208_v30 }
 0x45c   : > { %v13771_v20 = vpop.f32.mrf.mxu1 }
 0x45e   : > { %v6675_v26 = vpop.f32.mrf.mxu1 }
 0x45f   : > { %v13817_v26 = vpop.f32.mrf.mxu0 }
 0x460   : > { %v13774_v51 = vpop.f32.mrf.mxu1 }
 0x462   : > { %v6685_v45 = vpop.f32.mrf.mxu1 }
 0x464   : > { %v13777_v11 = vpop.f32.mrf.mxu1 }
 0x465   : > { %v6976_v11 = vpop.f32.mrf.mxu0 }
 0x466   : > { %v6695_v28 = vpop.f32.mrf.mxu1 }
 0x467   : > { %v13820_v37 = vpop.f32.mrf.mxu0 }
 0x468   : > { %v13780_v1 = vpop.f32.mrf.mxu1 }
 0x469   : > { %v6986_v43 = vpop.f32.mrf.mxu0 }
 0x46a   : > { %v6705_v62 = vpop.f32.mrf.mxu1 }
 0x46c   : > { %v13783_v49 = vpop.f32.mrf.mxu1 }
 0x46e   : > { %v6715_v21 = vpop.f32.mrf.mxu1 }
 0x46f   : > { %v6927_v21 = vadd.f32 %v6926_v33, %v17220_v48  ;;  %v12081_v48 = vld [vmem:[%s18025_s5 + $0x48] sm:$0xff] }
 0x470   : > { %v13842_v0 = vpop.f32.mrf.mxu1 }
 0x472   : > { %v7207_v42 = vpop.f32.mrf.mxu1 }
 0x473   : > { %v7208_v15 = vadd.f32 %v7207_v42, %v17204_v17 }
 0x474   : > { %v13845_v5 = vpop.f32.mrf.mxu1 }
 0x475   : > { %v7398_v47 = vadd.f32 %v7208_v15, %v6887_v23 }
 0x476   : > { %v7217_v58 = vpop.f32.mrf.mxu1 }
 0x477   : > { %v7430_v20 = vadd.f32 %v7398_v47, %v7366_v25  ;;  %v7218_v24 = vadd.f32 %v7217_v58, %v17210_v56  ;;  %v6917_v56 = vadd.f32 %v6916_v50, %v17214_v34  ;;  %v12080_v25 = vld [vmem:[%s18025_s5 + $0x40] sm:$0xff] }
 0x478   : > { %v13848_v36 = vpop.f32.mrf.mxu1 }
 0x479   : > { %v7462_v29 = vadd.f32 %v7430_v20, %v17271_v9  ;;  %v7400_v17 = vadd.f32 %v7218_v24, %v6897_v22  ;;  %v6947_v22 = vadd.f32 %v17339_v39, %v17238_v54  ;;  %v12091_v54 = vld [vmem:[%s18025_s5 + $0x88] sm:$0xff] }
 0x47a   : > { %v7227_v7 = vpop.f32.mrf.mxu1 }
 0x47b   : > { %v7501_v51 = vadd.f32 %v17352_v6, %v7462_v29  ;;  %v7432_v32 = vadd.f32 %v7400_v17, %v17310_v14  ;;  %v7228_v52 = vadd.f32 %v7227_v7, %v17216_v13 }
 0x47c   : > { %v13851_v45 = vpop.f32.mrf.mxu1 }
 0x47d   : > { %v7533_v28 = vmax.f32 %v7501_v51, 0.0  ;;  %v7464_v1 = vadd.f32 %v7432_v32, %v17273_v53  ;;  %v7402_v57 = vadd.f32 %v7228_v52, %v6907_v19  ;;  %v12090_v51 = vld [vmem:[%s18025_s5 + $0x80] sm:$0xff] }
 0x47e   : > { %v7237_v62 = vpop.f32.mrf.mxu1 }
 0x47f   : > { %7565 = vst.msk [vmem:[#allocation6] sm:$0xff] %vm3905_vm2, %v7533_v28  ;;  %v7503_v9 = vadd.f32 %v17352_v6, %v7464_v1  ;;  %v7238_v49 = vadd.f32 %v7237_v62, %v17222_v3  ;;  %v7434_v14 = vadd.f32 %v7402_v57, %v17315_v4 }
 0x480   : > { %v13854_v30 = vpop.f32.mrf.mxu1 }
 0x481   : > { %v7535_v13 = vmax.f32 %v7503_v9, 0.0  ;;  %v7404_v60 = vadd.f32 %v7238_v49, %v6917_v56  ;;  %v7466_v53 = vadd.f32 %v7434_v14, %v17277_v38  ;;  %v12086_v38 = vld [vmem:[%s18025_s5 + $0x68] sm:$0xff]  ;;  %v12100_v49 = vld [vmem:[%s18025_s5 + $0xc0] sm:$0xff] }
 0x482   : > { %v7247_v44 = vpop.f32.mrf.mxu1  ;;  %v12105_v14 = vld [vmem:[%s18025_s5 + $0xe0] sm:$0xff] }
 0x483   : > { %7567 = vst.msk [vmem:[#allocation6 + $0x10] sm:$0xff] %vm3905_vm2, %v7535_v13  ;;  %v7436_v34 = vadd.f32 %v7404_v60, %v17320_v59  ;;  %v7248_v50 = vadd.f32 %v7247_v44, %v17228_v12  ;;  %v7505_v0 = vadd.f32 %v17352_v6, %v7466_v53  ;;  %v6937_v59 = vadd.f32 %v17337_v40, %v17226_v61  ;;  %v12085_v61 = vld [vmem:[%s18025_s5 + $0x60] sm:$0xff]  ;;  %v12111_v60 = vld [vmem:[%s18025_s5 + $0x108] sm:$0xff] }
 0x484   : > { %v13857_v3 = vpop.f32.mrf.mxu1 }
 0x485   : > { %v7468_v4 = vadd.f32 %v7436_v34, %v17281_v41  ;;  %v7406_v18 = vadd.f32 %v7248_v50, %v6927_v21  ;;  %v7537_v33 = vmax.f32 %v7505_v0, 0.0  ;;  %v12116_v21 = vld [vmem:[%s18025_s5 + $0x128] sm:$0xff]  ;;  %v12110_v0 = vld [vmem:[%s18025_s5 + $0x100] sm:$0xff] }
 0x486   : > { %v7257_v12 = vpop.f32.mrf.mxu1  ;;  %v7598_v42 = vld [vmem:[#allocation6] sm:$0x1]  ;;  %v7678_v23 = vld [vmem:[#allocation6 + $0x2] sm:$0x1]  ;;  %v7840_v36 = vld [vmem:[#allocation6 + $0x6] sm:$0x1] }
 0x487   : > { %v7507_v15 = vadd.f32 %v17352_v6, %v7468_v4  ;;  %v7438_v41 = vadd.f32 %v7406_v18, %v17325_v35  ;;  %13893 = vmatmul.mubr.msk.f32.vlgmr.msra.gmra.mxu0 %vm3905_vm2, %v7598_v42  ;;  %13900 = vmatmul.mubr.msk.f32.vlgmr.msra.gmra.mxu1 %vm3905_vm2, %v7678_v23  ;;  %7569 = vst.msk [vmem:[#allocation6 + $0x20] sm:$0xff] %vm3905_vm2, %v7537_v33  ;;  %v13823_v35 = vpop.f32.mrf.mxu0  ;;  %v12115_v3 = vld [vmem:[%s18025_s5 + $0x120] sm:$0xff] }
 0x488   : > { %v7258_v40 = vadd.f32 %v7257_v12, %v17240_v55  ;;  %13903 = vmatpush3.msra.mxu0 %v12081_v48  ;;  %13910 = vmatpush3.msra.mxu1 %v12086_v38  ;;  %v13860_v5 = vpop.f32.mrf.mxu1  ;;  %v12121_v48 = vld [vmem:[%s18025_s5 + $0x148] sm:$0xff]  ;;  %v12120_v42 = vld [vmem:[%s18025_s5 + $0x140] sm:$0xff] }
 0x489   : > { %v7539_v16 = vmax.f32 %v7507_v15, 0.0  ;;  %v7470_v47 = vadd.f32 %v7438_v41, %v17285_v10  ;;  %13904 = vmatprep.subr.mxu0 %v18535_v63  ;;  %13911 = vmatprep.subr.mxu1 %v18535_v63  ;;  %v12096_v10 = vld [vmem:[%s18025_s5 + $0xa8] sm:$0xff]  ;;  %v6996_v29 = vpop.f32.mrf.mxu0  ;;  %v12125_v23 = vld [vmem:[%s18025_s5 + $0x160] sm:$0xff] }
 0x48a   : > { %v7408_v58 = vadd.f32 %v7258_v40, %v6937_v59  ;;  %13905 = vmatpush3.msra.mxu0 %v12080_v25  ;;  %13912 = vmatpush3.msra.mxu1 %v12085_v61  ;;  %v7267_v20 = vpop.f32.mrf.mxu1  ;;  %v8002_v57 = vld [vmem:[#allocation6 + $0x13] sm:$0x1]  ;;  %v8083_v53 = vld [vmem:[#allocation6 + $0x15] sm:$0x1]  ;;  %v12145_v29 = vld [vmem:[%s18025_s5 + $0x1e0] sm:$0xff] }
 0x48b   : > { %7571 = vst.msk [vmem:[#allocation6 + $0x30] sm:$0xff] %vm3905_vm2, %v7539_v16  ;;  %v7509_v55 = vadd.f32 %v17352_v6, %v7470_v47  ;;  %v7268_v24 = vadd.f32 %v7267_v20, %v17246_v27  ;;  %13906 = vmatprep.mubr.msk.f32.mxu0 %vm14342_vm4, %v18535_v63  ;;  %13913 = vmatprep.mubr.msk.f32.mxu1 %vm14342_vm4, %v18535_v63  ;;  %v7759_v27 = vld [vmem:[#allocation6 + $0x4] sm:$0x1]  ;;  %v13826_v28 = vpop.f32.mrf.mxu0  ;;  %v12126_v38 = vld [vmem:[%s18025_s5 + $0x168] sm:$0xff] }
 0x48c   : > { %v7440_v39 = vadd.f32 %v7408_v58, %v17330_v31  ;;  %13916 = vmatprep.subr.mxu0 %v18535_v63  ;;  %13923 = vmatprep.subr.mxu1 %v18535_v63  ;;  %v13863_v26 = vpop.f32.mrf.mxu1  ;;  %v12095_v31 = vld [vmem:[%s18025_s5 + $0xa0] sm:$0xff]  ;;  %v12131_v61 = vld [vmem:[%s18025_s5 + $0x188] sm:$0xff] }
 0x48d   : > { %v7541_v17 = vmax.f32 %v7509_v55, 0.0  ;;  %v7410_v7 = vadd.f32 %v7268_v24, %v6947_v22  ;;  %13907 = vmatmul.mubr.msk.f32.vlgmr.msra.gmra.mxu0 %vm3905_vm2, %v7759_v27  ;;  %13914 = vmatmul.mubr.msk.f32.vlgmr.msra.gmra.mxu1 %vm3905_vm2, %v7840_v36  ;;  %v7006_v37 = vpop.f32.mrf.mxu0  ;;  %v12136_v40 = vld [vmem:[%s18025_s5 + $0x1a8] sm:$0xff]  ;;  %v12130_v22 = vld [vmem:[%s18025_s5 + $0x180] sm:$0xff] }
 0x48e   : > { %v7472_v32 = vadd.f32 %v7440_v39, %v17289_v2  ;;  %13917 = vmatpush3.msra.mxu0 %v12091_v54  ;;  %13924 = vmatpush3.msra.mxu1 %v12096_v10  ;;  %v7277_v19 = vpop.f32.mrf.mxu1  ;;  %v12101_v2 = vld [vmem:[%s18025_s5 + $0xc8] sm:$0xff]  ;;  %v8164_v44 = vld [vmem:[#allocation6 + $0x20] sm:$0x1]  ;;  %v8245_v59 = vld [vmem:[#allocation6 + $0x22] sm:$0x1] }
 0x48f   : > { %7573 = vst.msk [vmem:[#allocation6 + $0x40] sm:$0xff] %vm3905_vm2, %v7541_v17  ;;  %v7442_v52 = vadd.f32 %v7410_v7, %v17335_v46  ;;  %13918 = vmatprep.subr.mxu0 %v18535_v63  ;;  %13925 = vmatprep.subr.mxu1 %v18535_v63  ;;  %v12106_v46 = vld [vmem:[%s18025_s5 + $0xe8] sm:$0xff]  ;;  %v13829_v50 = vpop.f32.mrf.mxu0  ;;  %v8326_v33 = vld [vmem:[#allocation6 + $0x24] sm:$0x1]  ;;  %v8407_v5 = vld [vmem:[#allocation6 + $0x26] sm:$0x1] }
 0x490   : > { %v7511_v45 = vadd.f32 %v17352_v6, %v7472_v32  ;;  %13919 = vmatpush3.msra.mxu0 %v12090_v51  ;;  %13926 = vmatpush3.msra.mxu1 %v12095_v31  ;;  %v13866_v11 = vpop.f32.mrf.mxu1  ;;  %v12135_v58 = vld [vmem:[%s18025_s5 + $0x1a0] sm:$0xff]  ;;  %v12141_v54 = vld [vmem:[%s18025_s5 + $0x1c8] sm:$0xff] }
 0x491   : > { %v7474_v1 = vadd.f32 %v7442_v52, %v17293_v8  ;;  %13920 = vmatprep.mubr.msk.f32.mxu0 %vm14342_vm4, %v18535_v63  ;;  %13927 = vmatprep.mubr.msk.f32.mxu1 %vm14342_vm4, %v18535_v63  ;;  %v7921_v8 = vld [vmem:[#allocation6 + $0x11] sm:$0x1]  ;;  %v7016_v18 = vpop.f32.mrf.mxu0  ;;  %v12140_v26 = vld [vmem:[%s18025_s5 + $0x1c0] sm:$0xff] }
 0x492   : > { %v7543_v56 = vmax.f32 %v7511_v45, 0.0  ;;  %13930 = vmatprep.subr.mxu0 %v18535_v63  ;;  %13937 = vmatprep.subr.mxu1 %v18535_v63  ;;  %v7287_v62 = vpop.f32.mrf.mxu1  ;;  %v8488_v35 = vld [vmem:[#allocation6 + $0x31] sm:$0x1]  ;;  %v8569_v39 = vld [vmem:[#allocation6 + $0x33] sm:$0x1]  ;;  %v12150_v45 = vld [vmem:[%s18025_s5 + $0x200] sm:$0xff] }
 0x493   : > { %v7513_v9 = vadd.f32 %v17352_v6, %v7474_v1  ;;  %13921 = vmatmul.mubr.msk.f32.vlgmr.msra.gmra.mxu0 %vm3905_vm2, %v7921_v8  ;;  %13928 = vmatmul.mubr.msk.f32.vlgmr.msra.gmra.mxu1 %vm3905_vm2, %v8002_v57  ;;  %v13832_v41 = vpop.f32.mrf.mxu0  ;;  %v12146_v10 = vld [vmem:[%s18025_s5 + $0x1e8] sm:$0xff]  ;;  %v12155_v11 = vld [vmem:[%s18025_s5 + $0x220] sm:$0xff]  ;;  %v12084_v18 = vld [vmem:[%s18025_s5 + $0x58] sm:$0xff] }
 0x494   : > { %7575 = vst.msk [vmem:[#allocation6 + $0x50] sm:$0xff] %vm3905_vm2, %v7543_v56  ;;  %13931 = vmatpush3.msra.mxu0 %v12101_v2  ;;  %13938 = vmatpush3.msra.mxu1 %v12106_v46  ;;  %v13869_v30 = vpop.f32.mrf.mxu1  ;;  %v8650_v27 = vld [vmem:[#allocation6 + $0x35] sm:$0x1]  ;;  %v12160_v56 = vld [vmem:[%s18025_s5 + $0x240] sm:$0xff]  ;;  %v12088_v41 = vld [vmem:[%s18025_s5 + $0x70] sm:$0xff] }
 0x495   : > { %v7545_v13 = vmax.f32 %v7513_v9, 0.0  ;;  %13932 = vmatprep.subr.mxu0 %v18535_v63  ;;  %13939 = vmatprep.subr.mxu1 %v18535_v63  ;;  %v7026_v47 = vpop.f32.mrf.mxu0  ;;  %v12151_v31 = vld [vmem:[%s18025_s5 + $0x208] sm:$0xff]  ;;  %v12165_v8 = vld [vmem:[%s18025_s5 + $0x260] sm:$0xff] }
 0x496   : > { %13933 = vmatpush3.msra.mxu0 %v12100_v49  ;;  %13940 = vmatpush3.msra.mxu1 %v12105_v14  ;;  %v7297_v6 = vpop.f32.mrf.mxu1  ;;  %v12156_v32 = vld [vmem:[%s18025_s5 + $0x228] sm:$0xff]  ;;  %v8731_v19 = vld [vmem:[#allocation6 + $0x40] sm:$0x1]  ;;  %v8812_v52 = vld [vmem:[#allocation6 + $0x42] sm:$0x1] }
 0x497   : > { %7577 = vst.msk [vmem:[#allocation6 + $0x60] sm:$0xff] %vm3905_vm2, %v7545_v13  ;;  %13934 = vmatprep.mubr.msk.f32.mxu0 %vm14342_vm4, %v18535_v63  ;;  %13941 = vmatprep.mubr.msk.f32.mxu1 %vm14342_vm4, %v18535_v63  ;;  %v13835_v24 = vpop.f32.mrf.mxu0  ;;  %v12161_v28 = vld [vmem:[%s18025_s5 + $0x248] sm:$0xff]  ;;  %v8893_v2 = vld [vmem:[#allocation6 + $0x44] sm:$0x1]  ;;  %v8974_v46 = vld [vmem:[#allocation6 + $0x46] sm:$0x1] }
 0x498   : > { %13944 = vmatprep.subr.mxu0 %v18535_v63  ;;  %13951 = vmatprep.subr.mxu1 %v18535_v63  ;;  %v13872_v34 = vpop.f32.mrf.mxu1  ;;  %v12166_v1 = vld [vmem:[%s18025_s5 + $0x268] sm:$0xff]  ;;  %v12170_v14 = vld [vmem:[%s18025_s5 + $0x280] sm:$0xff]  ;;  %v12103_v47 = vld [vmem:[%s18025_s5 + $0xd0] sm:$0xff] }
 0x499   : > { %13935 = vmatmul.mubr.msk.f32.vlgmr.msra.gmra.mxu0 %vm3905_vm2, %v8083_v53  ;;  %13942 = vmatmul.mubr.msk.f32.vlgmr.msra.gmra.mxu1 %vm3905_vm2, %v8164_v44  ;;  %v7036_v7 = vpop.f32.mrf.mxu0  ;;  %v12171_v57 = vld [vmem:[%s18025_s5 + $0x288] sm:$0xff]  ;;  %v12175_v30 = vld [vmem:[%s18025_s5 + $0x2a0] sm:$0xff]  ;;  %v12074_v34 = vld [vmem:[%s18025_s5 + $0x18] sm:$0xff] }
 0x49a   : > { %13945 = vmatpush3.msra.mxu0 %v12111_v60  ;;  %13952 = vmatpush3.msra.mxu1 %v12116_v21  ;;  %v7307_v43 = vpop.f32.mrf.mxu1  ;;  %v12176_v62 = vld [vmem:[%s18025_s5 + $0x2a8] sm:$0xff]  ;;  %v12180_v21 = vld [vmem:[%s18025_s5 + $0x2c0] sm:$0xff]  ;;  %v12108_v24 = vld [vmem:[%s18025_s5 + $0xf0] sm:$0xff] }
 0x49b   : > { %13946 = vmatprep.subr.mxu0 %v18535_v63  ;;  %13953 = vmatprep.subr.mxu1 %v18535_v63  ;;  %v9055_v9 = vld [vmem:[#allocation6 + $0x51] sm:$0x1]  ;;  %v9136_v49 = vld [vmem:[#allocation6 + $0x53] sm:$0x1]  ;;  %v9217_v6 = vld [vmem:[#allocation6 + $0x55] sm:$0x1] }
 0x49c   : > { %13947 = vmatpush3.msra.mxu0 %v12110_v0  ;;  %13954 = vmatpush3.msra.mxu1 %v12115_v3  ;;  %v13875_v4 = vpop.f32.mrf.mxu1  ;;  %v12181_v37 = vld [vmem:[%s18025_s5 + $0x2c8] sm:$0xff]  ;;  %v12185_v53 = vld [vmem:[%s18025_s5 + $0x2e0] sm:$0xff]  ;;  %v12073_v43 = vld [vmem:[%s18025_s5 + $0x10] sm:$0xff] }
 0x49d   : > { %13948 = vmatprep.mubr.msk.f32.mxu0 %vm14342_vm4, %v18535_v63  ;;  %13955 = vmatprep.mubr.msk.f32.mxu1 %vm14342_vm4, %v18535_v63  ;;  %v12186_v13 = vld [vmem:[%s18025_s5 + $0x2e8] sm:$0xff]  ;;  %v12190_v3 = vld [vmem:[%s18025_s5 + $0x300] sm:$0xff]  ;;  %v12079_v4 = vld [vmem:[%s18025_s5 + $0x38] sm:$0xff] }
 0x49e   : > { %13958 = vmatprep.subr.mxu0 %v18535_v63  ;;  %13965 = vmatprep.subr.mxu1 %v18535_v63  ;;  %v7317_v12 = vpop.f32.mrf.mxu1  ;;  %v9298_v60 = vld [vmem:[#allocation6 + $0x60] sm:$0x1]  ;;  %v12191_v44 = vld [vmem:[%s18025_s5 + $0x308] sm:$0xff]  ;;  %v9379_v50 = vld [vmem:[#allocation6 + $0x62] sm:$0x1] }
 0x49f   : > { %13949 = vmatmul.mubr.msk.f32.vlgmr.msra.gmra.mxu0 %vm3905_vm2, %v8245_v59  ;;  %13956 = vmatmul.mubr.msk.f32.vlgmr.msra.gmra.mxu1 %vm3905_vm2, %v8326_v33  ;;  %v9460_v0 = vld [vmem:[#allocation6 + $0x64] sm:$0x1]  ;;  %v12078_v59 = vld [vmem:[%s18025_s5 + $0x30] sm:$0xff] }
 0x4a0   : > { %13959 = vmatpush3.msra.mxu0 %v12121_v48  ;;  %13966 = vmatpush3.msra.mxu1 %v12126_v38  ;;  %v13878_v15 = vpop.f32.mrf.mxu1  ;;  %v9541_v48 = vld [vmem:[#allocation6 + $0x66] sm:$0x1]  ;;  %v7674_v38 = vld [vmem:[#allocation6 + $0x1] sm:$0x1]  ;;  %v12083_v33 = vld [vmem:[%s18025_s5 + $0x50] sm:$0xff] }
 0x4a1   : > { %13960 = vmatprep.subr.mxu0 %v18535_v63  ;;  %13967 = vmatprep.subr.mxu1 %v18535_v63  ;;  %v12089_v12 = vld [vmem:[%s18025_s5 + $0x78] sm:$0xff] }
 0x4a2   : > { %13961 = vmatpush3.msra.mxu0 %v12120_v42  ;;  %13968 = vmatpush3.msra.mxu1 %v12125_v23  ;;  %v7327_v25 = vpop.f32.mrf.mxu1  ;;  %v12094_v42 = vld [vmem:[%s18025_s5 + $0x98] sm:$0xff] }
 0x4a3   : > { %13962 = vmatprep.mubr.msk.f32.mxu0 %vm14342_vm4, %v18535_v63  ;;  %13969 = vmatprep.mubr.msk.f32.mxu1 %vm14342_vm4, %v18535_v63  ;;  %v7755_v23 = vld [vmem:[#allocation6 + $0x3] sm:$0x1]  ;;  %v7836_v15 = vld [vmem:[#allocation6 + $0x5] sm:$0x1]  ;;  %v12093_v25 = vld [vmem:[%s18025_s5 + $0x90] sm:$0xff] }
 0x4a4   : > { %13972 = vmatprep.subr.mxu0 %v18535_v63  ;;  %13979 = vmatprep.subr.mxu1 %v18535_v63  ;;  %v13881_v16 = vpop.f32.mrf.mxu1  ;;  %v12134_v7 = vld [vmem:[%s18025_s5 + $0x198] sm:$0xff] }
 0x4a5   : > { %13963 = vmatmul.mubr.msk.f32.vlgmr.msra.gmra.mxu0 %vm3905_vm2, %v8407_v5  ;;  %13970 = vmatmul.mubr.msk.f32.vlgmr.msra.gmra.mxu1 %vm3905_vm2, %v8488_v35  ;;  %v7917_v5 = vld [vmem:[#allocation6 + $0x10] sm:$0x1]  ;;  %v7998_v35 = vld [vmem:[#allocation6 + $0x12] sm:$0x1]  ;;  %v12098_v16 = vld [vmem:[%s18025_s5 + $0xb0] sm:$0xff] }
 0x4a6   : > { %13973 = vmatpush3.msra.mxu0 %v12131_v61  ;;  %13980 = vmatpush3.msra.mxu1 %v12136_v40  ;;  %v7337_v20 = vpop.f32.mrf.mxu1  ;;  %v12099_v61 = vld [vmem:[%s18025_s5 + $0xb8] sm:$0xff] }
 0x4a7   : > { %13974 = vmatprep.subr.mxu0 %v18535_v63  ;;  %13981 = vmatprep.subr.mxu1 %v18535_v63  ;;  %v12104_v40 = vld [vmem:[%s18025_s5 + $0xd8] sm:$0xff]  ;;  %v8079_v20 = vld [vmem:[#allocation6 + $0x14] sm:$0x1] }
 0x4a8   : > { %13975 = vmatpush3.msra.mxu0 %v12130_v22  ;;  %13982 = vmatpush3.msra.mxu1 %v12135_v58  ;;  %v13884_v55 = vpop.f32.mrf.mxu1  ;;  %v12109_v22 = vld [vmem:[%s18025_s5 + $0xf8] sm:$0xff] }
 0x4a9   : > { %13976 = vmatprep.mubr.msk.f32.mxu0 %vm14342_vm4, %v18535_v63  ;;  %13983 = vmatprep.mubr.msk.f32.mxu1 %vm14342_vm4, %v18535_v63  ;;  %v12114_v58 = vld [vmem:[%s18025_s5 + $0x118] sm:$0xff]  ;;  %v8160_v55 = vld [vmem:[#allocation6 + $0x16] sm:$0x1] }
 0x4aa   : > { %13986 = vmatprep.subr.mxu0 %v18535_v63  ;;  %13993 = vmatprep.subr.mxu1 %v18535_v63  ;;  %v7347_v36 = vpop.f32.mrf.mxu1 }
 0x4ab   : > { %13977 = vmatmul.mubr.msk.f32.vlgmr.msra.gmra.mxu0 %vm3905_vm2, %v8569_v39  ;;  %13984 = vmatmul.mubr.msk.f32.vlgmr.msra.gmra.mxu1 %vm3905_vm2, %v8650_v27  ;;  %v12124_v39 = vld [vmem:[%s18025_s5 + $0x158] sm:$0xff] }
 0x4ac   : > { %13987 = vmatpush3.msra.mxu0 %v12141_v54  ;;  %13994 = vmatpush3.msra.mxu1 %v12146_v10  ;;  %v13887_v17 = vpop.f32.mrf.mxu1  ;;  %v12113_v54 = vld [vmem:[%s18025_s5 + $0x110] sm:$0xff]  ;;  %v12119_v10 = vld [vmem:[%s18025_s5 + $0x138] sm:$0xff] }
 0x4ad   : > { %13988 = vmatprep.subr.mxu0 %v18535_v63  ;;  %13995 = vmatprep.subr.mxu1 %v18535_v63  ;;  %v8241_v27 = vld [vmem:[#allocation6 + $0x21] sm:$0x1]  ;;  %v8322_v36 = vld [vmem:[#allocation6 + $0x23] sm:$0x1] }
 0x4ae   : > { %13989 = vmatpush3.msra.mxu0 %v12140_v26  ;;  %13996 = vmatpush3.msra.mxu1 %v12145_v29  ;;  %v7357_v51 = vpop.f32.mrf.mxu1  ;;  %v12118_v26 = vld [vmem:[%s18025_s5 + $0x130] sm:$0xff]  ;;  %v12129_v17 = vld [vmem:[%s18025_s5 + $0x178] sm:$0xff] }
 0x4af   : > { %13990 = vmatprep.mubr.msk.f32.mxu0 %vm14342_vm4, %v18535_v63  ;;  %13997 = vmatprep.mubr.msk.f32.mxu1 %vm14342_vm4, %v18535_v63  ;;  %v12123_v29 = vld [vmem:[%s18025_s5 + $0x150] sm:$0xff]  ;;  %v8403_v51 = vld [vmem:[#allocation6 + $0x25] sm:$0x1] }
 0x4b0   : > { %14000 = vmatprep.subr.mxu0 %v18535_v63  ;;  %14007 = vmatprep.subr.mxu1 %v18535_v63 }
 0x4b1   : > { %13991 = vmatmul.mubr.msk.f32.vlgmr.msra.gmra.mxu0 %vm3905_vm2, %v8731_v19  ;;  %13998 = vmatmul.mubr.msk.f32.vlgmr.msra.gmra.mxu1 %vm3905_vm2, %v8812_v52  ;;  %v12133_v19 = vld [vmem:[%s18025_s5 + $0x190] sm:$0xff]  ;;  %v12139_v52 = vld [vmem:[%s18025_s5 + $0x1b8] sm:$0xff] }
 0x4b2   : > { %14001 = vmatpush3.msra.mxu0 %v12151_v31  ;;  %14008 = vmatpush3.msra.mxu1 %v12156_v32  ;;  %v8484_v31 = vld [vmem:[#allocation6 + $0x30] sm:$0x1]  ;;  %v12128_v32 = vld [vmem:[%s18025_s5 + $0x170] sm:$0xff] }
 0x4b3   : > { %14002 = vmatprep.subr.mxu0 %v18535_v63  ;;  %14009 = vmatprep.subr.mxu1 %v18535_v63 }
 0x4b4   : > { %14003 = vmatpush3.msra.mxu0 %v12150_v45  ;;  %14010 = vmatpush3.msra.mxu1 %v12155_v11  ;;  %v12144_v45 = vld [vmem:[%s18025_s5 + $0x1d8] sm:$0xff]  ;;  %v8565_v11 = vld [vmem:[#allocation6 + $0x32] sm:$0x1] }
 0x4b5   : > { %14004 = vmatprep.mubr.msk.f32.mxu0 %vm14342_vm4, %v18535_v63  ;;  %14011 = vmatprep.mubr.msk.f32.mxu1 %vm14342_vm4, %v18535_v63 }
 0x4b6   : > { %14014 = vmatprep.subr.mxu0 %v18535_v63  ;;  %14021 = vmatprep.subr.mxu1 %v18535_v63 }
 0x4b7   : > { %14005 = vmatmul.mubr.msk.f32.vlgmr.msra.gmra.mxu0 %vm3905_vm2, %v8893_v2  ;;  %14012 = vmatmul.mubr.msk.f32.vlgmr.msra.gmra.mxu1 %vm3905_vm2, %v8974_v46  ;;  %v12143_v2 = vld [vmem:[%s18025_s5 + $0x1d0] sm:$0xff]  ;;  %v12149_v46 = vld [vmem:[%s18025_s5 + $0x1f8] sm:$0xff] }
 0x4b8   : > { %14015 = vmatpush3.msra.mxu0 %v12161_v28  ;;  %14022 = vmatpush3.msra.mxu1 %v12166_v1  ;;  %v8646_v28 = vld [vmem:[#allocation6 + $0x34] sm:$0x1]  ;;  %v12138_v1 = vld [vmem:[%s18025_s5 + $0x1b0] sm:$0xff] }
 0x4b9   : > { %14016 = vmatprep.subr.mxu0 %v18535_v63  ;;  %14023 = vmatprep.subr.mxu1 %v18535_v63 }
 0x4ba   : > { %14017 = vmatpush3.msra.mxu0 %v12160_v56  ;;  %14024 = vmatpush3.msra.mxu1 %v12165_v8  ;;  %v12154_v56 = vld [vmem:[%s18025_s5 + $0x218] sm:$0xff]  ;;  %v8727_v8 = vld [vmem:[#allocation6 + $0x36] sm:$0x1] }
 0x4bb   : > { %14018 = vmatprep.mubr.msk.f32.mxu0 %vm14342_vm4, %v18535_v63  ;;  %14025 = vmatprep.mubr.msk.f32.mxu1 %vm14342_vm4, %v18535_v63 }
 0x4bc   : > { %14028 = vmatprep.subr.mxu0 %v18535_v63  ;;  %14035 = vmatprep.subr.mxu1 %v18535_v63 }
 0x4bd   : > { %14019 = vmatmul.mubr.msk.f32.vlgmr.msra.gmra.mxu0 %vm3905_vm2, %v9055_v9  ;;  %14026 = vmatmul.mubr.msk.f32.vlgmr.msra.gmra.mxu1 %vm3905_vm2, %v9136_v49  ;;  %v12153_v9 = vld [vmem:[%s18025_s5 + $0x210] sm:$0xff]  ;;  %v12159_v49 = vld [vmem:[%s18025_s5 + $0x238] sm:$0xff] }
 0x4be   : > { %14029 = vmatpush3.msra.mxu0 %v12171_v57  ;;  %14036 = vmatpush3.msra.mxu1 %v12176_v62  ;;  %v8808_v57 = vld [vmem:[#allocation6 + $0x41] sm:$0x1]  ;;  %v12148_v62 = vld [vmem:[%s18025_s5 + $0x1f0] sm:$0xff] }
 0x4bf   : > { %14030 = vmatprep.subr.mxu0 %v18535_v63  ;;  %14037 = vmatprep.subr.mxu1 %v18535_v63 }
 0x4c0   : > { %14031 = vmatpush3.msra.mxu0 %v12170_v14  ;;  %14038 = vmatpush3.msra.mxu1 %v12175_v30  ;;  %v12164_v14 = vld [vmem:[%s18025_s5 + $0x258] sm:$0xff] }
 0x4c1   : > { %14032 = vmatprep.mubr.msk.f32.mxu0 %vm14342_vm4, %v18535_v63  ;;  %14039 = vmatprep.mubr.msk.f32.mxu1 %vm14342_vm4, %v18535_v63  ;;  %v8889_v30 = vld [vmem:[#allocation6 + $0x43] sm:$0x1] }
 0x4c2   : > { %14042 = vmatprep.subr.mxu0 %v18535_v63  ;;  %14049 = vmatprep.subr.mxu1 %v18535_v63 }
 0x4c3   : > { %14033 = vmatmul.mubr.msk.f32.vlgmr.msra.gmra.mxu0 %vm3905_vm2, %v9217_v6  ;;  %14040 = vmatmul.mubr.msk.f32.vlgmr.msra.gmra.mxu1 %vm3905_vm2, %v9298_v60  ;;  %v12163_v6 = vld [vmem:[%s18025_s5 + $0x250] sm:$0xff]  ;;  %v12169_v60 = vld [vmem:[%s18025_s5 + $0x278] sm:$0xff] }
 0x4c4   : > { %14043 = vmatpush3.msra.mxu0 %v12181_v37  ;;  %14050 = vmatpush3.msra.mxu1 %v12186_v13  ;;  %v8970_v37 = vld [vmem:[#allocation6 + $0x45] sm:$0x1]  ;;  %v12158_v13 = vld [vmem:[%s18025_s5 + $0x230] sm:$0xff] }
 0x4c5   : > { %14044 = vmatprep.subr.mxu0 %v18535_v63  ;;  %14051 = vmatprep.subr.mxu1 %v18535_v63 }
 0x4c6   : > { %14045 = vmatpush3.msra.mxu0 %v12180_v21  ;;  %14052 = vmatpush3.msra.mxu1 %v12185_v53  ;;  %v12174_v21 = vld [vmem:[%s18025_s5 + $0x298] sm:$0xff]  ;;  %v9051_v53 = vld [vmem:[#allocation6 + $0x50] sm:$0x1] }
 0x4c7   : > { %14046 = vmatprep.mubr.msk.f32.mxu0 %vm14342_vm4, %v18535_v63  ;;  %14053 = vmatprep.mubr.msk.f32.mxu1 %vm14342_vm4, %v18535_v63 }
 0x4c8   : > { %14056 = vmatprep.subr.mxu0 %v18535_v63  ;;  %14063 = vmatprep.subr.mxu1 %v18535_v63 }
 0x4c9   : > { %14047 = vmatmul.mubr.msk.f32.vlgmr.msra.gmra.mxu0 %vm3905_vm2, %v9379_v50  ;;  %14054 = vmatmul.mubr.msk.f32.vlgmr.msra.gmra.mxu1 %vm3905_vm2, %v9460_v0  ;;  %v12173_v50 = vld [vmem:[%s18025_s5 + $0x290] sm:$0xff]  ;;  %v12179_v0 = vld [vmem:[%s18025_s5 + $0x2b8] sm:$0xff] }
 0x4ca   : > { %14057 = vmatpush3.msra.mxu0 %v12191_v44  ;;  %14064 = vmatpush3.msra.mxu1 %v12074_v34  ;;  %v9132_v44 = vld [vmem:[#allocation6 + $0x52] sm:$0x1]  ;;  %v12168_v34 = vld [vmem:[%s18025_s5 + $0x270] sm:$0xff] }
 0x4cb   : > { %14058 = vmatprep.subr.mxu0 %v18535_v63  ;;  %14065 = vmatprep.subr.mxu1 %v18535_v63 }
 0x4cc   : > { %14059 = vmatpush3.msra.mxu0 %v12190_v3  ;;  %14066 = vmatpush3.msra.mxu1 %v12073_v43  ;;  %v12184_v3 = vld [vmem:[%s18025_s5 + $0x2d8] sm:$0xff]  ;;  %v9213_v43 = vld [vmem:[#allocation6 + $0x54] sm:$0x1] }
 0x4cd   : > { %14060 = vmatprep.mubr.msk.f32.mxu0 %vm14342_vm4, %v18535_v63  ;;  %14067 = vmatprep.mubr.msk.f32.mxu1 %vm14342_vm4, %v18535_v63 }
 0x4ce   : > { %14070 = vmatprep.subr.mxu0 %v18535_v63  ;;  %14077 = vmatprep.subr.mxu1 %v18535_v63 }
 0x4cf   : > { %14061 = vmatmul.mubr.msk.f32.vlgmr.msra.gmra.mxu0 %vm3905_vm2, %v9541_v48  ;;  %14068 = vmatmul.mubr.msk.f32.vlgmr.msra.gmra.mxu1 %vm3905_vm2, %v7674_v38  ;;  %v12183_v48 = vld [vmem:[%s18025_s5 + $0x2d0] sm:$0xff]  ;;  %v9375_v38 = vld [vmem:[#allocation6 + $0x61] sm:$0x1] }
 0x4d0   : > { %14071 = vmatpush3.msra.mxu0 %v12079_v4  ;;  %14078 = vmatpush3.msra.mxu1 %v12084_v18  ;;  %v9294_v4 = vld [vmem:[#allocation6 + $0x56] sm:$0x1]  ;;  %v12178_v18 = vld [vmem:[%s18025_s5 + $0x2b0] sm:$0xff] }
 0x4d1   : > { %14072 = vmatprep.subr.mxu0 %v18535_v63  ;;  %14079 = vmatprep.subr.mxu1 %v18535_v63 }
 0x4d2   : > { %14073 = vmatpush3.msra.mxu0 %v12078_v59  ;;  %14080 = vmatpush3.msra.mxu1 %v12083_v33  ;;  %v9456_v59 = vld [vmem:[#allocation6 + $0x63] sm:$0x1] }
 0x4d3   : > { %14074 = vmatprep.mubr.msk.f32.mxu0 %vm14342_vm4, %v18535_v63  ;;  %14081 = vmatprep.mubr.msk.f32.mxu1 %vm14342_vm4, %v18535_v63  ;;  %v12189_v33 = vld [vmem:[%s18025_s5 + $0x2f8] sm:$0xff] }
 0x4d4   : > { %14084 = vmatprep.subr.mxu0 %v18535_v63  ;;  %14091 = vmatprep.subr.mxu1 %v18535_v63 }
 0x4d5   : > { %14075 = vmatmul.mubr.msk.f32.vlgmr.msra.gmra.mxu0 %vm3905_vm2, %v7755_v23  ;;  %14082 = vmatmul.mubr.msk.f32.vlgmr.msra.gmra.mxu1 %vm3905_vm2, %v7836_v15 }
 0x4d6   : > { %14085 = vmatpush3.msra.mxu0 %v12089_v12  ;;  %14092 = vmatpush3.msra.mxu1 %v12094_v42  ;;  %v12188_v12 = vld [vmem:[%s18025_s5 + $0x2f0] sm:$0xff]  ;;  %v9537_v42 = vld [vmem:[#allocation6 + $0x65] sm:$0x1] }
 0x4d7   : > { %14086 = vmatprep.subr.mxu0 %v18535_v63  ;;  %14093 = vmatprep.subr.mxu1 %v18535_v63 }
 0x4d8   : > { %14087 = vmatpush3.msra.mxu0 %v12088_v41  ;;  %14094 = vmatpush3.msra.mxu1 %v12093_v25 }
 0x4d9   : > { %14088 = vmatprep.mubr.msk.f32.mxu0 %vm14342_vm4, %v18535_v63  ;;  %14095 = vmatprep.mubr.msk.f32.mxu1 %vm14342_vm4, %v18535_v63 }
 0x4da   : > { %14098 = vmatprep.subr.mxu0 %v18535_v63  ;;  %14105 = vmatprep.subr.mxu1 %v18535_v63 }
 0x4db   : > { %14089 = vmatmul.mubr.msk.f32.vlgmr.msra.gmra.mxu0 %vm3905_vm2, %v7917_v5  ;;  %14096 = vmatmul.mubr.msk.f32.vlgmr.msra.gmra.mxu1 %vm3905_vm2, %v7998_v35 }
 0x4dc   : > { %14099 = vmatpush3.msra.mxu0 %v12099_v61  ;;  %14106 = vmatpush3.msra.mxu1 %v12104_v40 }
 0x4dd   : > { %14100 = vmatprep.subr.mxu0 %v18535_v63  ;;  %14107 = vmatprep.subr.mxu1 %v18535_v63 }
 0x4de   : > { %14101 = vmatpush3.msra.mxu0 %v12098_v16  ;;  %14108 = vmatpush3.msra.mxu1 %v12103_v47 }
 0x4df   : > { %14102 = vmatprep.mubr.msk.f32.mxu0 %vm14342_vm4, %v18535_v63  ;;  %14109 = vmatprep.mubr.msk.f32.mxu1 %vm14342_vm4, %v18535_v63 }
 0x4e0   : > { %14112 = vmatprep.subr.mxu0 %v18535_v63  ;;  %14119 = vmatprep.subr.mxu1 %v18535_v63 }
 0x4e1   : > { %14103 = vmatmul.mubr.msk.f32.vlgmr.msra.gmra.mxu0 %vm3905_vm2, %v8079_v20  ;;  %14110 = vmatmul.mubr.msk.f32.vlgmr.msra.gmra.mxu1 %vm3905_vm2, %v8160_v55 }
 0x4e2   : > { %14113 = vmatpush3.msra.mxu0 %v12109_v22  ;;  %14120 = vmatpush3.msra.mxu1 %v12114_v58 }
 0x4e3   : > { %14114 = vmatprep.subr.mxu0 %v18535_v63  ;;  %14121 = vmatprep.subr.mxu1 %v18535_v63 }
 0x4e4   : > { %14115 = vmatpush3.msra.mxu0 %v12108_v24  ;;  %14122 = vmatpush3.msra.mxu1 %v12113_v54 }
 0x4e5   : > { %14116 = vmatprep.mubr.msk.f32.mxu0 %vm14342_vm4, %v18535_v63  ;;  %14123 = vmatprep.mubr.msk.f32.mxu1 %vm14342_vm4, %v18535_v63 }
 0x4e6   : > { %14126 = vmatprep.subr.mxu0 %v18535_v63  ;;  %14133 = vmatprep.subr.mxu1 %v18535_v63 }
 0x4e7   : > { %14117 = vmatmul.mubr.msk.f32.vlgmr.msra.gmra.mxu0 %vm3905_vm2, %v8241_v27  ;;  %14124 = vmatmul.mubr.msk.f32.vlgmr.msra.gmra.mxu1 %vm3905_vm2, %v8322_v36 }
 0x4e8   : > { %14127 = vmatpush3.msra.mxu0 %v12119_v10  ;;  %14134 = vmatpush3.msra.mxu1 %v12124_v39 }
 0x4e9   : > { %14128 = vmatprep.subr.mxu0 %v18535_v63  ;;  %14135 = vmatprep.subr.mxu1 %v18535_v63 }
 0x4ea   : > { %14129 = vmatpush3.msra.mxu0 %v12118_v26  ;;  %14136 = vmatpush3.msra.mxu1 %v12123_v29 }
 0x4eb   : > { %14130 = vmatprep.mubr.msk.f32.mxu0 %vm14342_vm4, %v18535_v63  ;;  %14137 = vmatprep.mubr.msk.f32.mxu1 %vm14342_vm4, %v18535_v63 }
 0x4ec   : > { %14140 = vmatprep.subr.mxu0 %v18535_v63  ;;  %14147 = vmatprep.subr.mxu1 %v18535_v63 }
 0x4ed   : > { %14131 = vmatmul.mubr.msk.f32.vlgmr.msra.gmra.mxu0 %vm3905_vm2, %v8403_v51  ;;  %14138 = vmatmul.mubr.msk.f32.vlgmr.msra.gmra.mxu1 %vm3905_vm2, %v8484_v31 }
 0x4ee   : > { %14141 = vmatpush3.msra.mxu0 %v12129_v17  ;;  %14148 = vmatpush3.msra.mxu1 %v12134_v7 }
 0x4ef   : > { %14142 = vmatprep.subr.mxu0 %v18535_v63  ;;  %14149 = vmatprep.subr.mxu1 %v18535_v63 }
 0x4f0   : > { %14143 = vmatpush3.msra.mxu0 %v12128_v32  ;;  %14150 = vmatpush3.msra.mxu1 %v12133_v19 }
 0x4f1   : > { %14144 = vmatprep.mubr.msk.f32.mxu0 %vm14342_vm4, %v18535_v63  ;;  %14151 = vmatprep.mubr.msk.f32.mxu1 %vm14342_vm4, %v18535_v63 }
 0x4f2   : > { %14154 = vmatprep.subr.mxu0 %v18535_v63  ;;  %14161 = vmatprep.subr.mxu1 %v18535_v63 }
 0x4f3   : > { %14145 = vmatmul.mubr.msk.f32.vlgmr.msra.gmra.mxu0 %vm3905_vm2, %v8565_v11  ;;  %14152 = vmatmul.mubr.msk.f32.vlgmr.msra.gmra.mxu1 %vm3905_vm2, %v8646_v28 }
 0x4f4   : > { %14155 = vmatpush3.msra.mxu0 %v12139_v52  ;;  %14162 = vmatpush3.msra.mxu1 %v12144_v45 }
 0x4f5   : > { %14156 = vmatprep.subr.mxu0 %v18535_v63  ;;  %14163 = vmatprep.subr.mxu1 %v18535_v63 }
 0x4f6   : > { %14157 = vmatpush3.msra.mxu0 %v12138_v1  ;;  %14164 = vmatpush3.msra.mxu1 %v12143_v2 }
 0x4f7   : > { %14158 = vmatprep.mubr.msk.f32.mxu0 %vm14342_vm4, %v18535_v63  ;;  %14165 = vmatprep.mubr.msk.f32.mxu1 %vm14342_vm4, %v18535_v63 }
 0x4f8   : > { %14168 = vmatprep.subr.mxu0 %v18535_v63  ;;  %14175 = vmatprep.subr.mxu1 %v18535_v63 }
 0x4f9   : > { %14159 = vmatmul.mubr.msk.f32.vlgmr.msra.gmra.mxu0 %vm3905_vm2, %v8727_v8  ;;  %14166 = vmatmul.mubr.msk.f32.vlgmr.msra.gmra.mxu1 %vm3905_vm2, %v8808_v57 }
 0x4fa   : > { %14169 = vmatpush3.msra.mxu0 %v12149_v46  ;;  %14176 = vmatpush3.msra.mxu1 %v12154_v56 }
 0x4fb   : > { %14170 = vmatprep.subr.mxu0 %v18535_v63  ;;  %14177 = vmatprep.subr.mxu1 %v18535_v63 }
 0x4fc   : > { %14171 = vmatpush3.msra.mxu0 %v12148_v62  ;;  %14178 = vmatpush3.msra.mxu1 %v12153_v9 }
 0x4fd   : > { %14172 = vmatprep.mubr.msk.f32.mxu0 %vm14342_vm4, %v18535_v63  ;;  %14179 = vmatprep.mubr.msk.f32.mxu1 %vm14342_vm4, %v18535_v63 }
 0x4fe   : > { %14182 = vmatprep.subr.mxu0 %v18535_v63  ;;  %14189 = vmatprep.subr.mxu1 %v18535_v63 }
 0x4ff   : > { %14173 = vmatmul.mubr.msk.f32.vlgmr.msra.gmra.mxu0 %vm3905_vm2, %v8889_v30  ;;  %14180 = vmatmul.mubr.msk.f32.vlgmr.msra.gmra.mxu1 %vm3905_vm2, %v8970_v37 }
 0x500   : > { %14183 = vmatpush3.msra.mxu0 %v12159_v49  ;;  %14190 = vmatpush3.msra.mxu1 %v12164_v14 }
 0x501   : > { %14184 = vmatprep.subr.mxu0 %v18535_v63  ;;  %14191 = vmatprep.subr.mxu1 %v18535_v63 }
 0x502   : > { %14185 = vmatpush3.msra.mxu0 %v12158_v13  ;;  %14192 = vmatpush3.msra.mxu1 %v12163_v6 }
 0x503   : > { %14186 = vmatprep.mubr.msk.f32.mxu0 %vm14342_vm4, %v18535_v63  ;;  %14193 = vmatprep.mubr.msk.f32.mxu1 %vm14342_vm4, %v18535_v63 }
 0x504   : > { %14196 = vmatprep.subr.mxu0 %v18535_v63  ;;  %14203 = vmatprep.subr.mxu1 %v18535_v63 }
 0x505   : > { %14187 = vmatmul.mubr.msk.f32.vlgmr.msra.gmra.mxu0 %vm3905_vm2, %v9051_v53  ;;  %14194 = vmatmul.mubr.msk.f32.vlgmr.msra.gmra.mxu1 %vm3905_vm2, %v9132_v44 }
 0x506   : > { %14197 = vmatpush3.msra.mxu0 %v12169_v60  ;;  %14204 = vmatpush3.msra.mxu1 %v12174_v21  ;;  %v7597_v21 = vld [vmem:[%s18026_s6] sm:$0x1] }
 0x507   : > { %14198 = vmatprep.subr.mxu0 %v18535_v63  ;;  %14205 = vmatprep.subr.mxu1 %v18535_v63 }
 0x508   : > { %14199 = vmatpush3.msra.mxu0 %v12168_v34  ;;  %14206 = vmatpush3.msra.mxu1 %v12173_v50 }
 0x509   : > { %14200 = vmatprep.mubr.msk.f32.mxu0 %vm14342_vm4, %v18535_v63  ;;  %14207 = vmatprep.mubr.msk.f32.mxu1 %vm14342_vm4, %v18535_v63 }
 0x50a   : > { %14210 = vmatprep.subr.mxu0 %v18535_v63  ;;  %14217 = vmatprep.subr.mxu1 %v18535_v63 }
 0x50b   : > { %14201 = vmatmul.mubr.msk.f32.vlgmr.msra.gmra.mxu0 %vm3905_vm2, %v9213_v43  ;;  %14208 = vmatmul.mubr.msk.f32.vlgmr.msra.gmra.mxu1 %vm3905_vm2, %v9294_v4 }
 0x50c   : > { %14211 = vmatpush3.msra.mxu0 %v12179_v0  ;;  %14218 = vmatpush3.msra.mxu1 %v12184_v3 }
 0x50d   : > { %14212 = vmatprep.subr.mxu0 %v18535_v63  ;;  %14219 = vmatprep.subr.mxu1 %v18535_v63 }
 0x50e   : > { %14213 = vmatpush3.msra.mxu0 %v12178_v18  ;;  %14220 = vmatpush3.msra.mxu1 %v12183_v48 }
 0x50f   : > { %14214 = vmatprep.mubr.msk.f32.mxu0 %vm14342_vm4, %v18535_v63  ;;  %14221 = vmatprep.mubr.msk.f32.mxu1 %vm14342_vm4, %v18535_v63 }
 0x510   : > { %14215 = vmatmul.mubr.msk.f32.vlgmr.msra.gmra.mxu0 %vm3905_vm2, %v9375_v38  ;;  %14222 = vmatmul.mubr.msk.f32.vlgmr.msra.gmra.mxu1 %vm3905_vm2, %v9456_v59 }
 0x511   : > { %14224 = vmatprep.subr.mxu0 %v18535_v63  ;;  %14228 = vmatprep.mubr.msk.f32.mxu0 %vm14342_vm4, %v18535_v63 }
 0x512   : > { %14225 = vmatpush3.msra.mxu0 %v12189_v33 }
 0x513   : > { %14226 = vmatprep.subr.mxu0 %v18535_v63 }
 0x514   : > { %14227 = vmatpush3.msra.mxu0 %v12188_v12 }
 0x515   : > { %14229 = vmatmul.mubr.msk.f32.vlgmr.msra.gmra.mxu0 %vm3905_vm2, %v9537_v42 }
 0x547   : > { %v7670_v23 = vpop.f32.mrf.mxu0  ;;  %v7751_v15 = vpop.f32.mrf.mxu1 }
 0x548   : > { %v9618_v34 = vadd.f32 %v7670_v23, %v7597_v21 }
 0x549   : > { %v13894_v41 = vpop.f32.mrf.mxu0  ;;  %v13901_v25 = vpop.f32.mrf.mxu1 }
 0x54d   : > { %v17911_v61 = vpop.f32.mrf.mxu0  ;;  %v17913_v40 = vpop.f32.mrf.mxu1 }
 0x54f   : > { %v13908_v5 = vpop.f32.mrf.mxu0  ;;  %v13915_v35 = vpop.f32.mrf.mxu1 }
 0x553   : > { %v17915_v16 = vpop.f32.mrf.mxu0  ;;  %v17917_v47 = vpop.f32.mrf.mxu1 }
 0x555   : > { %v13922_v22 = vpop.f32.mrf.mxu0  ;;  %v13929_v63 = vpop.f32.mrf.mxu1 }
 0x559   : > { %v17919_v58 = vpop.f32.mrf.mxu0  ;;  %v17921_v20 = vpop.f32.mrf.mxu1 }
 0x55b   : > { %v13936_v55 = vpop.f32.mrf.mxu0  ;;  %v13943_v24 = vpop.f32.mrf.mxu1 }
 0x55f   : > { %v17923_v54 = vpop.f32.mrf.mxu0  ;;  %v17925_v10 = vpop.f32.mrf.mxu1 }
 0x561   : > { %v13950_v39 = vpop.f32.mrf.mxu0  ;;  %v13957_v27 = vpop.f32.mrf.mxu1 }
 0x565   : > { %v17927_v36 = vpop.f32.mrf.mxu0  ;;  %v17929_v26 = vpop.f32.mrf.mxu1 }
 0x567   : > { %v13964_v29 = vpop.f32.mrf.mxu0  ;;  %v13971_v17 = vpop.f32.mrf.mxu1 }
 0x56b   : > { %v17931_v7 = vpop.f32.mrf.mxu0  ;;  %v17933_v51 = vpop.f32.mrf.mxu1 }
 0x56d   : > { %v13978_v31 = vpop.f32.mrf.mxu0  ;;  %v13985_v32 = vpop.f32.mrf.mxu1 }
 0x571   : > { %v17935_v19 = vpop.f32.mrf.mxu0  ;;  %v17937_v52 = vpop.f32.mrf.mxu1 }
 0x573   : > { %v13992_v45 = vpop.f32.mrf.mxu0  ;;  %v13999_v11 = vpop.f32.mrf.mxu1 }
 0x577   : > { %v17939_v28 = vpop.f32.mrf.mxu0  ;;  %v17941_v1 = vpop.f32.mrf.mxu1 }
 0x579   : > { %v14006_v2 = vpop.f32.mrf.mxu0  ;;  %v14013_v46 = vpop.f32.mrf.mxu1 }
 0x57d   : > { %v17943_v56 = vpop.f32.mrf.mxu0  ;;  %v17945_v8 = vpop.f32.mrf.mxu1 }
 0x57f   : > { %v14020_v57 = vpop.f32.mrf.mxu0  ;;  %v14027_v62 = vpop.f32.mrf.mxu1 }
 0x583   : > { %v17947_v9 = vpop.f32.mrf.mxu0  ;;  %v17949_v49 = vpop.f32.mrf.mxu1 }
 0x585   : > { %v14034_v14 = vpop.f32.mrf.mxu0  ;;  %v14041_v30 = vpop.f32.mrf.mxu1 }
 0x589   : > { %v17951_v37 = vpop.f32.mrf.mxu0  ;;  %v17953_v13 = vpop.f32.mrf.mxu1 }
 0x58b   : > { %v14048_v6 = vpop.f32.mrf.mxu0  ;;  %v14055_v60 = vpop.f32.mrf.mxu1 }
 0x58f   : > { %v17958_v53 = vpop.f32.mrf.mxu0  ;;  %v9688_v44 = vpop.f32.mrf.mxu1 }
 0x590   : > { %v9689_v50 = vadd.f32 %v9688_v44, %v7751_v15 }
 0x591   : > { %v14062_v0 = vpop.f32.mrf.mxu0  ;;  %v14069_v3 = vpop.f32.mrf.mxu1 }
 0x592   : > { %v17960_v43 = vadd.f32 %v9689_v50, %v9618_v34 }
 0x595   : > { %v9761_v4 = vpop.f32.mrf.mxu0  ;;  %v9834_v18 = vpop.f32.mrf.mxu1 }
 0x597   : > { %v14076_v48 = vpop.f32.mrf.mxu0  ;;  %v14083_v38 = vpop.f32.mrf.mxu1 }
 0x59b   : > { %v9907_v59 = vpop.f32.mrf.mxu0  ;;  %v9980_v33 = vpop.f32.mrf.mxu1 }
 0x59d   : > { %v14090_v12 = vpop.f32.mrf.mxu0  ;;  %v14097_v42 = vpop.f32.mrf.mxu1 }
 0x5a1   : > { %v10053_v41 = vpop.f32.mrf.mxu0  ;;  %v10126_v25 = vpop.f32.mrf.mxu1 }
 0x5a2   : > { %v10054_v34 = vadd.f32 %v10053_v41, %v17919_v58  ;;  %v10127_v50 = vadd.f32 %v10126_v25, %v17921_v20  ;;  %v9908_v20 = vadd.f32 %v9907_v59, %v17915_v16 }
 0x5a3   : > { %v14104_v5 = vpop.f32.mrf.mxu0  ;;  %v14111_v35 = vpop.f32.mrf.mxu1 }
 0x5a4   : > { %v9762_v5 = vadd.f32 %v9761_v4, %v17911_v61  ;;  %v9835_v35 = vadd.f32 %v9834_v18, %v17913_v40  ;;  %v11374_v61 = vadd.f32 %v10127_v50, %v10054_v34 }
 0x5a7   : > { %v10199_v22 = vpop.f32.mrf.mxu0  ;;  %v10272_v63 = vpop.f32.mrf.mxu1 }
 0x5a9   : > { %v14118_v23 = vpop.f32.mrf.mxu0  ;;  %v14125_v15 = vpop.f32.mrf.mxu1 }
 0x5ad   : > { %v10345_v55 = vpop.f32.mrf.mxu0  ;;  %v10418_v24 = vpop.f32.mrf.mxu1 }
 0x5ae   : > { %v10346_v48 = vadd.f32 %v10345_v55, %v17927_v36  ;;  %v10419_v38 = vadd.f32 %v10418_v24, %v17929_v26  ;;  %v10273_v36 = vadd.f32 %v10272_v63, %v17925_v10  ;;  %v11372_v10 = vadd.f32 %v9835_v35, %v9762_v5 }
 0x5af   : > { %v14132_v39 = vpop.f32.mrf.mxu0  ;;  %v14139_v27 = vpop.f32.mrf.mxu1 }
 0x5b0   : > { %v11376_v4 = vadd.f32 %v10419_v38, %v10346_v48 }
 0x5b3   : > { %v10491_v29 = vpop.f32.mrf.mxu0  ;;  %v10564_v17 = vpop.f32.mrf.mxu1 }
 0x5b4   : > { %v10492_v12 = vadd.f32 %v10491_v29, %v17931_v7  ;;  %v10565_v42 = vadd.f32 %v10564_v17, %v17933_v51  ;;  %v11383_v29 = vadd.f32 %v11372_v10, %v17960_v43 }
 0x5b5   : > { %v14146_v31 = vpop.f32.mrf.mxu0  ;;  %v14153_v32 = vpop.f32.mrf.mxu1 }
 0x5b6   : > { %v11377_v40 = vadd.f32 %v10565_v42, %v10492_v12 }
 0x5b9   : > { %v10637_v45 = vpop.f32.mrf.mxu0  ;;  %v10710_v11 = vpop.f32.mrf.mxu1 }
 0x5ba   : > { %v10638_v0 = vadd.f32 %v10637_v45, %v17935_v19  ;;  %v10711_v3 = vadd.f32 %v10710_v11, %v17937_v52  ;;  %v9981_v19 = vadd.f32 %v9980_v33, %v17917_v47  ;;  %v10200_v52 = vadd.f32 %v10199_v22, %v17923_v54 }
 0x5bb   : > { %v14160_v2 = vpop.f32.mrf.mxu0  ;;  %v14167_v46 = vpop.f32.mrf.mxu1 }
 0x5bc   : > { %v11378_v41 = vadd.f32 %v10711_v3, %v10638_v0  ;;  %v11373_v59 = vadd.f32 %v9981_v19, %v9908_v20  ;;  %v11375_v33 = vadd.f32 %v10273_v36, %v10200_v52 }
 0x5be   : > { %v11384_v24 = vadd.f32 %v11374_v61, %v11373_v59 }
 0x5bf   : > { %v10783_v57 = vpop.f32.mrf.mxu0  ;;  %v10856_v62 = vpop.f32.mrf.mxu1 }
 0x5c0   : > { %v10784_v18 = vadd.f32 %v10783_v57, %v17939_v28  ;;  %v10857_v16 = vadd.f32 %v10856_v62, %v17941_v1  ;;  %v11385_v1 = vadd.f32 %v11376_v4, %v11375_v33  ;;  %v11389_v11 = vadd.f32 %v11384_v24, %v11383_v29 }
 0x5c1   : > { %v14174_v14 = vpop.f32.mrf.mxu0  ;;  %v14181_v30 = vpop.f32.mrf.mxu1 }
 0x5c5   : > { %v10929_v6 = vpop.f32.mrf.mxu0  ;;  %v11002_v60 = vpop.f32.mrf.mxu1 }
 0x5c6   : > { %v10930_v26 = vadd.f32 %v10929_v6, %v17943_v56  ;;  %v11003_v7 = vadd.f32 %v11002_v60, %v17945_v8  ;;  %v11386_v8 = vadd.f32 %v11378_v41, %v11377_v40 }
 0x5c7   : > { %v14188_v21 = vpop.f32.mrf.mxu0  ;;  %v14195_v44 = vpop.f32.mrf.mxu1 }
 0x5c8   : > { %v11380_v63 = vadd.f32 %v11003_v7, %v10930_v26  ;;  %v11390_v17 = vadd.f32 %v11386_v8, %v11385_v1 }
 0x5ca   : > { %v11392_v46 = vadd.f32 %v11390_v17, %v11389_v11 }
 0x5cb   : > { %v11075_v23 = vpop.f32.mrf.mxu0  ;;  %v11148_v58 = vpop.f32.mrf.mxu1 }
 0x5cc   : > { %v11076_v47 = vadd.f32 %v11075_v23, %v17947_v9  ;;  %v11149_v54 = vadd.f32 %v11148_v58, %v17949_v49  ;;  %v11379_v9 = vadd.f32 %v10857_v16, %v10784_v18 }
 0x5cd   : > { %v14202_v51 = vpop.f32.mrf.mxu0  ;;  %v14209_v25 = vpop.f32.mrf.mxu1 }
 0x5ce   : > { %v11381_v27 = vadd.f32 %v11149_v54, %v11076_v47  ;;  %v11387_v31 = vadd.f32 %v11380_v63, %v11379_v9 }
 0x5d0   : > { %v11221_v56 = vpop.f32.mrf.mxu0  ;;  %v11294_v22 = vpop.f32.mrf.mxu1 }
 0x5d1   : > { %v11222_v15 = vadd.f32 %v11221_v56, %v17951_v37  ;;  %v11295_v55 = vadd.f32 %v11294_v22, %v17953_v13 }
 0x5d2   : > { %v14216_v28 = vpop.f32.mrf.mxu0  ;;  %v14223_v39 = vpop.f32.mrf.mxu1 }
 0x5d3   : > { %v11382_v49 = vadd.f32 %v11295_v55, %v11222_v15 }
 0x5d5   : > { %v11388_v32 = vadd.f32 %v11382_v49, %v11381_v27  ;;  %v11367_v45 = vpop.f32.mrf.mxu0 }
 0x5d6   : > { %v11368_v37 = vadd.f32 %v11367_v45, %v17958_v53 }
 0x5d7   : > { %v11391_v13 = vadd.f32 %v11388_v32, %v11387_v31  ;;  %v14230_v2 = vpop.f32.mrf.mxu0 }
 0x5d9   : > { %v11393_v57 = vadd.f32 %v11391_v13, %v11368_v37 }
 0x5db   : > { %v11394_v62 = vadd.f32 %v11393_v57, %v11392_v46 }
 0x5dd   : > { %11396 = vst.msk [vmem:[%s270_s9] sm:$0x1] %vm11395_vm5, %v11394_v62 }
 0x5de   : > { %14291 = shalt.err (!%p14288_p3)
}
 0x5df   : > { %s14292_s21 = scalar_lea.hbm %s11408_s16, 16  ;;  %s14296_s29 = scalar_lea.hbm %s18027_s7, 32 }
 0x5e0   : > { %p14293_p4 = scmp.ne.s32.totalorder %s11408_s16, %s14292_s21  ;;  %p14297_p9 = scmp.lt.s32.totalorder %s11408_s16, %s18027_s7 }
 0x5e1   : > { %p14298_p10 = scmp.lt.s32.totalorder %s14296_s29, %s14292_s21 }
 0x5e2   : > { %p14294_p7 = pnand %p14293_p4, %p14422_p5 }
 0x5e3   : > { %p14299_p11 = por %p14298_p10, %p14297_p9 }
 0x5e4   : > { %p14295_p8 = pneg %p14294_p7 }
 0x5e6   : > { %p14300_p12 = pnand %p14299_p11, %p14295_p8 }
 0x5e8   : > { %14303 = shalt.err (!%p14300_p12)
}
 0x5e9   : > { %14232 = dma.vmem_to_hbm [thread:$0]  (%p14422_p5), %s11411_s13, 16, %s11408_s16, %s11398_s17  }
 0x5ea PF: > { %p14238_p13 = scmp.ge.s32.totalorder %s14338_s27, 2  ;;  %s11422_s14 = sand.u32 1, %s14326_s24  }
 0x5eb   : > { %s11423_s15 = scalar_lea.sflag [#allocation8], %s11422_s14 }
 0x5ec   : > { %p14235_p0 = pnand %p14238_p13, %p14426_p6 }
 0x5ee   : > { %p14236_p1 = pneg %p14235_p0 }
 0x5f0   : > { %14321 = dma.done.wait (%p14236_p1), %s11423_s15, 16  }
 0x5f1   : > { %14323 = vsyncadd (%p14236_p1), %s11423_s15, 4294967280  ;;  %p17_p2 = scmp.ge.s32.totalorder %s14409_s30, 4   ;;  %s18571_s24 = smov %s14330_s25 }
 0x5f2   : > { %s18572_s25 = smov %s14334_s26  ;;  %s18573_s26 = smov %s14420_s10 }
 0x5f3   : > { %s18574_s27 = smov %s14409_s30  ;;  %19 = sbr.rel (!%p17_p2) target bundleno = 3 (0x3), region = 153 }
 0x5f8   :  { %11427 = vsyncpa [#allocation8], 1 }
 0x5f9   :  { %11429 = vsyncpa [#allocation8 + $0x1], 1 }

</bundles_post_ra>
